<compile_context>
chip_gen: v6e
topology: v6e:2x2x1
jax: 0.10.0
libtpu: 0.0.40
codegen_flags: <defaults>
</compile_context>

<pallas_src>
import functools

import numpy as np

import jax
import jax.numpy as jnp
from jax.experimental import pallas as pl
from jax.experimental.pallas import tpu as pltpu

GDIM = 32        # gender embedding dim (nn.Linear(1, 32))
ATTN_DIM = 32    # scaled-down AdaA attn_dim (original: 768)
ADJ_DIM = 32     # scaled-down Self_Attention_Adj attention size (original: 256)


# ------------------------------------------------------------------
# Dense / conv matmul kernel (bf16 MXU, fused bias + ReLU, M tiled)
# ------------------------------------------------------------------
def _dense_kernel(x_ref, w_ref, b_ref, o_ref, *, relu):
    y = jnp.dot(x_ref[...], w_ref[...], preferred_element_type=jnp.float32)
    y = y + b_ref[...]
    if relu:
        y = jnp.maximum(y, 0.0)
    o_ref[...] = y


def dense(x, w, bias=None, relu=False, block_m=256):
    """out = relu?((x @ w) + bias). Operands cast to bf16 (f32 accumulation); eval-mode
       BN is pre-folded into (w, bias) by the caller. M is tiled and marked 'parallel'."""
    M, K = x.shape
    N = w.shape[1]
    b = (jnp.zeros((1, N), jnp.float32) if bias is None
         else bias.reshape(1, N).astype(jnp.float32))
    xb = x.astype(jnp.bfloat16)
    wb = w.astype(jnp.bfloat16)
    tm = block_m if (M % block_m == 0 and M >= block_m) else M
    return pl.pallas_call(
        functools.partial(_dense_kernel, relu=relu),
        grid=(M // tm,),
        in_specs=[pl.BlockSpec((tm, K), lambda i: (i, 0)),
                  pl.BlockSpec((K, N), lambda i: (0, 0)),
                  pl.BlockSpec((1, N), lambda i: (0, 0))],
        out_specs=pl.BlockSpec((tm, N), lambda i: (i, 0)),
        out_shape=jax.ShapeDtypeStruct((M, N), jnp.float32),
        compiler_params=pltpu.CompilerParams(dimension_semantics=("parallel",)),
    )(xb, wb, b)


def conv2d(x, w, stride=1, padding=1, relu=False):
    """NHWC conv: im2col in glue + Pallas bf16 matmul with fused ReLU. w is PyTorch
       [Cout, Cin, kh, kw]."""
    B, H, W, Cin = x.shape
    Cout, _, kh, kw = w.shape
    Ho = (H + 2 * padding - kh) // stride + 1
    Wo = (W + 2 * padding - kw) // stride + 1
    xp = jnp.pad(x, ((0, 0), (padding, padding), (padding, padding), (0, 0)))
    cols = [xp[:, i:i + stride * Ho:stride, j:j + stride * Wo:stride, :]
            for i in range(kh) for j in range(kw)]
    col = jnp.concatenate(cols, axis=-1).reshape(B * Ho * Wo, kh * kw * Cin)
    wmat = jnp.transpose(w, (2, 3, 1, 0)).reshape(kh * kw * Cin, Cout)
    out = dense(col, wmat, relu=relu)
    return out.reshape(B, Ho, Wo, Cout)


def maxpool2(x):
    # glue: 2x2 / stride-2 max pool (stand-in for the ResNet stem maxpool), NHWC
    B, H, W, C = x.shape
    return x.reshape(B, H // 2, 2, W // 2, 2, C).max(axis=(2, 4))


# ------------------------------------------------------------------
# CBAM: one fused kernel per batch element
# ------------------------------------------------------------------
def _cbam_kernel(x_ref, w1_ref, w2_ref, ma_ref, mm_ref, xo_ref, at_ref):
    """Channel-attention MLP (+sigmoid gate) and spatial 3x3-conv attention, fully fused.
       The 3x3 spatial conv is applied as two precomputed [HW, HW] stencil matrices."""
    x = x_ref[0]                                            # [HW, C]
    avg_c = jnp.mean(x, axis=0, keepdims=True)              # [1, C]
    max_c = jnp.max(x, axis=0, keepdims=True)               # [1, C]
    pooled = jnp.concatenate([avg_c, max_c], axis=0)        # [2, C] -> shared MLP, one pass
    h = jnp.maximum(jnp.dot(pooled, w1_ref[...], preferred_element_type=jnp.float32), 0.0)
    a = jnp.dot(h, w2_ref[...], preferred_element_type=jnp.float32)    # [2, C]
    ca = jax.nn.sigmoid(jnp.sum(a, axis=0, keepdims=True))             # avg-branch + max-branch
    xc = x * ca                                             # channel-gated features
    s_avg = jnp.mean(xc, axis=-1, keepdims=True)            # [HW, 1]
    s_max = jnp.max(xc, axis=-1, keepdims=True)             # [HW, 1]
    logit = (jnp.dot(ma_ref[...], s_avg, preferred_element_type=jnp.float32)
             + jnp.dot(mm_ref[...], s_max, preferred_element_type=jnp.float32))
    sattn = jax.nn.sigmoid(logit)                           # [HW, 1]
    xo_ref[0] = xc * sattn
    at_ref[0] = sattn


def cbam(x, p):
    B, H, W, C = x.shape
    HW = H * W
    xt = x.reshape(B, HW, C)
    r = p['w1'].shape[1]
    xo, at = pl.pallas_call(
        _cbam_kernel,
        grid=(B,),
        in_specs=[pl.BlockSpec((1, HW, C), lambda b: (b, 0, 0)),
                  pl.BlockSpec((C, r), lambda b: (0, 0)),
                  pl.BlockSpec((r, C), lambda b: (0, 0)),
                  pl.BlockSpec((HW, HW), lambda b: (0, 0)),
                  pl.BlockSpec((HW, HW), lambda b: (0, 0))],
        out_specs=[pl.BlockSpec((1, HW, C), lambda b: (b, 0, 0)),
                   pl.BlockSpec((1, HW, 1), lambda b: (b, 0, 0))],
        out_shape=[jax.ShapeDtypeStruct((B, HW, C), jnp.float32),
                   jax.ShapeDtypeStruct((B, HW, 1), jnp.float32)],
        compiler_params=pltpu.CompilerParams(dimension_semantics=("parallel",)),
    )(xt, p['w1'], p['w2'], p['m_avg'], p['m_max'])
    return xo.reshape(B, H, W, C), at.reshape(B, 1, H, W)


# ------------------------------------------------------------------
# AdaA: one fused kernel per batch element (cls-row-only attention)
# ------------------------------------------------------------------
def _adaa_kernel(x_ref, g_ref, wqx_ref, wqg_ref, wkx_ref, wkg_ref, wvx_ref, wvg_ref,
                 gamma_ref, beta_ref, fc2_ref, xo_ref, cls_ref, at_ref, *, scale):
    """Only attn[:, 0, :] (cls query row) and feature_out[:, 0] are ever consumed, so
       q / scores / softmax / attn@v are computed for that single row: O(N*D)."""
    x = x_ref[0]                           # [HW, C] tokens ('b d h w -> b (h w) d')
    g = g_ref[0]                           # [1, GDIM]
    gamma = gamma_ref[...]                 # [1, D]
    beta = beta_ref[...]

    cls = jnp.mean(x, axis=0, keepdims=True)               # AdaptiveAvgPool2d(1)  [1, C]

    bf = lambda t: t.astype(jnp.bfloat16)
    xb, cb, gb = bf(x), bf(cls), bf(g)

    def proj(t, wx_ref, wg_ref):
        # Linear over [feat | gender] split into its two weight blocks -> ReLU -> LayerNorm
        p = (jnp.dot(t, bf(wx_ref[...]), preferred_element_type=jnp.float32)
             + jnp.dot(gb, bf(wg_ref[...]), preferred_element_type=jnp.float32))
        p = jnp.maximum(p, 0.0)
        mu = jnp.mean(p, axis=-1, keepdims=True)
        var = jnp.mean(jnp.square(p - mu), axis=-1, keepdims=True)
        return ((p - mu) * jax.lax.rsqrt(var + 1e-5)) * gamma + beta

    q = proj(cb, wqx_ref, wqg_ref)         # [1, D]   (cls row only)
    k_cls = proj(cb, wkx_ref, wkg_ref)     # [1, D]
    v_cls = proj(cb, wvx_ref, wvg_ref)     # [1, D]
    k_tok = proj(xb, wkx_ref, wkg_ref)     # [HW, D]
    v_tok = proj(xb, wvx_ref, wvg_ref)     # [HW, D]

    # scores of the cls query against [cls ; tokens]; softmax over that axis
    s_tok = jnp.sum(k_tok * q, axis=-1, keepdims=True) * scale     # [HW, 1]
    s_cls = jnp.sum(k_cls * q, axis=-1, keepdims=True) * scale     # [1, 1]
    m = jnp.maximum(jnp.max(s_tok, axis=0, keepdims=True), s_cls)  # [1, 1]
    e_tok = jnp.exp(s_tok - m)
    e_cls = jnp.exp(s_cls - m)
    inv = pl.reciprocal(jnp.sum(e_tok, axis=0, keepdims=True) + e_cls, approx=True)
    a_tok = e_tok * inv                    # [HW, 1]  == attn[0, 1:]
    a_cls = e_cls * inv                    # [1, 1]   == attn[0, 0]

    out = jnp.sum(a_tok * v_tok, axis=0, keepdims=True) + a_cls * v_cls     # [1, D]
    cls_tok = jnp.dot(out, fc2_ref[...], preferred_element_type=jnp.float32)  # fc2 (1x1 conv)

    xo_ref[0] = x * a_tok                  # attn * x (broadcast over channels)
    cls_ref[0] = cls_tok
    at_ref[0] = a_tok


def adaa(x, ge3, p):
    B, H, W, C = x.shape
    HW = H * W
    D = ATTN_DIM
    xt = x.reshape(B, HW, C)
    scale = float(D) ** (-0.5)
    xo, cls_feat, at = pl.pallas_call(
        functools.partial(_adaa_kernel, scale=scale),
        grid=(B,),
        in_specs=[pl.BlockSpec((1, HW, C), lambda b: (b, 0, 0)),
                  pl.BlockSpec((1, 1, GDIM), lambda b: (b, 0, 0)),
                  pl.BlockSpec((C, D), lambda b: (0, 0)),
                  pl.BlockSpec((GDIM, D), lambda b: (0, 0)),
                  pl.BlockSpec((C, D), lambda b: (0, 0)),
                  pl.BlockSpec((GDIM, D), lambda b: (0, 0)),
                  pl.BlockSpec((C, D), lambda b: (0, 0)),
                  pl.BlockSpec((GDIM, D), lambda b: (0, 0)),
                  pl.BlockSpec((1, D), lambda b: (0, 0)),
                  pl.BlockSpec((1, D), lambda b: (0, 0)),
                  pl.BlockSpec((D, C), lambda b: (0, 0))],
        out_specs=[pl.BlockSpec((1, HW, C), lambda b: (b, 0, 0)),
                   pl.BlockSpec((1, 1, C), lambda b: (b, 0, 0)),
                   pl.BlockSpec((1, HW, 1), lambda b: (b, 0, 0))],
        out_shape=[jax.ShapeDtypeStruct((B, HW, C), jnp.float32),
                   jax.ShapeDtypeStruct((B, 1, C), jnp.float32),
                   jax.ShapeDtypeStruct((B, HW, 1), jnp.float32)],
        compiler_params=pltpu.CompilerParams(dimension_semantics=("parallel",)),
    )(xt, ge3, p['wq_x'], p['wq_g'], p['wk_x'], p['wk_g'], p['wv_x'], p['wv_g'],
      p['gamma'], p['beta'], p['fc2_w'])
    return xo.reshape(B, H, W, C), cls_feat[:, 0, :], at.reshape(B, 1, H, W)


# ------------------------------------------------------------------
# Graph stage (Self_Attention_Adj + Graph_GCN stand-in), fused per batch
# ------------------------------------------------------------------
def _gcn_kernel(x_ref, wq_ref, wk_ref, wg_ref, o_ref):
    nf = x_ref[0]                                           # [HW, C]  nodes x features
    q = jnp.dot(nf, wq_ref[...], preferred_element_type=jnp.float32)
    k = jnp.dot(nf, wk_ref[...], preferred_element_type=jnp.float32)
    q = jnp.where(q > 0, q, 0.01 * q)                       # LeakyReLU
    k = jnp.where(k > 0, k, 0.01 * k)
    s = jax.lax.dot_general(q, k, (((1,), (1,)), ((), ())),
                            preferred_element_type=jnp.float32)        # [HW, HW]
    s = s - jnp.max(s, axis=-1, keepdims=True)
    e = jnp.exp(s)
    adj = e * pl.reciprocal(jnp.sum(e, axis=-1, keepdims=True), approx=True)
    hh = jnp.dot(adj, nf, preferred_element_type=jnp.float32)           # aggregate
    out = jnp.dot(hh, wg_ref[...], preferred_element_type=jnp.float32)  # GCN weight
    out = jnp.where(out > 0, out, 0.01 * out)                           # F.leaky_relu
    o_ref[0] = jnp.mean(out, axis=0, keepdims=True)          # adaptive_avg_pool over nodes


def gcn_stage(x, p):
    # TODO(synk): Self_Attention_Adj / Graph_GCN are not defined in the reference source;
    # a standard attention-adjacency + one-layer GCN + LeakyReLU + node-avg-pool is used.
    B, H, W, C = x.shape
    HW = H * W
    xt = x.reshape(B, HW, C)
    A = p['wq'].shape[1]
    gap = pl.pallas_call(
        _gcn_kernel,
        grid=(B,),
        in_specs=[pl.BlockSpec((1, HW, C), lambda b: (b, 0, 0)),
                  pl.BlockSpec((C, A), lambda b: (0, 0)),
                  pl.BlockSpec((C, A), lambda b: (0, 0)),
                  pl.BlockSpec((C, C), lambda b: (0, 0))],
        out_specs=pl.BlockSpec((1, 1, C), lambda b: (b, 0, 0)),
        out_shape=jax.ShapeDtypeStruct((B, 1, C), jnp.float32),
        compiler_params=pltpu.CompilerParams(dimension_semantics=("parallel",)),
    )(xt, p['wq'], p['wk'], p['wg'])
    return gap[:, 0, :]


# ------------------------------------------------------------------
# Fused heads
# ------------------------------------------------------------------
def _fc_head_kernel(x_ref, w1_ref, b1_ref, w2_ref, b2_ref, w3_ref, b3_ref, o_ref):
    h = jnp.maximum(jnp.dot(x_ref[...], w1_ref[...], preferred_element_type=jnp.float32)
                    + b1_ref[...], 0.0)
    h = jnp.maximum(jnp.dot(h, w2_ref[...], preferred_element_type=jnp.float32)
                    + b2_ref[...], 0.0)
    # final Linear(32 -> 1) as a VPU reduction (avoid an N=1 MXU pass)
    o_ref[...] = jnp.sum(h * w3_ref[...], axis=-1, keepdims=True) + b3_ref[...]


def fc_head(x, p):
    B = x.shape[0]
    return pl.pallas_call(
        _fc_head_kernel,
        out_shape=jax.ShapeDtypeStruct((B, 1), jnp.float32),
    )(x.astype(jnp.float32), p['w1'], p['b1'].reshape(1, -1),
      p['w2'], p['b2'].reshape(1, -1), p['w3_row'], p['b3'].reshape(1, 1))


def _emb_kernel(x_ref, w1_ref, b1_ref, w2_ref, b2_ref, o_ref):
    h = jnp.maximum(jnp.dot(x_ref[...], w1_ref[...], preferred_element_type=jnp.float32)
                    + b1_ref[...], 0.0)
    e = jnp.dot(h, w2_ref[...], preferred_element_type=jnp.float32) + b2_ref[...]
    n = jnp.sqrt(jnp.sum(e * e, axis=-1, keepdims=True))
    o_ref[...] = e / jnp.maximum(n, 1e-12)                  # F.normalize(dim=1)


def emb_head(x, p):
    B = x.shape[0]
    N = p['w2'].shape[1]
    return pl.pallas_call(
        _emb_kernel,
        out_shape=jax.ShapeDtypeStruct((B, N), jnp.float32),
    )(x.astype(jnp.float32), p['w1'], p['b1'].reshape(1, -1),
      p['w2'], p['b2'].reshape(1, -1))


# ------------------------------------------------------------------
# Parameters (deterministic, synthetic, scaled-down shapes; BN folded)
# ------------------------------------------------------------------
def _stencil_basis(H, W):
    """0/1 basis matrices for a 3x3 / stride-1 / pad-1 conv acting on a flattened HxW map."""
    HW = H * W
    basis = np.zeros((3, 3, HW, HW), np.float32)
    for di in range(3):
        for dj in range(3):
            for h in range(H):
                hs = h + di - 1
                if not (0 <= hs < H):
                    continue
                for w in range(W):
                    ws = w + dj - 1
                    if 0 <= ws < W:
                        basis[di, dj, h * W + w, hs * W + ws] = 1.0
    return jnp.asarray(basis)


def init_params(key):
    state = [key]

    def nxt():
        state[0], sub = jax.random.split(state[0])
        return sub

    def rnd(shape, s=0.1):
        return jax.random.normal(nxt(), shape, jnp.float32) * s

    def bn(n):
        # eval-mode BatchNorm folded to scale/shift (running_mean=0, running_var=1, eps=1e-5)
        gamma = 1.0 + rnd((n,), 0.05)
        beta = rnd((n,), 0.05)
        return gamma / jnp.sqrt(1.0 + 1e-5), beta

    P = {}
    # gender branch: Linear(1, 32) + BatchNorm1d(32) + ReLU (BN folded into w, b)
    gw, gb = rnd((1, GDIM), 0.5), rnd((GDIM,), 0.1)
    gs, gt = bn(GDIM)
    P['gender_w'] = gw * gs[None, :]
    P['gender_b'] = gb * gs + gt

    # TODO(synk): backbone ResNet stages are external constructor args; scaled stand-ins.
    P['b0_conv1'] = rnd((8, 1, 3, 3), 0.3)
    P['b0_conv2'] = rnd((16, 8, 3, 3), 0.15)
    P['b1_conv'] = rnd((32, 16, 3, 3), 0.1)
    P['b2_conv'] = rnd((64, 32, 3, 3), 0.08)
    P['b3_conv'] = rnd((128, 64, 3, 3), 0.06)

    def cbam_p(c, ratio, side):
        wsp = rnd((1, 2, 3, 3), 0.2)                        # spatial 3x3 conv, 2 -> 1
        basis = _stencil_basis(side, side)                  # [3, 3, HW, HW]
        return {'w1': rnd((c, c // ratio), 0.2),
                'w2': rnd((c // ratio, c), 0.2),
                'm_avg': jnp.tensordot(wsp[0, 0], basis, axes=2),   # [HW, HW]
                'm_max': jnp.tensordot(wsp[0, 1], basis, axes=2)}

    P['cbam0'] = cbam_p(16, 4, 16)
    P['cbam1'] = cbam_p(32, 4, 8)

    def adaa_p(c, d):
        # q/k/v Linear weights split into [feature | gender] row blocks
        return {'wq_x': rnd((c, d), 0.1), 'wq_g': rnd((GDIM, d), 0.1),
                'wk_x': rnd((c, d), 0.1), 'wk_g': rnd((GDIM, d), 0.1),
                'wv_x': rnd((c, d), 0.1), 'wv_g': rnd((GDIM, d), 0.1),
                'gamma': 1.0 + rnd((1, d), 0.05), 'beta': rnd((1, d), 0.05),
                'fc2_w': rnd((d, c), 0.1)}

    P['adaa0'] = adaa_p(64, ATTN_DIM)
    P['adaa1'] = adaa_p(128, ATTN_DIM)

    # graph stage (Self_Attention_Adj(2048, 256) / Graph_GCN(16, 2048, 2048), scaled down)
    P['gcn'] = {'wq': rnd((128, ADJ_DIM), 0.1),
                'wk': rnd((128, ADJ_DIM), 0.1),
                'wg': rnd((128, 128), 0.08)}

    # fc head: Linear->BN->ReLU->Linear->BN->ReLU->Linear(->1); BN folded into (w, b)
    w1, b1 = rnd((128 + GDIM, 64), 0.1), rnd((64,), 0.05)
    s1, t1 = bn(64)
    w2, b2 = rnd((64, 32), 0.1), rnd((32,), 0.05)
    s2, t2 = bn(32)
    P['fc'] = {'w1': w1 * s1[None, :], 'b1': b1 * s1 + t1,
               'w2': w2 * s2[None, :], 'b2': b2 * s2 + t2,
               'w3_row': rnd((32, 1), 0.1).T, 'b3': rnd((1,), 0.05)}

    # cls embedding heads (Linear -> ReLU -> Linear, then F.normalize)
    P['emb0'] = {'w1': rnd((64, 32), 0.1), 'b1': rnd((32,), 0.05),
                 'w2': rnd((32, 48), 0.1), 'b2': rnd((48,), 0.05)}
    P['emb1'] = {'w1': rnd((128, 32), 0.1), 'b1': rnd((32,), 0.05),
                 'w2': rnd((32, 48), 0.1), 'b2': rnd((48,), 0.05)}
    return P


# ------------------------------------------------------------------
# Full forward pass (Student_Contrast_Model_Pretrain_GCN.forward)
# ------------------------------------------------------------------
@jax.jit
def forward(P, image, gender):
    B = image.shape[0]
    # gender_encode = relu(BN(Linear(gender)))  (BN folded)
    ge = dense(gender, P['gender_w'], bias=P['gender_b'], relu=True)          # [B, 32]
    ge3 = ge.reshape(B, 1, GDIM)

    x = jnp.transpose(image, (0, 2, 3, 1))                                    # NHWC
    # backbone0 stand-in (stem conv + maxpool + layer1 stand-in)
    x = conv2d(x, P['b0_conv1'], stride=1, padding=1, relu=True)              # [B,32,32,8]
    x = maxpool2(x)                                                           # [B,16,16,8]
    x = conv2d(x, P['b0_conv2'], stride=1, padding=1, relu=True)              # [B,16,16,16]
    x0, attn0 = cbam(x, P['cbam0'])                                           # attn0 [B,1,16,16]

    x = conv2d(x0, P['b1_conv'], stride=2, padding=1, relu=True)              # [B,8,8,32]
    x1, attn1 = cbam(x, P['cbam1'])                                           # attn1 [B,1,8,8]

    x = conv2d(x1, P['b2_conv'], stride=1, padding=1, relu=True)              # [B,8,8,64]
    x2, cls2, attn2 = adaa(x, ge3, P['adaa0'])                                # attn2 [B,1,8,8]

    x = conv2d(x2, P['b3_conv'], stride=2, padding=1, relu=True)              # [B,4,4,128]
    x3, cls3, attn3 = adaa(x, ge3, P['adaa1'])                                # attn3 [B,1,4,4]

    # adjacency learning + GCN + LeakyReLU + adaptive_avg_pool, then cat with gender
    gap = gcn_stage(x3, P['gcn'])                                             # [B, 128]
    feat = jnp.concatenate([gap, ge], axis=1)                                 # [B, 160]

    c2 = emb_head(cls2, P['emb0'])                                            # [B, 48]
    c3 = emb_head(cls3, P['emb1'])                                            # [B, 48]
    y = fc_head(feat, P['fc'])                                                # [B, 1]
    return y, c2, c3, attn0, attn1, attn2, attn3


if __name__ == "__main__":
    key = jax.random.PRNGKey(0)
    pkey, ikey, gkey = jax.random.split(key, 3)
    params = init_params(pkey)
    image = jax.random.normal(ikey, (2, 1, 32, 32), jnp.float32)              # NCHW, 1-channel
    gender = (jax.random.uniform(gkey, (2, 1)) > 0.5).astype(jnp.float32)     # [B, 1]

    outs = forward(params, image, gender)
    outs = jax.block_until_ready(outs)
    y, c2, c3, a0, a1, a2, a3 = outs

    assert y.shape == (2, 1)
    assert c2.shape == (2, 48) and c3.shape == (2, 48)
    assert a0.shape == (2, 1, 16, 16) and a1.shape == (2, 1, 8, 8)
    assert a2.shape == (2, 1, 8, 8) and a3.shape == (2, 1, 4, 4)
    assert all(bool(jnp.all(jnp.isfinite(o))) for o in outs)
    print("KERNEL_OK")
</pallas_src>

<mosaic_0001>
module attributes {stable_mosaic.version = 11 : i64} {
  func.func @_dense_kernel(%arg0: i32, %arg1: memref<256x9xbf16, #tpu.memory_space<vmem>>, %arg2: memref<9x8xbf16, #tpu.memory_space<vmem>>, %arg3: memref<1x8xf32, #tpu.memory_space<vmem>>, %arg4: memref<256x8xf32, #tpu.memory_space<vmem>>) attributes {dimension_semantics = [#tpu.dimension_semantics<parallel>], iteration_bounds = array<i64: 8>, scalar_prefetch = 0 : i64, scratch_operands = 0 : i64, tpu.core_type = #tpu.core_type<tc>, window_params = [{transform_indices = @transform_0, window_bounds = array<i64: 256, 9>}, {pipeline_mode = #tpu.pipeline_mode<synchronous>, transform_indices = @transform_1, window_bounds = array<i64: 9, 8>}, {pipeline_mode = #tpu.pipeline_mode<synchronous>, transform_indices = @transform_2, window_bounds = array<i64: 1, 8>}, {transform_indices = @transform_3, window_bounds = array<i64: 256, 8>}]} {
    %c0 = arith.constant 0 : index
    %c0_0 = arith.constant 0 : index
    %0 = vector.load %arg1[%c0, %c0_0] : memref<256x9xbf16, #tpu.memory_space<vmem>>, vector<256x9xbf16>
    %c0_1 = arith.constant 0 : index
    %c0_2 = arith.constant 0 : index
    %1 = vector.load %arg2[%c0_1, %c0_2] : memref<9x8xbf16, #tpu.memory_space<vmem>>, vector<9x8xbf16>
    %cst = arith.constant dense<0.000000e+00> : vector<256x8xf32>
    %2 = tpu.matmul %0, %1, %cst {dimension_numbers = #tpu.dot_dimension_numbers<[1], [0], [0], [1], [0, 0, 1, 1], [], []>} : vector<256x9xbf16>, vector<9x8xbf16>, vector<256x8xf32> -> vector<256x8xf32>
    %c0_3 = arith.constant 0 : index
    %c0_4 = arith.constant 0 : index
    %3 = vector.load %arg3[%c0_3, %c0_4] : memref<1x8xf32, #tpu.memory_space<vmem>>, vector<1x8xf32>
    %4 = vector.broadcast %3 : vector<1x8xf32> to vector<256x8xf32>
    %5 = arith.addf %2, %4 : vector<256x8xf32>
    %cst_5 = arith.constant 0.000000e+00 : f32
    %6 = vector.broadcast %cst_5 : f32 to vector<256x8xf32>
    %7 = arith.maximumf %5, %6 : vector<256x8xf32>
    %c0_6 = arith.constant 0 : index
    %c0_7 = arith.constant 0 : index
    %8 = vector.load %arg4[%c0_6, %c0_7] : memref<256x8xf32, #tpu.memory_space<vmem>>, vector<256x8xf32>
    tpu.vector_store %arg4[%c0_6, %c0_7], %7 {strides = array<i32>} : memref<256x8xf32, #tpu.memory_space<vmem>>, vector<256x8xf32>,
    return
  }
  func.func @transform_0(%arg0: i32) -> (i32, i32) {
    %c0_i32 = arith.constant 0 : i32
    %c0_i32_0 = arith.constant 0 : i32
    return %arg0, %c0_i32 : i32, i32
  }
  func.func @transform_1(%arg0: i32) -> (i32, i32) {
    %c0_i32 = arith.constant 0 : i32
    %c0_i32_0 = arith.constant 0 : i32
    %c0_i32_1 = arith.constant 0 : i32
    return %c0_i32, %c0_i32_0 : i32, i32
  }
  func.func @transform_2(%arg0: i32) -> (i32, i32) {
    %c0_i32 = arith.constant 0 : i32
    %c0_i32_0 = arith.constant 0 : i32
    %c0_i32_1 = arith.constant 0 : i32
    return %c0_i32, %c0_i32_0 : i32, i32
  }
  func.func @transform_3(%arg0: i32) -> (i32, i32) {
    %c0_i32 = arith.constant 0 : i32
    %c0_i32_0 = arith.constant 0 : i32
    return %arg0, %c0_i32 : i32, i32
  }
}

module attributes {stable_mosaic.version = 11 : i64} {
  func.func @_dense_kernel(%arg0: i32, %arg1: memref<256x72xbf16, #tpu.memory_space<vmem>>, %arg2: memref<72x16xbf16, #tpu.memory_space<vmem>>, %arg3: memref<1x16xf32, #tpu.memory_space<vmem>>, %arg4: memref<256x16xf32, #tpu.memory_space<vmem>>) attributes {dimension_semantics = [#tpu.dimension_semantics<parallel>], iteration_bounds = array<i64: 2>, scalar_prefetch = 0 : i64, scratch_operands = 0 : i64, tpu.core_type = #tpu.core_type<tc>, window_params = [{transform_indices = @transform_0, window_bounds = array<i64: 256, 72>}, {pipeline_mode = #tpu.pipeline_mode<synchronous>, transform_indices = @transform_1, window_bounds = array<i64: 72, 16>}, {pipeline_mode = #tpu.pipeline_mode<synchronous>, transform_indices = @transform_2, window_bounds = array<i64: 1, 16>}, {transform_indices = @transform_3, window_bounds = array<i64: 256, 16>}]} {
    %c0 = arith.constant 0 : index
    %c0_0 = arith.constant 0 : index
    %0 = vector.load %arg1[%c0, %c0_0] : memref<256x72xbf16, #tpu.memory_space<vmem>>, vector<256x72xbf16>
    %c0_1 = arith.constant 0 : index
    %c0_2 = arith.constant 0 : index
    %1 = vector.load %arg2[%c0_1, %c0_2] : memref<72x16xbf16, #tpu.memory_space<vmem>>, vector<72x16xbf16>
    %cst = arith.constant dense<0.000000e+00> : vector<256x16xf32>
    %2 = tpu.matmul %0, %1, %cst {dimension_numbers = #tpu.dot_dimension_numbers<[1], [0], [0], [1], [0, 0, 1, 1], [], []>} : vector<256x72xbf16>, vector<72x16xbf16>, vector<256x16xf32> -> vector<256x16xf32>
    %c0_3 = arith.constant 0 : index
    %c0_4 = arith.constant 0 : index
    %3 = vector.load %arg3[%c0_3, %c0_4] : memref<1x16xf32, #tpu.memory_space<vmem>>, vector<1x16xf32>
    %4 = vector.broadcast %3 : vector<1x16xf32> to vector<256x16xf32>
    %5 = arith.addf %2, %4 : vector<256x16xf32>
    %cst_5 = arith.constant 0.000000e+00 : f32
    %6 = vector.broadcast %cst_5 : f32 to vector<256x16xf32>
    %7 = arith.maximumf %5, %6 : vector<256x16xf32>
    %c0_6 = arith.constant 0 : index
    %c0_7 = arith.constant 0 : index
    %8 = vector.load %arg4[%c0_6, %c0_7] : memref<256x16xf32, #tpu.memory_space<vmem>>, vector<256x16xf32>
    tpu.vector_store %arg4[%c0_6, %c0_7], %7 {strides = array<i32>} : memref<256x16xf32, #tpu.memory_space<vmem>>, vector<256x16xf32>,
    return
  }
  func.func @transform_0(%arg0: i32) -> (i32, i32) {
    %c0_i32 = arith.constant 0 : i32
    %c0_i32_0 = arith.constant 0 : i32
    return %arg0, %c0_i32 : i32, i32
  }
  func.func @transform_1(%arg0: i32) -> (i32, i32) {
    %c0_i32 = arith.constant 0 : i32
    %c0_i32_0 = arith.constant 0 : i32
    %c0_i32_1 = arith.constant 0 : i32
    return %c0_i32, %c0_i32_0 : i32, i32
  }
  func.func @transform_2(%arg0: i32) -> (i32, i32) {
    %c0_i32 = arith.constant 0 : i32
    %c0_i32_0 = arith.constant 0 : i32
    %c0_i32_1 = arith.constant 0 : i32
    return %c0_i32, %c0_i32_0 : i32, i32
  }
  func.func @transform_3(%arg0: i32) -> (i32, i32) {
    %c0_i32 = arith.constant 0 : i32
    %c0_i32_0 = arith.constant 0 : i32
    return %arg0, %c0_i32 : i32, i32
  }
}

module attributes {stable_mosaic.version = 11 : i64} {
  func.func @_cbam_kernel(%arg0: i32, %arg1: memref<1x256x16xf32, #tpu.memory_space<vmem>>, %arg2: memref<16x4xf32, #tpu.memory_space<vmem>>, %arg3: memref<4x16xf32, #tpu.memory_space<vmem>>, %arg4: memref<256x256xf32, #tpu.memory_space<vmem>>, %arg5: memref<256x256xf32, #tpu.memory_space<vmem>>, %arg6: memref<1x256x16xf32, #tpu.memory_space<vmem>>, %arg7: memref<1x256x1xf32, #tpu.memory_space<vmem>>) attributes {dimension_semantics = [#tpu.dimension_semantics<parallel>], iteration_bounds = array<i64: 2>, scalar_prefetch = 0 : i64, scratch_operands = 0 : i64, tpu.core_type = #tpu.core_type<tc>, window_params = [{transform_indices = @transform_0, window_bounds = array<i64: 1, 256, 16>}, {pipeline_mode = #tpu.pipeline_mode<synchronous>, transform_indices = @transform_1, window_bounds = array<i64: 16, 4>}, {pipeline_mode = #tpu.pipeline_mode<synchronous>, transform_indices = @transform_2, window_bounds = array<i64: 4, 16>}, {pipeline_mode = #tpu.pipeline_mode<synchronous>, transform_indices = @transform_3, window_bounds = array<i64: 256, 256>}, {pipeline_mode = #tpu.pipeline_mode<synchronous>, transform_indices = @transform_4, window_bounds = array<i64: 256, 256>}, {transform_indices = @transform_5, window_bounds = array<i64: 1, 256, 16>}, {transform_indices = @transform_6, window_bounds = array<i64: 1, 256, 1>}]} {
    %c0 = arith.constant 0 : index
    %c0_0 = arith.constant 0 : index
    %c0_1 = arith.constant 0 : index
    %0 = vector.load %arg1[%c0, %c0_0, %c0_1] : memref<1x256x16xf32, #tpu.memory_space<vmem>>, vector<1x256x16xf32>
    %1 = vector.shape_cast %0 : vector<1x256x16xf32> to vector<256x16xf32>
    %cst = arith.constant dense<0.000000e+00> : vector<16xf32>
    %2 = vector.multi_reduction <add>, %1, %cst [0] : vector<256x16xf32> to vector<16xf32>
    %3 = vector.shape_cast %2 : vector<16xf32> to vector<1x16xf32>
    %cst_2 = arith.constant 2.560000e+02 : f32
    %4 = vector.broadcast %cst_2 : f32 to vector<1x16xf32>
    %5 = arith.divf %3, %4 : vector<1x16xf32>
    %cst_3 = arith.constant dense<0xFF800000> : vector<16xf32>
    %6 = vector.multi_reduction <maximumf>, %1, %cst_3 [0] : vector<256x16xf32> to vector<16xf32>
    %7 = vector.shape_cast %6 : vector<16xf32> to vector<1x16xf32>
    %8 = tpu.concatenate %5, %7 in 0 : vector<1x16xf32>, vector<1x16xf32> -> vector<2x16xf32>
    %c0_4 = arith.constant 0 : index
    %c0_5 = arith.constant 0 : index
    %9 = vector.load %arg2[%c0_4, %c0_5] : memref<16x4xf32, #tpu.memory_space<vmem>>, vector<16x4xf32>
    %cst_6 = arith.constant dense<0.000000e+00> : vector<2x4xf32>
    %10 = tpu.matmul %8, %9, %cst_6 {dimension_numbers = #tpu.dot_dimension_numbers<[1], [0], [0], [1], [0, 0, 1, 1], [], []>} : vector<2x16xf32>, vector<16x4xf32>, vector<2x4xf32> -> vector<2x4xf32>
    %cst_7 = arith.constant 0.000000e+00 : f32
    %11 = vector.broadcast %cst_7 : f32 to vector<2x4xf32>
    %12 = arith.maximumf %10, %11 : vector<2x4xf32>
    %c0_8 = arith.constant 0 : index
    %c0_9 = arith.constant 0 : index
    %13 = vector.load %arg3[%c0_8, %c0_9] : memref<4x16xf32, #tpu.memory_space<vmem>>, vector<4x16xf32>
    %cst_10 = arith.constant dense<0.000000e+00> : vector<2x16xf32>
    %14 = tpu.matmul %12, %13, %cst_10 {dimension_numbers = #tpu.dot_dimension_numbers<[1], [0], [0], [1], [0, 0, 1, 1], [], []>} : vector<2x4xf32>, vector<4x16xf32>, vector<2x16xf32> -> vector<2x16xf32>
    %cst_11 = arith.constant dense<0.000000e+00> : vector<16xf32>
    %15 = vector.multi_reduction <add>, %14, %cst_11 [0] : vector<2x16xf32> to vector<16xf32>
    %16 = vector.shape_cast %15 : vector<16xf32> to vector<1x16xf32>
    %17 = arith.negf %16 : vector<1x16xf32>
    %18 = math.exp %17 : vector<1x16xf32>
    %cst_12 = arith.constant 1.000000e+00 : f32
    %19 = vector.broadcast %cst_12 : f32 to vector<1x16xf32>
    %20 = arith.addf %19, %18 : vector<1x16xf32>
    %21 = arith.divf %19, %20 : vector<1x16xf32>
    %22 = vector.broadcast %21 : vector<1x16xf32> to vector<256x16xf32>
    %23 = arith.mulf %1, %22 : vector<256x16xf32>
    %cst_13 = arith.constant dense<0.000000e+00> : vector<256xf32>
    %24 = vector.multi_reduction <add>, %23, %cst_13 [1] : vector<256x16xf32> to vector<256xf32>
    %25 = vector.shape_cast %24 : vector<256xf32> to vector<256x1xf32>
    %cst_14 = arith.constant 1.600000e+01 : f32
    %26 = vector.broadcast %cst_14 : f32 to vector<256x1xf32>
    %27 = arith.divf %25, %26 : vector<256x1xf32>
    %cst_15 = arith.constant dense<0xFF800000> : vector<256xf32>
    %28 = vector.multi_reduction <maximumf>, %23, %cst_15 [1] : vector<256x16xf32> to vector<256xf32>
    %29 = vector.shape_cast %28 : vector<256xf32> to vector<256x1xf32>
    %c0_16 = arith.constant 0 : index
    %c0_17 = arith.constant 0 : index
    %30 = vector.load %arg4[%c0_16, %c0_17] : memref<256x256xf32, #tpu.memory_space<vmem>>, vector<256x256xf32>
    %cst_18 = arith.constant dense<0.000000e+00> : vector<256x1xf32>
    %31 = tpu.matmul %30, %27, %cst_18 {dimension_numbers = #tpu.dot_dimension_numbers<[1], [0], [0], [1], [0, 0, 1, 1], [], []>} : vector<256x256xf32>, vector<256x1xf32>, vector<256x1xf32> -> vector<256x1xf32>
    %c0_19 = arith.constant 0 : index
    %c0_20 = arith.constant 0 : index
    %32 = vector.load %arg5[%c0_19, %c0_20] : memref<256x256xf32, #tpu.memory_space<vmem>>, vector<256x256xf32>
    %cst_21 = arith.constant dense<0.000000e+00> : vector<256x1xf32>
    %33 = tpu.matmul %32, %29, %cst_21 {dimension_numbers = #tpu.dot_dimension_numbers<[1], [0], [0], [1], [0, 0, 1, 1], [], []>} : vector<256x256xf32>, vector<256x1xf32>, vector<256x1xf32> -> vector<256x1xf32>
    %34 = arith.addf %31, %33 : vector<256x1xf32>
    %35 = arith.negf %34 : vector<256x1xf32>
    %36 = math.exp %35 : vector<256x1xf32>
    %cst_22 = arith.constant 1.000000e+00 : f32
    %37 = vector.broadcast %cst_22 : f32 to vector<256x1xf32>
    %38 = arith.addf %37, %36 : vector<256x1xf32>
    %39 = arith.divf %37, %38 : vector<256x1xf32>
    %40 = vector.broadcast %39 : vector<256x1xf32> to vector<256x16xf32>
    %41 = arith.mulf %23, %40 : vector<256x16xf32>
    %c0_23 = arith.constant 0 : index
    %c0_24 = arith.constant 0 : index
    %c0_25 = arith.constant 0 : index
    %42 = vector.load %arg6[%c0_23, %c0_24, %c0_25] : memref<1x256x16xf32, #tpu.memory_space<vmem>>, vector<1x256x16xf32>
    %43 = vector.shape_cast %42 : vector<1x256x16xf32> to vector<256x16xf32>
    %44 = vector.shape_cast %41 : vector<256x16xf32> to vector<1x256x16xf32>
    tpu.vector_store %arg6[%c0_23, %c0_24, %c0_25], %44 {strides = array<i32>} : memref<1x256x16xf32, #tpu.memory_space<vmem>>, vector<1x256x16xf32>,
    %c0_26 = arith.constant 0 : index
    %c0_27 = arith.constant 0 : index
    %c0_28 = arith.constant 0 : index
    %45 = vector.load %arg7[%c0_26, %c0_27, %c0_28] : memref<1x256x1xf32, #tpu.memory_space<vmem>>, vector<1x256x1xf32>
    %46 = vector.shape_cast %45 : vector<1x256x1xf32> to vector<256x1xf32>
    %47 = vector.shape_cast %39 : vector<256x1xf32> to vector<1x256x1xf32>
    tpu.vector_store %arg7[%c0_26, %c0_27, %c0_28], %47 {strides = array<i32>} : memref<1x256x1xf32, #tpu.memory_space<vmem>>, vector<1x256x1xf32>,
    return
  }
  func.func @transform_0(%arg0: i32) -> (i32, i32, i32) {
    %c0_i32 = arith.constant 0 : i32
    %c0_i32_0 = arith.constant 0 : i32
    %c0_i32_1 = arith.constant 0 : i32
    return %arg0, %c0_i32, %c0_i32_0 : i32, i32, i32
  }
  func.func @transform_1(%arg0: i32) -> (i32, i32) {
    %c0_i32 = arith.constant 0 : i32
    %c0_i32_0 = arith.constant 0 : i32
    %c0_i32_1 = arith.constant 0 : i32
    return %c0_i32, %c0_i32_0 : i32, i32
  }
  func.func @transform_2(%arg0: i32) -> (i32, i32) {
    %c0_i32 = arith.constant 0 : i32
    %c0_i32_0 = arith.constant 0 : i32
    %c0_i32_1 = arith.constant 0 : i32
    return %c0_i32, %c0_i32_0 : i32, i32
  }
  func.func @transform_3(%arg0: i32) -> (i32, i32) {
    %c0_i32 = arith.constant 0 : i32
    %c0_i32_0 = arith.constant 0 : i32
    %c0_i32_1 = arith.constant 0 : i32
    return %c0_i32, %c0_i32_0 : i32, i32
  }
  func.func @transform_4(%arg0: i32) -> (i32, i32) {
    %c0_i32 = arith.constant 0 : i32
    %c0_i32_0 = arith.constant 0 : i32
    %c0_i32_1 = arith.constant 0 : i32
    return %c0_i32, %c0_i32_0 : i32, i32
  }
  func.func @transform_5(%arg0: i32) -> (i32, i32, i32) {
    %c0_i32 = arith.constant 0 : i32
    %c0_i32_0 = arith.constant 0 : i32
    %c0_i32_1 = arith.constant 0 : i32
    return %arg0, %c0_i32, %c0_i32_0 : i32, i32, i32
  }
  func.func @transform_6(%arg0: i32) -> (i32, i32, i32) {
    %c0_i32 = arith.constant 0 : i32
    %c0_i32_0 = arith.constant 0 : i32
    %c0_i32_1 = arith.constant 0 : i32
    return %arg0, %c0_i32, %c0_i32_0 : i32, i32, i32
  }
}

module attributes {stable_mosaic.version = 11 : i64} {
  func.func @_dense_kernel(%arg0: i32, %arg1: memref<128x144xbf16, #tpu.memory_space<vmem>>, %arg2: memref<144x32xbf16, #tpu.memory_space<vmem>>, %arg3: memref<1x32xf32, #tpu.memory_space<vmem>>, %arg4: memref<128x32xf32, #tpu.memory_space<vmem>>) attributes {dimension_semantics = [#tpu.dimension_semantics<parallel>], iteration_bounds = array<i64: 1>, scalar_prefetch = 0 : i64, scratch_operands = 0 : i64, tpu.core_type = #tpu.core_type<tc>, window_params = [{transform_indices = @transform_0, window_bounds = array<i64: 128, 144>}, {pipeline_mode = #tpu.pipeline_mode<synchronous>, transform_indices = @transform_1, window_bounds = array<i64: 144, 32>}, {pipeline_mode = #tpu.pipeline_mode<synchronous>, transform_indices = @transform_2, window_bounds = array<i64: 1, 32>}, {transform_indices = @transform_3, window_bounds = array<i64: 128, 32>}]} {
    %c0 = arith.constant 0 : index
    %c0_0 = arith.constant 0 : index
    %0 = vector.load %arg1[%c0, %c0_0] : memref<128x144xbf16, #tpu.memory_space<vmem>>, vector<128x144xbf16>
    %c0_1 = arith.constant 0 : index
    %c0_2 = arith.constant 0 : index
    %1 = vector.load %arg2[%c0_1, %c0_2] : memref<144x32xbf16, #tpu.memory_space<vmem>>, vector<144x32xbf16>
    %cst = arith.constant dense<0.000000e+00> : vector<128x32xf32>
    %2 = tpu.matmul %0, %1, %cst {dimension_numbers = #tpu.dot_dimension_numbers<[1], [0], [0], [1], [0, 0, 1, 1], [], []>} : vector<128x144xbf16>, vector<144x32xbf16>, vector<128x32xf32> -> vector<128x32xf32>
    %c0_3 = arith.constant 0 : index
    %c0_4 = arith.constant 0 : index
    %3 = vector.load %arg3[%c0_3, %c0_4] : memref<1x32xf32, #tpu.memory_space<vmem>>, vector<1x32xf32>
    %4 = vector.broadcast %3 : vector<1x32xf32> to vector<128x32xf32>
    %5 = arith.addf %2, %4 : vector<128x32xf32>
    %cst_5 = arith.constant 0.000000e+00 : f32
    %6 = vector.broadcast %cst_5 : f32 to vector<128x32xf32>
    %7 = arith.maximumf %5, %6 : vector<128x32xf32>
    %c0_6 = arith.constant 0 : index
    %c0_7 = arith.constant 0 : index
    %8 = vector.load %arg4[%c0_6, %c0_7] : memref<128x32xf32, #tpu.memory_space<vmem>>, vector<128x32xf32>
    tpu.vector_store %arg4[%c0_6, %c0_7], %7 {strides = array<i32>} : memref<128x32xf32, #tpu.memory_space<vmem>>, vector<128x32xf32>,
    return
  }
  func.func @transform_0(%arg0: i32) -> (i32, i32) {
    %c0_i32 = arith.constant 0 : i32
    %c0_i32_0 = arith.constant 0 : i32
    return %arg0, %c0_i32 : i32, i32
  }
  func.func @transform_1(%arg0: i32) -> (i32, i32) {
    %c0_i32 = arith.constant 0 : i32
    %c0_i32_0 = arith.constant 0 : i32
    %c0_i32_1 = arith.constant 0 : i32
    return %c0_i32, %c0_i32_0 : i32, i32
  }
  func.func @transform_2(%arg0: i32) -> (i32, i32) {
    %c0_i32 = arith.constant 0 : i32
    %c0_i32_0 = arith.constant 0 : i32
    %c0_i32_1 = arith.constant 0 : i32
    return %c0_i32, %c0_i32_0 : i32, i32
  }
  func.func @transform_3(%arg0: i32) -> (i32, i32) {
    %c0_i32 = arith.constant 0 : i32
    %c0_i32_0 = arith.constant 0 : i32
    return %arg0, %c0_i32 : i32, i32
  }
}

module attributes {stable_mosaic.version = 11 : i64} {
  func.func @_cbam_kernel(%arg0: i32, %arg1: memref<1x64x32xf32, #tpu.memory_space<vmem>>, %arg2: memref<32x8xf32, #tpu.memory_space<vmem>>, %arg3: memref<8x32xf32, #tpu.memory_space<vmem>>, %arg4: memref<64x64xf32, #tpu.memory_space<vmem>>, %arg5: memref<64x64xf32, #tpu.memory_space<vmem>>, %arg6: memref<1x64x32xf32, #tpu.memory_space<vmem>>, %arg7: memref<1x64x1xf32, #tpu.memory_space<vmem>>) attributes {dimension_semantics = [#tpu.dimension_semantics<parallel>], iteration_bounds = array<i64: 2>, scalar_prefetch = 0 : i64, scratch_operands = 0 : i64, tpu.core_type = #tpu.core_type<tc>, window_params = [{transform_indices = @transform_0, window_bounds = array<i64: 1, 64, 32>}, {pipeline_mode = #tpu.pipeline_mode<synchronous>, transform_indices = @transform_1, window_bounds = array<i64: 32, 8>}, {pipeline_mode = #tpu.pipeline_mode<synchronous>, transform_indices = @transform_2, window_bounds = array<i64: 8, 32>}, {pipeline_mode = #tpu.pipeline_mode<synchronous>, transform_indices = @transform_3, window_bounds = array<i64: 64, 64>}, {pipeline_mode = #tpu.pipeline_mode<synchronous>, transform_indices = @transform_4, window_bounds = array<i64: 64, 64>}, {transform_indices = @transform_5, window_bounds = array<i64: 1, 64, 32>}, {transform_indices = @transform_6, window_bounds = array<i64: 1, 64, 1>}]} {
    %c0 = arith.constant 0 : index
    %c0_0 = arith.constant 0 : index
    %c0_1 = arith.constant 0 : index
    %0 = vector.load %arg1[%c0, %c0_0, %c0_1] : memref<1x64x32xf32, #tpu.memory_space<vmem>>, vector<1x64x32xf32>
    %1 = vector.shape_cast %0 : vector<1x64x32xf32> to vector<64x32xf32>
    %cst = arith.constant dense<0.000000e+00> : vector<32xf32>
    %2 = vector.multi_reduction <add>, %1, %cst [0] : vector<64x32xf32> to vector<32xf32>
    %3 = vector.shape_cast %2 : vector<32xf32> to vector<1x32xf32>
    %cst_2 = arith.constant 6.400000e+01 : f32
    %4 = vector.broadcast %cst_2 : f32 to vector<1x32xf32>
    %5 = arith.divf %3, %4 : vector<1x32xf32>
    %cst_3 = arith.constant dense<0xFF800000> : vector<32xf32>
    %6 = vector.multi_reduction <maximumf>, %1, %cst_3 [0] : vector<64x32xf32> to vector<32xf32>
    %7 = vector.shape_cast %6 : vector<32xf32> to vector<1x32xf32>
    %8 = tpu.concatenate %5, %7 in 0 : vector<1x32xf32>, vector<1x32xf32> -> vector<2x32xf32>
    %c0_4 = arith.constant 0 : index
    %c0_5 = arith.constant 0 : index
    %9 = vector.load %arg2[%c0_4, %c0_5] : memref<32x8xf32, #tpu.memory_space<vmem>>, vector<32x8xf32>
    %cst_6 = arith.constant dense<0.000000e+00> : vector<2x8xf32>
    %10 = tpu.matmul %8, %9, %cst_6 {dimension_numbers = #tpu.dot_dimension_numbers<[1], [0], [0], [1], [0, 0, 1, 1], [], []>} : vector<2x32xf32>, vector<32x8xf32>, vector<2x8xf32> -> vector<2x8xf32>
    %cst_7 = arith.constant 0.000000e+00 : f32
    %11 = vector.broadcast %cst_7 : f32 to vector<2x8xf32>
    %12 = arith.maximumf %10, %11 : vector<2x8xf32>
    %c0_8 = arith.constant 0 : index
    %c0_9 = arith.constant 0 : index
    %13 = vector.load %arg3[%c0_8, %c0_9] : memref<8x32xf32, #tpu.memory_space<vmem>>, vector<8x32xf32>
    %cst_10 = arith.constant dense<0.000000e+00> : vector<2x32xf32>
    %14 = tpu.matmul %12, %13, %cst_10 {dimension_numbers = #tpu.dot_dimension_numbers<[1], [0], [0], [1], [0, 0, 1, 1], [], []>} : vector<2x8xf32>, vector<8x32xf32>, vector<2x32xf32> -> vector<2x32xf32>
    %cst_11 = arith.constant dense<0.000000e+00> : vector<32xf32>
    %15 = vector.multi_reduction <add>, %14, %cst_11 [0] : vector<2x32xf32> to vector<32xf32>
    %16 = vector.shape_cast %15 : vector<32xf32> to vector<1x32xf32>
    %17 = arith.negf %16 : vector<1x32xf32>
    %18 = math.exp %17 : vector<1x32xf32>
    %cst_12 = arith.constant 1.000000e+00 : f32
    %19 = vector.broadcast %cst_12 : f32 to vector<1x32xf32>
    %20 = arith.addf %19, %18 : vector<1x32xf32>
    %21 = arith.divf %19, %20 : vector<1x32xf32>
    %22 = vector.broadcast %21 : vector<1x32xf32> to vector<64x32xf32>
    %23 = arith.mulf %1, %22 : vector<64x32xf32>
    %cst_13 = arith.constant dense<0.000000e+00> : vector<64xf32>
    %24 = vector.multi_reduction <add>, %23, %cst_13 [1] : vector<64x32xf32> to vector<64xf32>
    %25 = vector.shape_cast %24 : vector<64xf32> to vector<64x1xf32>
    %cst_14 = arith.constant 3.200000e+01 : f32
    %26 = vector.broadcast %cst_14 : f32 to vector<64x1xf32>
    %27 = arith.divf %25, %26 : vector<64x1xf32>
    %cst_15 = arith.constant dense<0xFF800000> : vector<64xf32>
    %28 = vector.multi_reduction <maximumf>, %23, %cst_15 [1] : vector<64x32xf32> to vector<64xf32>
    %29 = vector.shape_cast %28 : vector<64xf32> to vector<64x1xf32>
    %c0_16 = arith.constant 0 : index
    %c0_17 = arith.constant 0 : index
    %30 = vector.load %arg4[%c0_16, %c0_17] : memref<64x64xf32, #tpu.memory_space<vmem>>, vector<64x64xf32>
    %cst_18 = arith.constant dense<0.000000e+00> : vector<64x1xf32>
    %31 = tpu.matmul %30, %27, %cst_18 {dimension_numbers = #tpu.dot_dimension_numbers<[1], [0], [0], [1], [0, 0, 1, 1], [], []>} : vector<64x64xf32>, vector<64x1xf32>, vector<64x1xf32> -> vector<64x1xf32>
    %c0_19 = arith.constant 0 : index
    %c0_20 = arith.constant 0 : index
    %32 = vector.load %arg5[%c0_19, %c0_20] : memref<64x64xf32, #tpu.memory_space<vmem>>, vector<64x64xf32>
    %cst_21 = arith.constant dense<0.000000e+00> : vector<64x1xf32>
    %33 = tpu.matmul %32, %29, %cst_21 {dimension_numbers = #tpu.dot_dimension_numbers<[1], [0], [0], [1], [0, 0, 1, 1], [], []>} : vector<64x64xf32>, vector<64x1xf32>, vector<64x1xf32> -> vector<64x1xf32>
    %34 = arith.addf %31, %33 : vector<64x1xf32>
    %35 = arith.negf %34 : vector<64x1xf32>
    %36 = math.exp %35 : vector<64x1xf32>
    %cst_22 = arith.constant 1.000000e+00 : f32
    %37 = vector.broadcast %cst_22 : f32 to vector<64x1xf32>
    %38 = arith.addf %37, %36 : vector<64x1xf32>
    %39 = arith.divf %37, %38 : vector<64x1xf32>
    %40 = vector.broadcast %39 : vector<64x1xf32> to vector<64x32xf32>
    %41 = arith.mulf %23, %40 : vector<64x32xf32>
    %c0_23 = arith.constant 0 : index
    %c0_24 = arith.constant 0 : index
    %c0_25 = arith.constant 0 : index
    %42 = vector.load %arg6[%c0_23, %c0_24, %c0_25] : memref<1x64x32xf32, #tpu.memory_space<vmem>>, vector<1x64x32xf32>
    %43 = vector.shape_cast %42 : vector<1x64x32xf32> to vector<64x32xf32>
    %44 = vector.shape_cast %41 : vector<64x32xf32> to vector<1x64x32xf32>
    tpu.vector_store %arg6[%c0_23, %c0_24, %c0_25], %44 {strides = array<i32>} : memref<1x64x32xf32, #tpu.memory_space<vmem>>, vector<1x64x32xf32>,
    %c0_26 = arith.constant 0 : index
    %c0_27 = arith.constant 0 : index
    %c0_28 = arith.constant 0 : index
    %45 = vector.load %arg7[%c0_26, %c0_27, %c0_28] : memref<1x64x1xf32, #tpu.memory_space<vmem>>, vector<1x64x1xf32>
    %46 = vector.shape_cast %45 : vector<1x64x1xf32> to vector<64x1xf32>
    %47 = vector.shape_cast %39 : vector<64x1xf32> to vector<1x64x1xf32>
    tpu.vector_store %arg7[%c0_26, %c0_27, %c0_28], %47 {strides = array<i32>} : memref<1x64x1xf32, #tpu.memory_space<vmem>>, vector<1x64x1xf32>,
    return
  }
  func.func @transform_0(%arg0: i32) -> (i32, i32, i32) {
    %c0_i32 = arith.constant 0 : i32
    %c0_i32_0 = arith.constant 0 : i32
    %c0_i32_1 = arith.constant 0 : i32
    return %arg0, %c0_i32, %c0_i32_0 : i32, i32, i32
  }
  func.func @transform_1(%arg0: i32) -> (i32, i32) {
    %c0_i32 = arith.constant 0 : i32
    %c0_i32_0 = arith.constant 0 : i32
    %c0_i32_1 = arith.constant 0 : i32
    return %c0_i32, %c0_i32_0 : i32, i32
  }
  func.func @transform_2(%arg0: i32) -> (i32, i32) {
    %c0_i32 = arith.constant 0 : i32
    %c0_i32_0 = arith.constant 0 : i32
    %c0_i32_1 = arith.constant 0 : i32
    return %c0_i32, %c0_i32_0 : i32, i32
  }
  func.func @transform_3(%arg0: i32) -> (i32, i32) {
    %c0_i32 = arith.constant 0 : i32
    %c0_i32_0 = arith.constant 0 : i32
    %c0_i32_1 = arith.constant 0 : i32
    return %c0_i32, %c0_i32_0 : i32, i32
  }
  func.func @transform_4(%arg0: i32) -> (i32, i32) {
    %c0_i32 = arith.constant 0 : i32
    %c0_i32_0 = arith.constant 0 : i32
    %c0_i32_1 = arith.constant 0 : i32
    return %c0_i32, %c0_i32_0 : i32, i32
  }
  func.func @transform_5(%arg0: i32) -> (i32, i32, i32) {
    %c0_i32 = arith.constant 0 : i32
    %c0_i32_0 = arith.constant 0 : i32
    %c0_i32_1 = arith.constant 0 : i32
    return %arg0, %c0_i32, %c0_i32_0 : i32, i32, i32
  }
  func.func @transform_6(%arg0: i32) -> (i32, i32, i32) {
    %c0_i32 = arith.constant 0 : i32
    %c0_i32_0 = arith.constant 0 : i32
    %c0_i32_1 = arith.constant 0 : i32
    return %arg0, %c0_i32, %c0_i32_0 : i32, i32, i32
  }
}

module attributes {stable_mosaic.version = 11 : i64} {
  func.func @_dense_kernel(%arg0: i32, %arg1: memref<128x288xbf16, #tpu.memory_space<vmem>>, %arg2: memref<288x64xbf16, #tpu.memory_space<vmem>>, %arg3: memref<1x64xf32, #tpu.memory_space<vmem>>, %arg4: memref<128x64xf32, #tpu.memory_space<vmem>>) attributes {dimension_semantics = [#tpu.dimension_semantics<parallel>], iteration_bounds = array<i64: 1>, scalar_prefetch = 0 : i64, scratch_operands = 0 : i64, tpu.core_type = #tpu.core_type<tc>, window_params = [{transform_indices = @transform_0, window_bounds = array<i64: 128, 288>}, {pipeline_mode = #tpu.pipeline_mode<synchronous>, transform_indices = @transform_1, window_bounds = array<i64: 288, 64>}, {pipeline_mode = #tpu.pipeline_mode<synchronous>, transform_indices = @transform_2, window_bounds = array<i64: 1, 64>}, {transform_indices = @transform_3, window_bounds = array<i64: 128, 64>}]} {
    %c0 = arith.constant 0 : index
    %c0_0 = arith.constant 0 : index
    %0 = vector.load %arg1[%c0, %c0_0] : memref<128x288xbf16, #tpu.memory_space<vmem>>, vector<128x288xbf16>
    %c0_1 = arith.constant 0 : index
    %c0_2 = arith.constant 0 : index
    %1 = vector.load %arg2[%c0_1, %c0_2] : memref<288x64xbf16, #tpu.memory_space<vmem>>, vector<288x64xbf16>
    %cst = arith.constant dense<0.000000e+00> : vector<128x64xf32>
    %2 = tpu.matmul %0, %1, %cst {dimension_numbers = #tpu.dot_dimension_numbers<[1], [0], [0], [1], [0, 0, 1, 1], [], []>} : vector<128x288xbf16>, vector<288x64xbf16>, vector<128x64xf32> -> vector<128x64xf32>
    %c0_3 = arith.constant 0 : index
    %c0_4 = arith.constant 0 : index
    %3 = vector.load %arg3[%c0_3, %c0_4] : memref<1x64xf32, #tpu.memory_space<vmem>>, vector<1x64xf32>
    %4 = vector.broadcast %3 : vector<1x64xf32> to vector<128x64xf32>
    %5 = arith.addf %2, %4 : vector<128x64xf32>
    %cst_5 = arith.constant 0.000000e+00 : f32
    %6 = vector.broadcast %cst_5 : f32 to vector<128x64xf32>
    %7 = arith.maximumf %5, %6 : vector<128x64xf32>
    %c0_6 = arith.constant 0 : index
    %c0_7 = arith.constant 0 : index
    %8 = vector.load %arg4[%c0_6, %c0_7] : memref<128x64xf32, #tpu.memory_space<vmem>>, vector<128x64xf32>
    tpu.vector_store %arg4[%c0_6, %c0_7], %7 {strides = array<i32>} : memref<128x64xf32, #tpu.memory_space<vmem>>, vector<128x64xf32>,
    return
  }
  func.func @transform_0(%arg0: i32) -> (i32, i32) {
    %c0_i32 = arith.constant 0 : i32
    %c0_i32_0 = arith.constant 0 : i32
    return %arg0, %c0_i32 : i32, i32
  }
  func.func @transform_1(%arg0: i32) -> (i32, i32) {
    %c0_i32 = arith.constant 0 : i32
    %c0_i32_0 = arith.constant 0 : i32
    %c0_i32_1 = arith.constant 0 : i32
    return %c0_i32, %c0_i32_0 : i32, i32
  }
  func.func @transform_2(%arg0: i32) -> (i32, i32) {
    %c0_i32 = arith.constant 0 : i32
    %c0_i32_0 = arith.constant 0 : i32
    %c0_i32_1 = arith.constant 0 : i32
    return %c0_i32, %c0_i32_0 : i32, i32
  }
  func.func @transform_3(%arg0: i32) -> (i32, i32) {
    %c0_i32 = arith.constant 0 : i32
    %c0_i32_0 = arith.constant 0 : i32
    return %arg0, %c0_i32 : i32, i32
  }
}

module attributes {stable_mosaic.version = 11 : i64} {
  func.func @_dense_kernel(%arg0: i32, %arg1: memref<2x1xbf16, #tpu.memory_space<vmem>>, %arg2: memref<1x32xbf16, #tpu.memory_space<vmem>>, %arg3: memref<1x32xf32, #tpu.memory_space<vmem>>, %arg4: memref<2x32xf32, #tpu.memory_space<vmem>>) attributes {dimension_semantics = [#tpu.dimension_semantics<parallel>], iteration_bounds = array<i64: 1>, scalar_prefetch = 0 : i64, scratch_operands = 0 : i64, tpu.core_type = #tpu.core_type<tc>, window_params = [{transform_indices = @transform_0, window_bounds = array<i64: 2, 1>}, {pipeline_mode = #tpu.pipeline_mode<synchronous>, transform_indices = @transform_1, window_bounds = array<i64: 1, 32>}, {pipeline_mode = #tpu.pipeline_mode<synchronous>, transform_indices = @transform_2, window_bounds = array<i64: 1, 32>}, {transform_indices = @transform_3, window_bounds = array<i64: 2, 32>}]} {
    %c0 = arith.constant 0 : index
    %c0_0 = arith.constant 0 : index
    %0 = vector.load %arg1[%c0, %c0_0] : memref<2x1xbf16, #tpu.memory_space<vmem>>, vector<2x1xbf16>
    %c0_1 = arith.constant 0 : index
    %c0_2 = arith.constant 0 : index
    %1 = vector.load %arg2[%c0_1, %c0_2] : memref<1x32xbf16, #tpu.memory_space<vmem>>, vector<1x32xbf16>
    %cst = arith.constant dense<0.000000e+00> : vector<2x32xf32>
    %2 = tpu.matmul %0, %1, %cst {dimension_numbers = #tpu.dot_dimension_numbers<[1], [0], [0], [1], [0, 0, 1, 1], [], []>} : vector<2x1xbf16>, vector<1x32xbf16>, vector<2x32xf32> -> vector<2x32xf32>
    %c0_3 = arith.constant 0 : index
    %c0_4 = arith.constant 0 : index
    %3 = vector.load %arg3[%c0_3, %c0_4] : memref<1x32xf32, #tpu.memory_space<vmem>>, vector<1x32xf32>
    %4 = vector.broadcast %3 : vector<1x32xf32> to vector<2x32xf32>
    %5 = arith.addf %2, %4 : vector<2x32xf32>
    %cst_5 = arith.constant 0.000000e+00 : f32
    %6 = vector.broadcast %cst_5 : f32 to vector<2x32xf32>
    %7 = arith.maximumf %5, %6 : vector<2x32xf32>
    %c0_6 = arith.constant 0 : index
    %c0_7 = arith.constant 0 : index
    %8 = vector.load %arg4[%c0_6, %c0_7] : memref<2x32xf32, #tpu.memory_space<vmem>>, vector<2x32xf32>
    tpu.vector_store %arg4[%c0_6, %c0_7], %7 {strides = array<i32>} : memref<2x32xf32, #tpu.memory_space<vmem>>, vector<2x32xf32>,
    return
  }
  func.func @transform_0(%arg0: i32) -> (i32, i32) {
    %c0_i32 = arith.constant 0 : i32
    %c0_i32_0 = arith.constant 0 : i32
    return %arg0, %c0_i32 : i32, i32
  }
  func.func @transform_1(%arg0: i32) -> (i32, i32) {
    %c0_i32 = arith.constant 0 : i32
    %c0_i32_0 = arith.constant 0 : i32
    %c0_i32_1 = arith.constant 0 : i32
    return %c0_i32, %c0_i32_0 : i32, i32
  }
  func.func @transform_2(%arg0: i32) -> (i32, i32) {
    %c0_i32 = arith.constant 0 : i32
    %c0_i32_0 = arith.constant 0 : i32
    %c0_i32_1 = arith.constant 0 : i32
    return %c0_i32, %c0_i32_0 : i32, i32
  }
  func.func @transform_3(%arg0: i32) -> (i32, i32) {
    %c0_i32 = arith.constant 0 : i32
    %c0_i32_0 = arith.constant 0 : i32
    return %arg0, %c0_i32 : i32, i32
  }
}

module attributes {stable_mosaic.version = 11 : i64} {
  func.func @_adaa_kernel(%arg0: i32, %arg1: memref<1x64x64xf32, #tpu.memory_space<vmem>>, %arg2: memref<1x1x32xf32, #tpu.memory_space<vmem>>, %arg3: memref<64x32xf32, #tpu.memory_space<vmem>>, %arg4: memref<32x32xf32, #tpu.memory_space<vmem>>, %arg5: memref<64x32xf32, #tpu.memory_space<vmem>>, %arg6: memref<32x32xf32, #tpu.memory_space<vmem>>, %arg7: memref<64x32xf32, #tpu.memory_space<vmem>>, %arg8: memref<32x32xf32, #tpu.memory_space<vmem>>, %arg9: memref<1x32xf32, #tpu.memory_space<vmem>>, %arg10: memref<1x32xf32, #tpu.memory_space<vmem>>, %arg11: memref<32x64xf32, #tpu.memory_space<vmem>>, %arg12: memref<1x64x64xf32, #tpu.memory_space<vmem>>, %arg13: memref<1x1x64xf32, #tpu.memory_space<vmem>>, %arg14: memref<1x64x1xf32, #tpu.memory_space<vmem>>) attributes {dimension_semantics = [#tpu.dimension_semantics<parallel>], iteration_bounds = array<i64: 2>, scalar_prefetch = 0 : i64, scratch_operands = 0 : i64, tpu.core_type = #tpu.core_type<tc>, window_params = [{transform_indices = @transform_0, window_bounds = array<i64: 1, 64, 64>}, {transform_indices = @transform_1, window_bounds = array<i64: 1, 1, 32>}, {pipeline_mode = #tpu.pipeline_mode<synchronous>, transform_indices = @transform_2, window_bounds = array<i64: 64, 32>}, {pipeline_mode = #tpu.pipeline_mode<synchronous>, transform_indices = @transform_3, window_bounds = array<i64: 32, 32>}, {pipeline_mode = #tpu.pipeline_mode<synchronous>, transform_indices = @transform_4, window_bounds = array<i64: 64, 32>}, {pipeline_mode = #tpu.pipeline_mode<synchronous>, transform_indices = @transform_5, window_bounds = array<i64: 32, 32>}, {pipeline_mode = #tpu.pipeline_mode<synchronous>, transform_indices = @transform_6, window_bounds = array<i64: 64, 32>}, {pipeline_mode = #tpu.pipeline_mode<synchronous>, transform_indices = @transform_7, window_bounds = array<i64: 32, 32>}, {pipeline_mode = #tpu.pipeline_mode<synchronous>, transform_indices = @transform_8, window_bounds = array<i64: 1, 32>}, {pipeline_mode = #tpu.pipeline_mode<synchronous>, transform_indices = @transform_9, window_bounds = array<i64: 1, 32>}, {pipeline_mode = #tpu.pipeline_mode<synchronous>, transform_indices = @transform_10, window_bounds = array<i64: 32, 64>}, {transform_indices = @transform_11, window_bounds = array<i64: 1, 64, 64>}, {transform_indices = @transform_12, window_bounds = array<i64: 1, 1, 64>}, {transform_indices = @transform_13, window_bounds = array<i64: 1, 64, 1>}]} {
    %c0 = arith.constant 0 : index
    %c0_0 = arith.constant 0 : index
    %c0_1 = arith.constant 0 : index
    %0 = vector.load %arg1[%c0, %c0_0, %c0_1] : memref<1x64x64xf32, #tpu.memory_space<vmem>>, vector<1x64x64xf32>
    %1 = vector.shape_cast %0 : vector<1x64x64xf32> to vector<64x64xf32>
    %c0_2 = arith.constant 0 : index
    %c0_3 = arith.constant 0 : index
    %c0_4 = arith.constant 0 : index
    %2 = vector.load %arg2[%c0_2, %c0_3, %c0_4] : memref<1x1x32xf32, #tpu.memory_space<vmem>>, vector<1x1x32xf32>
    %3 = vector.shape_cast %2 : vector<1x1x32xf32> to vector<1x32xf32>
    %c0_5 = arith.constant 0 : index
    %c0_6 = arith.constant 0 : index
    %4 = vector.load %arg9[%c0_5, %c0_6] : memref<1x32xf32, #tpu.memory_space<vmem>>, vector<1x32xf32>
    %c0_7 = arith.constant 0 : index
    %c0_8 = arith.constant 0 : index
    %5 = vector.load %arg10[%c0_7, %c0_8] : memref<1x32xf32, #tpu.memory_space<vmem>>, vector<1x32xf32>
    %cst = arith.constant dense<0.000000e+00> : vector<64xf32>
    %6 = vector.multi_reduction <add>, %1, %cst [0] : vector<64x64xf32> to vector<64xf32>
    %7 = vector.shape_cast %6 : vector<64xf32> to vector<1x64xf32>
    %cst_9 = arith.constant 6.400000e+01 : f32
    %8 = vector.broadcast %cst_9 : f32 to vector<1x64xf32>
    %9 = arith.divf %7, %8 : vector<1x64xf32>
    %10 = arith.truncf %1 : vector<64x64xf32> to vector<64x64xbf16>
    %11 = arith.truncf %9 : vector<1x64xf32> to vector<1x64xbf16>
    %12 = arith.truncf %3 : vector<1x32xf32> to vector<1x32xbf16>
    %c0_10 = arith.constant 0 : index
    %c0_11 = arith.constant 0 : index
    %13 = vector.load %arg3[%c0_10, %c0_11] : memref<64x32xf32, #tpu.memory_space<vmem>>, vector<64x32xf32>
    %14 = arith.truncf %13 : vector<64x32xf32> to vector<64x32xbf16>
    %cst_12 = arith.constant dense<0.000000e+00> : vector<1x32xf32>
    %15 = tpu.matmul %11, %14, %cst_12 {dimension_numbers = #tpu.dot_dimension_numbers<[1], [0], [0], [1], [0, 0, 1, 1], [], []>} : vector<1x64xbf16>, vector<64x32xbf16>, vector<1x32xf32> -> vector<1x32xf32>
    %c0_13 = arith.constant 0 : index
    %c0_14 = arith.constant 0 : index
    %16 = vector.load %arg4[%c0_13, %c0_14] : memref<32x32xf32, #tpu.memory_space<vmem>>, vector<32x32xf32>
    %17 = arith.truncf %16 : vector<32x32xf32> to vector<32x32xbf16>
    %cst_15 = arith.constant dense<0.000000e+00> : vector<1x32xf32>
    %18 = tpu.matmul %12, %17, %cst_15 {dimension_numbers = #tpu.dot_dimension_numbers<[1], [0], [0], [1], [0, 0, 1, 1], [], []>} : vector<1x32xbf16>, vector<32x32xbf16>, vector<1x32xf32> -> vector<1x32xf32>
    %19 = arith.addf %15, %18 : vector<1x32xf32>
    %cst_16 = arith.constant 0.000000e+00 : f32
    %20 = vector.broadcast %cst_16 : f32 to vector<1x32xf32>
    %21 = arith.maximumf %19, %20 : vector<1x32xf32>
    %cst_17 = arith.constant dense<0.000000e+00> : vector<1xf32>
    %22 = vector.multi_reduction <add>, %21, %cst_17 [1] : vector<1x32xf32> to vector<1xf32>
    %23 = vector.shape_cast %22 : vector<1xf32> to vector<1x1xf32>
    %cst_18 = arith.constant 3.200000e+01 : f32
    %24 = vector.broadcast %cst_18 : f32 to vector<1x1xf32>
    %25 = arith.divf %23, %24 : vector<1x1xf32>
    %26 = vector.broadcast %25 : vector<1x1xf32> to vector<1x32xf32>
    %27 = arith.subf %21, %26 : vector<1x32xf32>
    %28 = arith.mulf %27, %27 : vector<1x32xf32>
    %cst_19 = arith.constant dense<0.000000e+00> : vector<1xf32>
    %29 = vector.multi_reduction <add>, %28, %cst_19 [1] : vector<1x32xf32> to vector<1xf32>
    %30 = vector.shape_cast %29 : vector<1xf32> to vector<1x1xf32>
    %cst_20 = arith.constant 3.200000e+01 : f32
    %31 = vector.broadcast %cst_20 : f32 to vector<1x1xf32>
    %32 = arith.divf %30, %31 : vector<1x1xf32>
    %33 = vector.broadcast %25 : vector<1x1xf32> to vector<1x32xf32>
    %34 = arith.subf %21, %33 : vector<1x32xf32>
    %cst_21 = arith.constant 9.99999974E-6 : f32
    %35 = vector.broadcast %cst_21 : f32 to vector<1x1xf32>
    %36 = arith.addf %32, %35 : vector<1x1xf32>
    %37 = math.rsqrt %36 : vector<1x1xf32>
    %38 = vector.broadcast %37 : vector<1x1xf32> to vector<1x32xf32>
    %39 = arith.mulf %34, %38 : vector<1x32xf32>
    %40 = arith.mulf %39, %4 : vector<1x32xf32>
    %41 = arith.addf %40, %5 : vector<1x32xf32>
    %c0_22 = arith.constant 0 : index
    %c0_23 = arith.constant 0 : index
    %42 = vector.load %arg5[%c0_22, %c0_23] : memref<64x32xf32, #tpu.memory_space<vmem>>, vector<64x32xf32>
    %43 = arith.truncf %42 : vector<64x32xf32> to vector<64x32xbf16>
    %cst_24 = arith.constant dense<0.000000e+00> : vector<1x32xf32>
    %44 = tpu.matmul %11, %43, %cst_24 {dimension_numbers = #tpu.dot_dimension_numbers<[1], [0], [0], [1], [0, 0, 1, 1], [], []>} : vector<1x64xbf16>, vector<64x32xbf16>, vector<1x32xf32> -> vector<1x32xf32>
    %c0_25 = arith.constant 0 : index
    %c0_26 = arith.constant 0 : index
    %45 = vector.load %arg6[%c0_25, %c0_26] : memref<32x32xf32, #tpu.memory_space<vmem>>, vector<32x32xf32>
    %46 = arith.truncf %45 : vector<32x32xf32> to vector<32x32xbf16>
    %cst_27 = arith.constant dense<0.000000e+00> : vector<1x32xf32>
    %47 = tpu.matmul %12, %46, %cst_27 {dimension_numbers = #tpu.dot_dimension_numbers<[1], [0], [0], [1], [0, 0, 1, 1], [], []>} : vector<1x32xbf16>, vector<32x32xbf16>, vector<1x32xf32> -> vector<1x32xf32>
    %48 = arith.addf %44, %47 : vector<1x32xf32>
    %cst_28 = arith.constant 0.000000e+00 : f32
    %49 = vector.broadcast %cst_28 : f32 to vector<1x32xf32>
    %50 = arith.maximumf %48, %49 : vector<1x32xf32>
    %cst_29 = arith.constant dense<0.000000e+00> : vector<1xf32>
    %51 = vector.multi_reduction <add>, %50, %cst_29 [1] : vector<1x32xf32> to vector<1xf32>
    %52 = vector.shape_cast %51 : vector<1xf32> to vector<1x1xf32>
    %cst_30 = arith.constant 3.200000e+01 : f32
    %53 = vector.broadcast %cst_30 : f32 to vector<1x1xf32>
    %54 = arith.divf %52, %53 : vector<1x1xf32>
    %55 = vector.broadcast %54 : vector<1x1xf32> to vector<1x32xf32>
    %56 = arith.subf %50, %55 : vector<1x32xf32>
    %57 = arith.mulf %56, %56 : vector<1x32xf32>
    %cst_31 = arith.constant dense<0.000000e+00> : vector<1xf32>
    %58 = vector.multi_reduction <add>, %57, %cst_31 [1] : vector<1x32xf32> to vector<1xf32>
    %59 = vector.shape_cast %58 : vector<1xf32> to vector<1x1xf32>
    %cst_32 = arith.constant 3.200000e+01 : f32
    %60 = vector.broadcast %cst_32 : f32 to vector<1x1xf32>
    %61 = arith.divf %59, %60 : vector<1x1xf32>
    %62 = vector.broadcast %54 : vector<1x1xf32> to vector<1x32xf32>
    %63 = arith.subf %50, %62 : vector<1x32xf32>
    %cst_33 = arith.constant 9.99999974E-6 : f32
    %64 = vector.broadcast %cst_33 : f32 to vector<1x1xf32>
    %65 = arith.addf %61, %64 : vector<1x1xf32>
    %66 = math.rsqrt %65 : vector<1x1xf32>
    %67 = vector.broadcast %66 : vector<1x1xf32> to vector<1x32xf32>
    %68 = arith.mulf %63, %67 : vector<1x32xf32>
    %69 = arith.mulf %68, %4 : vector<1x32xf32>
    %70 = arith.addf %69, %5 : vector<1x32xf32>
    %c0_34 = arith.constant 0 : index
    %c0_35 = arith.constant 0 : index
    %71 = vector.load %arg7[%c0_34, %c0_35] : memref<64x32xf32, #tpu.memory_space<vmem>>, vector<64x32xf32>
    %72 = arith.truncf %71 : vector<64x32xf32> to vector<64x32xbf16>
    %cst_36 = arith.constant dense<0.000000e+00> : vector<1x32xf32>
    %73 = tpu.matmul %11, %72, %cst_36 {dimension_numbers = #tpu.dot_dimension_numbers<[1], [0], [0], [1], [0, 0, 1, 1], [], []>} : vector<1x64xbf16>, vector<64x32xbf16>, vector<1x32xf32> -> vector<1x32xf32>
    %c0_37 = arith.constant 0 : index
    %c0_38 = arith.constant 0 : index
    %74 = vector.load %arg8[%c0_37, %c0_38] : memref<32x32xf32, #tpu.memory_space<vmem>>, vector<32x32xf32>
    %75 = arith.truncf %74 : vector<32x32xf32> to vector<32x32xbf16>
    %cst_39 = arith.constant dense<0.000000e+00> : vector<1x32xf32>
    %76 = tpu.matmul %12, %75, %cst_39 {dimension_numbers = #tpu.dot_dimension_numbers<[1], [0], [0], [1], [0, 0, 1, 1], [], []>} : vector<1x32xbf16>, vector<32x32xbf16>, vector<1x32xf32> -> vector<1x32xf32>
    %77 = arith.addf %73, %76 : vector<1x32xf32>
    %cst_40 = arith.constant 0.000000e+00 : f32
    %78 = vector.broadcast %cst_40 : f32 to vector<1x32xf32>
    %79 = arith.maximumf %77, %78 : vector<1x32xf32>
    %cst_41 = arith.constant dense<0.000000e+00> : vector<1xf32>
    %80 = vector.multi_reduction <add>, %79, %cst_41 [1] : vector<1x32xf32> to vector<1xf32>
    %81 = vector.shape_cast %80 : vector<1xf32> to vector<1x1xf32>
    %cst_42 = arith.constant 3.200000e+01 : f32
    %82 = vector.broadcast %cst_42 : f32 to vector<1x1xf32>
    %83 = arith.divf %81, %82 : vector<1x1xf32>
    %84 = vector.broadcast %83 : vector<1x1xf32> to vector<1x32xf32>
    %85 = arith.subf %79, %84 : vector<1x32xf32>
    %86 = arith.mulf %85, %85 : vector<1x32xf32>
    %cst_43 = arith.constant dense<0.000000e+00> : vector<1xf32>
    %87 = vector.multi_reduction <add>, %86, %cst_43 [1] : vector<1x32xf32> to vector<1xf32>
    %88 = vector.shape_cast %87 : vector<1xf32> to vector<1x1xf32>
    %cst_44 = arith.constant 3.200000e+01 : f32
    %89 = vector.broadcast %cst_44 : f32 to vector<1x1xf32>
    %90 = arith.divf %88, %89 : vector<1x1xf32>
    %91 = vector.broadcast %83 : vector<1x1xf32> to vector<1x32xf32>
    %92 = arith.subf %79, %91 : vector<1x32xf32>
    %cst_45 = arith.constant 9.99999974E-6 : f32
    %93 = vector.broadcast %cst_45 : f32 to vector<1x1xf32>
    %94 = arith.addf %90, %93 : vector<1x1xf32>
    %95 = math.rsqrt %94 : vector<1x1xf32>
    %96 = vector.broadcast %95 : vector<1x1xf32> to vector<1x32xf32>
    %97 = arith.mulf %92, %96 : vector<1x32xf32>
    %98 = arith.mulf %97, %4 : vector<1x32xf32>
    %99 = arith.addf %98, %5 : vector<1x32xf32>
    %c0_46 = arith.constant 0 : index
    %c0_47 = arith.constant 0 : index
    %100 = vector.load %arg5[%c0_46, %c0_47] : memref<64x32xf32, #tpu.memory_space<vmem>>, vector<64x32xf32>
    %101 = arith.truncf %100 : vector<64x32xf32> to vector<64x32xbf16>
    %cst_48 = arith.constant dense<0.000000e+00> : vector<64x32xf32>
    %102 = tpu.matmul %10, %101, %cst_48 {dimension_numbers = #tpu.dot_dimension_numbers<[1], [0], [0], [1], [0, 0, 1, 1], [], []>} : vector<64x64xbf16>, vector<64x32xbf16>, vector<64x32xf32> -> vector<64x32xf32>
    %c0_49 = arith.constant 0 : index
    %c0_50 = arith.constant 0 : index
    %103 = vector.load %arg6[%c0_49, %c0_50] : memref<32x32xf32, #tpu.memory_space<vmem>>, vector<32x32xf32>
    %104 = arith.truncf %103 : vector<32x32xf32> to vector<32x32xbf16>
    %cst_51 = arith.constant dense<0.000000e+00> : vector<1x32xf32>
    %105 = tpu.matmul %12, %104, %cst_51 {dimension_numbers = #tpu.dot_dimension_numbers<[1], [0], [0], [1], [0, 0, 1, 1], [], []>} : vector<1x32xbf16>, vector<32x32xbf16>, vector<1x32xf32> -> vector<1x32xf32>
    %106 = vector.broadcast %105 : vector<1x32xf32> to vector<64x32xf32>
    %107 = arith.addf %102, %106 : vector<64x32xf32>
    %cst_52 = arith.constant 0.000000e+00 : f32
    %108 = vector.broadcast %cst_52 : f32 to vector<64x32xf32>
    %109 = arith.maximumf %107, %108 : vector<64x32xf32>
    %cst_53 = arith.constant dense<0.000000e+00> : vector<64xf32>
    %110 = vector.multi_reduction <add>, %109, %cst_53 [1] : vector<64x32xf32> to vector<64xf32>
    %111 = vector.shape_cast %110 : vector<64xf32> to vector<64x1xf32>
    %cst_54 = arith.constant 3.200000e+01 : f32
    %112 = vector.broadcast %cst_54 : f32 to vector<64x1xf32>
    %113 = arith.divf %111, %112 : vector<64x1xf32>
    %114 = vector.broadcast %113 : vector<64x1xf32> to vector<64x32xf32>
    %115 = arith.subf %109, %114 : vector<64x32xf32>
    %116 = arith.mulf %115, %115 : vector<64x32xf32>
    %cst_55 = arith.constant dense<0.000000e+00> : vector<64xf32>
    %117 = vector.multi_reduction <add>, %116, %cst_55 [1] : vector<64x32xf32> to vector<64xf32>
    %118 = vector.shape_cast %117 : vector<64xf32> to vector<64x1xf32>
    %cst_56 = arith.constant 3.200000e+01 : f32
    %119 = vector.broadcast %cst_56 : f32 to vector<64x1xf32>
    %120 = arith.divf %118, %119 : vector<64x1xf32>
    %121 = vector.broadcast %113 : vector<64x1xf32> to vector<64x32xf32>
    %122 = arith.subf %109, %121 : vector<64x32xf32>
    %cst_57 = arith.constant 9.99999974E-6 : f32
    %123 = vector.broadcast %cst_57 : f32 to vector<64x1xf32>
    %124 = arith.addf %120, %123 : vector<64x1xf32>
    %125 = math.rsqrt %124 : vector<64x1xf32>
    %126 = vector.broadcast %125 : vector<64x1xf32> to vector<64x32xf32>
    %127 = arith.mulf %122, %126 : vector<64x32xf32>
    %128 = vector.broadcast %4 : vector<1x32xf32> to vector<64x32xf32>
    %129 = arith.mulf %127, %128 : vector<64x32xf32>
    %130 = vector.broadcast %5 : vector<1x32xf32> to vector<64x32xf32>
    %131 = arith.addf %129, %130 : vector<64x32xf32>
    %c0_58 = arith.constant 0 : index
    %c0_59 = arith.constant 0 : index
    %132 = vector.load %arg7[%c0_58, %c0_59] : memref<64x32xf32, #tpu.memory_space<vmem>>, vector<64x32xf32>
    %133 = arith.truncf %132 : vector<64x32xf32> to vector<64x32xbf16>
    %cst_60 = arith.constant dense<0.000000e+00> : vector<64x32xf32>
    %134 = tpu.matmul %10, %133, %cst_60 {dimension_numbers = #tpu.dot_dimension_numbers<[1], [0], [0], [1], [0, 0, 1, 1], [], []>} : vector<64x64xbf16>, vector<64x32xbf16>, vector<64x32xf32> -> vector<64x32xf32>
    %c0_61 = arith.constant 0 : index
    %c0_62 = arith.constant 0 : index
    %135 = vector.load %arg8[%c0_61, %c0_62] : memref<32x32xf32, #tpu.memory_space<vmem>>, vector<32x32xf32>
    %136 = arith.truncf %135 : vector<32x32xf32> to vector<32x32xbf16>
    %cst_63 = arith.constant dense<0.000000e+00> : vector<1x32xf32>
    %137 = tpu.matmul %12, %136, %cst_63 {dimension_numbers = #tpu.dot_dimension_numbers<[1], [0], [0], [1], [0, 0, 1, 1], [], []>} : vector<1x32xbf16>, vector<32x32xbf16>, vector<1x32xf32> -> vector<1x32xf32>
    %138 = vector.broadcast %137 : vector<1x32xf32> to vector<64x32xf32>
    %139 = arith.addf %134, %138 : vector<64x32xf32>
    %cst_64 = arith.constant 0.000000e+00 : f32
    %140 = vector.broadcast %cst_64 : f32 to vector<64x32xf32>
    %141 = arith.maximumf %139, %140 : vector<64x32xf32>
    %cst_65 = arith.constant dense<0.000000e+00> : vector<64xf32>
    %142 = vector.multi_reduction <add>, %141, %cst_65 [1] : vector<64x32xf32> to vector<64xf32>
    %143 = vector.shape_cast %142 : vector<64xf32> to vector<64x1xf32>
    %cst_66 = arith.constant 3.200000e+01 : f32
    %144 = vector.broadcast %cst_66 : f32 to vector<64x1xf32>
    %145 = arith.divf %143, %144 : vector<64x1xf32>
    %146 = vector.broadcast %145 : vector<64x1xf32> to vector<64x32xf32>
    %147 = arith.subf %141, %146 : vector<64x32xf32>
    %148 = arith.mulf %147, %147 : vector<64x32xf32>
    %cst_67 = arith.constant dense<0.000000e+00> : vector<64xf32>
    %149 = vector.multi_reduction <add>, %148, %cst_67 [1] : vector<64x32xf32> to vector<64xf32>
    %150 = vector.shape_cast %149 : vector<64xf32> to vector<64x1xf32>
    %cst_68 = arith.constant 3.200000e+01 : f32
    %151 = vector.broadcast %cst_68 : f32 to vector<64x1xf32>
    %152 = arith.divf %150, %151 : vector<64x1xf32>
    %153 = vector.broadcast %145 : vector<64x1xf32> to vector<64x32xf32>
    %154 = arith.subf %141, %153 : vector<64x32xf32>
    %cst_69 = arith.constant 9.99999974E-6 : f32
    %155 = vector.broadcast %cst_69 : f32 to vector<64x1xf32>
    %156 = arith.addf %152, %155 : vector<64x1xf32>
    %157 = math.rsqrt %156 : vector<64x1xf32>
    %158 = vector.broadcast %157 : vector<64x1xf32> to vector<64x32xf32>
    %159 = arith.mulf %154, %158 : vector<64x32xf32>
    %160 = vector.broadcast %4 : vector<1x32xf32> to vector<64x32xf32>
    %161 = arith.mulf %159, %160 : vector<64x32xf32>
    %162 = vector.broadcast %5 : vector<1x32xf32> to vector<64x32xf32>
    %163 = arith.addf %161, %162 : vector<64x32xf32>
    %164 = vector.broadcast %41 : vector<1x32xf32> to vector<64x32xf32>
    %165 = arith.mulf %131, %164 : vector<64x32xf32>
    %cst_70 = arith.constant dense<0.000000e+00> : vector<64xf32>
    %166 = vector.multi_reduction <add>, %165, %cst_70 [1] : vector<64x32xf32> to vector<64xf32>
    %167 = vector.shape_cast %166 : vector<64xf32> to vector<64x1xf32>
    %cst_71 = arith.constant 0.176776692 : f32
    %168 = vector.broadcast %cst_71 : f32 to vector<64x1xf32>
    %169 = arith.mulf %167, %168 : vector<64x1xf32>
    %170 = arith.mulf %70, %41 : vector<1x32xf32>
    %cst_72 = arith.constant dense<0.000000e+00> : vector<1xf32>
    %171 = vector.multi_reduction <add>, %170, %cst_72 [1] : vector<1x32xf32> to vector<1xf32>
    %172 = vector.shape_cast %171 : vector<1xf32> to vector<1x1xf32>
    %cst_73 = arith.constant 0.176776692 : f32
    %173 = vector.broadcast %cst_73 : f32 to vector<1x1xf32>
    %174 = arith.mulf %172, %173 : vector<1x1xf32>
    %cst_74 = arith.constant dense<0xFF800000> : vector<1xf32>
    %175 = vector.multi_reduction <maximumf>, %169, %cst_74 [0] : vector<64x1xf32> to vector<1xf32>
    %176 = vector.shape_cast %175 : vector<1xf32> to vector<1x1xf32>
    %177 = arith.maximumf %176, %174 : vector<1x1xf32>
    %178 = vector.broadcast %177 : vector<1x1xf32> to vector<64x1xf32>
    %179 = arith.subf %169, %178 : vector<64x1xf32>
    %180 = math.exp %179 : vector<64x1xf32>
    %181 = arith.subf %174, %177 : vector<1x1xf32>
    %182 = math.exp %181 : vector<1x1xf32>
    %cst_75 = arith.constant dense<0.000000e+00> : vector<1xf32>
    %183 = vector.multi_reduction <add>, %180, %cst_75 [0] : vector<64x1xf32> to vector<1xf32>
    %184 = vector.shape_cast %183 : vector<1xf32> to vector<1x1xf32>
    %185 = arith.addf %184, %182 : vector<1x1xf32>
    %186 = tpu.reciprocal %185 {approx = true} : vector<1x1xf32> -> vector<1x1xf32>
    %187 = vector.broadcast %186 : vector<1x1xf32> to vector<64x1xf32>
    %188 = arith.mulf %180, %187 : vector<64x1xf32>
    %189 = arith.mulf %182, %186 : vector<1x1xf32>
    %190 = vector.broadcast %188 : vector<64x1xf32> to vector<64x32xf32>
    %191 = arith.mulf %190, %163 : vector<64x32xf32>
    %cst_76 = arith.constant dense<0.000000e+00> : vector<32xf32>
    %192 = vector.multi_reduction <add>, %191, %cst_76 [0] : vector<64x32xf32> to vector<32xf32>
    %193 = vector.shape_cast %192 : vector<32xf32> to vector<1x32xf32>
    %194 = vector.broadcast %189 : vector<1x1xf32> to vector<1x32xf32>
    %195 = arith.mulf %194, %99 : vector<1x32xf32>
    %196 = arith.addf %193, %195 : vector<1x32xf32>
    %c0_77 = arith.constant 0 : index
    %c0_78 = arith.constant 0 : index
    %197 = vector.load %arg11[%c0_77, %c0_78] : memref<32x64xf32, #tpu.memory_space<vmem>>, vector<32x64xf32>
    %cst_79 = arith.constant dense<0.000000e+00> : vector<1x64xf32>
    %198 = tpu.matmul %196, %197, %cst_79 {dimension_numbers = #tpu.dot_dimension_numbers<[1], [0], [0], [1], [0, 0, 1, 1], [], []>} : vector<1x32xf32>, vector<32x64xf32>, vector<1x64xf32> -> vector<1x64xf32>
    %199 = vector.broadcast %188 : vector<64x1xf32> to vector<64x64xf32>
    %200 = arith.mulf %1, %199 : vector<64x64xf32>
    %c0_80 = arith.constant 0 : index
    %c0_81 = arith.constant 0 : index
    %c0_82 = arith.constant 0 : index
    %201 = vector.load %arg12[%c0_80, %c0_81, %c0_82] : memref<1x64x64xf32, #tpu.memory_space<vmem>>, vector<1x64x64xf32>
    %202 = vector.shape_cast %201 : vector<1x64x64xf32> to vector<64x64xf32>
    %203 = vector.shape_cast %200 : vector<64x64xf32> to vector<1x64x64xf32>
    tpu.vector_store %arg12[%c0_80, %c0_81, %c0_82], %203 {strides = array<i32>} : memref<1x64x64xf32, #tpu.memory_space<vmem>>, vector<1x64x64xf32>,
    %c0_83 = arith.constant 0 : index
    %c0_84 = arith.constant 0 : index
    %c0_85 = arith.constant 0 : index
    %204 = vector.load %arg13[%c0_83, %c0_84, %c0_85] : memref<1x1x64xf32, #tpu.memory_space<vmem>>, vector<1x1x64xf32>
    %205 = vector.shape_cast %204 : vector<1x1x64xf32> to vector<1x64xf32>
    %206 = vector.shape_cast %198 : vector<1x64xf32> to vector<1x1x64xf32>
    tpu.vector_store %arg13[%c0_83, %c0_84, %c0_85], %206 {strides = array<i32>} : memref<1x1x64xf32, #tpu.memory_space<vmem>>, vector<1x1x64xf32>,
    %c0_86 = arith.constant 0 : index
    %c0_87 = arith.constant 0 : index
    %c0_88 = arith.constant 0 : index
    %207 = vector.load %arg14[%c0_86, %c0_87, %c0_88] : memref<1x64x1xf32, #tpu.memory_space<vmem>>, vector<1x64x1xf32>
    %208 = vector.shape_cast %207 : vector<1x64x1xf32> to vector<64x1xf32>
    %209 = vector.shape_cast %188 : vector<64x1xf32> to vector<1x64x1xf32>
    tpu.vector_store %arg14[%c0_86, %c0_87, %c0_88], %209 {strides = array<i32>} : memref<1x64x1xf32, #tpu.memory_space<vmem>>, vector<1x64x1xf32>,
    return
  }
  func.func @transform_0(%arg0: i32) -> (i32, i32, i32) {
    %c0_i32 = arith.constant 0 : i32
    %c0_i32_0 = arith.constant 0 : i32
    %c0_i32_1 = arith.constant 0 : i32
    return %arg0, %c0_i32, %c0_i32_0 : i32, i32, i32
  }
  func.func @transform_1(%arg0: i32) -> (i32, i32, i32) {
    %c0_i32 = arith.constant 0 : i32
    %c0_i32_0 = arith.constant 0 : i32
    %c0_i32_1 = arith.constant 0 : i32
    return %arg0, %c0_i32, %c0_i32_0 : i32, i32, i32
  }
  func.func @transform_2(%arg0: i32) -> (i32, i32) {
    %c0_i32 = arith.constant 0 : i32
    %c0_i32_0 = arith.constant 0 : i32
    %c0_i32_1 = arith.constant 0 : i32
    return %c0_i32, %c0_i32_0 : i32, i32
  }
  func.func @transform_3(%arg0: i32) -> (i32, i32) {
    %c0_i32 = arith.constant 0 : i32
    %c0_i32_0 = arith.constant 0 : i32
    %c0_i32_1 = arith.constant 0 : i32
    return %c0_i32, %c0_i32_0 : i32, i32
  }
  func.func @transform_4(%arg0: i32) -> (i32, i32) {
    %c0_i32 = arith.constant 0 : i32
    %c0_i32_0 = arith.constant 0 : i32
    %c0_i32_1 = arith.constant 0 : i32
    return %c0_i32, %c0_i32_0 : i32, i32
  }
  func.func @transform_5(%arg0: i32) -> (i32, i32) {
    %c0_i32 = arith.constant 0 : i32
    %c0_i32_0 = arith.constant 0 : i32
    %c0_i32_1 = arith.constant 0 : i32
    return %c0_i32, %c0_i32_0 : i32, i32
  }
  func.func @transform_6(%arg0: i32) -> (i32, i32) {
    %c0_i32 = arith.constant 0 : i32
    %c0_i32_0 = arith.constant 0 : i32
    %c0_i32_1 = arith.constant 0 : i32
    return %c0_i32, %c0_i32_0 : i32, i32
  }
  func.func @transform_7(%arg0: i32) -> (i32, i32) {
    %c0_i32 = arith.constant 0 : i32
    %c0_i32_0 = arith.constant 0 : i32
    %c0_i32_1 = arith.constant 0 : i32
    return %c0_i32, %c0_i32_0 : i32, i32
  }
  func.func @transform_8(%arg0: i32) -> (i32, i32) {
    %c0_i32 = arith.constant 0 : i32
    %c0_i32_0 = arith.constant 0 : i32
    %c0_i32_1 = arith.constant 0 : i32
    return %c0_i32, %c0_i32_0 : i32, i32
  }
  func.func @transform_9(%arg0: i32) -> (i32, i32) {
    %c0_i32 = arith.constant 0 : i32
    %c0_i32_0 = arith.constant 0 : i32
    %c0_i32_1 = arith.constant 0 : i32
    return %c0_i32, %c0_i32_0 : i32, i32
  }
  func.func @transform_10(%arg0: i32) -> (i32, i32) {
    %c0_i32 = arith.constant 0 : i32
    %c0_i32_0 = arith.constant 0 : i32
    %c0_i32_1 = arith.constant 0 : i32
    return %c0_i32, %c0_i32_0 : i32, i32
  }
  func.func @transform_11(%arg0: i32) -> (i32, i32, i32) {
    %c0_i32 = arith.constant 0 : i32
    %c0_i32_0 = arith.constant 0 : i32
    %c0_i32_1 = arith.constant 0 : i32
    return %arg0, %c0_i32, %c0_i32_0 : i32, i32, i32
  }
  func.func @transform_12(%arg0: i32) -> (i32, i32, i32) {
    %c0_i32 = arith.constant 0 : i32
    %c0_i32_0 = arith.constant 0 : i32
    %c0_i32_1 = arith.constant 0 : i32
    return %arg0, %c0_i32, %c0_i32_0 : i32, i32, i32
  }
  func.func @transform_13(%arg0: i32) -> (i32, i32, i32) {
    %c0_i32 = arith.constant 0 : i32
    %c0_i32_0 = arith.constant 0 : i32
    %c0_i32_1 = arith.constant 0 : i32
    return %arg0, %c0_i32, %c0_i32_0 : i32, i32, i32
  }
}

module attributes {stable_mosaic.version = 11 : i64} {
  func.func @_dense_kernel(%arg0: i32, %arg1: memref<32x576xbf16, #tpu.memory_space<vmem>>, %arg2: memref<576x128xbf16, #tpu.memory_space<vmem>>, %arg3: memref<1x128xf32, #tpu.memory_space<vmem>>, %arg4: memref<32x128xf32, #tpu.memory_space<vmem>>) attributes {dimension_semantics = [#tpu.dimension_semantics<parallel>], iteration_bounds = array<i64: 1>, scalar_prefetch = 0 : i64, scratch_operands = 0 : i64, tpu.core_type = #tpu.core_type<tc>, window_params = [{transform_indices = @transform_0, window_bounds = array<i64: 32, 576>}, {pipeline_mode = #tpu.pipeline_mode<synchronous>, transform_indices = @transform_1, window_bounds = array<i64: 576, 128>}, {pipeline_mode = #tpu.pipeline_mode<synchronous>, transform_indices = @transform_2, window_bounds = array<i64: 1, 128>}, {transform_indices = @transform_3, window_bounds = array<i64: 32, 128>}]} {
    %c0 = arith.constant 0 : index
    %c0_0 = arith.constant 0 : index
    %0 = vector.load %arg1[%c0, %c0_0] : memref<32x576xbf16, #tpu.memory_space<vmem>>, vector<32x576xbf16>
    %c0_1 = arith.constant 0 : index
    %c0_2 = arith.constant 0 : index
    %1 = vector.load %arg2[%c0_1, %c0_2] : memref<576x128xbf16, #tpu.memory_space<vmem>>, vector<576x128xbf16>
    %cst = arith.constant dense<0.000000e+00> : vector<32x128xf32>
    %2 = tpu.matmul %0, %1, %cst {dimension_numbers = #tpu.dot_dimension_numbers<[1], [0], [0], [1], [0, 0, 1, 1], [], []>} : vector<32x576xbf16>, vector<576x128xbf16>, vector<32x128xf32> -> vector<32x128xf32>
    %c0_3 = arith.constant 0 : index
    %c0_4 = arith.constant 0 : index
    %3 = vector.load %arg3[%c0_3, %c0_4] : memref<1x128xf32, #tpu.memory_space<vmem>>, vector<1x128xf32>
    %4 = vector.broadcast %3 : vector<1x128xf32> to vector<32x128xf32>
    %5 = arith.addf %2, %4 : vector<32x128xf32>
    %cst_5 = arith.constant 0.000000e+00 : f32
    %6 = vector.broadcast %cst_5 : f32 to vector<32x128xf32>
    %7 = arith.maximumf %5, %6 : vector<32x128xf32>
    %c0_6 = arith.constant 0 : index
    %c0_7 = arith.constant 0 : index
    %8 = vector.load %arg4[%c0_6, %c0_7] : memref<32x128xf32, #tpu.memory_space<vmem>>, vector<32x128xf32>
    tpu.vector_store %arg4[%c0_6, %c0_7], %7 {strides = array<i32>} : memref<32x128xf32, #tpu.memory_space<vmem>>, vector<32x128xf32>,
    return
  }
  func.func @transform_0(%arg0: i32) -> (i32, i32) {
    %c0_i32 = arith.constant 0 : i32
    %c0_i32_0 = arith.constant 0 : i32
    return %arg0, %c0_i32 : i32, i32
  }
  func.func @transform_1(%arg0: i32) -> (i32, i32) {
    %c0_i32 = arith.constant 0 : i32
    %c0_i32_0 = arith.constant 0 : i32
    %c0_i32_1 = arith.constant 0 : i32
    return %c0_i32, %c0_i32_0 : i32, i32
  }
  func.func @transform_2(%arg0: i32) -> (i32, i32) {
    %c0_i32 = arith.constant 0 : i32
    %c0_i32_0 = arith.constant 0 : i32
    %c0_i32_1 = arith.constant 0 : i32
    return %c0_i32, %c0_i32_0 : i32, i32
  }
  func.func @transform_3(%arg0: i32) -> (i32, i32) {
    %c0_i32 = arith.constant 0 : i32
    %c0_i32_0 = arith.constant 0 : i32
    return %arg0, %c0_i32 : i32, i32
  }
}

module attributes {stable_mosaic.version = 11 : i64} {
  func.func @_adaa_kernel(%arg0: i32, %arg1: memref<1x16x128xf32, #tpu.memory_space<vmem>>, %arg2: memref<1x1x32xf32, #tpu.memory_space<vmem>>, %arg3: memref<128x32xf32, #tpu.memory_space<vmem>>, %arg4: memref<32x32xf32, #tpu.memory_space<vmem>>, %arg5: memref<128x32xf32, #tpu.memory_space<vmem>>, %arg6: memref<32x32xf32, #tpu.memory_space<vmem>>, %arg7: memref<128x32xf32, #tpu.memory_space<vmem>>, %arg8: memref<32x32xf32, #tpu.memory_space<vmem>>, %arg9: memref<1x32xf32, #tpu.memory_space<vmem>>, %arg10: memref<1x32xf32, #tpu.memory_space<vmem>>, %arg11: memref<32x128xf32, #tpu.memory_space<vmem>>, %arg12: memref<1x16x128xf32, #tpu.memory_space<vmem>>, %arg13: memref<1x1x128xf32, #tpu.memory_space<vmem>>, %arg14: memref<1x16x1xf32, #tpu.memory_space<vmem>>) attributes {dimension_semantics = [#tpu.dimension_semantics<parallel>], iteration_bounds = array<i64: 2>, scalar_prefetch = 0 : i64, scratch_operands = 0 : i64, tpu.core_type = #tpu.core_type<tc>, window_params = [{transform_indices = @transform_0, window_bounds = array<i64: 1, 16, 128>}, {transform_indices = @transform_1, window_bounds = array<i64: 1, 1, 32>}, {pipeline_mode = #tpu.pipeline_mode<synchronous>, transform_indices = @transform_2, window_bounds = array<i64: 128, 32>}, {pipeline_mode = #tpu.pipeline_mode<synchronous>, transform_indices = @transform_3, window_bounds = array<i64: 32, 32>}, {pipeline_mode = #tpu.pipeline_mode<synchronous>, transform_indices = @transform_4, window_bounds = array<i64: 128, 32>}, {pipeline_mode = #tpu.pipeline_mode<synchronous>, transform_indices = @transform_5, window_bounds = array<i64: 32, 32>}, {pipeline_mode = #tpu.pipeline_mode<synchronous>, transform_indices = @transform_6, window_bounds = array<i64: 128, 32>}, {pipeline_mode = #tpu.pipeline_mode<synchronous>, transform_indices = @transform_7, window_bounds = array<i64: 32, 32>}, {pipeline_mode = #tpu.pipeline_mode<synchronous>, transform_indices = @transform_8, window_bounds = array<i64: 1, 32>}, {pipeline_mode = #tpu.pipeline_mode<synchronous>, transform_indices = @transform_9, window_bounds = array<i64: 1, 32>}, {pipeline_mode = #tpu.pipeline_mode<synchronous>, transform_indices = @transform_10, window_bounds = array<i64: 32, 128>}, {transform_indices = @transform_11, window_bounds = array<i64: 1, 16, 128>}, {transform_indices = @transform_12, window_bounds = array<i64: 1, 1, 128>}, {transform_indices = @transform_13, window_bounds = array<i64: 1, 16, 1>}]} {
    %c0 = arith.constant 0 : index
    %c0_0 = arith.constant 0 : index
    %c0_1 = arith.constant 0 : index
    %0 = vector.load %arg1[%c0, %c0_0, %c0_1] : memref<1x16x128xf32, #tpu.memory_space<vmem>>, vector<1x16x128xf32>
    %1 = vector.shape_cast %0 : vector<1x16x128xf32> to vector<16x128xf32>
    %c0_2 = arith.constant 0 : index
    %c0_3 = arith.constant 0 : index
    %c0_4 = arith.constant 0 : index
    %2 = vector.load %arg2[%c0_2, %c0_3, %c0_4] : memref<1x1x32xf32, #tpu.memory_space<vmem>>, vector<1x1x32xf32>
    %3 = vector.shape_cast %2 : vector<1x1x32xf32> to vector<1x32xf32>
    %c0_5 = arith.constant 0 : index
    %c0_6 = arith.constant 0 : index
    %4 = vector.load %arg9[%c0_5, %c0_6] : memref<1x32xf32, #tpu.memory_space<vmem>>, vector<1x32xf32>
    %c0_7 = arith.constant 0 : index
    %c0_8 = arith.constant 0 : index
    %5 = vector.load %arg10[%c0_7, %c0_8] : memref<1x32xf32, #tpu.memory_space<vmem>>, vector<1x32xf32>
    %cst = arith.constant dense<0.000000e+00> : vector<128xf32>
    %6 = vector.multi_reduction <add>, %1, %cst [0] : vector<16x128xf32> to vector<128xf32>
    %7 = vector.shape_cast %6 : vector<128xf32> to vector<1x128xf32>
    %cst_9 = arith.constant 1.600000e+01 : f32
    %8 = vector.broadcast %cst_9 : f32 to vector<1x128xf32>
    %9 = arith.divf %7, %8 : vector<1x128xf32>
    %10 = arith.truncf %1 : vector<16x128xf32> to vector<16x128xbf16>
    %11 = arith.truncf %9 : vector<1x128xf32> to vector<1x128xbf16>
    %12 = arith.truncf %3 : vector<1x32xf32> to vector<1x32xbf16>
    %c0_10 = arith.constant 0 : index
    %c0_11 = arith.constant 0 : index
    %13 = vector.load %arg3[%c0_10, %c0_11] : memref<128x32xf32, #tpu.memory_space<vmem>>, vector<128x32xf32>
    %14 = arith.truncf %13 : vector<128x32xf32> to vector<128x32xbf16>
    %cst_12 = arith.constant dense<0.000000e+00> : vector<1x32xf32>
    %15 = tpu.matmul %11, %14, %cst_12 {dimension_numbers = #tpu.dot_dimension_numbers<[1], [0], [0], [1], [0, 0, 1, 1], [], []>} : vector<1x128xbf16>, vector<128x32xbf16>, vector<1x32xf32> -> vector<1x32xf32>
    %c0_13 = arith.constant 0 : index
    %c0_14 = arith.constant 0 : index
    %16 = vector.load %arg4[%c0_13, %c0_14] : memref<32x32xf32, #tpu.memory_space<vmem>>, vector<32x32xf32>
    %17 = arith.truncf %16 : vector<32x32xf32> to vector<32x32xbf16>
    %cst_15 = arith.constant dense<0.000000e+00> : vector<1x32xf32>
    %18 = tpu.matmul %12, %17, %cst_15 {dimension_numbers = #tpu.dot_dimension_numbers<[1], [0], [0], [1], [0, 0, 1, 1], [], []>} : vector<1x32xbf16>, vector<32x32xbf16>, vector<1x32xf32> -> vector<1x32xf32>
    %19 = arith.addf %15, %18 : vector<1x32xf32>
    %cst_16 = arith.constant 0.000000e+00 : f32
    %20 = vector.broadcast %cst_16 : f32 to vector<1x32xf32>
    %21 = arith.maximumf %19, %20 : vector<1x32xf32>
    %cst_17 = arith.constant dense<0.000000e+00> : vector<1xf32>
    %22 = vector.multi_reduction <add>, %21, %cst_17 [1] : vector<1x32xf32> to vector<1xf32>
    %23 = vector.shape_cast %22 : vector<1xf32> to vector<1x1xf32>
    %cst_18 = arith.constant 3.200000e+01 : f32
    %24 = vector.broadcast %cst_18 : f32 to vector<1x1xf32>
    %25 = arith.divf %23, %24 : vector<1x1xf32>
    %26 = vector.broadcast %25 : vector<1x1xf32> to vector<1x32xf32>
    %27 = arith.subf %21, %26 : vector<1x32xf32>
    %28 = arith.mulf %27, %27 : vector<1x32xf32>
    %cst_19 = arith.constant dense<0.000000e+00> : vector<1xf32>
    %29 = vector.multi_reduction <add>, %28, %cst_19 [1] : vector<1x32xf32> to vector<1xf32>
    %30 = vector.shape_cast %29 : vector<1xf32> to vector<1x1xf32>
    %cst_20 = arith.constant 3.200000e+01 : f32
    %31 = vector.broadcast %cst_20 : f32 to vector<1x1xf32>
    %32 = arith.divf %30, %31 : vector<1x1xf32>
    %33 = vector.broadcast %25 : vector<1x1xf32> to vector<1x32xf32>
    %34 = arith.subf %21, %33 : vector<1x32xf32>
    %cst_21 = arith.constant 9.99999974E-6 : f32
    %35 = vector.broadcast %cst_21 : f32 to vector<1x1xf32>
    %36 = arith.addf %32, %35 : vector<1x1xf32>
    %37 = math.rsqrt %36 : vector<1x1xf32>
    %38 = vector.broadcast %37 : vector<1x1xf32> to vector<1x32xf32>
    %39 = arith.mulf %34, %38 : vector<1x32xf32>
    %40 = arith.mulf %39, %4 : vector<1x32xf32>
    %41 = arith.addf %40, %5 : vector<1x32xf32>
    %c0_22 = arith.constant 0 : index
    %c0_23 = arith.constant 0 : index
    %42 = vector.load %arg5[%c0_22, %c0_23] : memref<128x32xf32, #tpu.memory_space<vmem>>, vector<128x32xf32>
    %43 = arith.truncf %42 : vector<128x32xf32> to vector<128x32xbf16>
    %cst_24 = arith.constant dense<0.000000e+00> : vector<1x32xf32>
    %44 = tpu.matmul %11, %43, %cst_24 {dimension_numbers = #tpu.dot_dimension_numbers<[1], [0], [0], [1], [0, 0, 1, 1], [], []>} : vector<1x128xbf16>, vector<128x32xbf16>, vector<1x32xf32> -> vector<1x32xf32>
    %c0_25 = arith.constant 0 : index
    %c0_26 = arith.constant 0 : index
    %45 = vector.load %arg6[%c0_25, %c0_26] : memref<32x32xf32, #tpu.memory_space<vmem>>, vector<32x32xf32>
    %46 = arith.truncf %45 : vector<32x32xf32> to vector<32x32xbf16>
    %cst_27 = arith.constant dense<0.000000e+00> : vector<1x32xf32>
    %47 = tpu.matmul %12, %46, %cst_27 {dimension_numbers = #tpu.dot_dimension_numbers<[1], [0], [0], [1], [0, 0, 1, 1], [], []>} : vector<1x32xbf16>, vector<32x32xbf16>, vector<1x32xf32> -> vector<1x32xf32>
    %48 = arith.addf %44, %47 : vector<1x32xf32>
    %cst_28 = arith.constant 0.000000e+00 : f32
    %49 = vector.broadcast %cst_28 : f32 to vector<1x32xf32>
    %50 = arith.maximumf %48, %49 : vector<1x32xf32>
    %cst_29 = arith.constant dense<0.000000e+00> : vector<1xf32>
    %51 = vector.multi_reduction <add>, %50, %cst_29 [1] : vector<1x32xf32> to vector<1xf32>
    %52 = vector.shape_cast %51 : vector<1xf32> to vector<1x1xf32>
    %cst_30 = arith.constant 3.200000e+01 : f32
    %53 = vector.broadcast %cst_30 : f32 to vector<1x1xf32>
    %54 = arith.divf %52, %53 : vector<1x1xf32>
    %55 = vector.broadcast %54 : vector<1x1xf32> to vector<1x32xf32>
    %56 = arith.subf %50, %55 : vector<1x32xf32>
    %57 = arith.mulf %56, %56 : vector<1x32xf32>
    %cst_31 = arith.constant dense<0.000000e+00> : vector<1xf32>
    %58 = vector.multi_reduction <add>, %57, %cst_31 [1] : vector<1x32xf32> to vector<1xf32>
    %59 = vector.shape_cast %58 : vector<1xf32> to vector<1x1xf32>
    %cst_32 = arith.constant 3.200000e+01 : f32
    %60 = vector.broadcast %cst_32 : f32 to vector<1x1xf32>
    %61 = arith.divf %59, %60 : vector<1x1xf32>
    %62 = vector.broadcast %54 : vector<1x1xf32> to vector<1x32xf32>
    %63 = arith.subf %50, %62 : vector<1x32xf32>
    %cst_33 = arith.constant 9.99999974E-6 : f32
    %64 = vector.broadcast %cst_33 : f32 to vector<1x1xf32>
    %65 = arith.addf %61, %64 : vector<1x1xf32>
    %66 = math.rsqrt %65 : vector<1x1xf32>
    %67 = vector.broadcast %66 : vector<1x1xf32> to vector<1x32xf32>
    %68 = arith.mulf %63, %67 : vector<1x32xf32>
    %69 = arith.mulf %68, %4 : vector<1x32xf32>
    %70 = arith.addf %69, %5 : vector<1x32xf32>
    %c0_34 = arith.constant 0 : index
    %c0_35 = arith.constant 0 : index
    %71 = vector.load %arg7[%c0_34, %c0_35] : memref<128x32xf32, #tpu.memory_space<vmem>>, vector<128x32xf32>
    %72 = arith.truncf %71 : vector<128x32xf32> to vector<128x32xbf16>
    %cst_36 = arith.constant dense<0.000000e+00> : vector<1x32xf32>
    %73 = tpu.matmul %11, %72, %cst_36 {dimension_numbers = #tpu.dot_dimension_numbers<[1], [0], [0], [1], [0, 0, 1, 1], [], []>} : vector<1x128xbf16>, vector<128x32xbf16>, vector<1x32xf32> -> vector<1x32xf32>
    %c0_37 = arith.constant 0 : index
    %c0_38 = arith.constant 0 : index
    %74 = vector.load %arg8[%c0_37, %c0_38] : memref<32x32xf32, #tpu.memory_space<vmem>>, vector<32x32xf32>
    %75 = arith.truncf %74 : vector<32x32xf32> to vector<32x32xbf16>
    %cst_39 = arith.constant dense<0.000000e+00> : vector<1x32xf32>
    %76 = tpu.matmul %12, %75, %cst_39 {dimension_numbers = #tpu.dot_dimension_numbers<[1], [0], [0], [1], [0, 0, 1, 1], [], []>} : vector<1x32xbf16>, vector<32x32xbf16>, vector<1x32xf32> -> vector<1x32xf32>
    %77 = arith.addf %73, %76 : vector<1x32xf32>
    %cst_40 = arith.constant 0.000000e+00 : f32
    %78 = vector.broadcast %cst_40 : f32 to vector<1x32xf32>
    %79 = arith.maximumf %77, %78 : vector<1x32xf32>
    %cst_41 = arith.constant dense<0.000000e+00> : vector<1xf32>
    %80 = vector.multi_reduction <add>, %79, %cst_41 [1] : vector<1x32xf32> to vector<1xf32>
    %81 = vector.shape_cast %80 : vector<1xf32> to vector<1x1xf32>
    %cst_42 = arith.constant 3.200000e+01 : f32
    %82 = vector.broadcast %cst_42 : f32 to vector<1x1xf32>
    %83 = arith.divf %81, %82 : vector<1x1xf32>
    %84 = vector.broadcast %83 : vector<1x1xf32> to vector<1x32xf32>
    %85 = arith.subf %79, %84 : vector<1x32xf32>
    %86 = arith.mulf %85, %85 : vector<1x32xf32>
    %cst_43 = arith.constant dense<0.000000e+00> : vector<1xf32>
    %87 = vector.multi_reduction <add>, %86, %cst_43 [1] : vector<1x32xf32> to vector<1xf32>
    %88 = vector.shape_cast %87 : vector<1xf32> to vector<1x1xf32>
    %cst_44 = arith.constant 3.200000e+01 : f32
    %89 = vector.broadcast %cst_44 : f32 to vector<1x1xf32>
    %90 = arith.divf %88, %89 : vector<1x1xf32>
    %91 = vector.broadcast %83 : vector<1x1xf32> to vector<1x32xf32>
    %92 = arith.subf %79, %91 : vector<1x32xf32>
    %cst_45 = arith.constant 9.99999974E-6 : f32
    %93 = vector.broadcast %cst_45 : f32 to vector<1x1xf32>
    %94 = arith.addf %90, %93 : vector<1x1xf32>
    %95 = math.rsqrt %94 : vector<1x1xf32>
    %96 = vector.broadcast %95 : vector<1x1xf32> to vector<1x32xf32>
    %97 = arith.mulf %92, %96 : vector<1x32xf32>
    %98 = arith.mulf %97, %4 : vector<1x32xf32>
    %99 = arith.addf %98, %5 : vector<1x32xf32>
    %c0_46 = arith.constant 0 : index
    %c0_47 = arith.constant 0 : index
    %100 = vector.load %arg5[%c0_46, %c0_47] : memref<128x32xf32, #tpu.memory_space<vmem>>, vector<128x32xf32>
    %101 = arith.truncf %100 : vector<128x32xf32> to vector<128x32xbf16>
    %cst_48 = arith.constant dense<0.000000e+00> : vector<16x32xf32>
    %102 = tpu.matmul %10, %101, %cst_48 {dimension_numbers = #tpu.dot_dimension_numbers<[1], [0], [0], [1], [0, 0, 1, 1], [], []>} : vector<16x128xbf16>, vector<128x32xbf16>, vector<16x32xf32> -> vector<16x32xf32>
    %c0_49 = arith.constant 0 : index
    %c0_50 = arith.constant 0 : index
    %103 = vector.load %arg6[%c0_49, %c0_50] : memref<32x32xf32, #tpu.memory_space<vmem>>, vector<32x32xf32>
    %104 = arith.truncf %103 : vector<32x32xf32> to vector<32x32xbf16>
    %cst_51 = arith.constant dense<0.000000e+00> : vector<1x32xf32>
    %105 = tpu.matmul %12, %104, %cst_51 {dimension_numbers = #tpu.dot_dimension_numbers<[1], [0], [0], [1], [0, 0, 1, 1], [], []>} : vector<1x32xbf16>, vector<32x32xbf16>, vector<1x32xf32> -> vector<1x32xf32>
    %106 = vector.broadcast %105 : vector<1x32xf32> to vector<16x32xf32>
    %107 = arith.addf %102, %106 : vector<16x32xf32>
    %cst_52 = arith.constant 0.000000e+00 : f32
    %108 = vector.broadcast %cst_52 : f32 to vector<16x32xf32>
    %109 = arith.maximumf %107, %108 : vector<16x32xf32>
    %cst_53 = arith.constant dense<0.000000e+00> : vector<16xf32>
    %110 = vector.multi_reduction <add>, %109, %cst_53 [1] : vector<16x32xf32> to vector<16xf32>
    %111 = vector.shape_cast %110 : vector<16xf32> to vector<16x1xf32>
    %cst_54 = arith.constant 3.200000e+01 : f32
    %112 = vector.broadcast %cst_54 : f32 to vector<16x1xf32>
    %113 = arith.divf %111, %112 : vector<16x1xf32>
    %114 = vector.broadcast %113 : vector<16x1xf32> to vector<16x32xf32>
    %115 = arith.subf %109, %114 : vector<16x32xf32>
    %116 = arith.mulf %115, %115 : vector<16x32xf32>
    %cst_55 = arith.constant dense<0.000000e+00> : vector<16xf32>
    %117 = vector.multi_reduction <add>, %116, %cst_55 [1] : vector<16x32xf32> to vector<16xf32>
    %118 = vector.shape_cast %117 : vector<16xf32> to vector<16x1xf32>
    %cst_56 = arith.constant 3.200000e+01 : f32
    %119 = vector.broadcast %cst_56 : f32 to vector<16x1xf32>
    %120 = arith.divf %118, %119 : vector<16x1xf32>
    %121 = vector.broadcast %113 : vector<16x1xf32> to vector<16x32xf32>
    %122 = arith.subf %109, %121 : vector<16x32xf32>
    %cst_57 = arith.constant 9.99999974E-6 : f32
    %123 = vector.broadcast %cst_57 : f32 to vector<16x1xf32>
    %124 = arith.addf %120, %123 : vector<16x1xf32>
    %125 = math.rsqrt %124 : vector<16x1xf32>
    %126 = vector.broadcast %125 : vector<16x1xf32> to vector<16x32xf32>
    %127 = arith.mulf %122, %126 : vector<16x32xf32>
    %128 = vector.broadcast %4 : vector<1x32xf32> to vector<16x32xf32>
    %129 = arith.mulf %127, %128 : vector<16x32xf32>
    %130 = vector.broadcast %5 : vector<1x32xf32> to vector<16x32xf32>
    %131 = arith.addf %129, %130 : vector<16x32xf32>
    %c0_58 = arith.constant 0 : index
    %c0_59 = arith.constant 0 : index
    %132 = vector.load %arg7[%c0_58, %c0_59] : memref<128x32xf32, #tpu.memory_space<vmem>>, vector<128x32xf32>
    %133 = arith.truncf %132 : vector<128x32xf32> to vector<128x32xbf16>
    %cst_60 = arith.constant dense<0.000000e+00> : vector<16x32xf32>
    %134 = tpu.matmul %10, %133, %cst_60 {dimension_numbers = #tpu.dot_dimension_numbers<[1], [0], [0], [1], [0, 0, 1, 1], [], []>} : vector<16x128xbf16>, vector<128x32xbf16>, vector<16x32xf32> -> vector<16x32xf32>
    %c0_61 = arith.constant 0 : index
    %c0_62 = arith.constant 0 : index
    %135 = vector.load %arg8[%c0_61, %c0_62] : memref<32x32xf32, #tpu.memory_space<vmem>>, vector<32x32xf32>
    %136 = arith.truncf %135 : vector<32x32xf32> to vector<32x32xbf16>
    %cst_63 = arith.constant dense<0.000000e+00> : vector<1x32xf32>
    %137 = tpu.matmul %12, %136, %cst_63 {dimension_numbers = #tpu.dot_dimension_numbers<[1], [0], [0], [1], [0, 0, 1, 1], [], []>} : vector<1x32xbf16>, vector<32x32xbf16>, vector<1x32xf32> -> vector<1x32xf32>
    %138 = vector.broadcast %137 : vector<1x32xf32> to vector<16x32xf32>
    %139 = arith.addf %134, %138 : vector<16x32xf32>
    %cst_64 = arith.constant 0.000000e+00 : f32
    %140 = vector.broadcast %cst_64 : f32 to vector<16x32xf32>
    %141 = arith.maximumf %139, %140 : vector<16x32xf32>
    %cst_65 = arith.constant dense<0.000000e+00> : vector<16xf32>
    %142 = vector.multi_reduction <add>, %141, %cst_65 [1] : vector<16x32xf32> to vector<16xf32>
    %143 = vector.shape_cast %142 : vector<16xf32> to vector<16x1xf32>
    %cst_66 = arith.constant 3.200000e+01 : f32
    %144 = vector.broadcast %cst_66 : f32 to vector<16x1xf32>
    %145 = arith.divf %143, %144 : vector<16x1xf32>
    %146 = vector.broadcast %145 : vector<16x1xf32> to vector<16x32xf32>
    %147 = arith.subf %141, %146 : vector<16x32xf32>
    %148 = arith.mulf %147, %147 : vector<16x32xf32>
    %cst_67 = arith.constant dense<0.000000e+00> : vector<16xf32>
    %149 = vector.multi_reduction <add>, %148, %cst_67 [1] : vector<16x32xf32> to vector<16xf32>
    %150 = vector.shape_cast %149 : vector<16xf32> to vector<16x1xf32>
    %cst_68 = arith.constant 3.200000e+01 : f32
    %151 = vector.broadcast %cst_68 : f32 to vector<16x1xf32>
    %152 = arith.divf %150, %151 : vector<16x1xf32>
    %153 = vector.broadcast %145 : vector<16x1xf32> to vector<16x32xf32>
    %154 = arith.subf %141, %153 : vector<16x32xf32>
    %cst_69 = arith.constant 9.99999974E-6 : f32
    %155 = vector.broadcast %cst_69 : f32 to vector<16x1xf32>
    %156 = arith.addf %152, %155 : vector<16x1xf32>
    %157 = math.rsqrt %156 : vector<16x1xf32>
    %158 = vector.broadcast %157 : vector<16x1xf32> to vector<16x32xf32>
    %159 = arith.mulf %154, %158 : vector<16x32xf32>
    %160 = vector.broadcast %4 : vector<1x32xf32> to vector<16x32xf32>
    %161 = arith.mulf %159, %160 : vector<16x32xf32>
    %162 = vector.broadcast %5 : vector<1x32xf32> to vector<16x32xf32>
    %163 = arith.addf %161, %162 : vector<16x32xf32>
    %164 = vector.broadcast %41 : vector<1x32xf32> to vector<16x32xf32>
    %165 = arith.mulf %131, %164 : vector<16x32xf32>
    %cst_70 = arith.constant dense<0.000000e+00> : vector<16xf32>
    %166 = vector.multi_reduction <add>, %165, %cst_70 [1] : vector<16x32xf32> to vector<16xf32>
    %167 = vector.shape_cast %166 : vector<16xf32> to vector<16x1xf32>
    %cst_71 = arith.constant 0.176776692 : f32
    %168 = vector.broadcast %cst_71 : f32 to vector<16x1xf32>
    %169 = arith.mulf %167, %168 : vector<16x1xf32>
    %170 = arith.mulf %70, %41 : vector<1x32xf32>
    %cst_72 = arith.constant dense<0.000000e+00> : vector<1xf32>
    %171 = vector.multi_reduction <add>, %170, %cst_72 [1] : vector<1x32xf32> to vector<1xf32>
    %172 = vector.shape_cast %171 : vector<1xf32> to vector<1x1xf32>
    %cst_73 = arith.constant 0.176776692 : f32
    %173 = vector.broadcast %cst_73 : f32 to vector<1x1xf32>
    %174 = arith.mulf %172, %173 : vector<1x1xf32>
    %cst_74 = arith.constant dense<0xFF800000> : vector<1xf32>
    %175 = vector.multi_reduction <maximumf>, %169, %cst_74 [0] : vector<16x1xf32> to vector<1xf32>
    %176 = vector.shape_cast %175 : vector<1xf32> to vector<1x1xf32>
    %177 = arith.maximumf %176, %174 : vector<1x1xf32>
    %178 = vector.broadcast %177 : vector<1x1xf32> to vector<16x1xf32>
    %179 = arith.subf %169, %178 : vector<16x1xf32>
    %180 = math.exp %179 : vector<16x1xf32>
    %181 = arith.subf %174, %177 : vector<1x1xf32>
    %182 = math.exp %181 : vector<1x1xf32>
    %cst_75 = arith.constant dense<0.000000e+00> : vector<1xf32>
    %183 = vector.multi_reduction <add>, %180, %cst_75 [0] : vector<16x1xf32> to vector<1xf32>
    %184 = vector.shape_cast %183 : vector<1xf32> to vector<1x1xf32>
    %185 = arith.addf %184, %182 : vector<1x1xf32>
    %186 = tpu.reciprocal %185 {approx = true} : vector<1x1xf32> -> vector<1x1xf32>
    %187 = vector.broadcast %186 : vector<1x1xf32> to vector<16x1xf32>
    %188 = arith.mulf %180, %187 : vector<16x1xf32>
    %189 = arith.mulf %182, %186 : vector<1x1xf32>
    %190 = vector.broadcast %188 : vector<16x1xf32> to vector<16x32xf32>
    %191 = arith.mulf %190, %163 : vector<16x32xf32>
    %cst_76 = arith.constant dense<0.000000e+00> : vector<32xf32>
    %192 = vector.multi_reduction <add>, %191, %cst_76 [0] : vector<16x32xf32> to vector<32xf32>
    %193 = vector.shape_cast %192 : vector<32xf32> to vector<1x32xf32>
    %194 = vector.broadcast %189 : vector<1x1xf32> to vector<1x32xf32>
    %195 = arith.mulf %194, %99 : vector<1x32xf32>
    %196 = arith.addf %193, %195 : vector<1x32xf32>
    %c0_77 = arith.constant 0 : index
    %c0_78 = arith.constant 0 : index
    %197 = vector.load %arg11[%c0_77, %c0_78] : memref<32x128xf32, #tpu.memory_space<vmem>>, vector<32x128xf32>
    %cst_79 = arith.constant dense<0.000000e+00> : vector<1x128xf32>
    %198 = tpu.matmul %196, %197, %cst_79 {dimension_numbers = #tpu.dot_dimension_numbers<[1], [0], [0], [1], [0, 0, 1, 1], [], []>} : vector<1x32xf32>, vector<32x128xf32>, vector<1x128xf32> -> vector<1x128xf32>
    %199 = vector.broadcast %188 : vector<16x1xf32> to vector<16x128xf32>
    %200 = arith.mulf %1, %199 : vector<16x128xf32>
    %c0_80 = arith.constant 0 : index
    %c0_81 = arith.constant 0 : index
    %c0_82 = arith.constant 0 : index
    %201 = vector.load %arg12[%c0_80, %c0_81, %c0_82] : memref<1x16x128xf32, #tpu.memory_space<vmem>>, vector<1x16x128xf32>
    %202 = vector.shape_cast %201 : vector<1x16x128xf32> to vector<16x128xf32>
    %203 = vector.shape_cast %200 : vector<16x128xf32> to vector<1x16x128xf32>
    tpu.vector_store %arg12[%c0_80, %c0_81, %c0_82], %203 {strides = array<i32>} : memref<1x16x128xf32, #tpu.memory_space<vmem>>, vector<1x16x128xf32>,
    %c0_83 = arith.constant 0 : index
    %c0_84 = arith.constant 0 : index
    %c0_85 = arith.constant 0 : index
    %204 = vector.load %arg13[%c0_83, %c0_84, %c0_85] : memref<1x1x128xf32, #tpu.memory_space<vmem>>, vector<1x1x128xf32>
    %205 = vector.shape_cast %204 : vector<1x1x128xf32> to vector<1x128xf32>
    %206 = vector.shape_cast %198 : vector<1x128xf32> to vector<1x1x128xf32>
    tpu.vector_store %arg13[%c0_83, %c0_84, %c0_85], %206 {strides = array<i32>} : memref<1x1x128xf32, #tpu.memory_space<vmem>>, vector<1x1x128xf32>,
    %c0_86 = arith.constant 0 : index
    %c0_87 = arith.constant 0 : index
    %c0_88 = arith.constant 0 : index
    %207 = vector.load %arg14[%c0_86, %c0_87, %c0_88] : memref<1x16x1xf32, #tpu.memory_space<vmem>>, vector<1x16x1xf32>
    %208 = vector.shape_cast %207 : vector<1x16x1xf32> to vector<16x1xf32>
    %209 = vector.shape_cast %188 : vector<16x1xf32> to vector<1x16x1xf32>
    tpu.vector_store %arg14[%c0_86, %c0_87, %c0_88], %209 {strides = array<i32>} : memref<1x16x1xf32, #tpu.memory_space<vmem>>, vector<1x16x1xf32>,
    return
  }
  func.func @transform_0(%arg0: i32) -> (i32, i32, i32) {
    %c0_i32 = arith.constant 0 : i32
    %c0_i32_0 = arith.constant 0 : i32
    %c0_i32_1 = arith.constant 0 : i32
    return %arg0, %c0_i32, %c0_i32_0 : i32, i32, i32
  }
  func.func @transform_1(%arg0: i32) -> (i32, i32, i32) {
    %c0_i32 = arith.constant 0 : i32
    %c0_i32_0 = arith.constant 0 : i32
    %c0_i32_1 = arith.constant 0 : i32
    return %arg0, %c0_i32, %c0_i32_0 : i32, i32, i32
  }
  func.func @transform_2(%arg0: i32) -> (i32, i32) {
    %c0_i32 = arith.constant 0 : i32
    %c0_i32_0 = arith.constant 0 : i32
    %c0_i32_1 = arith.constant 0 : i32
    return %c0_i32, %c0_i32_0 : i32, i32
  }
  func.func @transform_3(%arg0: i32) -> (i32, i32) {
    %c0_i32 = arith.constant 0 : i32
    %c0_i32_0 = arith.constant 0 : i32
    %c0_i32_1 = arith.constant 0 : i32
    return %c0_i32, %c0_i32_0 : i32, i32
  }
  func.func @transform_4(%arg0: i32) -> (i32, i32) {
    %c0_i32 = arith.constant 0 : i32
    %c0_i32_0 = arith.constant 0 : i32
    %c0_i32_1 = arith.constant 0 : i32
    return %c0_i32, %c0_i32_0 : i32, i32
  }
  func.func @transform_5(%arg0: i32) -> (i32, i32) {
    %c0_i32 = arith.constant 0 : i32
    %c0_i32_0 = arith.constant 0 : i32
    %c0_i32_1 = arith.constant 0 : i32
    return %c0_i32, %c0_i32_0 : i32, i32
  }
  func.func @transform_6(%arg0: i32) -> (i32, i32) {
    %c0_i32 = arith.constant 0 : i32
    %c0_i32_0 = arith.constant 0 : i32
    %c0_i32_1 = arith.constant 0 : i32
    return %c0_i32, %c0_i32_0 : i32, i32
  }
  func.func @transform_7(%arg0: i32) -> (i32, i32) {
    %c0_i32 = arith.constant 0 : i32
    %c0_i32_0 = arith.constant 0 : i32
    %c0_i32_1 = arith.constant 0 : i32
    return %c0_i32, %c0_i32_0 : i32, i32
  }
  func.func @transform_8(%arg0: i32) -> (i32, i32) {
    %c0_i32 = arith.constant 0 : i32
    %c0_i32_0 = arith.constant 0 : i32
    %c0_i32_1 = arith.constant 0 : i32
    return %c0_i32, %c0_i32_0 : i32, i32
  }
  func.func @transform_9(%arg0: i32) -> (i32, i32) {
    %c0_i32 = arith.constant 0 : i32
    %c0_i32_0 = arith.constant 0 : i32
    %c0_i32_1 = arith.constant 0 : i32
    return %c0_i32, %c0_i32_0 : i32, i32
  }
  func.func @transform_10(%arg0: i32) -> (i32, i32) {
    %c0_i32 = arith.constant 0 : i32
    %c0_i32_0 = arith.constant 0 : i32
    %c0_i32_1 = arith.constant 0 : i32
    return %c0_i32, %c0_i32_0 : i32, i32
  }
  func.func @transform_11(%arg0: i32) -> (i32, i32, i32) {
    %c0_i32 = arith.constant 0 : i32
    %c0_i32_0 = arith.constant 0 : i32
    %c0_i32_1 = arith.constant 0 : i32
    return %arg0, %c0_i32, %c0_i32_0 : i32, i32, i32
  }
  func.func @transform_12(%arg0: i32) -> (i32, i32, i32) {
    %c0_i32 = arith.constant 0 : i32
    %c0_i32_0 = arith.constant 0 : i32
    %c0_i32_1 = arith.constant 0 : i32
    return %arg0, %c0_i32, %c0_i32_0 : i32, i32, i32
  }
  func.func @transform_13(%arg0: i32) -> (i32, i32, i32) {
    %c0_i32 = arith.constant 0 : i32
    %c0_i32_0 = arith.constant 0 : i32
    %c0_i32_1 = arith.constant 0 : i32
    return %arg0, %c0_i32, %c0_i32_0 : i32, i32, i32
  }
}

module attributes {stable_mosaic.version = 11 : i64} {
  func.func @_gcn_kernel(%arg0: i32, %arg1: memref<1x16x128xf32, #tpu.memory_space<vmem>>, %arg2: memref<128x32xf32, #tpu.memory_space<vmem>>, %arg3: memref<128x32xf32, #tpu.memory_space<vmem>>, %arg4: memref<128x128xf32, #tpu.memory_space<vmem>>, %arg5: memref<1x1x128xf32, #tpu.memory_space<vmem>>) attributes {dimension_semantics = [#tpu.dimension_semantics<parallel>], iteration_bounds = array<i64: 2>, scalar_prefetch = 0 : i64, scratch_operands = 0 : i64, tpu.core_type = #tpu.core_type<tc>, window_params = [{transform_indices = @transform_0, window_bounds = array<i64: 1, 16, 128>}, {pipeline_mode = #tpu.pipeline_mode<synchronous>, transform_indices = @transform_1, window_bounds = array<i64: 128, 32>}, {pipeline_mode = #tpu.pipeline_mode<synchronous>, transform_indices = @transform_2, window_bounds = array<i64: 128, 32>}, {pipeline_mode = #tpu.pipeline_mode<synchronous>, transform_indices = @transform_3, window_bounds = array<i64: 128, 128>}, {transform_indices = @transform_4, window_bounds = array<i64: 1, 1, 128>}]} {
    %c0 = arith.constant 0 : index
    %c0_0 = arith.constant 0 : index
    %c0_1 = arith.constant 0 : index
    %0 = vector.load %arg1[%c0, %c0_0, %c0_1] : memref<1x16x128xf32, #tpu.memory_space<vmem>>, vector<1x16x128xf32>
    %1 = vector.shape_cast %0 : vector<1x16x128xf32> to vector<16x128xf32>
    %c0_2 = arith.constant 0 : index
    %c0_3 = arith.constant 0 : index
    %2 = vector.load %arg2[%c0_2, %c0_3] : memref<128x32xf32, #tpu.memory_space<vmem>>, vector<128x32xf32>
    %cst = arith.constant dense<0.000000e+00> : vector<16x32xf32>
    %3 = tpu.matmul %1, %2, %cst {dimension_numbers = #tpu.dot_dimension_numbers<[1], [0], [0], [1], [0, 0, 1, 1], [], []>} : vector<16x128xf32>, vector<128x32xf32>, vector<16x32xf32> -> vector<16x32xf32>
    %c0_4 = arith.constant 0 : index
    %c0_5 = arith.constant 0 : index
    %4 = vector.load %arg3[%c0_4, %c0_5] : memref<128x32xf32, #tpu.memory_space<vmem>>, vector<128x32xf32>
    %cst_6 = arith.constant dense<0.000000e+00> : vector<16x32xf32>
    %5 = tpu.matmul %1, %4, %cst_6 {dimension_numbers = #tpu.dot_dimension_numbers<[1], [0], [0], [1], [0, 0, 1, 1], [], []>} : vector<16x128xf32>, vector<128x32xf32>, vector<16x32xf32> -> vector<16x32xf32>
    %cst_7 = arith.constant 0.000000e+00 : f32
    %6 = vector.broadcast %cst_7 : f32 to vector<16x32xf32>
    %7 = arith.cmpf ogt, %3, %6 : vector<16x32xf32>
    %cst_8 = arith.constant 0.00999999977 : f32
    %8 = vector.broadcast %cst_8 : f32 to vector<16x32xf32>
    %9 = arith.mulf %8, %3 : vector<16x32xf32>
    %10 = arith.select %7, %3, %9 : vector<16x32xi1>, vector<16x32xf32>
    %cst_9 = arith.constant 0.000000e+00 : f32
    %11 = vector.broadcast %cst_9 : f32 to vector<16x32xf32>
    %12 = arith.cmpf ogt, %5, %11 : vector<16x32xf32>
    %cst_10 = arith.constant 0.00999999977 : f32
    %13 = vector.broadcast %cst_10 : f32 to vector<16x32xf32>
    %14 = arith.mulf %13, %5 : vector<16x32xf32>
    %15 = arith.select %12, %5, %14 : vector<16x32xi1>, vector<16x32xf32>
    %cst_11 = arith.constant dense<0.000000e+00> : vector<16x16xf32>
    %16 = tpu.matmul %10, %15, %cst_11 {dimension_numbers = #tpu.dot_dimension_numbers<[1], [1], [0], [0], [0, 0, 1, 0], [], []>} : vector<16x32xf32>, vector<16x32xf32>, vector<16x16xf32> -> vector<16x16xf32>
    %cst_12 = arith.constant dense<0xFF800000> : vector<16xf32>
    %17 = vector.multi_reduction <maximumf>, %16, %cst_12 [1] : vector<16x16xf32> to vector<16xf32>
    %18 = vector.shape_cast %17 : vector<16xf32> to vector<16x1xf32>
    %19 = vector.broadcast %18 : vector<16x1xf32> to vector<16x16xf32>
    %20 = arith.subf %16, %19 : vector<16x16xf32>
    %21 = math.exp %20 : vector<16x16xf32>
    %cst_13 = arith.constant dense<0.000000e+00> : vector<16xf32>
    %22 = vector.multi_reduction <add>, %21, %cst_13 [1] : vector<16x16xf32> to vector<16xf32>
    %23 = vector.shape_cast %22 : vector<16xf32> to vector<16x1xf32>
    %24 = tpu.reciprocal %23 {approx = true} : vector<16x1xf32> -> vector<16x1xf32>
    %25 = vector.broadcast %24 : vector<16x1xf32> to vector<16x16xf32>
    %26 = arith.mulf %21, %25 : vector<16x16xf32>
    %cst_14 = arith.constant dense<0.000000e+00> : vector<16x128xf32>
    %27 = tpu.matmul %26, %1, %cst_14 {dimension_numbers = #tpu.dot_dimension_numbers<[1], [0], [0], [1], [0, 0, 1, 1], [], []>} : vector<16x16xf32>, vector<16x128xf32>, vector<16x128xf32> -> vector<16x128xf32>
    %c0_15 = arith.constant 0 : index
    %c0_16 = arith.constant 0 : index
    %28 = vector.load %arg4[%c0_15, %c0_16] : memref<128x128xf32, #tpu.memory_space<vmem>>, vector<128x128xf32>
    %cst_17 = arith.constant dense<0.000000e+00> : vector<16x128xf32>
    %29 = tpu.matmul %27, %28, %cst_17 {dimension_numbers = #tpu.dot_dimension_numbers<[1], [0], [0], [1], [0, 0, 1, 1], [], []>} : vector<16x128xf32>, vector<128x128xf32>, vector<16x128xf32> -> vector<16x128xf32>
    %cst_18 = arith.constant 0.000000e+00 : f32
    %30 = vector.broadcast %cst_18 : f32 to vector<16x128xf32>
    %31 = arith.cmpf ogt, %29, %30 : vector<16x128xf32>
    %cst_19 = arith.constant 0.00999999977 : f32
    %32 = vector.broadcast %cst_19 : f32 to vector<16x128xf32>
    %33 = arith.mulf %32, %29 : vector<16x128xf32>
    %34 = arith.select %31, %29, %33 : vector<16x128xi1>, vector<16x128xf32>
    %cst_20 = arith.constant dense<0.000000e+00> : vector<128xf32>
    %35 = vector.multi_reduction <add>, %34, %cst_20 [0] : vector<16x128xf32> to vector<128xf32>
    %36 = vector.shape_cast %35 : vector<128xf32> to vector<1x128xf32>
    %cst_21 = arith.constant 1.600000e+01 : f32
    %37 = vector.broadcast %cst_21 : f32 to vector<1x128xf32>
    %38 = arith.divf %36, %37 : vector<1x128xf32>
    %c0_22 = arith.constant 0 : index
    %c0_23 = arith.constant 0 : index
    %c0_24 = arith.constant 0 : index
    %39 = vector.load %arg5[%c0_22, %c0_23, %c0_24] : memref<1x1x128xf32, #tpu.memory_space<vmem>>, vector<1x1x128xf32>
    %40 = vector.shape_cast %39 : vector<1x1x128xf32> to vector<1x128xf32>
    %41 = vector.shape_cast %38 : vector<1x128xf32> to vector<1x1x128xf32>
    tpu.vector_store %arg5[%c0_22, %c0_23, %c0_24], %41 {strides = array<i32>} : memref<1x1x128xf32, #tpu.memory_space<vmem>>, vector<1x1x128xf32>,
    return
  }
  func.func @transform_0(%arg0: i32) -> (i32, i32, i32) {
    %c0_i32 = arith.constant 0 : i32
    %c0_i32_0 = arith.constant 0 : i32
    %c0_i32_1 = arith.constant 0 : i32
    return %arg0, %c0_i32, %c0_i32_0 : i32, i32, i32
  }
  func.func @transform_1(%arg0: i32) -> (i32, i32) {
    %c0_i32 = arith.constant 0 : i32
    %c0_i32_0 = arith.constant 0 : i32
    %c0_i32_1 = arith.constant 0 : i32
    return %c0_i32, %c0_i32_0 : i32, i32
  }
  func.func @transform_2(%arg0: i32) -> (i32, i32) {
    %c0_i32 = arith.constant 0 : i32
    %c0_i32_0 = arith.constant 0 : i32
    %c0_i32_1 = arith.constant 0 : i32
    return %c0_i32, %c0_i32_0 : i32, i32
  }
  func.func @transform_3(%arg0: i32) -> (i32, i32) {
    %c0_i32 = arith.constant 0 : i32
    %c0_i32_0 = arith.constant 0 : i32
    %c0_i32_1 = arith.constant 0 : i32
    return %c0_i32, %c0_i32_0 : i32, i32
  }
  func.func @transform_4(%arg0: i32) -> (i32, i32, i32) {
    %c0_i32 = arith.constant 0 : i32
    %c0_i32_0 = arith.constant 0 : i32
    %c0_i32_1 = arith.constant 0 : i32
    return %arg0, %c0_i32, %c0_i32_0 : i32, i32, i32
  }
}

module attributes {stable_mosaic.version = 11 : i64} {
  func.func @_fc_head_kernel(%arg0: memref<2x160xf32, #tpu.memory_space<vmem>>, %arg1: memref<160x64xf32, #tpu.memory_space<vmem>>, %arg2: memref<1x64xf32, #tpu.memory_space<vmem>>, %arg3: memref<64x32xf32, #tpu.memory_space<vmem>>, %arg4: memref<1x32xf32, #tpu.memory_space<vmem>>, %arg5: memref<1x32xf32, #tpu.memory_space<vmem>>, %arg6: memref<1x1xf32, #tpu.memory_space<vmem>>, %arg7: memref<2x1xf32, #tpu.memory_space<vmem>>) attributes {dimension_semantics = [], scalar_prefetch = 0 : i64, scratch_operands = 0 : i64, tpu.core_type = #tpu.core_type<tc>} {
    %c0 = arith.constant 0 : index
    %c0_0 = arith.constant 0 : index
    %0 = vector.load %arg0[%c0, %c0_0] : memref<2x160xf32, #tpu.memory_space<vmem>>, vector<2x160xf32>
    %c0_1 = arith.constant 0 : index
    %c0_2 = arith.constant 0 : index
    %1 = vector.load %arg1[%c0_1, %c0_2] : memref<160x64xf32, #tpu.memory_space<vmem>>, vector<160x64xf32>
    %cst = arith.constant dense<0.000000e+00> : vector<2x64xf32>
    %2 = tpu.matmul %0, %1, %cst {dimension_numbers = #tpu.dot_dimension_numbers<[1], [0], [0], [1], [0, 0, 1, 1], [], []>} : vector<2x160xf32>, vector<160x64xf32>, vector<2x64xf32> -> vector<2x64xf32>
    %c0_3 = arith.constant 0 : index
    %c0_4 = arith.constant 0 : index
    %3 = vector.load %arg2[%c0_3, %c0_4] : memref<1x64xf32, #tpu.memory_space<vmem>>, vector<1x64xf32>
    %4 = vector.broadcast %3 : vector<1x64xf32> to vector<2x64xf32>
    %5 = arith.addf %2, %4 : vector<2x64xf32>
    %cst_5 = arith.constant 0.000000e+00 : f32
    %6 = vector.broadcast %cst_5 : f32 to vector<2x64xf32>
    %7 = arith.maximumf %5, %6 : vector<2x64xf32>
    %c0_6 = arith.constant 0 : index
    %c0_7 = arith.constant 0 : index
    %8 = vector.load %arg3[%c0_6, %c0_7] : memref<64x32xf32, #tpu.memory_space<vmem>>, vector<64x32xf32>
    %cst_8 = arith.constant dense<0.000000e+00> : vector<2x32xf32>
    %9 = tpu.matmul %7, %8, %cst_8 {dimension_numbers = #tpu.dot_dimension_numbers<[1], [0], [0], [1], [0, 0, 1, 1], [], []>} : vector<2x64xf32>, vector<64x32xf32>, vector<2x32xf32> -> vector<2x32xf32>
    %c0_9 = arith.constant 0 : index
    %c0_10 = arith.constant 0 : index
    %10 = vector.load %arg4[%c0_9, %c0_10] : memref<1x32xf32, #tpu.memory_space<vmem>>, vector<1x32xf32>
    %11 = vector.broadcast %10 : vector<1x32xf32> to vector<2x32xf32>
    %12 = arith.addf %9, %11 : vector<2x32xf32>
    %cst_11 = arith.constant 0.000000e+00 : f32
    %13 = vector.broadcast %cst_11 : f32 to vector<2x32xf32>
    %14 = arith.maximumf %12, %13 : vector<2x32xf32>
    %c0_12 = arith.constant 0 : index
    %c0_13 = arith.constant 0 : index
    %15 = vector.load %arg5[%c0_12, %c0_13] : memref<1x32xf32, #tpu.memory_space<vmem>>, vector<1x32xf32>
    %16 = vector.broadcast %15 : vector<1x32xf32> to vector<2x32xf32>
    %17 = arith.mulf %14, %16 : vector<2x32xf32>
    %cst_14 = arith.constant dense<0.000000e+00> : vector<2xf32>
    %18 = vector.multi_reduction <add>, %17, %cst_14 [1] : vector<2x32xf32> to vector<2xf32>
    %19 = vector.shape_cast %18 : vector<2xf32> to vector<2x1xf32>
    %c0_15 = arith.constant 0 : index
    %c0_16 = arith.constant 0 : index
    %20 = vector.load %arg6[%c0_15, %c0_16] : memref<1x1xf32, #tpu.memory_space<vmem>>, vector<1x1xf32>
    %21 = vector.broadcast %20 : vector<1x1xf32> to vector<2x1xf32>
    %22 = arith.addf %19, %21 : vector<2x1xf32>
    %c0_17 = arith.constant 0 : index
    %c0_18 = arith.constant 0 : index
    %23 = vector.load %arg7[%c0_17, %c0_18] : memref<2x1xf32, #tpu.memory_space<vmem>>, vector<2x1xf32>
    tpu.vector_store %arg7[%c0_17, %c0_18], %22 {strides = array<i32>} : memref<2x1xf32, #tpu.memory_space<vmem>>, vector<2x1xf32>,
    return
  }
}

module attributes {stable_mosaic.version = 11 : i64} {
  func.func @_emb_kernel(%arg0: memref<2x128xf32, #tpu.memory_space<vmem>>, %arg1: memref<128x32xf32, #tpu.memory_space<vmem>>, %arg2: memref<1x32xf32, #tpu.memory_space<vmem>>, %arg3: memref<32x48xf32, #tpu.memory_space<vmem>>, %arg4: memref<1x48xf32, #tpu.memory_space<vmem>>, %arg5: memref<2x48xf32, #tpu.memory_space<vmem>>) attributes {dimension_semantics = [], scalar_prefetch = 0 : i64, scratch_operands = 0 : i64, tpu.core_type = #tpu.core_type<tc>} {
    %c0 = arith.constant 0 : index
    %c0_0 = arith.constant 0 : index
    %0 = vector.load %arg0[%c0, %c0_0] : memref<2x128xf32, #tpu.memory_space<vmem>>, vector<2x128xf32>
    %c0_1 = arith.constant 0 : index
    %c0_2 = arith.constant 0 : index
    %1 = vector.load %arg1[%c0_1, %c0_2] : memref<128x32xf32, #tpu.memory_space<vmem>>, vector<128x32xf32>
    %cst = arith.constant dense<0.000000e+00> : vector<2x32xf32>
    %2 = tpu.matmul %0, %1, %cst {dimension_numbers = #tpu.dot_dimension_numbers<[1], [0], [0], [1], [0, 0, 1, 1], [], []>} : vector<2x128xf32>, vector<128x32xf32>, vector<2x32xf32> -> vector<2x32xf32>
    %c0_3 = arith.constant 0 : index
    %c0_4 = arith.constant 0 : index
    %3 = vector.load %arg2[%c0_3, %c0_4] : memref<1x32xf32, #tpu.memory_space<vmem>>, vector<1x32xf32>
    %4 = vector.broadcast %3 : vector<1x32xf32> to vector<2x32xf32>
    %5 = arith.addf %2, %4 : vector<2x32xf32>
    %cst_5 = arith.constant 0.000000e+00 : f32
    %6 = vector.broadcast %cst_5 : f32 to vector<2x32xf32>
    %7 = arith.maximumf %5, %6 : vector<2x32xf32>
    %c0_6 = arith.constant 0 : index
    %c0_7 = arith.constant 0 : index
    %8 = vector.load %arg3[%c0_6, %c0_7] : memref<32x48xf32, #tpu.memory_space<vmem>>, vector<32x48xf32>
    %cst_8 = arith.constant dense<0.000000e+00> : vector<2x48xf32>
    %9 = tpu.matmul %7, %8, %cst_8 {dimension_numbers = #tpu.dot_dimension_numbers<[1], [0], [0], [1], [0, 0, 1, 1], [], []>} : vector<2x32xf32>, vector<32x48xf32>, vector<2x48xf32> -> vector<2x48xf32>
    %c0_9 = arith.constant 0 : index
    %c0_10 = arith.constant 0 : index
    %10 = vector.load %arg4[%c0_9, %c0_10] : memref<1x48xf32, #tpu.memory_space<vmem>>, vector<1x48xf32>
    %11 = vector.broadcast %10 : vector<1x48xf32> to vector<2x48xf32>
    %12 = arith.addf %9, %11 : vector<2x48xf32>
    %13 = arith.mulf %12, %12 : vector<2x48xf32>
    %cst_11 = arith.constant dense<0.000000e+00> : vector<2xf32>
    %14 = vector.multi_reduction <add>, %13, %cst_11 [1] : vector<2x48xf32> to vector<2xf32>
    %15 = vector.shape_cast %14 : vector<2xf32> to vector<2x1xf32>
    %16 = math.sqrt %15 : vector<2x1xf32>
    %cst_12 = arith.constant 9.99999996E-13 : f32
    %17 = vector.broadcast %cst_12 : f32 to vector<2x1xf32>
    %18 = arith.maximumf %16, %17 : vector<2x1xf32>
    %19 = vector.broadcast %18 : vector<2x1xf32> to vector<2x48xf32>
    %20 = arith.divf %12, %19 : vector<2x48xf32>
    %c0_13 = arith.constant 0 : index
    %c0_14 = arith.constant 0 : index
    %21 = vector.load %arg5[%c0_13, %c0_14] : memref<2x48xf32, #tpu.memory_space<vmem>>, vector<2x48xf32>
    tpu.vector_store %arg5[%c0_13, %c0_14], %20 {strides = array<i32>} : memref<2x48xf32, #tpu.memory_space<vmem>>, vector<2x48xf32>,
    return
  }
}

module attributes {stable_mosaic.version = 11 : i64} {
  func.func @_emb_kernel(%arg0: memref<2x64xf32, #tpu.memory_space<vmem>>, %arg1: memref<64x32xf32, #tpu.memory_space<vmem>>, %arg2: memref<1x32xf32, #tpu.memory_space<vmem>>, %arg3: memref<32x48xf32, #tpu.memory_space<vmem>>, %arg4: memref<1x48xf32, #tpu.memory_space<vmem>>, %arg5: memref<2x48xf32, #tpu.memory_space<vmem>>) attributes {dimension_semantics = [], scalar_prefetch = 0 : i64, scratch_operands = 0 : i64, tpu.core_type = #tpu.core_type<tc>} {
    %c0 = arith.constant 0 : index
    %c0_0 = arith.constant 0 : index
    %0 = vector.load %arg0[%c0, %c0_0] : memref<2x64xf32, #tpu.memory_space<vmem>>, vector<2x64xf32>
    %c0_1 = arith.constant 0 : index
    %c0_2 = arith.constant 0 : index
    %1 = vector.load %arg1[%c0_1, %c0_2] : memref<64x32xf32, #tpu.memory_space<vmem>>, vector<64x32xf32>
    %cst = arith.constant dense<0.000000e+00> : vector<2x32xf32>
    %2 = tpu.matmul %0, %1, %cst {dimension_numbers = #tpu.dot_dimension_numbers<[1], [0], [0], [1], [0, 0, 1, 1], [], []>} : vector<2x64xf32>, vector<64x32xf32>, vector<2x32xf32> -> vector<2x32xf32>
    %c0_3 = arith.constant 0 : index
    %c0_4 = arith.constant 0 : index
    %3 = vector.load %arg2[%c0_3, %c0_4] : memref<1x32xf32, #tpu.memory_space<vmem>>, vector<1x32xf32>
    %4 = vector.broadcast %3 : vector<1x32xf32> to vector<2x32xf32>
    %5 = arith.addf %2, %4 : vector<2x32xf32>
    %cst_5 = arith.constant 0.000000e+00 : f32
    %6 = vector.broadcast %cst_5 : f32 to vector<2x32xf32>
    %7 = arith.maximumf %5, %6 : vector<2x32xf32>
    %c0_6 = arith.constant 0 : index
    %c0_7 = arith.constant 0 : index
    %8 = vector.load %arg3[%c0_6, %c0_7] : memref<32x48xf32, #tpu.memory_space<vmem>>, vector<32x48xf32>
    %cst_8 = arith.constant dense<0.000000e+00> : vector<2x48xf32>
    %9 = tpu.matmul %7, %8, %cst_8 {dimension_numbers = #tpu.dot_dimension_numbers<[1], [0], [0], [1], [0, 0, 1, 1], [], []>} : vector<2x32xf32>, vector<32x48xf32>, vector<2x48xf32> -> vector<2x48xf32>
    %c0_9 = arith.constant 0 : index
    %c0_10 = arith.constant 0 : index
    %10 = vector.load %arg4[%c0_9, %c0_10] : memref<1x48xf32, #tpu.memory_space<vmem>>, vector<1x48xf32>
    %11 = vector.broadcast %10 : vector<1x48xf32> to vector<2x48xf32>
    %12 = arith.addf %9, %11 : vector<2x48xf32>
    %13 = arith.mulf %12, %12 : vector<2x48xf32>
    %cst_11 = arith.constant dense<0.000000e+00> : vector<2xf32>
    %14 = vector.multi_reduction <add>, %13, %cst_11 [1] : vector<2x48xf32> to vector<2xf32>
    %15 = vector.shape_cast %14 : vector<2xf32> to vector<2x1xf32>
    %16 = math.sqrt %15 : vector<2x1xf32>
    %cst_12 = arith.constant 9.99999996E-13 : f32
    %17 = vector.broadcast %cst_12 : f32 to vector<2x1xf32>
    %18 = arith.maximumf %16, %17 : vector<2x1xf32>
    %19 = vector.broadcast %18 : vector<2x1xf32> to vector<2x48xf32>
    %20 = arith.divf %12, %19 : vector<2x48xf32>
    %c0_13 = arith.constant 0 : index
    %c0_14 = arith.constant 0 : index
    %21 = vector.load %arg5[%c0_13, %c0_14] : memref<2x48xf32, #tpu.memory_space<vmem>>, vector<2x48xf32>
    tpu.vector_store %arg5[%c0_13, %c0_14], %20 {strides = array<i32>} : memref<2x48xf32, #tpu.memory_space<vmem>>, vector<2x48xf32>,
    return
  }
}

</mosaic_0001>

<bundles_post_ra>
// kernel: forward.15
= control target key start
LH: loop header
LB: loop body
LE: loop exit
PB: predicated region body
PF: predicated region fallthrough
CT: control target
= control target key end

     0   :  { %s792_s12 = smov 0   ;;  %s953_s0 = inlined_call_operand.vmem [shape: bf16[2048,9], index: 0, kind: input, shape index: {}]   ;;  %s954_s1 = inlined_call_operand.vmem [shape: bf16[9,8], index: 1, kind: input, shape index: {}]   ;;  %s955_s2 = inlined_call_operand.vmem [shape: f32[1,8], index: 2, kind: input, shape index: {}]   ;;  %s956_s3 = inlined_call_operand.vmem [shape: f32[2048,8], index: 3, kind: output, shape index: {}]  }
   0x1 LB: > { %s639_s13 = sadd.s32 4294967295, %s769_s12   ;;  %p643_p0 = scmp.ge.s32.totalorder %s769_s12, 1  ;;  %s769_s12 = sphi %s792_s12, %s13_s12  }
   0x2   : > { %p138_p1 = scmp.lt.s32.totalorder %s769_s12, 9 }
   0x4   : > { %p139_p2 = pnand %p643_p0, %p138_p1 }
   0x5   : > { %s644_s16 = sshll.u32 (!%p139_p2), %s639_s13, 5 }
   0x6   : > { %142 = sbr.rel (%p139_p2) target bundleno = 248 (0xf8), region = 32  ;;  %p163_p3 = scmp.lt.s32.totalorder (!%p139_p2), %s644_s16, 255 }
   0xb   : > { %v746_v0 = vld [vmem:[%s954_s1] sm:$0x1f]   ;;  %vm350_vm0 = vcmask 1043456   ;;  %vm351_vm1 = vcmask 1044480   ;;  %v771_v1 = vmov 65535   ;;  %s958_s16 = smov (!%p163_p3, %s644_s16), 255 }
   0xc   : > { %v352_v2 = vsel %vm350_vm0, 4294967295, %v771_v1  ;;  %s645_s17 = sshll.u32 %s958_s16, 2  ;;  %vm301_vm2 = vcmask 72704   ;;  %v846_v21 = vld [vmem:[%s955_s2] ss:$0 sm:$0xff]  ;;  %s647_s23 = sshll.u32 %s958_s16, 3 }
   0xd   : > { %v353_v3 = vsel %vm351_vm1, %v352_v2, 0  ;;  %s809_s20 = scalar_lea.vmem %s953_s0, %s645_s17  ;;  %s853_s26 = scalar_lea.vmem %s956_s3, %s647_s23  ;;  %vm550_vm3 = vcmask 64512  }
   0xe   : > { %v355_v4 = vand.u32 %v746_v0, %v353_v3  ;;  %v747_v5 = vld [vmem:[%s809_s20] sm:$0xff]   ;;  %v749_v7 = vld [vmem:[%s809_s20 + $0x8] sm:$0xff]   ;;  %v751_v9 = vld [vmem:[%s809_s20 + $0x10] sm:$0xff]  }
   0xf   : > { %v748_v6 = vld [vmem:[%s809_s20 + $0x40] sm:$0xff]   ;;  %703 = vmatprep.mubr.msk.bf16.mxu0 %vm301_vm2, %v747_v5  ;;  %v750_v8 = vld [vmem:[%s809_s20 + $0x48] sm:$0xff]   ;;  %v752_v10 = vld [vmem:[%s809_s20 + $0x50] sm:$0xff]  }
  0x10   : > { %701 = vmatprep.subr.bf16.mxu0 %v355_v4  ;;  %735 = vmatprep.subr.bf16.mxu1 %v355_v4  ;;  %v753_v11 = vld [vmem:[%s809_s20 + $0x18] sm:$0xff]   ;;  %v755_v13 = vld [vmem:[%s809_s20 + $0x20] sm:$0xff]   ;;  %v757_v15 = vld [vmem:[%s809_s20 + $0x28] sm:$0xff]  }
  0x11   : > { %702 = vmatpush3.bf16.msra.mxu0 %v355_v4  ;;  %736 = vmatpush3.bf16.msra.mxu1 %v355_v4  ;;  %v754_v12 = vld [vmem:[%s809_s20 + $0x58] sm:$0xff]   ;;  %v756_v14 = vld [vmem:[%s809_s20 + $0x60] sm:$0xff]   ;;  %v758_v16 = vld [vmem:[%s809_s20 + $0x68] sm:$0xff]  }
  0x12   : > { %719 = vmatprep.mubr.msk.bf16.mxu1 %vm301_vm2, %v748_v6  ;;  %v759_v17 = vld [vmem:[%s809_s20 + $0x30] sm:$0xff]   ;;  %v761_v19 = vld [vmem:[%s809_s20 + $0x38] sm:$0xff]  }
  0x13   : > { %v760_v18 = vld [vmem:[%s809_s20 + $0x70] sm:$0xff]   ;;  %v762_v20 = vld [vmem:[%s809_s20 + $0x78] sm:$0xff]  }
  0x14   : > { %704 = vmatmul.mubr.msk.bf16.vlgmr.msra.gmra.mxu0 %vm301_vm2, %v749_v7  ;;  %720 = vmatmul.mubr.msk.bf16.vlgmr.msra.gmra.mxu1 %vm301_vm2, %v750_v8 }
  0x15   : > { %707 = vmatprep.mubr.msk.bf16.mxu0 %vm301_vm2, %v751_v9  ;;  %723 = vmatprep.mubr.msk.bf16.mxu1 %vm301_vm2, %v752_v10 }
  0x1c   : > { %708 = vmatmul.mubr.msk.bf16.gmra.mxu0 %vm301_vm2, %v753_v11  ;;  %724 = vmatmul.mubr.msk.bf16.gmra.mxu1 %vm301_vm2, %v754_v12 }
  0x1d   : > { %711 = vmatprep.mubr.msk.bf16.mxu0 %vm301_vm2, %v755_v13  ;;  %727 = vmatprep.mubr.msk.bf16.mxu1 %vm301_vm2, %v756_v14 }
  0x24   : > { %712 = vmatmul.mubr.msk.bf16.gmra.mxu0 %vm301_vm2, %v757_v15  ;;  %728 = vmatmul.mubr.msk.bf16.gmra.mxu1 %vm301_vm2, %v758_v16 }
  0x25   : > { %715 = vmatprep.mubr.msk.bf16.mxu0 %vm301_vm2, %v759_v17  ;;  %731 = vmatprep.mubr.msk.bf16.mxu1 %vm301_vm2, %v760_v18 }
  0x2c   : > { %716 = vmatmul.mubr.msk.bf16.gmra.mxu0 %vm301_vm2, %v761_v19  ;;  %732 = vmatmul.mubr.msk.bf16.gmra.mxu1 %vm301_vm2, %v762_v20 }
  0xd4   : > { %v705_v22 = vpop.f32.mrf.mxu0  ;;  %v721_v24 = vpop.f32.mrf.mxu1 }
  0xd5   : > { %v400_v23 = vadd.f32 %v705_v22, %v846_v21  ;;  %v464_v25 = vadd.f32 %v721_v24, %v846_v21 }
  0xd6   : > { %v391_v26 = vpop.f32.mrf.mxu0  ;;  %v455_v29 = vpop.f32.mrf.mxu1 }
  0xd7   : > { %v520_v27 = vmax.f32 %v400_v23, 0.0  ;;  %v392_v28 = vadd.f32 %v846_v21, %v391_v26  ;;  %v536_v30 = vmax.f32 %v464_v25, 0.0  ;;  %v456_v31 = vadd.f32 %v846_v21, %v455_v29 }
  0xd8   : > { %v706_v32 = vpop.f32.mrf.mxu0  ;;  %v722_v35 = vpop.f32.mrf.mxu1 }
  0xd9   : > { %553 = vst.msk [vmem:[%s853_s26 + $0x10] sm:$0xff] %vm550_vm3, %v520_v27  ;;  %v518_v33 = vmax.f32 %v392_v28, 0.0  ;;  %v403_v34 = vadd.f32 %v706_v32, %v846_v21  ;;  %569 = vst.msk [vmem:[%s853_s26 + $0x90] sm:$0xff] %vm550_vm3, %v536_v30  ;;  %v534_v36 = vmax.f32 %v456_v31, 0.0  ;;  %v467_v37 = vadd.f32 %v722_v35, %v846_v21 }
  0xda   : > { %v394_v38 = vpop.f32.mrf.mxu0  ;;  %v458_v41 = vpop.f32.mrf.mxu1 }
  0xdb   : > { %551 = vst.msk [vmem:[%s853_s26] sm:$0xff] %vm550_vm3, %v518_v33  ;;  %v521_v39 = vmax.f32 %v403_v34, 0.0  ;;  %v395_v40 = vadd.f32 %v846_v21, %v394_v38  ;;  %567 = vst.msk [vmem:[%s853_s26 + $0x80] sm:$0xff] %vm550_vm3, %v534_v36  ;;  %v537_v42 = vmax.f32 %v467_v37, 0.0  ;;  %v459_v43 = vadd.f32 %v846_v21, %v458_v41 }
  0xdc   : > { %v709_v44 = vpop.f32.mrf.mxu0  ;;  %v725_v47 = vpop.f32.mrf.mxu1 }
  0xdd   : > { %554 = vst.msk [vmem:[%s853_s26 + $0x18] sm:$0xff] %vm550_vm3, %v521_v39  ;;  %v519_v45 = vmax.f32 %v395_v40, 0.0  ;;  %v416_v46 = vadd.f32 %v709_v44, %v846_v21  ;;  %570 = vst.msk [vmem:[%s853_s26 + $0x98] sm:$0xff] %vm550_vm3, %v537_v42  ;;  %v535_v48 = vmax.f32 %v459_v43, 0.0  ;;  %v480_v49 = vadd.f32 %v725_v47, %v846_v21 }
  0xde   : > { %v407_v50 = vpop.f32.mrf.mxu0  ;;  %v471_v53 = vpop.f32.mrf.mxu1 }
  0xdf   : > { %552 = vst.msk [vmem:[%s853_s26 + $0x8] sm:$0xff] %vm550_vm3, %v519_v45  ;;  %v524_v51 = vmax.f32 %v416_v46, 0.0  ;;  %v408_v52 = vadd.f32 %v846_v21, %v407_v50  ;;  %568 = vst.msk [vmem:[%s853_s26 + $0x88] sm:$0xff] %vm550_vm3, %v535_v48  ;;  %v540_v54 = vmax.f32 %v480_v49, 0.0  ;;  %v472_v55 = vadd.f32 %v846_v21, %v471_v53 }
  0xe0   : > { %v710_v56 = vpop.f32.mrf.mxu0  ;;  %v726_v59 = vpop.f32.mrf.mxu1 }
  0xe1   : > { %557 = vst.msk [vmem:[%s853_s26 + $0x30] sm:$0xff] %vm550_vm3, %v524_v51  ;;  %v522_v57 = vmax.f32 %v408_v52, 0.0  ;;  %v419_v58 = vadd.f32 %v710_v56, %v846_v21  ;;  %573 = vst.msk [vmem:[%s853_s26 + $0xb0] sm:$0xff] %vm550_vm3, %v540_v54  ;;  %v538_v60 = vmax.f32 %v472_v55, 0.0  ;;  %v483_v61 = vadd.f32 %v726_v59, %v846_v21 }
  0xe2   : > { %v410_v62 = vpop.f32.mrf.mxu0  ;;  %v474_v1 = vpop.f32.mrf.mxu1 }
  0xe3   : > { %555 = vst.msk [vmem:[%s853_s26 + $0x20] sm:$0xff] %vm550_vm3, %v522_v57  ;;  %v525_v63 = vmax.f32 %v419_v58, 0.0  ;;  %v411_v0 = vadd.f32 %v846_v21, %v410_v62  ;;  %571 = vst.msk [vmem:[%s853_s26 + $0xa0] sm:$0xff] %vm550_vm3, %v538_v60  ;;  %v541_v2 = vmax.f32 %v483_v61, 0.0  ;;  %v475_v3 = vadd.f32 %v846_v21, %v474_v1 }
  0xe4   : > { %v713_v4 = vpop.f32.mrf.mxu0  ;;  %v729_v7 = vpop.f32.mrf.mxu1 }
  0xe5   : > { %558 = vst.msk [vmem:[%s853_s26 + $0x38] sm:$0xff] %vm550_vm3, %v525_v63  ;;  %v523_v5 = vmax.f32 %v411_v0, 0.0  ;;  %v432_v6 = vadd.f32 %v713_v4, %v846_v21  ;;  %574 = vst.msk [vmem:[%s853_s26 + $0xb8] sm:$0xff] %vm550_vm3, %v541_v2  ;;  %v539_v8 = vmax.f32 %v475_v3, 0.0  ;;  %v496_v9 = vadd.f32 %v729_v7, %v846_v21 }
  0xe6   : > { %v423_v10 = vpop.f32.mrf.mxu0  ;;  %v487_v13 = vpop.f32.mrf.mxu1 }
  0xe7   : > { %556 = vst.msk [vmem:[%s853_s26 + $0x28] sm:$0xff] %vm550_vm3, %v523_v5  ;;  %v528_v11 = vmax.f32 %v432_v6, 0.0  ;;  %v424_v12 = vadd.f32 %v846_v21, %v423_v10  ;;  %572 = vst.msk [vmem:[%s853_s26 + $0xa8] sm:$0xff] %vm550_vm3, %v539_v8  ;;  %v544_v14 = vmax.f32 %v496_v9, 0.0  ;;  %v488_v15 = vadd.f32 %v846_v21, %v487_v13 }
  0xe8   : > { %v714_v16 = vpop.f32.mrf.mxu0  ;;  %v730_v19 = vpop.f32.mrf.mxu1 }
  0xe9   : > { %561 = vst.msk [vmem:[%s853_s26 + $0x50] sm:$0xff] %vm550_vm3, %v528_v11  ;;  %v526_v17 = vmax.f32 %v424_v12, 0.0  ;;  %v435_v18 = vadd.f32 %v714_v16, %v846_v21  ;;  %577 = vst.msk [vmem:[%s853_s26 + $0xd0] sm:$0xff] %vm550_vm3, %v544_v14  ;;  %v542_v20 = vmax.f32 %v488_v15, 0.0  ;;  %v499_v22 = vadd.f32 %v730_v19, %v846_v21 }
  0xea   : > { %v426_v23 = vpop.f32.mrf.mxu0  ;;  %v490_v26 = vpop.f32.mrf.mxu1 }
  0xeb   : > { %559 = vst.msk [vmem:[%s853_s26 + $0x40] sm:$0xff] %vm550_vm3, %v526_v17  ;;  %v529_v24 = vmax.f32 %v435_v18, 0.0  ;;  %v427_v25 = vadd.f32 %v846_v21, %v426_v23  ;;  %575 = vst.msk [vmem:[%s853_s26 + $0xc0] sm:$0xff] %vm550_vm3, %v542_v20  ;;  %v545_v27 = vmax.f32 %v499_v22, 0.0  ;;  %v491_v28 = vadd.f32 %v846_v21, %v490_v26 }
  0xec   : > { %v717_v29 = vpop.f32.mrf.mxu0  ;;  %v733_v32 = vpop.f32.mrf.mxu1 }
  0xed   : > { %562 = vst.msk [vmem:[%s853_s26 + $0x58] sm:$0xff] %vm550_vm3, %v529_v24  ;;  %v527_v30 = vmax.f32 %v427_v25, 0.0  ;;  %v448_v31 = vadd.f32 %v717_v29, %v846_v21  ;;  %578 = vst.msk [vmem:[%s853_s26 + $0xd8] sm:$0xff] %vm550_vm3, %v545_v27  ;;  %v543_v33 = vmax.f32 %v491_v28, 0.0  ;;  %v512_v34 = vadd.f32 %v733_v32, %v846_v21 }
  0xee   : > { %v439_v35 = vpop.f32.mrf.mxu0  ;;  %v503_v38 = vpop.f32.mrf.mxu1 }
  0xef   : > { %560 = vst.msk [vmem:[%s853_s26 + $0x48] sm:$0xff] %vm550_vm3, %v527_v30  ;;  %v532_v36 = vmax.f32 %v448_v31, 0.0  ;;  %v440_v37 = vadd.f32 %v846_v21, %v439_v35  ;;  %576 = vst.msk [vmem:[%s853_s26 + $0xc8] sm:$0xff] %vm550_vm3, %v543_v33  ;;  %v548_v39 = vmax.f32 %v512_v34, 0.0  ;;  %v504_v40 = vadd.f32 %v846_v21, %v503_v38 }
  0xf0   : > { %v718_v41 = vpop.f32.mrf.mxu0  ;;  %v734_v44 = vpop.f32.mrf.mxu1 }
  0xf1   : > { %565 = vst.msk [vmem:[%s853_s26 + $0x70] sm:$0xff] %vm550_vm3, %v532_v36  ;;  %v530_v42 = vmax.f32 %v440_v37, 0.0  ;;  %v451_v43 = vadd.f32 %v718_v41, %v846_v21  ;;  %581 = vst.msk [vmem:[%s853_s26 + $0xf0] sm:$0xff] %vm550_vm3, %v548_v39  ;;  %v546_v45 = vmax.f32 %v504_v40, 0.0  ;;  %v515_v46 = vadd.f32 %v734_v44, %v846_v21 }
  0xf2   : > { %v442_v47 = vpop.f32.mrf.mxu0  ;;  %v506_v50 = vpop.f32.mrf.mxu1 }
  0xf3   : > { %563 = vst.msk [vmem:[%s853_s26 + $0x60] sm:$0xff] %vm550_vm3, %v530_v42  ;;  %v533_v48 = vmax.f32 %v451_v43, 0.0  ;;  %v443_v49 = vadd.f32 %v846_v21, %v442_v47  ;;  %579 = vst.msk [vmem:[%s853_s26 + $0xe0] sm:$0xff] %vm550_vm3, %v546_v45  ;;  %v549_v51 = vmax.f32 %v515_v46, 0.0  ;;  %v507_v52 = vadd.f32 %v846_v21, %v506_v50 }
  0xf5   : > { %566 = vst.msk [vmem:[%s853_s26 + $0x78] sm:$0xff] %vm550_vm3, %v533_v48  ;;  %v531_v53 = vmax.f32 %v443_v49, 0.0  ;;  %582 = vst.msk [vmem:[%s853_s26 + $0xf8] sm:$0xff] %vm550_vm3, %v549_v51  ;;  %v547_v54 = vmax.f32 %v507_v52, 0.0 }
  0xf7   : > { %564 = vst.msk [vmem:[%s853_s26 + $0x68] sm:$0xff] %vm550_vm3, %v531_v53  ;;  %580 = vst.msk [vmem:[%s853_s26 + $0xe8] sm:$0xff] %vm550_vm3, %v547_v54 }
  0xf8 PF: > { %s13_s12 = sadd.s32 1, %s769_s12  }
  0xf9   : > { %p10_p4 = scmp.ge.s32.totalorder %s13_s12, 10  }
  0xfb   :  { %12 = sbr.rel (!%p10_p4) target bundleno = 1 (0x1), region = 62 }

// kernel: forward.16
= control target key start
LH: loop header
LB: loop body
LE: loop exit
PB: predicated region body
PF: predicated region fallthrough
CT: control target
= control target key end

     0   :  { %s846_s12 = smov 0   ;;  %s1019_s0 = inlined_call_operand.vmem [shape: bf16[512,72], index: 0, kind: input, shape index: {}]   ;;  %s1020_s1 = inlined_call_operand.vmem [shape: bf16[72,16], index: 1, kind: input, shape index: {}]   ;;  %s1021_s2 = inlined_call_operand.vmem [shape: f32[1,16], index: 2, kind: input, shape index: {}]   ;;  %s1022_s3 = inlined_call_operand.vmem [shape: f32[512,16], index: 3, kind: output, shape index: {}]  }
   0x1 LB: > { %s665_s13 = sadd.s32 4294967295, %s824_s12   ;;  %p669_p0 = scmp.ge.s32.totalorder %s824_s12, 1  ;;  %s824_s12 = sphi %s846_s12, %s13_s12  }
   0x2   : > { %p138_p1 = scmp.lt.s32.totalorder %s824_s12, 3 }
   0x4   : > { %p139_p2 = pnand %p669_p0, %p138_p1 }
   0x5   : > { %s670_s18 = sshll.u32 (!%p139_p2), %s665_s13, 5 }
   0x6   : > { %142 = sbr.rel (%p139_p2) target bundleno = 260 (0x104), region = 32  ;;  %p163_p3 = scmp.lt.s32.totalorder (!%p139_p2), %s670_s18, 63 }
   0xb   : > { %v797_v0 = vld [vmem:[%s1020_s1 + $0x20] ss:$0 sps:$4 sm:$0xff]   ;;  %vm379_vm0 = vcmask 1043456   ;;  %v798_v1 = vld [vmem:[%s1020_s1 + $0x18] sm:$0xff]   ;;  %v799_v3 = vld [vmem:[%s1020_s1 + $0x10] sm:$0xff]   ;;  %s1024_s18 = smov (!%p163_p3, %s670_s18), 63 }
   0xc   : > { %787 = vmatprep.subr.msk.bf16.mxu0 %vm379_vm0, %v797_v0  ;;  %788 = vmatprep.subr.msk.bf16.mxu1 %vm379_vm0, %v797_v0  ;;  %v381_v2 = vsel %vm379_vm0, %v797_v0, 0  ;;  %v800_v4 = vld [vmem:[%s1020_s1 + $0x8] sm:$0xff]   ;;  %s671_s23 = sshll.u32 %s1024_s18, 2  ;;  %vm330_vm1 = vcmask 588800   ;;  %v801_v7 = vld [vmem:[%s1020_s1] sm:$0xff]   ;;  %s673_s4 = sshll.u32 %s1024_s18, 3 }
   0xd   : > { %736 = vmatpush3.bf16.msra.mxu0 %v381_v2  ;;  %782 = vmatpush3.bf16.msra.mxu1 %v381_v2  ;;  %s872_s26 = scalar_lea.vmem %s1019_s0, %s671_s23  ;;  %v912_v22 = vld [vmem:[%s1021_s2] ss:$0 sm:$0xff]  ;;  %s920_s7 = scalar_lea.vmem %s1022_s3, %s673_s4  ;;  %vm576_vm2 = vcmask 130048  }
   0xe   : > { %737 = vmatprep.subr.bf16.mxu0 %v798_v1  ;;  %778 = vmatprep.subr.bf16.mxu1 %v798_v1  ;;  %v802_v5 = vld [vmem:[%s872_s26] sm:$0xff]   ;;  %v804_v8 = vld [vmem:[%s872_s26 + $0x8] sm:$0xff]   ;;  %v806_v10 = vld [vmem:[%s872_s26 + $0x10] sm:$0xff]  }
   0xf   : > { %v803_v6 = vld [vmem:[%s872_s26 + $0x40] sm:$0xff]   ;;  %745 = vmatprep.mubr.msk.bf16.mxu0 %vm330_vm1, %v802_v5  ;;  %v805_v9 = vld [vmem:[%s872_s26 + $0x48] sm:$0xff]   ;;  %v807_v11 = vld [vmem:[%s872_s26 + $0x50] sm:$0xff]  }
  0x10   : > { %761 = vmatprep.mubr.msk.bf16.mxu1 %vm330_vm1, %v803_v6  ;;  %v808_v12 = vld [vmem:[%s872_s26 + $0x18] sm:$0xff]   ;;  %v810_v14 = vld [vmem:[%s872_s26 + $0x20] sm:$0xff]   ;;  %v812_v16 = vld [vmem:[%s872_s26 + $0x28] sm:$0xff]  }
  0x11   : > { %738 = vmatpush3.bf16.msra.mxu0 %v798_v1  ;;  %783 = vmatpush3.bf16.msra.mxu1 %v798_v1  ;;  %v809_v13 = vld [vmem:[%s872_s26 + $0x58] sm:$0xff]   ;;  %v811_v15 = vld [vmem:[%s872_s26 + $0x60] sm:$0xff]   ;;  %v813_v17 = vld [vmem:[%s872_s26 + $0x68] sm:$0xff]  }
  0x12   : > { %739 = vmatprep.subr.bf16.mxu0 %v799_v3  ;;  %779 = vmatprep.subr.bf16.mxu1 %v799_v3  ;;  %v814_v18 = vld [vmem:[%s872_s26 + $0x30] sm:$0xff]   ;;  %v816_v20 = vld [vmem:[%s872_s26 + $0x38] sm:$0xff]  }
  0x13   : > { %v815_v19 = vld [vmem:[%s872_s26 + $0x70] sm:$0xff]   ;;  %v817_v21 = vld [vmem:[%s872_s26 + $0x78] sm:$0xff]  }
  0x15   : > { %740 = vmatpush3.bf16.msra.mxu0 %v799_v3  ;;  %784 = vmatpush3.bf16.msra.mxu1 %v799_v3 }
  0x16   : > { %741 = vmatprep.subr.bf16.mxu0 %v800_v4  ;;  %780 = vmatprep.subr.bf16.mxu1 %v800_v4 }
  0x19   : > { %742 = vmatpush3.bf16.msra.mxu0 %v800_v4  ;;  %785 = vmatpush3.bf16.msra.mxu1 %v800_v4 }
  0x1a   : > { %743 = vmatprep.subr.bf16.mxu0 %v801_v7  ;;  %781 = vmatprep.subr.bf16.mxu1 %v801_v7 }
  0x1d   : > { %744 = vmatpush3.bf16.msra.mxu0 %v801_v7  ;;  %786 = vmatpush3.bf16.msra.mxu1 %v801_v7 }
  0x20   : > { %746 = vmatmul.mubr.msk.bf16.vlgmr.msra.gmra.mxu0 %vm330_vm1, %v804_v8  ;;  %762 = vmatmul.mubr.msk.bf16.vlgmr.msra.gmra.mxu1 %vm330_vm1, %v805_v9 }
  0x21   : > { %749 = vmatprep.mubr.msk.bf16.mxu0 %vm330_vm1, %v806_v10  ;;  %765 = vmatprep.mubr.msk.bf16.mxu1 %vm330_vm1, %v807_v11 }
  0x28   : > { %750 = vmatmul.mubr.msk.bf16.gmra.mxu0 %vm330_vm1, %v808_v12  ;;  %766 = vmatmul.mubr.msk.bf16.gmra.mxu1 %vm330_vm1, %v809_v13 }
  0x29   : > { %753 = vmatprep.mubr.msk.bf16.mxu0 %vm330_vm1, %v810_v14  ;;  %769 = vmatprep.mubr.msk.bf16.mxu1 %vm330_vm1, %v811_v15 }
  0x30   : > { %754 = vmatmul.mubr.msk.bf16.gmra.mxu0 %vm330_vm1, %v812_v16  ;;  %770 = vmatmul.mubr.msk.bf16.gmra.mxu1 %vm330_vm1, %v813_v17 }
  0x31   : > { %757 = vmatprep.mubr.msk.bf16.mxu0 %vm330_vm1, %v814_v18  ;;  %773 = vmatprep.mubr.msk.bf16.mxu1 %vm330_vm1, %v815_v19 }
  0x38   : > { %758 = vmatmul.mubr.msk.bf16.gmra.mxu0 %vm330_vm1, %v816_v20  ;;  %774 = vmatmul.mubr.msk.bf16.gmra.mxu1 %vm330_vm1, %v817_v21 }
  0xe0   : > { %v747_v23 = vpop.f32.mrf.mxu0  ;;  %v763_v24 = vpop.f32.mrf.mxu1 }
  0xe1   : > { %v426_v25 = vadd.f32 %v747_v23, %v912_v22  ;;  %v490_v26 = vadd.f32 %v763_v24, %v912_v22 }
  0xe2   : > { %v417_v27 = vpop.f32.mrf.mxu0  ;;  %v481_v28 = vpop.f32.mrf.mxu1 }
  0xe3   : > { %v546_v29 = vmax.f32 %v426_v25, 0.0  ;;  %v562_v30 = vmax.f32 %v490_v26, 0.0  ;;  %v418_v31 = vadd.f32 %v912_v22, %v417_v27  ;;  %v482_v32 = vadd.f32 %v912_v22, %v481_v28 }
  0xe4   : > { %v748_v33 = vpop.f32.mrf.mxu0  ;;  %v764_v34 = vpop.f32.mrf.mxu1 }
  0xe5   : > { %579 = vst.msk [vmem:[%s920_s7 + $0x10] sm:$0xff] %vm576_vm2, %v546_v29  ;;  %595 = vst.msk [vmem:[%s920_s7 + $0x90] sm:$0xff] %vm576_vm2, %v562_v30  ;;  %v544_v35 = vmax.f32 %v418_v31, 0.0  ;;  %v560_v36 = vmax.f32 %v482_v32, 0.0  ;;  %v429_v37 = vadd.f32 %v748_v33, %v912_v22  ;;  %v493_v38 = vadd.f32 %v764_v34, %v912_v22 }
  0xe6   : > { %v420_v39 = vpop.f32.mrf.mxu0  ;;  %v484_v40 = vpop.f32.mrf.mxu1 }
  0xe7   : > { %577 = vst.msk [vmem:[%s920_s7] sm:$0xff] %vm576_vm2, %v544_v35  ;;  %593 = vst.msk [vmem:[%s920_s7 + $0x80] sm:$0xff] %vm576_vm2, %v560_v36  ;;  %v547_v41 = vmax.f32 %v429_v37, 0.0  ;;  %v563_v42 = vmax.f32 %v493_v38, 0.0  ;;  %v421_v43 = vadd.f32 %v912_v22, %v420_v39  ;;  %v485_v44 = vadd.f32 %v912_v22, %v484_v40 }
  0xe8   : > { %v751_v45 = vpop.f32.mrf.mxu0  ;;  %v767_v46 = vpop.f32.mrf.mxu1 }
  0xe9   : > { %580 = vst.msk [vmem:[%s920_s7 + $0x18] sm:$0xff] %vm576_vm2, %v547_v41  ;;  %596 = vst.msk [vmem:[%s920_s7 + $0x98] sm:$0xff] %vm576_vm2, %v563_v42  ;;  %v545_v47 = vmax.f32 %v421_v43, 0.0  ;;  %v561_v48 = vmax.f32 %v485_v44, 0.0  ;;  %v442_v49 = vadd.f32 %v751_v45, %v912_v22  ;;  %v506_v50 = vadd.f32 %v767_v46, %v912_v22 }
  0xea   : > { %v433_v51 = vpop.f32.mrf.mxu0  ;;  %v497_v52 = vpop.f32.mrf.mxu1 }
  0xeb   : > { %578 = vst.msk [vmem:[%s920_s7 + $0x8] sm:$0xff] %vm576_vm2, %v545_v47  ;;  %594 = vst.msk [vmem:[%s920_s7 + $0x88] sm:$0xff] %vm576_vm2, %v561_v48  ;;  %v550_v53 = vmax.f32 %v442_v49, 0.0  ;;  %v566_v54 = vmax.f32 %v506_v50, 0.0  ;;  %v434_v55 = vadd.f32 %v912_v22, %v433_v51  ;;  %v498_v56 = vadd.f32 %v912_v22, %v497_v52 }
  0xec   : > { %v752_v57 = vpop.f32.mrf.mxu0  ;;  %v768_v58 = vpop.f32.mrf.mxu1 }
  0xed   : > { %583 = vst.msk [vmem:[%s920_s7 + $0x30] sm:$0xff] %vm576_vm2, %v550_v53  ;;  %599 = vst.msk [vmem:[%s920_s7 + $0xb0] sm:$0xff] %vm576_vm2, %v566_v54  ;;  %v548_v59 = vmax.f32 %v434_v55, 0.0  ;;  %v564_v60 = vmax.f32 %v498_v56, 0.0  ;;  %v445_v61 = vadd.f32 %v752_v57, %v912_v22  ;;  %v509_v62 = vadd.f32 %v768_v58, %v912_v22 }
  0xee   : > { %v436_v63 = vpop.f32.mrf.mxu0  ;;  %v500_v0 = vpop.f32.mrf.mxu1 }
  0xef   : > { %581 = vst.msk [vmem:[%s920_s7 + $0x20] sm:$0xff] %vm576_vm2, %v548_v59  ;;  %597 = vst.msk [vmem:[%s920_s7 + $0xa0] sm:$0xff] %vm576_vm2, %v564_v60  ;;  %v551_v1 = vmax.f32 %v445_v61, 0.0  ;;  %v567_v2 = vmax.f32 %v509_v62, 0.0  ;;  %v437_v3 = vadd.f32 %v912_v22, %v436_v63  ;;  %v501_v4 = vadd.f32 %v912_v22, %v500_v0 }
  0xf0   : > { %v755_v5 = vpop.f32.mrf.mxu0  ;;  %v771_v6 = vpop.f32.mrf.mxu1 }
  0xf1   : > { %584 = vst.msk [vmem:[%s920_s7 + $0x38] sm:$0xff] %vm576_vm2, %v551_v1  ;;  %600 = vst.msk [vmem:[%s920_s7 + $0xb8] sm:$0xff] %vm576_vm2, %v567_v2  ;;  %v549_v7 = vmax.f32 %v437_v3, 0.0  ;;  %v565_v8 = vmax.f32 %v501_v4, 0.0  ;;  %v458_v9 = vadd.f32 %v755_v5, %v912_v22  ;;  %v522_v10 = vadd.f32 %v771_v6, %v912_v22 }
  0xf2   : > { %v449_v11 = vpop.f32.mrf.mxu0  ;;  %v513_v12 = vpop.f32.mrf.mxu1 }
  0xf3   : > { %582 = vst.msk [vmem:[%s920_s7 + $0x28] sm:$0xff] %vm576_vm2, %v549_v7  ;;  %598 = vst.msk [vmem:[%s920_s7 + $0xa8] sm:$0xff] %vm576_vm2, %v565_v8  ;;  %v554_v13 = vmax.f32 %v458_v9, 0.0  ;;  %v570_v14 = vmax.f32 %v522_v10, 0.0  ;;  %v450_v15 = vadd.f32 %v912_v22, %v449_v11  ;;  %v514_v16 = vadd.f32 %v912_v22, %v513_v12 }
  0xf4   : > { %v756_v17 = vpop.f32.mrf.mxu0  ;;  %v772_v18 = vpop.f32.mrf.mxu1 }
  0xf5   : > { %587 = vst.msk [vmem:[%s920_s7 + $0x50] sm:$0xff] %vm576_vm2, %v554_v13  ;;  %603 = vst.msk [vmem:[%s920_s7 + $0xd0] sm:$0xff] %vm576_vm2, %v570_v14  ;;  %v552_v19 = vmax.f32 %v450_v15, 0.0  ;;  %v568_v20 = vmax.f32 %v514_v16, 0.0  ;;  %v461_v21 = vadd.f32 %v756_v17, %v912_v22  ;;  %v525_v23 = vadd.f32 %v772_v18, %v912_v22 }
  0xf6   : > { %v452_v24 = vpop.f32.mrf.mxu0  ;;  %v516_v25 = vpop.f32.mrf.mxu1 }
  0xf7   : > { %585 = vst.msk [vmem:[%s920_s7 + $0x40] sm:$0xff] %vm576_vm2, %v552_v19  ;;  %601 = vst.msk [vmem:[%s920_s7 + $0xc0] sm:$0xff] %vm576_vm2, %v568_v20  ;;  %v555_v26 = vmax.f32 %v461_v21, 0.0  ;;  %v571_v27 = vmax.f32 %v525_v23, 0.0  ;;  %v453_v28 = vadd.f32 %v912_v22, %v452_v24  ;;  %v517_v29 = vadd.f32 %v912_v22, %v516_v25 }
  0xf8   : > { %v759_v30 = vpop.f32.mrf.mxu0  ;;  %v775_v31 = vpop.f32.mrf.mxu1 }
  0xf9   : > { %588 = vst.msk [vmem:[%s920_s7 + $0x58] sm:$0xff] %vm576_vm2, %v555_v26  ;;  %604 = vst.msk [vmem:[%s920_s7 + $0xd8] sm:$0xff] %vm576_vm2, %v571_v27  ;;  %v553_v32 = vmax.f32 %v453_v28, 0.0  ;;  %v569_v33 = vmax.f32 %v517_v29, 0.0  ;;  %v474_v34 = vadd.f32 %v759_v30, %v912_v22  ;;  %v538_v35 = vadd.f32 %v775_v31, %v912_v22 }
  0xfa   : > { %v465_v36 = vpop.f32.mrf.mxu0  ;;  %v529_v37 = vpop.f32.mrf.mxu1 }
  0xfb   : > { %586 = vst.msk [vmem:[%s920_s7 + $0x48] sm:$0xff] %vm576_vm2, %v553_v32  ;;  %602 = vst.msk [vmem:[%s920_s7 + $0xc8] sm:$0xff] %vm576_vm2, %v569_v33  ;;  %v558_v38 = vmax.f32 %v474_v34, 0.0  ;;  %v574_v39 = vmax.f32 %v538_v35, 0.0  ;;  %v466_v40 = vadd.f32 %v912_v22, %v465_v36  ;;  %v530_v41 = vadd.f32 %v912_v22, %v529_v37 }
  0xfc   : > { %v760_v42 = vpop.f32.mrf.mxu0  ;;  %v776_v43 = vpop.f32.mrf.mxu1 }
  0xfd   : > { %591 = vst.msk [vmem:[%s920_s7 + $0x70] sm:$0xff] %vm576_vm2, %v558_v38  ;;  %607 = vst.msk [vmem:[%s920_s7 + $0xf0] sm:$0xff] %vm576_vm2, %v574_v39  ;;  %v556_v44 = vmax.f32 %v466_v40, 0.0  ;;  %v572_v45 = vmax.f32 %v530_v41, 0.0  ;;  %v477_v46 = vadd.f32 %v760_v42, %v912_v22  ;;  %v541_v47 = vadd.f32 %v776_v43, %v912_v22 }
  0xfe   : > { %v468_v48 = vpop.f32.mrf.mxu0  ;;  %v532_v49 = vpop.f32.mrf.mxu1 }
  0xff   : > { %589 = vst.msk [vmem:[%s920_s7 + $0x60] sm:$0xff] %vm576_vm2, %v556_v44  ;;  %605 = vst.msk [vmem:[%s920_s7 + $0xe0] sm:$0xff] %vm576_vm2, %v572_v45  ;;  %v559_v50 = vmax.f32 %v477_v46, 0.0  ;;  %v575_v51 = vmax.f32 %v541_v47, 0.0  ;;  %v469_v52 = vadd.f32 %v912_v22, %v468_v48  ;;  %v533_v53 = vadd.f32 %v912_v22, %v532_v49 }
 0x101   : > { %592 = vst.msk [vmem:[%s920_s7 + $0x78] sm:$0xff] %vm576_vm2, %v559_v50  ;;  %608 = vst.msk [vmem:[%s920_s7 + $0xf8] sm:$0xff] %vm576_vm2, %v575_v51  ;;  %v557_v54 = vmax.f32 %v469_v52, 0.0  ;;  %v573_v55 = vmax.f32 %v533_v53, 0.0 }
 0x103   : > { %590 = vst.msk [vmem:[%s920_s7 + $0x68] sm:$0xff] %vm576_vm2, %v557_v54  ;;  %606 = vst.msk [vmem:[%s920_s7 + $0xe8] sm:$0xff] %vm576_vm2, %v573_v55 }
 0x104 PF: > { %s13_s12 = sadd.s32 1, %s824_s12  }
 0x105   : > { %p10_p4 = scmp.ge.s32.totalorder %s13_s12, 4  }
 0x107   :  { %12 = sbr.rel (!%p10_p4) target bundleno = 1 (0x1), region = 62 }

// kernel: forward.17
= control target key start
LH: loop header
LB: loop body
LE: loop exit
PB: predicated region body
PF: predicated region fallthrough
CT: control target
= control target key end

     0   :  { %s2241_s21 = smov 0   ;;  %s3377_s0 = inlined_call_operand.vmem [shape: f32[2,256,16], index: 0, kind: input, shape index: {}]   ;;  %s3378_s1 = inlined_call_operand.vmem [shape: f32[16,4], index: 1, kind: input, shape index: {}]   ;;  %s3379_s2 = inlined_call_operand.vmem [shape: f32[4,16], index: 2, kind: input, shape index: {}]   ;;  %s3380_s3 = inlined_call_operand.vmem [shape: f32[256,256], index: 3, kind: input, shape index: {}]   ;;  %s3381_s4 = inlined_call_operand.vmem [shape: f32[256,256], index: 4, kind: input, shape index: {}]   ;;  %s3382_s5 = inlined_call_operand.vmem [shape: f32[2,256,16], index: 5, kind: output, shape index: {0}]   ;;  %s3383_s6 = inlined_call_operand.vmem [shape: f32[2,256,1], index: 6, kind: output, shape index: {1}]  }
   0x1 LB: > { %s1981_s22 = sadd.s32 4294967295, %s2201_s21   ;;  %p1985_p0 = scmp.ge.s32.totalorder %s2201_s21, 1  ;;  %s2201_s21 = sphi %s2241_s21, %s17_s21  }
   0x2   : > { %p215_p1 = scmp.lt.s32.totalorder %s2201_s21, 3 }
   0x4   : > { %p216_p2 = pnand %p1985_p0, %p215_p1 }
   0x5   : > { %p250_p3 = scmp.lt.s32.totalorder (!%p216_p2), %s1981_s22, 1 }
   0x6   : > { %219 = sbr.rel (%p216_p2) target bundleno = 1273 (0x4f9), region = 40 }
   0xb   : > { %v441_v0 = vld [vmem:[%s3378_s1 + $0x8] sm:$0xff]  ;;  %v2203_v1 = vmov 0.0   ;;  %v440_v2 = vld [vmem:[%s3378_s1] sm:$0xff]  ;;  %vm2204_vm0 = vmmov 0   ;;  %s3385_s22 = smov (!%p250_p3, %s1981_s22), 1  ;;  %vm297_vm1 = vcmask 130048  }
   0xc   : > { %2038 = vmatprep.subr.mxu0 %v2203_v1  ;;  %2042 = vmatprep.mubr.msk.f32.mxu0 %vm2204_vm0, %v2203_v1  ;;  %s2260_s27 = sshll.u32 %s3385_s22, 8  ;;  %vm438_vm2 = vcmask 1040384   ;;  %vm521_vm3 = vcmask 1043456   ;;  %vm517_vm4 = vcmask 31744   ;;  %vm595_vm5 = vcmask 123904  }
   0xd   : > { %2039 = vmatpush3.msra.mxu0 %v441_v0  ;;  %2045 = vmatprep.subr.mxu1 %v2203_v1  ;;  %s2266_s30 = scalar_lea.vmem %s3377_s0, %s2260_s27  ;;  %s3206_s26 = scalar_lea.vmem %s3383_s6, %s2260_s27  ;;  %vm1860_vm6 = vcmask 7168  }
   0xe   : > { %2040 = vmatprep.subr.mxu0 %v2203_v1  ;;  %2047 = vmatprep.mubr.msk.f32.mxu1 %vm2204_vm0, %v2203_v1  ;;  %v2270_v3 = vld [vmem:[%s2266_s30] sm:$0xff]  ;;  %v2273_v4 = vld [vmem:[%s2266_s30 + $0x8] sm:$0xff]  ;;  %v2276_v5 = vld [vmem:[%s2266_s30 + $0x10] sm:$0xff] }
   0xf   : > { %2041 = vmatpush3.msra.mxu0 %v440_v2  ;;  %v2279_v6 = vld [vmem:[%s2266_s30 + $0x18] sm:$0xff]  ;;  %v298_v7 = vsel %vm297_vm1, %v2270_v3, 0.0  ;;  %v299_v8 = vsel %vm297_vm1, %v2273_v4, 0.0  ;;  %v301_v9 = vsel %vm297_vm1, %v2276_v5, 0.0  ;;  %v2288_v10 = vld [vmem:[%s2266_s30 + $0x20] sm:$0xff]  ;;  %v2293_v13 = vld [vmem:[%s2266_s30 + $0x28] sm:$0xff] }
  0x10   : > { %1219 = vmatprep.subr.mxu0 %v2203_v1  ;;  %v300_v11 = vadd.f32 %v299_v8, %v298_v7  ;;  %v303_v12 = vsel %vm297_vm1, %v2279_v6, 0.0  ;;  %v305_v15 = vsel %vm297_vm1, %v2288_v10, 0.0  ;;  %v2298_v16 = vld [vmem:[%s2266_s30 + $0x30] sm:$0xff]  ;;  %v307_v18 = vsel %vm297_vm1, %v2293_v13, 0.0  ;;  %v2303_v19 = vld [vmem:[%s2266_s30 + $0x38] sm:$0xff]  ;;  %v2306_v21 = vld [vmem:[%s2266_s30 + $0x40] sm:$0xff] }
  0x11   : > { %v309_v22 = vsel %vm297_vm1, %v2298_v16, 0.0  ;;  %v311_v24 = vsel %vm297_vm1, %v2303_v19, 0.0  ;;  %v2313_v25 = vld [vmem:[%s2266_s30 + $0x48] sm:$0xff]  ;;  %v313_v27 = vsel %vm297_vm1, %v2306_v21, 0.0  ;;  %v369_v28 = vsel %vm297_vm1, %v2270_v3, -inf  ;;  %v2320_v29 = vld [vmem:[%s2266_s30 + $0x50] sm:$0xff] }
  0x12   : > { %v302_v14 = vadd.f32 %v301_v9, %v300_v11  ;;  %v370_v30 = vsel %vm297_vm1, %v2273_v4, -inf  ;;  %v371_v31 = vsel %vm297_vm1, %v2276_v5, -inf  ;;  %v372_v32 = vsel %vm297_vm1, %v2279_v6, -inf  ;;  %v2339_v39 = vld [vmem:[%s2266_s30 + $0x58] sm:$0xff]  ;;  %v2344_v43 = vld [vmem:[%s2266_s30 + $0x60] sm:$0xff]  ;;  %v2357_v53 = vld [vmem:[%s2266_s30 + $0x68] sm:$0xff] }
  0x13   : > { %v373_v33 = vsel %vm297_vm1, %v2288_v10, -inf  ;;  %v375_v35 = vsel %vm297_vm1, %v2293_v13, -inf  ;;  %v377_v36 = vsel %vm297_vm1, %v2298_v16, -inf  ;;  %v379_v37 = vsel %vm297_vm1, %v2303_v19, -inf  ;;  %v2362_v56 = vld [vmem:[%s2266_s30 + $0x70] sm:$0xff]  ;;  %v2365_v61 = vld [vmem:[%s2266_s30 + $0x78] sm:$0xff] }
  0x14   : > { %v304_v17 = vadd.f32 %v303_v12, %v302_v14  ;;  %v315_v38 = vsel %vm297_vm1, %v2313_v25, 0.0  ;;  %v317_v41 = vsel %vm297_vm1, %v2320_v29, 0.0  ;;  %v374_v42 = vmax.f32 %v369_v28, %v373_v33  ;;  %v2378_v9 = vld [vmem:[%s2266_s30 + $0x80] sm:$0xff]  ;;  %v2383_v14 = vld [vmem:[%s2266_s30 + $0x88] sm:$0xff] }
  0x15   : > { %v376_v44 = vmax.f32 %v370_v30, %v375_v35  ;;  %v378_v45 = vmax.f32 %v371_v31, %v377_v36  ;;  %v380_v46 = vmax.f32 %v372_v32, %v379_v37  ;;  %v381_v47 = vsel %vm297_vm1, %v2306_v21, -inf  ;;  %v2402_v33 = vld [vmem:[%s2266_s30 + $0xa0] sm:$0xff] }
  0x16   : > { %v306_v20 = vadd.f32 %v305_v15, %v304_v17  ;;  %v383_v49 = vsel %vm297_vm1, %v2313_v25, -inf  ;;  %v385_v50 = vsel %vm297_vm1, %v2320_v29, -inf  ;;  %v387_v51 = vsel %vm297_vm1, %v2339_v39, -inf  ;;  %v2386_v15 = vld [vmem:[%s2266_s30 + $0x90] sm:$0xff] }
  0x17   : > { %v319_v52 = vsel %vm297_vm1, %v2339_v39, 0.0  ;;  %v321_v55 = vsel %vm297_vm1, %v2344_v43, 0.0  ;;  %v382_v57 = vmax.f32 %v374_v42, %v381_v47  ;;  %v384_v58 = vmax.f32 %v376_v44, %v383_v49 }
  0x18   : > { %v308_v23 = vadd.f32 %v307_v18, %v306_v20  ;;  %v386_v59 = vmax.f32 %v378_v45, %v385_v50  ;;  %v388_v60 = vmax.f32 %v380_v46, %v387_v51  ;;  %v389_v63 = vsel %vm297_vm1, %v2344_v43, -inf  ;;  %v2426_v50 = vld [vmem:[%s2266_s30 + $0xc0] sm:$0xff] }
  0x19   : > { %v391_v0 = vsel %vm297_vm1, %v2357_v53, -inf  ;;  %v393_v2 = vsel %vm297_vm1, %v2362_v56, -inf  ;;  %v323_v7 = vsel %vm297_vm1, %v2357_v53, 0.0  ;;  %v395_v8 = vsel %vm297_vm1, %v2365_v61, -inf }
  0x1a   : > { %v310_v26 = vadd.f32 %v309_v22, %v308_v23  ;;  %v325_v12 = vsel %vm297_vm1, %v2362_v56, 0.0  ;;  %v390_v17 = vmax.f32 %v382_v57, %v389_v63  ;;  %v392_v18 = vmax.f32 %v384_v58, %v391_v0  ;;  %v2391_v23 = vld [vmem:[%s2266_s30 + $0x98] sm:$0xff] }
  0x1b   : > { %v394_v20 = vmax.f32 %v386_v59, %v393_v2  ;;  %v397_v22 = vsel %vm297_vm1, %v2378_v9, -inf  ;;  %v401_v28 = vsel %vm297_vm1, %v2386_v15, -inf  ;;  %v327_v30 = vsel %vm297_vm1, %v2365_v61, 0.0  ;;  %v2436_v59 = vld [vmem:[%s2266_s30 + $0xd0] sm:$0xff] }
  0x1c   : > { %v312_v34 = vadd.f32 %v311_v24, %v310_v26  ;;  %v396_v26 = vmax.f32 %v388_v60, %v395_v8  ;;  %v403_v31 = vsel %vm297_vm1, %v2391_v23, -inf  ;;  %v329_v35 = vsel %vm297_vm1, %v2378_v9, 0.0  ;;  %v2439_v60 = vld [vmem:[%s2266_s30 + $0xd8] sm:$0xff] }
  0x1d   : > { %v398_v36 = vmax.f32 %v390_v17, %v397_v22  ;;  %v405_v45 = vsel %vm297_vm1, %v2402_v33, -inf  ;;  %v331_v47 = vsel %vm297_vm1, %v2383_v14, 0.0  ;;  %v413_v58 = vsel %vm297_vm1, %v2426_v50, -inf  ;;  %v2453_v17 = vld [vmem:[%s2266_s30 + $0xf8] sm:$0xff] }
  0x1e   : > { %v314_v40 = vadd.f32 %v313_v27, %v312_v34  ;;  %v399_v27 = vsel %vm297_vm1, %v2383_v14, -inf  ;;  %v2405_v34 = vld [vmem:[%s2266_s30 + $0xa8] sm:$0xff]  ;;  %v404_v44 = vmax.f32 %v396_v26, %v403_v31  ;;  %v417_v8 = vsel %vm297_vm1, %v2436_v59, -inf }
  0x1f   : > { %v400_v37 = vmax.f32 %v392_v18, %v399_v27  ;;  %v407_v46 = vsel %vm297_vm1, %v2405_v34, -inf  ;;  %v337_v22 = vsel %vm297_vm1, %v2402_v33, 0.0  ;;  %v2461_v27 = vld [vmem:[%s2266_s30 + $0xe8] sm:$0xff] }
  0x20   : > { %v316_v48 = vadd.f32 %v315_v38, %v314_v40  ;;  %v402_v38 = vmax.f32 %v394_v20, %v401_v28  ;;  %v2410_v40 = vld [vmem:[%s2266_s30 + $0xb0] sm:$0xff]  ;;  %v2456_v20 = vld [vmem:[%s2266_s30 + $0xe0] sm:$0xff] }
  0x21   : > { %v408_v57 = vmax.f32 %v400_v37, %v407_v46 }
  0x22   : > { %v318_v54 = vadd.f32 %v317_v41, %v316_v48  ;;  %v2413_v41 = vld [vmem:[%s2266_s30 + $0xb8] sm:$0xff]  ;;  %v409_v48 = vsel %vm297_vm1, %v2410_v40, -inf }
  0x23   : > { %v411_v49 = vsel %vm297_vm1, %v2413_v41, -inf  ;;  %v410_v63 = vmax.f32 %v402_v38, %v409_v48  ;;  %v427_v38 = vsel %vm297_vm1, %v2453_v17, -inf }
  0x24   : > { %v320_v62 = vadd.f32 %v319_v52, %v318_v54  ;;  %v2429_v52 = vld [vmem:[%s2266_s30 + $0xc8] sm:$0xff]  ;;  %v333_v54 = vsel %vm297_vm1, %v2386_v15, 0.0  ;;  %v412_v0 = vmax.f32 %v404_v44, %v411_v49  ;;  %v341_v44 = vsel %vm297_vm1, %v2410_v40, 0.0 }
  0x25   : > { %v415_v2 = vsel %vm297_vm1, %v2429_v52, -inf }
  0x26   : > { %v322_v11 = vadd.f32 %v321_v55, %v320_v62  ;;  %v406_v55 = vmax.f32 %v398_v36, %v405_v45  ;;  %v416_v26 = vmax.f32 %v408_v57, %v415_v2  ;;  %v423_v36 = vsel %vm297_vm1, %v2461_v27, -inf }
  0x27   : > { %v349_v2 = vsel %vm297_vm1, %v2436_v59, 0.0 }
  0x28   : > { %v324_v24 = vadd.f32 %v323_v7, %v322_v11  ;;  %v335_v7 = vsel %vm297_vm1, %v2391_v23, 0.0  ;;  %v419_v11 = vsel %vm297_vm1, %v2439_v60, -inf }
  0x29   : > { %v420_v31 = vmax.f32 %v412_v0, %v419_v11  ;;  %v351_v11 = vsel %vm297_vm1, %v2439_v60, 0.0 }
  0x2a   : > { %v326_v32 = vadd.f32 %v325_v12, %v324_v24  ;;  %v2450_v12 = vld [vmem:[%s2266_s30 + $0xf0] sm:$0xff]  ;;  %v414_v24 = vmax.f32 %v406_v55, %v413_v58  ;;  %v345_v55 = vsel %vm297_vm1, %v2426_v50, 0.0  ;;  %s3274_s30 = scalar_lea.vmem %s3382_s5, %s2260_s27 }
  0x2b   : > { %v425_v37 = vsel %vm297_vm1, %v2450_v12, -inf  ;;  %v428_v49 = vmax.f32 %v420_v31, %v427_v38  ;;  %v357_v31 = vsel %vm297_vm1, %v2450_v12, 0.0 }
  0x2c   : > { %v328_v42 = vadd.f32 %v327_v30, %v326_v32  ;;  %v418_v30 = vmax.f32 %v410_v63, %v417_v8  ;;  %v421_v32 = vsel %vm297_vm1, %v2456_v20, -inf  ;;  %v347_v63 = vsel %vm297_vm1, %v2429_v52, 0.0 }
  0x2d   : > { %v422_v45 = vmax.f32 %v414_v24, %v421_v32 }
  0x2e   : > { %v330_v51 = vadd.f32 %v329_v35, %v328_v42  ;;  %v339_v35 = vsel %vm297_vm1, %v2405_v34, 0.0  ;;  %v426_v48 = vmax.f32 %v418_v30, %v425_v37 }
  0x30   : > { %v332_v62 = vadd.f32 %v331_v47, %v330_v51  ;;  %v424_v47 = vmax.f32 %v416_v26, %v423_v36  ;;  %v343_v51 = vsel %vm297_vm1, %v2413_v41, 0.0  ;;  %v359_v36 = vsel %vm297_vm1, %v2453_v17, 0.0 }
  0x32   : > { %v334_v18 = vadd.f32 %v333_v54, %v332_v62  ;;  %v429_v58 = vmax.f32 %v422_v45, %v424_v47  ;;  %v430_v62 = vmax.f32 %v426_v48, %v428_v49 }
  0x34   : > { %v336_v28 = vadd.f32 %v335_v7, %v334_v18  ;;  %v431_v8 = vmax.f32 %v429_v58, %v430_v62  ;;  %v516_v62 = vld [vmem:[%s3379_s2] sm:$0xf] }
  0x35   : > { %2046 = vmatpush3.msk.msra.mxu1 %vm521_vm3, %v516_v62 }
  0x36   : > { %v338_v42 = vadd.f32 %v337_v22, %v336_v28  ;;  %v353_v22 = vsel %vm297_vm1, %v2456_v20, 0.0  ;;  %v432_v26 = vrot.slane %v431_v8, 4  ;;  %v355_v28 = vsel %vm297_vm1, %v2461_v27, 0.0  ;;  %994 = vmatprep.subr.mxu1 %v2203_v1 }
  0x38   : > { %v340_v46 = vadd.f32 %v339_v35, %v338_v42  ;;  %v433_v35 = vmax.f32 %v431_v8, %v432_v26 }
  0x3a   : > { %v342_v54 = vadd.f32 %v341_v44, %v340_v46  ;;  %v434_v42 = vrot.slane %v433_v35, 2 }
  0x3c   : > { %v344_v57 = vadd.f32 %v343_v51, %v342_v54  ;;  %v435_v46 = vmax.f32 %v433_v35, %v434_v42 }
  0x3e   : > { %v346_v0 = vadd.f32 %v345_v55, %v344_v57  ;;  %v436_v49 = vrot.slane %v435_v46, 1 }
  0x40   : > { %v348_v7 = vadd.f32 %v347_v63, %v346_v0  ;;  %v437_v55 = vmax.f32 %v435_v46, %v436_v49 }
  0x42   : > { %v350_v18 = vadd.f32 %v349_v2, %v348_v7 }
  0x44   : > { %v352_v24 = vadd.f32 %v351_v11, %v350_v18 }
  0x46   : > { %v354_v30 = vadd.f32 %v353_v22, %v352_v24 }
  0x48   : > { %v356_v32 = vadd.f32 %v355_v28, %v354_v30 }
  0x4a   : > { %v358_v37 = vadd.f32 %v357_v31, %v356_v32 }
  0x4c   : > { %v360_v38 = vadd.f32 %v359_v36, %v358_v37 }
  0x4e   : > { %v361_v44 = vrot.slane %v360_v38, 4 }
  0x50   : > { %v362_v45 = vadd.f32 %v361_v44, %v360_v38 }
  0x52   : > { %v363_v47 = vrot.slane %v362_v45, 2 }
  0x54   : > { %v364_v48 = vadd.f32 %v363_v47, %v362_v45 }
  0x56   : > { %v365_v51 = vrot.slane %v364_v48, 1 }
  0x58   : > { %v366_v54 = vadd.f32 %v365_v51, %v364_v48 }
  0x5a   : > { %v368_v57 = vmul.f32 0.00390625, %v366_v54 }
  0x5c   : > { %v439_v58 = vsel %vm438_vm2, %v368_v57, %v437_v55 }
  0x5d   : > { %2043 = vmatmul.mubr.msk.f32.vlgmr.msra.gmra.mxu0 %vm297_vm1, %v439_v58 }
 0x11d   : > { %v511_v63 = vpop.f32.mrf.mxu0 }
 0x11e   : > { %v515_v0 = vmax.f32 %v511_v63, 0.0 }
 0x11f   : > { %v2044_v2 = vpop.f32.mrf.mxu0 }
 0x120   : > { %2048 = vmatmul.mubr.msk.f32.vlgmr.msra.gmra.mxu1 %vm517_vm4, %v515_v0 }
 0x1e0   : > { %v591_v7 = vpop.f32.mrf.mxu1 }
 0x1e1   : > { %v596_v8 = vsel %vm595_vm5, %v591_v7, 0.0 }
 0x1e2   : > { %v597_v11 = vrot.slane %v596_v8, 4  ;;  %v2049_v18 = vpop.f32.mrf.mxu1 }
 0x1e4   : > { %v598_v22 = vadd.f32 %v597_v11, %v596_v8 }
 0x1e6   : > { %v599_v24 = vrot.slane %v598_v22, 2 }
 0x1e8   : > { %v600_v26 = vadd.f32 %v599_v24, %v598_v22 }
 0x1ea   : > { %v601_v28 = vrot.slane %v600_v26, 1 }
 0x1ec   : > { %v602_v30 = vadd.f32 %v601_v28, %v600_v26 }
 0x1ee   : > { %v1995_v31 = vmul.f32 -1.442695, %v602_v30 }
 0x1f0   : > { %2063 = vpow2.f32 %v1995_v31 }
 0x1fd   : > { %v2064_v32 = vpop.eup %2063 }
 0x1fe   : > { %v606_v35 = vadd.f32 1.0, %v2064_v32 }
 0x200   : > { %2065 = vrcp.f32 %v606_v35 }
 0x20d   : > { %v2498_v36 = vpop.eup %2065 }
 0x20e   : > { %v2502_v37 = vmul.f32 %v2498_v36, %v2365_v61  ;;  %v2510_v44 = vmul.f32 %v2498_v36, %v2362_v56  ;;  %v2514_v45 = vmul.f32 %v2498_v36, %v2357_v53  ;;  %v2522_v47 = vmul.f32 %v2498_v36, %v2344_v43 }
 0x20f   : > { %v2530_v48 = vmul.f32 %v2498_v36, %v2339_v39  ;;  %v2538_v51 = vmul.f32 %v2498_v36, %v2320_v29  ;;  %v2546_v55 = vmul.f32 %v2498_v36, %v2313_v25  ;;  %v2554_v58 = vmul.f32 %v2498_v36, %v2306_v21 }
 0x210   : > { %v815_v38 = vsel %vm297_vm1, %v2502_v37, -inf  ;;  %v686_v42 = vsel %vm297_vm1, %v2502_v37, 0.0  ;;  %v683_v61 = vsel %vm297_vm1, %v2510_v44, 0.0  ;;  %v680_v46 = vsel %vm297_vm1, %v2514_v45, 0.0 }
 0x211   : > { %816 = vmax.xlane.f32.xlu1 %v815_v38  ;;  %687 = vadd.xlane.f32.xlu0 %v686_v42  ;;  %v812_v56 = vsel %vm297_vm1, %v2510_v44, -inf  ;;  %v677_v53 = vsel %vm297_vm1, %v2522_v47, 0.0  ;;  %v809_v49 = vsel %vm297_vm1, %v2514_v45, -inf  ;;  %v674_v43 = vsel %vm297_vm1, %v2530_v48, 0.0 }
 0x212   : > { %v806_v54 = vsel %vm297_vm1, %v2522_v47, -inf  ;;  %v671_v39 = vsel %vm297_vm1, %v2538_v51, 0.0  ;;  %v803_v57 = vsel %vm297_vm1, %v2530_v48, -inf  ;;  %v668_v29 = vsel %vm297_vm1, %v2546_v55, 0.0 }
 0x213   : > { %v800_v62 = vsel %vm297_vm1, %v2538_v51, -inf  ;;  %v665_v25 = vsel %vm297_vm1, %v2554_v58, 0.0  ;;  %v2562_v63 = vmul.f32 %v2498_v36, %v2303_v19  ;;  %v797_v0 = vsel %vm297_vm1, %v2546_v55, -inf }
 0x214   : > { %v2570_v2 = vmul.f32 %v2498_v36, %v2298_v16  ;;  %v794_v7 = vsel %vm297_vm1, %v2554_v58, -inf  ;;  %v2578_v8 = vmul.f32 %v2498_v36, %v2293_v13  ;;  %v2586_v18 = vmul.f32 %v2498_v36, %v2288_v10 }
 0x215   : > { %684 = vadd.xlane.f32.xlu0 %v683_v61  ;;  %681 = vadd.xlane.f32.xlu1 %v680_v46  ;;  %v662_v21 = vsel %vm297_vm1, %v2562_v63, 0.0  ;;  %v791_v11 = vsel %vm297_vm1, %v2562_v63, -inf  ;;  %v2594_v24 = vmul.f32 %v2498_v36, %v2279_v6  ;;  %v2602_v28 = vmul.f32 %v2498_v36, %v2276_v5 }
 0x216   : > { %v659_v19 = vsel %vm297_vm1, %v2570_v2, 0.0  ;;  %v656_v16 = vsel %vm297_vm1, %v2578_v8, 0.0  ;;  %v788_v22 = vsel %vm297_vm1, %v2570_v2, -inf  ;;  %v653_v13 = vsel %vm297_vm1, %v2586_v18, 0.0 }
 0x217   : > { %v785_v26 = vsel %vm297_vm1, %v2578_v8, -inf  ;;  %v650_v10 = vsel %vm297_vm1, %v2594_v24, 0.0  ;;  %v782_v30 = vsel %vm297_vm1, %v2586_v18, -inf  ;;  %v647_v6 = vsel %vm297_vm1, %v2602_v28, 0.0 }
 0x218   : > { %v2610_v31 = vmul.f32 %v2498_v36, %v2273_v4  ;;  %v779_v32 = vsel %vm297_vm1, %v2594_v24, -inf  ;;  %v2618_v35 = vmul.f32 %v2498_v36, %v2270_v3  ;;  %v776_v38 = vsel %vm297_vm1, %v2602_v28, -inf }
 0x219   : > { %813 = vmax.xlane.f32.xlu0 %v812_v56  ;;  %678 = vadd.xlane.f32.xlu1 %v677_v53  ;;  %v2626_v42 = vmul.f32 %v2498_v36, %v2453_v17  ;;  %v2634_v46 = vmul.f32 %v2498_v36, %v2450_v12  ;;  %v2642_v53 = vmul.f32 %v2498_v36, %v2461_v27 }
 0x21a   : > { %v644_v5 = vsel %vm297_vm1, %v2610_v31, 0.0  ;;  %v641_v4 = vsel %vm297_vm1, %v2618_v35, 0.0  ;;  %v773_v61 = vsel %vm297_vm1, %v2610_v31, -inf  ;;  %v770_v56 = vsel %vm297_vm1, %v2618_v35, -inf }
 0x21b   : > { %v734_v3 = vsel %vm297_vm1, %v2626_v42, 0.0  ;;  %v731_v17 = vsel %vm297_vm1, %v2634_v46, 0.0  ;;  %v728_v12 = vsel %vm297_vm1, %v2642_v53, 0.0 }
 0x21d   : > { %810 = vmax.xlane.f32.xlu0 %v809_v49  ;;  %675 = vadd.xlane.f32.xlu1 %v674_v43  ;;  %v863_v49 = vsel %vm297_vm1, %v2626_v42, -inf  ;;  %v2650_v43 = vmul.f32 %v2498_v36, %v2456_v20 }
 0x21f   : > { %v725_v27 = vsel %vm297_vm1, %v2650_v43, 0.0 }
 0x221   : > { %807 = vmax.xlane.f32.xlu0 %v806_v54  ;;  %672 = vadd.xlane.f32.xlu1 %v671_v39  ;;  %v860_v54 = vsel %vm297_vm1, %v2634_v46, -inf  ;;  %v2658_v39 = vmul.f32 %v2498_v36, %v2439_v60 }
 0x223   : > { %v722_v20 = vsel %vm297_vm1, %v2658_v39, 0.0 }
 0x225   : > { %804 = vmax.xlane.f32.xlu0 %v803_v57  ;;  %669 = vadd.xlane.f32.xlu1 %v668_v29  ;;  %v857_v57 = vsel %vm297_vm1, %v2642_v53, -inf  ;;  %v2666_v29 = vmul.f32 %v2498_v36, %v2436_v59 }
 0x227   : > { %v719_v60 = vsel %vm297_vm1, %v2666_v29, 0.0 }
 0x229   : > { %801 = vmax.xlane.f32.xlu0 %v800_v62  ;;  %666 = vadd.xlane.f32.xlu1 %v665_v25  ;;  %v854_v62 = vsel %vm297_vm1, %v2650_v43, -inf  ;;  %v2674_v25 = vmul.f32 %v2498_v36, %v2429_v52 }
 0x22b   : > { %v716_v59 = vsel %vm297_vm1, %v2674_v25, 0.0 }
 0x22d   : > { %798 = vmax.xlane.f32.xlu0 %v797_v0  ;;  %663 = vadd.xlane.f32.xlu1 %v662_v21  ;;  %v851_v0 = vsel %vm297_vm1, %v2658_v39, -inf  ;;  %v2682_v21 = vmul.f32 %v2498_v36, %v2426_v50 }
 0x22f   : > { %v713_v52 = vsel %vm297_vm1, %v2682_v21, 0.0 }
 0x231   : > { %795 = vmax.xlane.f32.xlu0 %v794_v7  ;;  %660 = vadd.xlane.f32.xlu1 %v659_v19  ;;  %v848_v7 = vsel %vm297_vm1, %v2666_v29, -inf  ;;  %v2690_v19 = vmul.f32 %v2498_v36, %v2413_v41 }
 0x233   : > { %v710_v50 = vsel %vm297_vm1, %v2690_v19, 0.0 }
 0x235   : > { %792 = vmax.xlane.f32.xlu0 %v791_v11  ;;  %657 = vadd.xlane.f32.xlu1 %v656_v16  ;;  %v845_v11 = vsel %vm297_vm1, %v2674_v25, -inf  ;;  %v2698_v16 = vmul.f32 %v2498_v36, %v2410_v40 }
 0x237   : > { %v707_v41 = vsel %vm297_vm1, %v2698_v16, 0.0 }
 0x239   : > { %789 = vmax.xlane.f32.xlu0 %v788_v22  ;;  %654 = vadd.xlane.f32.xlu1 %v653_v13  ;;  %v842_v22 = vsel %vm297_vm1, %v2682_v21, -inf  ;;  %v2706_v13 = vmul.f32 %v2498_v36, %v2405_v34 }
 0x23b   : > { %v704_v40 = vsel %vm297_vm1, %v2706_v13, 0.0 }
 0x23d   : > { %786 = vmax.xlane.f32.xlu0 %v785_v26  ;;  %651 = vadd.xlane.f32.xlu1 %v650_v10  ;;  %v839_v26 = vsel %vm297_vm1, %v2690_v19, -inf  ;;  %v2714_v10 = vmul.f32 %v2498_v36, %v2402_v33 }
 0x23f   : > { %v701_v34 = vsel %vm297_vm1, %v2714_v10, 0.0 }
 0x241   : > { %783 = vmax.xlane.f32.xlu0 %v782_v30  ;;  %648 = vadd.xlane.f32.xlu1 %v647_v6  ;;  %v836_v30 = vsel %vm297_vm1, %v2698_v16, -inf  ;;  %v2722_v6 = vmul.f32 %v2498_v36, %v2391_v23 }
 0x243   : > { %v698_v33 = vsel %vm297_vm1, %v2722_v6, 0.0 }
 0x245   : > { %780 = vmax.xlane.f32.xlu0 %v779_v32  ;;  %645 = vadd.xlane.f32.xlu1 %v644_v5  ;;  %v833_v32 = vsel %vm297_vm1, %v2706_v13, -inf  ;;  %v2730_v5 = vmul.f32 %v2498_v36, %v2386_v15 }
 0x247   : > { %v695_v23 = vsel %vm297_vm1, %v2730_v5, 0.0 }
 0x249   : > { %777 = vmax.xlane.f32.xlu0 %v776_v38  ;;  %642 = vadd.xlane.f32.xlu1 %v641_v4  ;;  %v830_v38 = vsel %vm297_vm1, %v2714_v10, -inf  ;;  %v2738_v4 = vmul.f32 %v2498_v36, %v2383_v14 }
 0x24b   : > { %v692_v15 = vsel %vm297_vm1, %v2738_v4, 0.0 }
 0x24d   : > { %774 = vmax.xlane.f32.xlu0 %v773_v61  ;;  %735 = vadd.xlane.f32.xlu1 %v734_v3  ;;  %v827_v61 = vsel %vm297_vm1, %v2722_v6, -inf  ;;  %v2746_v3 = vmul.f32 %v2498_v36, %v2378_v9  ;;  %v867_v9 = vld [vmem:[%s3380_s3 + $0x8] sm:$0xff] }
 0x24e   : > { %1283 = vmatprep.mubr.f32.mxu0 %v867_v9  ;;  %v931_v36 = vld [vmem:[%s3381_s4 + $0x8] sm:$0xff] }
 0x24f   : > { %v689_v14 = vsel %vm297_vm1, %v2746_v3, 0.0  ;;  %1058 = vmatprep.mubr.f32.mxu1 %v931_v36 }
 0x251   : > { %771 = vmax.xlane.f32.xlu0 %v770_v56  ;;  %732 = vadd.xlane.f32.xlu1 %v731_v17  ;;  %v824_v56 = vsel %vm297_vm1, %v2730_v5, -inf  ;;  %v821_v17 = vsel %vm297_vm1, %v2738_v4, -inf }
 0x255   : > { %864 = vmax.xlane.f32.xlu0 %v863_v49  ;;  %729 = vadd.xlane.f32.xlu1 %v728_v12  ;;  %v818_v49 = vsel %vm297_vm1, %v2746_v3, -inf }
 0x259   : > { %861 = vmax.xlane.f32.xlu0 %v860_v54  ;;  %726 = vadd.xlane.f32.xlu1 %v725_v27 }
 0x25d   : > { %858 = vmax.xlane.f32.xlu0 %v857_v57  ;;  %723 = vadd.xlane.f32.xlu1 %v722_v20 }
 0x261   : > { %855 = vmax.xlane.f32.xlu0 %v854_v62  ;;  %720 = vadd.xlane.f32.xlu1 %v719_v60 }
 0x265   : > { %852 = vmax.xlane.f32.xlu0 %v851_v0  ;;  %717 = vadd.xlane.f32.xlu1 %v716_v59 }
 0x269   : > { %849 = vmax.xlane.f32.xlu0 %v848_v7  ;;  %714 = vadd.xlane.f32.xlu1 %v713_v52 }
 0x26d   : > { %846 = vmax.xlane.f32.xlu0 %v845_v11  ;;  %711 = vadd.xlane.f32.xlu1 %v710_v50 }
 0x271   : > { %843 = vmax.xlane.f32.xlu0 %v842_v22  ;;  %708 = vadd.xlane.f32.xlu1 %v707_v41 }
 0x275   : > { %840 = vmax.xlane.f32.xlu0 %v839_v26  ;;  %705 = vadd.xlane.f32.xlu1 %v704_v40 }
 0x279   : > { %837 = vmax.xlane.f32.xlu0 %v836_v30  ;;  %702 = vadd.xlane.f32.xlu1 %v701_v34 }
 0x27d   : > { %834 = vmax.xlane.f32.xlu0 %v833_v32  ;;  %699 = vadd.xlane.f32.xlu1 %v698_v33 }
 0x281   : > { %831 = vmax.xlane.f32.xlu0 %v830_v38  ;;  %696 = vadd.xlane.f32.xlu1 %v695_v23 }
 0x285   : > { %828 = vmax.xlane.f32.xlu0 %v827_v61  ;;  %693 = vadd.xlane.f32.xlu1 %v692_v15 }
 0x289   : > { %825 = vmax.xlane.f32.xlu0 %v824_v56  ;;  %690 = vadd.xlane.f32.xlu1 %v689_v14 }
 0x28d   : > { %822 = vmax.xlane.f32.xlu0 %v821_v17  ;;  %819 = vmax.xlane.f32.xlu1 %v818_v49 }
 0x29a   : > { %v817_v12 = vpop.xlane.xlu1 %816  ;;  %v688_v54 = vpop.xlane.xlu0 %687 }
 0x29b   : > { %v753_v27 = vmul.f32 0.0625, %v688_v54  ;;  %995 = vmatpush1.msra.mxu1 %v817_v12 }
 0x29c   : > { %996 = vmatprep.subr.mxu1 %v2203_v1 }
 0x29d   : > { %1220 = vmatpush1.msra.mxu0 %v753_v27 }
 0x29e   : > { %v685_v57 = vpop.xlane.xlu0 %684  ;;  %v682_v20 = vpop.xlane.xlu1 %681  ;;  %1221 = vmatprep.subr.mxu0 %v2203_v1 }
 0x29f   : > { %v752_v62 = vmul.f32 0.0625, %v685_v57  ;;  %v751_v60 = vmul.f32 0.0625, %v682_v20 }
 0x2a1   : > { %1222 = vmatpush1.msra.mxu0 %v752_v62 }
 0x2a2   : > { %1223 = vmatprep.subr.mxu0 %v2203_v1  ;;  %v814_v0 = vpop.xlane.xlu0 %813  ;;  %v679_v59 = vpop.xlane.xlu1 %678 }
 0x2a3   : > { %v750_v7 = vmul.f32 0.0625, %v679_v59  ;;  %997 = vmatpush1.msra.mxu1 %v814_v0  ;;  %1224 = vmatpush1.msra.mxu0 %v751_v60 }
 0x2a4   : > { %1225 = vmatprep.subr.mxu0 %v2203_v1  ;;  %998 = vmatprep.subr.mxu1 %v2203_v1 }
 0x2a5   : > { %1226 = vmatpush1.msra.mxu0 %v750_v7 }
 0x2a6   : > { %v811_v52 = vpop.xlane.xlu0 %810  ;;  %v676_v11 = vpop.xlane.xlu1 %675  ;;  %1227 = vmatprep.subr.mxu0 %v2203_v1 }
 0x2a7   : > { %v749_v50 = vmul.f32 0.0625, %v676_v11  ;;  %999 = vmatpush1.msra.mxu1 %v811_v52 }
 0x2a8   : > { %1000 = vmatprep.subr.mxu1 %v2203_v1 }
 0x2a9   : > { %1228 = vmatpush1.msra.mxu0 %v749_v50 }
 0x2aa   : > { %v808_v22 = vpop.xlane.xlu0 %807  ;;  %v673_v41 = vpop.xlane.xlu1 %672  ;;  %1229 = vmatprep.subr.mxu0 %v2203_v1 }
 0x2ab   : > { %v748_v26 = vmul.f32 0.0625, %v673_v41  ;;  %1001 = vmatpush1.msra.mxu1 %v808_v22 }
 0x2ac   : > { %1002 = vmatprep.subr.mxu1 %v2203_v1 }
 0x2ad   : > { %1230 = vmatpush1.msra.mxu0 %v748_v26 }
 0x2ae   : > { %v805_v40 = vpop.xlane.xlu0 %804  ;;  %v670_v30 = vpop.xlane.xlu1 %669  ;;  %1231 = vmatprep.subr.mxu0 %v2203_v1 }
 0x2af   : > { %v747_v34 = vmul.f32 0.0625, %v670_v30  ;;  %1003 = vmatpush1.msra.mxu1 %v805_v40 }
 0x2b0   : > { %1004 = vmatprep.subr.mxu1 %v2203_v1 }
 0x2b1   : > { %1232 = vmatpush1.msra.mxu0 %v747_v34 }
 0x2b2   : > { %v802_v32 = vpop.xlane.xlu0 %801  ;;  %v667_v33 = vpop.xlane.xlu1 %666  ;;  %1233 = vmatprep.subr.mxu0 %v2203_v1 }
 0x2b3   : > { %v746_v38 = vmul.f32 0.0625, %v667_v33  ;;  %1005 = vmatpush1.msra.mxu1 %v802_v32 }
 0x2b4   : > { %1006 = vmatprep.subr.mxu1 %v2203_v1 }
 0x2b5   : > { %1234 = vmatpush1.msra.mxu0 %v746_v38 }
 0x2b6   : > { %v799_v23 = vpop.xlane.xlu0 %798  ;;  %v664_v61 = vpop.xlane.xlu1 %663  ;;  %1235 = vmatprep.subr.mxu0 %v2203_v1 }
 0x2b7   : > { %v745_v15 = vmul.f32 0.0625, %v664_v61  ;;  %1007 = vmatpush1.msra.mxu1 %v799_v23 }
 0x2b8   : > { %1008 = vmatprep.subr.mxu1 %v2203_v1 }
 0x2b9   : > { %1236 = vmatpush1.msra.mxu0 %v745_v15 }
 0x2ba   : > { %v796_v56 = vpop.xlane.xlu0 %795  ;;  %v661_v14 = vpop.xlane.xlu1 %660  ;;  %1237 = vmatprep.subr.mxu0 %v2203_v1 }
 0x2bb   : > { %v744_v17 = vmul.f32 0.0625, %v661_v14  ;;  %1009 = vmatpush1.msra.mxu1 %v796_v56 }
 0x2bc   : > { %1010 = vmatprep.subr.mxu1 %v2203_v1 }
 0x2bd   : > { %1238 = vmatpush1.msra.mxu0 %v744_v17 }
 0x2be   : > { %v793_v49 = vpop.xlane.xlu0 %792  ;;  %v658_v9 = vpop.xlane.xlu1 %657  ;;  %1239 = vmatprep.subr.mxu0 %v2203_v1 }
 0x2bf   : > { %v743_v36 = vmul.f32 0.0625, %v658_v9  ;;  %1011 = vmatpush1.msra.mxu1 %v793_v49 }
 0x2c0   : > { %1012 = vmatprep.subr.mxu1 %v2203_v1 }
 0x2c1   : > { %1240 = vmatpush1.msra.mxu0 %v743_v36 }
 0x2c2   : > { %v790_v12 = vpop.xlane.xlu0 %789  ;;  %v655_v54 = vpop.xlane.xlu1 %654  ;;  %1241 = vmatprep.subr.mxu0 %v2203_v1 }
 0x2c3   : > { %v742_v27 = vmul.f32 0.0625, %v655_v54  ;;  %1013 = vmatpush1.msra.mxu1 %v790_v12 }
 0x2c4   : > { %1014 = vmatprep.subr.mxu1 %v2203_v1 }
 0x2c5   : > { %1242 = vmatpush1.msra.mxu0 %v742_v27 }
 0x2c6   : > { %v787_v57 = vpop.xlane.xlu0 %786  ;;  %v652_v20 = vpop.xlane.xlu1 %651  ;;  %1243 = vmatprep.subr.mxu0 %v2203_v1 }
 0x2c7   : > { %v741_v62 = vmul.f32 0.0625, %v652_v20  ;;  %1015 = vmatpush1.msra.mxu1 %v787_v57 }
 0x2c8   : > { %1016 = vmatprep.subr.mxu1 %v2203_v1 }
 0x2c9   : > { %1244 = vmatpush1.msra.mxu0 %v741_v62 }
 0x2ca   : > { %v784_v60 = vpop.xlane.xlu0 %783  ;;  %v649_v0 = vpop.xlane.xlu1 %648  ;;  %1245 = vmatprep.subr.mxu0 %v2203_v1 }
 0x2cb   : > { %v740_v59 = vmul.f32 0.0625, %v649_v0  ;;  %1017 = vmatpush1.msra.mxu1 %v784_v60 }
 0x2cc   : > { %1018 = vmatprep.subr.mxu1 %v2203_v1 }
 0x2cd   : > { %1246 = vmatpush1.msra.mxu0 %v740_v59 }
 0x2ce   : > { %v781_v7 = vpop.xlane.xlu0 %780  ;;  %v646_v52 = vpop.xlane.xlu1 %645  ;;  %1247 = vmatprep.subr.mxu0 %v2203_v1 }
 0x2cf   : > { %v739_v11 = vmul.f32 0.0625, %v646_v52  ;;  %1019 = vmatpush1.msra.mxu1 %v781_v7 }
 0x2d0   : > { %1020 = vmatprep.subr.mxu1 %v2203_v1 }
 0x2d1   : > { %1248 = vmatpush1.msra.mxu0 %v739_v11 }
 0x2d2   : > { %v778_v50 = vpop.xlane.xlu0 %777  ;;  %v643_v22 = vpop.xlane.xlu1 %642  ;;  %1249 = vmatprep.subr.mxu0 %v2203_v1 }
 0x2d3   : > { %v738_v41 = vmul.f32 0.0625, %v643_v22  ;;  %1021 = vmatpush1.msra.mxu1 %v778_v50 }
 0x2d4   : > { %1022 = vmatprep.subr.mxu1 %v2203_v1 }
 0x2d5   : > { %1250 = vmatpush1.msra.mxu0 %v738_v41 }
 0x2d6   : > { %v775_v26 = vpop.xlane.xlu0 %774  ;;  %v736_v40 = vpop.xlane.xlu1 %735  ;;  %1251 = vmatprep.subr.mxu0 %v2203_v1 }
 0x2d7   : > { %v769_v30 = vmul.f32 0.0625, %v736_v40  ;;  %1023 = vmatpush1.msra.mxu1 %v775_v26 }
 0x2d8   : > { %1024 = vmatprep.subr.mxu1 %v2203_v1 }
 0x2d9   : > { %1252 = vmatpush2.msra.mxu0 %v769_v30 }
 0x2da   : > { %v772_v34 = vpop.xlane.xlu0 %771  ;;  %v733_v32 = vpop.xlane.xlu1 %732  ;;  %1253 = vmatprep.subr.mxu0 %v2203_v1 }
 0x2db   : > { %v768_v33 = vmul.f32 0.0625, %v733_v32  ;;  %1025 = vmatpush1.msra.mxu1 %v772_v34 }
 0x2dc   : > { %1026 = vmatprep.subr.mxu1 %v2203_v1 }
 0x2dd   : > { %1254 = vmatpush2.msra.mxu0 %v768_v33 }
 0x2de   : > { %v865_v38 = vpop.xlane.xlu0 %864  ;;  %v730_v23 = vpop.xlane.xlu1 %729  ;;  %1255 = vmatprep.subr.mxu0 %v2203_v1 }
 0x2df   : > { %v767_v61 = vmul.f32 0.0625, %v730_v23  ;;  %1027 = vmatpush2.msra.mxu1 %v865_v38 }
 0x2e0   : > { %1028 = vmatprep.subr.mxu1 %v2203_v1 }
 0x2e1   : > { %1256 = vmatpush2.msra.mxu0 %v767_v61 }
 0x2e2   : > { %v862_v15 = vpop.xlane.xlu0 %861  ;;  %v727_v56 = vpop.xlane.xlu1 %726  ;;  %1257 = vmatprep.subr.mxu0 %v2203_v1 }
 0x2e3   : > { %v766_v14 = vmul.f32 0.0625, %v727_v56  ;;  %1029 = vmatpush2.msra.mxu1 %v862_v15 }
 0x2e4   : > { %1030 = vmatprep.subr.mxu1 %v2203_v1 }
 0x2e5   : > { %1258 = vmatpush2.msra.mxu0 %v766_v14 }
 0x2e6   : > { %v859_v17 = vpop.xlane.xlu0 %858  ;;  %v724_v49 = vpop.xlane.xlu1 %723  ;;  %1259 = vmatprep.subr.mxu0 %v2203_v1 }
 0x2e7   : > { %v765_v9 = vmul.f32 0.0625, %v724_v49  ;;  %1031 = vmatpush2.msra.mxu1 %v859_v17 }
 0x2e8   : > { %1032 = vmatprep.subr.mxu1 %v2203_v1 }
 0x2e9   : > { %1260 = vmatpush2.msra.mxu0 %v765_v9 }
 0x2ea   : > { %v856_v36 = vpop.xlane.xlu0 %855  ;;  %v721_v12 = vpop.xlane.xlu1 %720  ;;  %1261 = vmatprep.subr.mxu0 %v2203_v1 }
 0x2eb   : > { %v764_v54 = vmul.f32 0.0625, %v721_v12  ;;  %1033 = vmatpush2.msra.mxu1 %v856_v36 }
 0x2ec   : > { %1034 = vmatprep.subr.mxu1 %v2203_v1 }
 0x2ed   : > { %1262 = vmatpush2.msra.mxu0 %v764_v54  ;;  %v866_v54 = vld [vmem:[%s3380_s3] sm:$0xff] }
 0x2ee   : > { %v853_v27 = vpop.xlane.xlu0 %852  ;;  %v718_v57 = vpop.xlane.xlu1 %717  ;;  %1263 = vmatprep.subr.mxu0 %v2203_v1 }
 0x2ef   : > { %v763_v20 = vmul.f32 0.0625, %v718_v57  ;;  %1035 = vmatpush2.msra.mxu1 %v853_v27  ;;  %v869_v27 = vld [vmem:[%s3380_s3 + $0x18] sm:$0xff] }
 0x2f0   : > { %1036 = vmatprep.subr.mxu1 %v2203_v1 }
 0x2f1   : > { %1264 = vmatpush2.msra.mxu0 %v763_v20  ;;  %v930_v20 = vld [vmem:[%s3381_s4] sm:$0xff] }
 0x2f2   : > { %v850_v62 = vpop.xlane.xlu0 %849  ;;  %v715_v60 = vpop.xlane.xlu1 %714  ;;  %1265 = vmatprep.subr.mxu0 %v2203_v1 }
 0x2f3   : > { %v762_v0 = vmul.f32 0.0625, %v715_v60  ;;  %1037 = vmatpush2.msra.mxu1 %v850_v62  ;;  %v868_v62 = vld [vmem:[%s3380_s3 + $0x10] sm:$0xff] }
 0x2f4   : > { %1038 = vmatprep.subr.mxu1 %v2203_v1 }
 0x2f5   : > { %1266 = vmatpush2.msra.mxu0 %v762_v0  ;;  %v933_v0 = vld [vmem:[%s3381_s4 + $0x18] sm:$0xff] }
 0x2f6   : > { %v847_v59 = vpop.xlane.xlu0 %846  ;;  %v712_v7 = vpop.xlane.xlu1 %711  ;;  %1267 = vmatprep.subr.mxu0 %v2203_v1 }
 0x2f7   : > { %v761_v52 = vmul.f32 0.0625, %v712_v7  ;;  %1039 = vmatpush2.msra.mxu1 %v847_v59  ;;  %v871_v59 = vld [vmem:[%s3380_s3 + $0x28] sm:$0xff]  ;;  %v932_v7 = vld [vmem:[%s3381_s4 + $0x10] sm:$0xff] }
 0x2f8   : > { %1040 = vmatprep.subr.mxu1 %v2203_v1 }
 0x2f9   : > { %1268 = vmatpush2.msra.mxu0 %v761_v52  ;;  %v935_v52 = vld [vmem:[%s3381_s4 + $0x28] sm:$0xff] }
 0x2fa   : > { %v844_v11 = vpop.xlane.xlu0 %843  ;;  %v709_v50 = vpop.xlane.xlu1 %708  ;;  %1269 = vmatprep.subr.mxu0 %v2203_v1 }
 0x2fb   : > { %v760_v22 = vmul.f32 0.0625, %v709_v50  ;;  %1041 = vmatpush2.msra.mxu1 %v844_v11  ;;  %v873_v11 = vld [vmem:[%s3380_s3 + $0x38] sm:$0xff]  ;;  %v934_v50 = vld [vmem:[%s3381_s4 + $0x20] sm:$0xff] }
 0x2fc   : > { %1042 = vmatprep.subr.mxu1 %v2203_v1 }
 0x2fd   : > { %1270 = vmatpush2.msra.mxu0 %v760_v22  ;;  %v872_v22 = vld [vmem:[%s3380_s3 + $0x30] sm:$0xff] }
 0x2fe   : > { %v841_v41 = vpop.xlane.xlu0 %840  ;;  %v706_v26 = vpop.xlane.xlu1 %705  ;;  %1271 = vmatprep.subr.mxu0 %v2203_v1 }
 0x2ff   : > { %v759_v40 = vmul.f32 0.0625, %v706_v26  ;;  %1043 = vmatpush2.msra.mxu1 %v841_v41  ;;  %v937_v41 = vld [vmem:[%s3381_s4 + $0x38] sm:$0xff]  ;;  %v875_v26 = vld [vmem:[%s3380_s3 + $0x48] sm:$0xff] }
 0x300   : > { %1044 = vmatprep.subr.mxu1 %v2203_v1 }
 0x301   : > { %1272 = vmatpush2.msra.mxu0 %v759_v40  ;;  %v936_v40 = vld [vmem:[%s3381_s4 + $0x30] sm:$0xff] }
 0x302   : > { %v838_v30 = vpop.xlane.xlu0 %837  ;;  %v703_v34 = vpop.xlane.xlu1 %702  ;;  %1273 = vmatprep.subr.mxu0 %v2203_v1 }
 0x303   : > { %v758_v32 = vmul.f32 0.0625, %v703_v34  ;;  %1045 = vmatpush2.msra.mxu1 %v838_v30  ;;  %v874_v30 = vld [vmem:[%s3380_s3 + $0x40] sm:$0xff]  ;;  %v939_v34 = vld [vmem:[%s3381_s4 + $0x48] sm:$0xff] }
 0x304   : > { %1046 = vmatprep.subr.mxu1 %v2203_v1 }
 0x305   : > { %1274 = vmatpush2.msra.mxu0 %v758_v32  ;;  %v877_v32 = vld [vmem:[%s3380_s3 + $0x58] sm:$0xff] }
 0x306   : > { %v835_v33 = vpop.xlane.xlu0 %834  ;;  %v700_v38 = vpop.xlane.xlu1 %699  ;;  %1275 = vmatprep.subr.mxu0 %v2203_v1 }
 0x307   : > { %v757_v23 = vmul.f32 0.0625, %v700_v38  ;;  %1047 = vmatpush2.msra.mxu1 %v835_v33  ;;  %v938_v33 = vld [vmem:[%s3381_s4 + $0x40] sm:$0xff]  ;;  %v876_v38 = vld [vmem:[%s3380_s3 + $0x50] sm:$0xff] }
 0x308   : > { %1048 = vmatprep.subr.mxu1 %v2203_v1 }
 0x309   : > { %1276 = vmatpush2.msra.mxu0 %v757_v23  ;;  %v941_v23 = vld [vmem:[%s3381_s4 + $0x58] sm:$0xff] }
 0x30a   : > { %v832_v61 = vpop.xlane.xlu0 %831  ;;  %v697_v15 = vpop.xlane.xlu1 %696  ;;  %1277 = vmatprep.subr.mxu0 %v2203_v1 }
 0x30b   : > { %v756_v56 = vmul.f32 0.0625, %v697_v15  ;;  %1049 = vmatpush2.msra.mxu1 %v832_v61  ;;  %v879_v61 = vld [vmem:[%s3380_s3 + $0x68] sm:$0xff]  ;;  %v940_v15 = vld [vmem:[%s3381_s4 + $0x50] sm:$0xff] }
 0x30c   : > { %1050 = vmatprep.subr.mxu1 %v2203_v1 }
 0x30d   : > { %1278 = vmatpush2.msra.mxu0 %v756_v56  ;;  %v878_v56 = vld [vmem:[%s3380_s3 + $0x60] sm:$0xff] }
 0x30e   : > { %v829_v14 = vpop.xlane.xlu0 %828  ;;  %v694_v17 = vpop.xlane.xlu1 %693  ;;  %1279 = vmatprep.subr.mxu0 %v2203_v1 }
 0x30f   : > { %v755_v49 = vmul.f32 0.0625, %v694_v17  ;;  %1051 = vmatpush2.msra.mxu1 %v829_v14  ;;  %v943_v14 = vld [vmem:[%s3381_s4 + $0x68] sm:$0xff]  ;;  %v881_v17 = vld [vmem:[%s3380_s3 + $0x78] sm:$0xff] }
 0x310   : > { %1052 = vmatprep.subr.mxu1 %v2203_v1 }
 0x311   : > { %1280 = vmatpush2.msra.mxu0 %v755_v49  ;;  %v942_v49 = vld [vmem:[%s3381_s4 + $0x60] sm:$0xff] }
 0x312   : > { %v826_v9 = vpop.xlane.xlu0 %825  ;;  %v691_v36 = vpop.xlane.xlu1 %690  ;;  %1281 = vmatprep.subr.mxu0 %v2203_v1 }
 0x313   : > { %v754_v12 = vmul.f32 0.0625, %v691_v36  ;;  %1053 = vmatpush2.msra.mxu1 %v826_v9  ;;  %v880_v9 = vld [vmem:[%s3380_s3 + $0x70] sm:$0xff]  ;;  %v945_v36 = vld [vmem:[%s3381_s4 + $0x78] sm:$0xff] }
 0x314   : > { %1054 = vmatprep.subr.mxu1 %v2203_v1 }
 0x315   : > { %1282 = vmatpush2.msra.mxu0 %v754_v12  ;;  %v883_v12 = vld [vmem:[%s3380_s3 + $0x88] sm:$0xff] }
 0x316   : > { %v823_v57 = vpop.xlane.xlu0 %822  ;;  %1284 = vmatmul.mubr.f32.vlgmr.msra.gmra.mxu0 %v866_v54  ;;  %v820_v60 = vpop.xlane.xlu1 %819  ;;  %v944_v54 = vld [vmem:[%s3381_s4 + $0x70] sm:$0xff] }
 0x317   : > { %1055 = vmatpush2.msra.mxu1 %v823_v57  ;;  %1288 = vmatprep.mubr.f32.mxu0 %v869_v27  ;;  %v882_v27 = vld [vmem:[%s3380_s3 + $0x80] sm:$0xff]  ;;  %v947_v57 = vld [vmem:[%s3381_s4 + $0x88] sm:$0xff] }
 0x318   : > { %1056 = vmatprep.subr.mxu1 %v2203_v1  ;;  %v870_v1 = vld [vmem:[%s3380_s3 + $0x20] sm:$0xff] }
 0x319   : > { %1057 = vmatpush2.msra.mxu1 %v820_v60  ;;  %v884_v60 = vld [vmem:[%s3380_s3 + $0x90] sm:$0xff] }
 0x31a   : > { %1059 = vmatmul.mubr.f32.vlgmr.msra.gmra.mxu1 %v930_v20  ;;  %1289 = vmatmul.mubr.f32.gmra.mxu0 %v868_v62  ;;  %v885_v20 = vld [vmem:[%s3380_s3 + $0x98] sm:$0xff]  ;;  %v946_v62 = vld [vmem:[%s3381_s4 + $0x80] sm:$0xff] }
 0x31b   : > { %1063 = vmatprep.mubr.f32.mxu1 %v933_v0  ;;  %1293 = vmatprep.mubr.f32.mxu0 %v871_v59  ;;  %v949_v0 = vld [vmem:[%s3381_s4 + $0x98] sm:$0xff]  ;;  %v887_v59 = vld [vmem:[%s3380_s3 + $0xa8] sm:$0xff] }
 0x31e   : > { %1064 = vmatmul.mubr.f32.gmra.mxu1 %v932_v7  ;;  %1294 = vmatmul.mubr.f32.gmra.mxu0 %v870_v1  ;;  %v948_v7 = vld [vmem:[%s3381_s4 + $0x90] sm:$0xff]  ;;  %v886_v1 = vld [vmem:[%s3380_s3 + $0xa0] sm:$0xff] }
 0x31f   : > { %1068 = vmatprep.mubr.f32.mxu1 %v935_v52  ;;  %1298 = vmatprep.mubr.f32.mxu0 %v873_v11  ;;  %v951_v52 = vld [vmem:[%s3381_s4 + $0xa8] sm:$0xff]  ;;  %v889_v11 = vld [vmem:[%s3380_s3 + $0xb8] sm:$0xff] }
 0x322   : > { %1069 = vmatmul.mubr.f32.gmra.mxu1 %v934_v50  ;;  %1299 = vmatmul.mubr.f32.gmra.mxu0 %v872_v22  ;;  %v950_v50 = vld [vmem:[%s3381_s4 + $0xa0] sm:$0xff]  ;;  %v888_v22 = vld [vmem:[%s3380_s3 + $0xb0] sm:$0xff] }
 0x323   : > { %1073 = vmatprep.mubr.f32.mxu1 %v937_v41  ;;  %1303 = vmatprep.mubr.f32.mxu0 %v875_v26  ;;  %v953_v41 = vld [vmem:[%s3381_s4 + $0xb8] sm:$0xff]  ;;  %v891_v26 = vld [vmem:[%s3380_s3 + $0xc8] sm:$0xff] }
 0x326   : > { %1074 = vmatmul.mubr.f32.gmra.mxu1 %v936_v40  ;;  %1304 = vmatmul.mubr.f32.gmra.mxu0 %v874_v30  ;;  %v952_v40 = vld [vmem:[%s3381_s4 + $0xb0] sm:$0xff]  ;;  %v890_v30 = vld [vmem:[%s3380_s3 + $0xc0] sm:$0xff] }
 0x327   : > { %1078 = vmatprep.mubr.f32.mxu1 %v939_v34  ;;  %1308 = vmatprep.mubr.f32.mxu0 %v877_v32  ;;  %v955_v34 = vld [vmem:[%s3381_s4 + $0xc8] sm:$0xff]  ;;  %v893_v32 = vld [vmem:[%s3380_s3 + $0xd8] sm:$0xff] }
 0x32a   : > { %1079 = vmatmul.mubr.f32.gmra.mxu1 %v938_v33  ;;  %1309 = vmatmul.mubr.f32.gmra.mxu0 %v876_v38  ;;  %v954_v33 = vld [vmem:[%s3381_s4 + $0xc0] sm:$0xff]  ;;  %v892_v38 = vld [vmem:[%s3380_s3 + $0xd0] sm:$0xff] }
 0x32b   : > { %1083 = vmatprep.mubr.f32.mxu1 %v941_v23  ;;  %1313 = vmatprep.mubr.f32.mxu0 %v879_v61  ;;  %v957_v23 = vld [vmem:[%s3381_s4 + $0xd8] sm:$0xff]  ;;  %v895_v61 = vld [vmem:[%s3380_s3 + $0xe8] sm:$0xff] }
 0x32e   : > { %1084 = vmatmul.mubr.f32.gmra.mxu1 %v940_v15  ;;  %1314 = vmatmul.mubr.f32.gmra.mxu0 %v878_v56  ;;  %v956_v15 = vld [vmem:[%s3381_s4 + $0xd0] sm:$0xff]  ;;  %v894_v56 = vld [vmem:[%s3380_s3 + $0xe0] sm:$0xff] }
 0x32f   : > { %1088 = vmatprep.mubr.f32.mxu1 %v943_v14  ;;  %1318 = vmatprep.mubr.f32.mxu0 %v881_v17  ;;  %v959_v14 = vld [vmem:[%s3381_s4 + $0xe8] sm:$0xff]  ;;  %v897_v17 = vld [vmem:[%s3380_s3 + $0xf8] sm:$0xff] }
 0x332   : > { %1089 = vmatmul.mubr.f32.gmra.mxu1 %v942_v49  ;;  %1319 = vmatmul.mubr.f32.gmra.mxu0 %v880_v9  ;;  %v958_v49 = vld [vmem:[%s3381_s4 + $0xe0] sm:$0xff]  ;;  %v896_v9 = vld [vmem:[%s3380_s3 + $0xf0] sm:$0xff] }
 0x333   : > { %1093 = vmatprep.mubr.f32.mxu1 %v945_v36  ;;  %1323 = vmatprep.mubr.f32.mxu0 %v883_v12  ;;  %v961_v36 = vld [vmem:[%s3381_s4 + $0xf8] sm:$0xff]  ;;  %v899_v12 = vld [vmem:[%s3380_s3 + $0x108] sm:$0xff] }
 0x336   : > { %1094 = vmatmul.mubr.f32.gmra.mxu1 %v944_v54  ;;  %1324 = vmatmul.mubr.f32.gmra.mxu0 %v882_v27  ;;  %v960_v54 = vld [vmem:[%s3381_s4 + $0xf0] sm:$0xff]  ;;  %v898_v27 = vld [vmem:[%s3380_s3 + $0x100] sm:$0xff] }
 0x337   : > { %1098 = vmatprep.mubr.f32.mxu1 %v947_v57  ;;  %1328 = vmatprep.mubr.f32.mxu0 %v885_v20  ;;  %v963_v57 = vld [vmem:[%s3381_s4 + $0x108] sm:$0xff]  ;;  %v901_v20 = vld [vmem:[%s3380_s3 + $0x118] sm:$0xff] }
 0x33a   : > { %1099 = vmatmul.mubr.f32.gmra.mxu1 %v946_v62  ;;  %1329 = vmatmul.mubr.f32.gmra.mxu0 %v884_v60  ;;  %v962_v62 = vld [vmem:[%s3381_s4 + $0x100] sm:$0xff]  ;;  %v900_v60 = vld [vmem:[%s3380_s3 + $0x110] sm:$0xff] }
 0x33b   : > { %1103 = vmatprep.mubr.f32.mxu1 %v949_v0  ;;  %1333 = vmatprep.mubr.f32.mxu0 %v887_v59  ;;  %v965_v0 = vld [vmem:[%s3381_s4 + $0x118] sm:$0xff]  ;;  %v903_v59 = vld [vmem:[%s3380_s3 + $0x128] sm:$0xff] }
 0x33e   : > { %1104 = vmatmul.mubr.f32.gmra.mxu1 %v948_v7  ;;  %1334 = vmatmul.mubr.f32.gmra.mxu0 %v886_v1  ;;  %v964_v7 = vld [vmem:[%s3381_s4 + $0x110] sm:$0xff]  ;;  %v902_v1 = vld [vmem:[%s3380_s3 + $0x120] sm:$0xff] }
 0x33f   : > { %1108 = vmatprep.mubr.f32.mxu1 %v951_v52  ;;  %1338 = vmatprep.mubr.f32.mxu0 %v889_v11  ;;  %v967_v52 = vld [vmem:[%s3381_s4 + $0x128] sm:$0xff]  ;;  %v905_v11 = vld [vmem:[%s3380_s3 + $0x138] sm:$0xff] }
 0x342   : > { %1109 = vmatmul.mubr.f32.gmra.mxu1 %v950_v50  ;;  %1339 = vmatmul.mubr.f32.gmra.mxu0 %v888_v22  ;;  %v966_v50 = vld [vmem:[%s3381_s4 + $0x120] sm:$0xff]  ;;  %v904_v22 = vld [vmem:[%s3380_s3 + $0x130] sm:$0xff] }
 0x343   : > { %1113 = vmatprep.mubr.f32.mxu1 %v953_v41  ;;  %1343 = vmatprep.mubr.f32.mxu0 %v891_v26  ;;  %v969_v41 = vld [vmem:[%s3381_s4 + $0x138] sm:$0xff]  ;;  %v907_v26 = vld [vmem:[%s3380_s3 + $0x148] sm:$0xff] }
 0x346   : > { %1114 = vmatmul.mubr.f32.gmra.mxu1 %v952_v40  ;;  %1344 = vmatmul.mubr.f32.gmra.mxu0 %v890_v30  ;;  %v968_v40 = vld [vmem:[%s3381_s4 + $0x130] sm:$0xff]  ;;  %v906_v30 = vld [vmem:[%s3380_s3 + $0x140] sm:$0xff] }
 0x347   : > { %1118 = vmatprep.mubr.f32.mxu1 %v955_v34  ;;  %1348 = vmatprep.mubr.f32.mxu0 %v893_v32  ;;  %v971_v34 = vld [vmem:[%s3381_s4 + $0x148] sm:$0xff]  ;;  %v909_v32 = vld [vmem:[%s3380_s3 + $0x158] sm:$0xff] }
 0x34a   : > { %1119 = vmatmul.mubr.f32.gmra.mxu1 %v954_v33  ;;  %1349 = vmatmul.mubr.f32.gmra.mxu0 %v892_v38  ;;  %v970_v33 = vld [vmem:[%s3381_s4 + $0x140] sm:$0xff]  ;;  %v908_v38 = vld [vmem:[%s3380_s3 + $0x150] sm:$0xff] }
 0x34b   : > { %1123 = vmatprep.mubr.f32.mxu1 %v957_v23  ;;  %1353 = vmatprep.mubr.f32.mxu0 %v895_v61  ;;  %v973_v23 = vld [vmem:[%s3381_s4 + $0x158] sm:$0xff]  ;;  %v911_v61 = vld [vmem:[%s3380_s3 + $0x168] sm:$0xff] }
 0x34e   : > { %1124 = vmatmul.mubr.f32.gmra.mxu1 %v956_v15  ;;  %1354 = vmatmul.mubr.f32.gmra.mxu0 %v894_v56  ;;  %v972_v15 = vld [vmem:[%s3381_s4 + $0x150] sm:$0xff]  ;;  %v910_v56 = vld [vmem:[%s3380_s3 + $0x160] sm:$0xff] }
 0x34f   : > { %1128 = vmatprep.mubr.f32.mxu1 %v959_v14  ;;  %1358 = vmatprep.mubr.f32.mxu0 %v897_v17  ;;  %v975_v14 = vld [vmem:[%s3381_s4 + $0x168] sm:$0xff]  ;;  %v913_v17 = vld [vmem:[%s3380_s3 + $0x178] sm:$0xff] }
 0x352   : > { %1129 = vmatmul.mubr.f32.gmra.mxu1 %v958_v49  ;;  %1359 = vmatmul.mubr.f32.gmra.mxu0 %v896_v9  ;;  %v974_v49 = vld [vmem:[%s3381_s4 + $0x160] sm:$0xff]  ;;  %v912_v9 = vld [vmem:[%s3380_s3 + $0x170] sm:$0xff] }
 0x353   : > { %1133 = vmatprep.mubr.f32.mxu1 %v961_v36  ;;  %1363 = vmatprep.mubr.f32.mxu0 %v899_v12  ;;  %v977_v36 = vld [vmem:[%s3381_s4 + $0x178] sm:$0xff]  ;;  %v915_v12 = vld [vmem:[%s3380_s3 + $0x188] sm:$0xff] }
 0x356   : > { %1134 = vmatmul.mubr.f32.gmra.mxu1 %v960_v54  ;;  %1364 = vmatmul.mubr.f32.gmra.mxu0 %v898_v27  ;;  %v976_v54 = vld [vmem:[%s3381_s4 + $0x170] sm:$0xff]  ;;  %v914_v27 = vld [vmem:[%s3380_s3 + $0x180] sm:$0xff] }
 0x357   : > { %1138 = vmatprep.mubr.f32.mxu1 %v963_v57  ;;  %1368 = vmatprep.mubr.f32.mxu0 %v901_v20  ;;  %v979_v57 = vld [vmem:[%s3381_s4 + $0x188] sm:$0xff]  ;;  %v917_v20 = vld [vmem:[%s3380_s3 + $0x198] sm:$0xff] }
 0x35a   : > { %1139 = vmatmul.mubr.f32.gmra.mxu1 %v962_v62  ;;  %1369 = vmatmul.mubr.f32.gmra.mxu0 %v900_v60  ;;  %v978_v62 = vld [vmem:[%s3381_s4 + $0x180] sm:$0xff]  ;;  %v916_v60 = vld [vmem:[%s3380_s3 + $0x190] sm:$0xff] }
 0x35b   : > { %1143 = vmatprep.mubr.f32.mxu1 %v965_v0  ;;  %1373 = vmatprep.mubr.f32.mxu0 %v903_v59  ;;  %v981_v0 = vld [vmem:[%s3381_s4 + $0x198] sm:$0xff]  ;;  %v919_v59 = vld [vmem:[%s3380_s3 + $0x1a8] sm:$0xff] }
 0x35e   : > { %1144 = vmatmul.mubr.f32.gmra.mxu1 %v964_v7  ;;  %1374 = vmatmul.mubr.f32.gmra.mxu0 %v902_v1  ;;  %v980_v7 = vld [vmem:[%s3381_s4 + $0x190] sm:$0xff]  ;;  %v918_v1 = vld [vmem:[%s3380_s3 + $0x1a0] sm:$0xff] }
 0x35f   : > { %1148 = vmatprep.mubr.f32.mxu1 %v967_v52  ;;  %1378 = vmatprep.mubr.f32.mxu0 %v905_v11  ;;  %v983_v52 = vld [vmem:[%s3381_s4 + $0x1a8] sm:$0xff]  ;;  %v921_v11 = vld [vmem:[%s3380_s3 + $0x1b8] sm:$0xff] }
 0x362   : > { %1149 = vmatmul.mubr.f32.gmra.mxu1 %v966_v50  ;;  %1379 = vmatmul.mubr.f32.gmra.mxu0 %v904_v22  ;;  %v982_v50 = vld [vmem:[%s3381_s4 + $0x1a0] sm:$0xff]  ;;  %v920_v22 = vld [vmem:[%s3380_s3 + $0x1b0] sm:$0xff] }
 0x363   : > { %1153 = vmatprep.mubr.f32.mxu1 %v969_v41  ;;  %1383 = vmatprep.mubr.f32.mxu0 %v907_v26  ;;  %v985_v41 = vld [vmem:[%s3381_s4 + $0x1b8] sm:$0xff]  ;;  %v923_v26 = vld [vmem:[%s3380_s3 + $0x1c8] sm:$0xff] }
 0x366   : > { %1154 = vmatmul.mubr.f32.gmra.mxu1 %v968_v40  ;;  %1384 = vmatmul.mubr.f32.gmra.mxu0 %v906_v30  ;;  %v984_v40 = vld [vmem:[%s3381_s4 + $0x1b0] sm:$0xff]  ;;  %v922_v30 = vld [vmem:[%s3380_s3 + $0x1c0] sm:$0xff] }
 0x367   : > { %1158 = vmatprep.mubr.f32.mxu1 %v971_v34  ;;  %1388 = vmatprep.mubr.f32.mxu0 %v909_v32  ;;  %v987_v34 = vld [vmem:[%s3381_s4 + $0x1c8] sm:$0xff]  ;;  %v925_v32 = vld [vmem:[%s3380_s3 + $0x1d8] sm:$0xff] }
 0x36a   : > { %1159 = vmatmul.mubr.f32.gmra.mxu1 %v970_v33  ;;  %1389 = vmatmul.mubr.f32.gmra.mxu0 %v908_v38  ;;  %v986_v33 = vld [vmem:[%s3381_s4 + $0x1c0] sm:$0xff]  ;;  %v924_v38 = vld [vmem:[%s3380_s3 + $0x1d0] sm:$0xff] }
 0x36b   : > { %1163 = vmatprep.mubr.f32.mxu1 %v973_v23  ;;  %1393 = vmatprep.mubr.f32.mxu0 %v911_v61  ;;  %v989_v23 = vld [vmem:[%s3381_s4 + $0x1d8] sm:$0xff]  ;;  %v927_v61 = vld [vmem:[%s3380_s3 + $0x1e8] sm:$0xff] }
 0x36e   : > { %1164 = vmatmul.mubr.f32.gmra.mxu1 %v972_v15  ;;  %1394 = vmatmul.mubr.f32.gmra.mxu0 %v910_v56  ;;  %v988_v15 = vld [vmem:[%s3381_s4 + $0x1d0] sm:$0xff]  ;;  %v926_v56 = vld [vmem:[%s3380_s3 + $0x1e0] sm:$0xff] }
 0x36f   : > { %1168 = vmatprep.mubr.f32.mxu1 %v975_v14  ;;  %1398 = vmatprep.mubr.f32.mxu0 %v913_v17  ;;  %v991_v14 = vld [vmem:[%s3381_s4 + $0x1e8] sm:$0xff]  ;;  %v929_v17 = vld [vmem:[%s3380_s3 + $0x1f8] sm:$0xff] }
 0x372   : > { %1169 = vmatmul.mubr.f32.gmra.mxu1 %v974_v49  ;;  %1399 = vmatmul.mubr.f32.gmra.mxu0 %v912_v9  ;;  %v990_v49 = vld [vmem:[%s3381_s4 + $0x1e0] sm:$0xff]  ;;  %v928_v9 = vld [vmem:[%s3380_s3 + $0x1f0] sm:$0xff] }
 0x373   : > { %1173 = vmatprep.mubr.f32.mxu1 %v977_v36  ;;  %1403 = vmatprep.mubr.f32.mxu0 %v915_v12  ;;  %v993_v36 = vld [vmem:[%s3381_s4 + $0x1f8] sm:$0xff]  ;;  %v992_v12 = vld [vmem:[%s3381_s4 + $0x1f0] sm:$0xff] }
 0x376   : > { %1174 = vmatmul.mubr.f32.gmra.mxu1 %v976_v54  ;;  %1404 = vmatmul.mubr.f32.gmra.mxu0 %v914_v27  ;;  %v2205_v54 = vmov 0  }
 0x377   : > { %1178 = vmatprep.mubr.f32.mxu1 %v979_v57  ;;  %1408 = vmatprep.mubr.f32.mxu0 %v917_v20 }
 0x378   : > { %2061 = vset.pattern.permute.xlu0 %v2205_v54  ;;  %2062 = vset.pattern.permute.xlu1 %v2205_v54 }
 0x37a   : > { %1179 = vmatmul.mubr.f32.gmra.mxu1 %v978_v62  ;;  %1409 = vmatmul.mubr.f32.gmra.mxu0 %v916_v60 }
 0x37b   : > { %1183 = vmatprep.mubr.f32.mxu1 %v981_v0  ;;  %1413 = vmatprep.mubr.f32.mxu0 %v919_v59 }
 0x37e   : > { %1184 = vmatmul.mubr.f32.gmra.mxu1 %v980_v7  ;;  %1414 = vmatmul.mubr.f32.gmra.mxu0 %v918_v1 }
 0x37f   : > { %1188 = vmatprep.mubr.f32.mxu1 %v983_v52  ;;  %1418 = vmatprep.mubr.f32.mxu0 %v921_v11 }
 0x382   : > { %1189 = vmatmul.mubr.f32.gmra.mxu1 %v982_v50  ;;  %1419 = vmatmul.mubr.f32.gmra.mxu0 %v920_v22 }
 0x383   : > { %1193 = vmatprep.mubr.f32.mxu1 %v985_v41  ;;  %1423 = vmatprep.mubr.f32.mxu0 %v923_v26 }
 0x386   : > { %1194 = vmatmul.mubr.f32.gmra.mxu1 %v984_v40  ;;  %1424 = vmatmul.mubr.f32.gmra.mxu0 %v922_v30 }
 0x387   : > { %1198 = vmatprep.mubr.f32.mxu1 %v987_v34  ;;  %1428 = vmatprep.mubr.f32.mxu0 %v925_v32 }
 0x38a   : > { %1199 = vmatmul.mubr.f32.gmra.mxu1 %v986_v33  ;;  %1429 = vmatmul.mubr.f32.gmra.mxu0 %v924_v38 }
 0x38b   : > { %1203 = vmatprep.mubr.f32.mxu1 %v989_v23  ;;  %1433 = vmatprep.mubr.f32.mxu0 %v927_v61 }
 0x38e   : > { %1204 = vmatmul.mubr.f32.gmra.mxu1 %v988_v15  ;;  %1434 = vmatmul.mubr.f32.gmra.mxu0 %v926_v56 }
 0x38f   : > { %1208 = vmatprep.mubr.f32.mxu1 %v991_v14  ;;  %1438 = vmatprep.mubr.f32.mxu0 %v929_v17 }
 0x392   : > { %1209 = vmatmul.mubr.f32.gmra.mxu1 %v990_v49  ;;  %1439 = vmatmul.mubr.f32.gmra.mxu0 %v928_v9 }
 0x393   : > { %1213 = vmatprep.mubr.f32.mxu1 %v993_v36 }
 0x396   : > { %1214 = vmatmul.mubr.f32.gmra.mxu1 %v992_v12 }
 0x3d6   : > { %v1285_v27 = vpop.f32.mrf.mxu0 }
 0x3d8   : > { %v1287_v57 = vpop.f32.mrf.mxu0 }
 0x3da   : > { %v1060_v20 = vpop.f32.mrf.mxu1  ;;  %v1290_v62 = vpop.f32.mrf.mxu0 }
 0x3db   : > { %v1286_v60 = vadd.f32 %v1285_v27, %v1060_v20 }
 0x3dc   : > { %v1062_v0 = vpop.f32.mrf.mxu1  ;;  %v1292_v59 = vpop.f32.mrf.mxu0 }
 0x3dd   : > { %v1996_v7 = vmul.f32 -1.442695, %v1286_v60 }
 0x3de   : > { %v1065_v1 = vpop.f32.mrf.mxu1  ;;  %v1295_v52 = vpop.f32.mrf.mxu0 }
 0x3df   : > { %2067 = vpow2.f32 %v1996_v7  ;;  %v1291_v11 = vadd.f32 %v1290_v62, %v1065_v1 }
 0x3e0   : > { %v1067_v50 = vpop.f32.mrf.mxu1  ;;  %v1297_v22 = vpop.f32.mrf.mxu0 }
 0x3e1   : > { %v1997_v41 = vmul.f32 -1.442695, %v1291_v11 }
 0x3e2   : > { %v1070_v26 = vpop.f32.mrf.mxu1  ;;  %v1300_v40 = vpop.f32.mrf.mxu0 }
 0x3e3   : > { %2069 = vpow2.f32 %v1997_v41  ;;  %v1296_v30 = vadd.f32 %v1295_v52, %v1070_v26 }
 0x3e4   : > { %v1072_v34 = vpop.f32.mrf.mxu1  ;;  %v1302_v32 = vpop.f32.mrf.mxu0 }
 0x3e5   : > { %v1998_v33 = vmul.f32 -1.442695, %v1296_v30 }
 0x3e6   : > { %v1075_v38 = vpop.f32.mrf.mxu1  ;;  %v1305_v23 = vpop.f32.mrf.mxu0 }
 0x3e7   : > { %2071 = vpow2.f32 %v1998_v33  ;;  %v1301_v61 = vadd.f32 %v1300_v40, %v1075_v38 }
 0x3e8   : > { %v1077_v15 = vpop.f32.mrf.mxu1  ;;  %v1307_v56 = vpop.f32.mrf.mxu0 }
 0x3e9   : > { %v1999_v14 = vmul.f32 -1.442695, %v1301_v61 }
 0x3ea   : > { %v1080_v17 = vpop.f32.mrf.mxu1  ;;  %v1310_v49 = vpop.f32.mrf.mxu0 }
 0x3eb   : > { %2073 = vpow2.f32 %v1999_v14  ;;  %v1306_v9 = vadd.f32 %v1305_v23, %v1080_v17 }
 0x3ec   : > { %v2068_v36 = vpop.eup %2067  ;;  %v1082_v12 = vpop.f32.mrf.mxu1 }
 0x3ed   : > { %v1312_v54 = vpop.f32.mrf.mxu0  ;;  %v1540_v27 = vadd.f32 1.0, %v2068_v36  ;;  %v2000_v57 = vmul.f32 -1.442695, %v1306_v9 }
 0x3ee   : > { %v1085_v20 = vpop.f32.mrf.mxu1 }
 0x3ef   : > { %v1315_v62 = vpop.f32.mrf.mxu0  ;;  %2075 = vrcp.f32 %v1540_v27  ;;  %v1311_v60 = vadd.f32 %v1310_v49, %v1085_v20 }
 0x3f0   : > { %v2070_v0 = vpop.eup %2069  ;;  %2077 = vpow2.f32 %v2000_v57  ;;  %v1087_v59 = vpop.f32.mrf.mxu1 }
 0x3f1   : > { %v1317_v7 = vpop.f32.mrf.mxu0  ;;  %v1541_v1 = vadd.f32 1.0, %v2070_v0  ;;  %v2001_v52 = vmul.f32 -1.442695, %v1311_v60 }
 0x3f2   : > { %v1090_v11 = vpop.f32.mrf.mxu1 }
 0x3f3   : > { %v1320_v50 = vpop.f32.mrf.mxu0  ;;  %2079 = vrcp.f32 %v1541_v1  ;;  %v1316_v22 = vadd.f32 %v1315_v62, %v1090_v11 }
 0x3f4   : > { %v2072_v41 = vpop.eup %2071  ;;  %2081 = vpow2.f32 %v2001_v52  ;;  %v1092_v26 = vpop.f32.mrf.mxu1 }
 0x3f5   : > { %v1322_v40 = vpop.f32.mrf.mxu0  ;;  %v1542_v30 = vadd.f32 1.0, %v2072_v41  ;;  %v2002_v34 = vmul.f32 -1.442695, %v1316_v22 }
 0x3f6   : > { %v1095_v32 = vpop.f32.mrf.mxu1 }
 0x3f7   : > { %v1325_v33 = vpop.f32.mrf.mxu0  ;;  %2083 = vrcp.f32 %v1542_v30  ;;  %v1321_v38 = vadd.f32 %v1320_v50, %v1095_v32 }
 0x3f8   : > { %v2074_v23 = vpop.eup %2073  ;;  %2085 = vpow2.f32 %v2002_v34  ;;  %v1097_v61 = vpop.f32.mrf.mxu1 }
 0x3f9   : > { %v1327_v15 = vpop.f32.mrf.mxu0  ;;  %v1543_v56 = vadd.f32 1.0, %v2074_v23  ;;  %v2003_v14 = vmul.f32 -1.442695, %v1321_v38 }
 0x3fa   : > { %v1100_v17 = vpop.f32.mrf.mxu1 }
 0x3fb   : > { %v1330_v49 = vpop.f32.mrf.mxu0  ;;  %2087 = vrcp.f32 %v1543_v56  ;;  %v1326_v9 = vadd.f32 %v1325_v33, %v1100_v17 }
 0x3fc   : > { %v2076_v36 = vpop.eup %2075  ;;  %2089 = vpow2.f32 %v2003_v14  ;;  %v1102_v12 = vpop.f32.mrf.mxu1 }
 0x3fd   : > { %v1332_v54 = vpop.f32.mrf.mxu0  ;;  %v2078_v27 = vpop.eup %2077  ;;  %1861 = vst.msk [vmem:[%s3206_s26] sm:$0xff] %vm1860_vm6, %v2076_v36  ;;  %v2004_v57 = vmul.f32 -1.442695, %v1326_v9  ;;  %1638 = vperm.xlu0 %2061, %v2076_v36  }
 0x3fe   : > { %v1544_v20 = vadd.f32 1.0, %v2078_v27  ;;  %v1105_v62 = vpop.f32.mrf.mxu1 }
 0x3ff   : > { %v1335_v60 = vpop.f32.mrf.mxu0  ;;  %2091 = vpow2.f32 %v2004_v57  ;;  %v1331_v0 = vadd.f32 %v1330_v49, %v1105_v62 }
 0x400   : > { %v2080_v59 = vpop.eup %2079  ;;  %2093 = vrcp.f32 %v1544_v20  ;;  %v1107_v7 = vpop.f32.mrf.mxu1 }
 0x401   : > { %v1337_v1 = vpop.f32.mrf.mxu0  ;;  %v2082_v52 = vpop.eup %2081  ;;  %1862 = vst.msk [vmem:[%s3206_s26 + $0x8] sm:$0xff] %vm1860_vm6, %v2080_v59  ;;  %v2005_v11 = vmul.f32 -1.442695, %v1331_v0  ;;  %1643 = vperm.xlu1 %2062, %v2080_v59  }
 0x402   : > { %v1545_v50 = vadd.f32 1.0, %v2082_v52  ;;  %v1110_v22 = vpop.f32.mrf.mxu1 }
 0x403   : > { %v1340_v41 = vpop.f32.mrf.mxu0  ;;  %2095 = vpow2.f32 %v2005_v11  ;;  %v1336_v26 = vadd.f32 %v1335_v60, %v1110_v22 }
 0x404   : > { %v2084_v40 = vpop.eup %2083  ;;  %2097 = vrcp.f32 %v1545_v50  ;;  %v1112_v30 = vpop.f32.mrf.mxu1 }
 0x405   : > { %v1342_v34 = vpop.f32.mrf.mxu0  ;;  %v2086_v32 = vpop.eup %2085  ;;  %1863 = vst.msk [vmem:[%s3206_s26 + $0x10] sm:$0xff] %vm1860_vm6, %v2084_v40  ;;  %v2006_v33 = vmul.f32 -1.442695, %v1336_v26  ;;  %1648 = vperm.xlu1 %2062, %v2084_v40  }
 0x406   : > { %v1546_v38 = vadd.f32 1.0, %v2086_v32  ;;  %v1115_v23 = vpop.f32.mrf.mxu1 }
 0x407   : > { %v1345_v61 = vpop.f32.mrf.mxu0  ;;  %2099 = vpow2.f32 %v2006_v33  ;;  %v1341_v15 = vadd.f32 %v1340_v41, %v1115_v23 }
 0x408   : > { %v2088_v56 = vpop.eup %2087  ;;  %2101 = vrcp.f32 %v1546_v38  ;;  %v1117_v14 = vpop.f32.mrf.mxu1 }
 0x409   : > { %v1347_v17 = vpop.f32.mrf.mxu0  ;;  %v2090_v49 = vpop.eup %2089  ;;  %1864 = vst.msk [vmem:[%s3206_s26 + $0x18] sm:$0xff] %vm1860_vm6, %v2088_v56  ;;  %v2007_v9 = vmul.f32 -1.442695, %v1341_v15  ;;  %1653 = vperm.xlu1 %2062, %v2088_v56  }
 0x40a   : > { %v1547_v36 = vadd.f32 1.0, %v2090_v49  ;;  %v1120_v12 = vpop.f32.mrf.mxu1 }
 0x40b   : > { %v1350_v54 = vpop.f32.mrf.mxu0  ;;  %2103 = vpow2.f32 %v2007_v9  ;;  %v1346_v27 = vadd.f32 %v1345_v61, %v1120_v12 }
 0x40c   : > { %v2092_v57 = vpop.eup %2091  ;;  %2105 = vrcp.f32 %v1547_v36  ;;  %v1122_v20 = vpop.f32.mrf.mxu1 }
 0x40d   : > { %v1352_v62 = vpop.f32.mrf.mxu0  ;;  %v2094_v60 = vpop.eup %2093  ;;  %v1548_v0 = vadd.f32 1.0, %v2092_v57  ;;  %v2008_v59 = vmul.f32 -1.442695, %v1346_v27 }
 0x40e   : > { %1865 = vst.msk [vmem:[%s3206_s26 + $0x20] sm:$0xff] %vm1860_vm6, %v2094_v60  ;;  %1658 = vperm.xlu1 %2062, %v2094_v60   ;;  %v1125_v7 = vpop.f32.mrf.mxu1 }
 0x40f   : > { %v1355_v1 = vpop.f32.mrf.mxu0  ;;  %2107 = vrcp.f32 %v1548_v0  ;;  %v1351_v52 = vadd.f32 %v1350_v54, %v1125_v7 }
 0x410   : > { %v2096_v11 = vpop.eup %2095  ;;  %2109 = vpow2.f32 %v2008_v59  ;;  %v1127_v50 = vpop.f32.mrf.mxu1 }
 0x411   : > { %v1357_v22 = vpop.f32.mrf.mxu0  ;;  %v2098_v41 = vpop.eup %2097  ;;  %v1549_v26 = vadd.f32 1.0, %v2096_v11  ;;  %v2009_v40 = vmul.f32 -1.442695, %v1351_v52 }
 0x412   : > { %1866 = vst.msk [vmem:[%s3206_s26 + $0x28] sm:$0xff] %vm1860_vm6, %v2098_v41  ;;  %1663 = vperm.xlu1 %2062, %v2098_v41   ;;  %v1130_v30 = vpop.f32.mrf.mxu1 }
 0x413   : > { %v1360_v34 = vpop.f32.mrf.mxu0  ;;  %2111 = vrcp.f32 %v1549_v26  ;;  %v1356_v32 = vadd.f32 %v1355_v1, %v1130_v30 }
 0x414   : > { %v2100_v33 = vpop.eup %2099  ;;  %2113 = vpow2.f32 %v2009_v40  ;;  %v1132_v38 = vpop.f32.mrf.mxu1 }
 0x415   : > { %v1362_v23 = vpop.f32.mrf.mxu0  ;;  %v2102_v61 = vpop.eup %2101  ;;  %v1550_v15 = vadd.f32 1.0, %v2100_v33  ;;  %v2010_v56 = vmul.f32 -1.442695, %v1356_v32 }
 0x416   : > { %1867 = vst.msk [vmem:[%s3206_s26 + $0x30] sm:$0xff] %vm1860_vm6, %v2102_v61  ;;  %1668 = vperm.xlu1 %2062, %v2102_v61   ;;  %v1135_v14 = vpop.f32.mrf.mxu1 }
 0x417   : > { %v1365_v17 = vpop.f32.mrf.mxu0  ;;  %2115 = vrcp.f32 %v1550_v15  ;;  %v1361_v49 = vadd.f32 %v1360_v34, %v1135_v14 }
 0x418   : > { %v2104_v9 = vpop.eup %2103  ;;  %2117 = vpow2.f32 %v2010_v56  ;;  %v1137_v36 = vpop.f32.mrf.mxu1 }
 0x419   : > { %v1367_v12 = vpop.f32.mrf.mxu0  ;;  %v2106_v54 = vpop.eup %2105  ;;  %v1551_v27 = vadd.f32 1.0, %v2104_v9  ;;  %v2011_v57 = vmul.f32 -1.442695, %v1361_v49 }
 0x41a   : > { %1868 = vst.msk [vmem:[%s3206_s26 + $0x38] sm:$0xff] %vm1860_vm6, %v2106_v54  ;;  %1673 = vperm.xlu1 %2062, %v2106_v54   ;;  %v1140_v20 = vpop.f32.mrf.mxu1 }
 0x41b   : > { %v1370_v62 = vpop.f32.mrf.mxu0  ;;  %2119 = vrcp.f32 %v1551_v27  ;;  %v1366_v60 = vadd.f32 %v1365_v17, %v1140_v20 }
 0x41c   : > { %v2108_v0 = vpop.eup %2107  ;;  %2121 = vpow2.f32 %v2011_v57  ;;  %v1142_v59 = vpop.f32.mrf.mxu1 }
 0x41d   : > { %v1372_v7 = vpop.f32.mrf.mxu0  ;;  %v2110_v1 = vpop.eup %2109  ;;  %1869 = vst.msk [vmem:[%s3206_s26 + $0x40] sm:$0xff] %vm1860_vm6, %v2108_v0  ;;  %v2012_v52 = vmul.f32 -1.442695, %v1366_v60 }
 0x41e   : > { %v1552_v11 = vadd.f32 1.0, %v2110_v1  ;;  %1678 = vperm.xlu1 %2062, %v2108_v0   ;;  %v1145_v50 = vpop.f32.mrf.mxu1 }
 0x41f   : > { %v1375_v22 = vpop.f32.mrf.mxu0  ;;  %2123 = vpow2.f32 %v2012_v52  ;;  %v1371_v41 = vadd.f32 %v1370_v62, %v1145_v50 }
 0x420   : > { %v2112_v26 = vpop.eup %2111  ;;  %2125 = vrcp.f32 %v1552_v11  ;;  %v1147_v40 = vpop.f32.mrf.mxu1 }
 0x421   : > { %v1377_v30 = vpop.f32.mrf.mxu0  ;;  %v2114_v34 = vpop.eup %2113  ;;  %1870 = vst.msk [vmem:[%s3206_s26 + $0x48] sm:$0xff] %vm1860_vm6, %v2112_v26  ;;  %v2013_v32 = vmul.f32 -1.442695, %v1371_v41  ;;  %1683 = vperm.xlu0 %2061, %v2112_v26  }
 0x422   : > { %v1553_v33 = vadd.f32 1.0, %v2114_v34  ;;  %v1150_v38 = vpop.f32.mrf.mxu1 }
 0x423   : > { %v1380_v23 = vpop.f32.mrf.mxu0  ;;  %2127 = vpow2.f32 %v2013_v32  ;;  %v1376_v61 = vadd.f32 %v1375_v22, %v1150_v38 }
 0x424   : > { %v2116_v15 = vpop.eup %2115  ;;  %2129 = vrcp.f32 %v1553_v33  ;;  %v1152_v56 = vpop.f32.mrf.mxu1 }
 0x425   : > { %v1382_v14 = vpop.f32.mrf.mxu0  ;;  %v2118_v17 = vpop.eup %2117  ;;  %1871 = vst.msk [vmem:[%s3206_s26 + $0x50] sm:$0xff] %vm1860_vm6, %v2116_v15  ;;  %v2014_v49 = vmul.f32 -1.442695, %v1376_v61  ;;  %1688 = vperm.xlu1 %2062, %v2116_v15  }
 0x426   : > { %v1554_v9 = vadd.f32 1.0, %v2118_v17  ;;  %v1155_v36 = vpop.f32.mrf.mxu1 }
 0x427   : > { %v1385_v12 = vpop.f32.mrf.mxu0  ;;  %2131 = vpow2.f32 %v2014_v49  ;;  %v1381_v54 = vadd.f32 %v1380_v23, %v1155_v36 }
 0x428   : > { %v2120_v27 = vpop.eup %2119  ;;  %2133 = vrcp.f32 %v1554_v9  ;;  %v1157_v57 = vpop.f32.mrf.mxu1 }
 0x429   : > { %v1387_v20 = vpop.f32.mrf.mxu0  ;;  %v2122_v62 = vpop.eup %2121  ;;  %1872 = vst.msk [vmem:[%s3206_s26 + $0x58] sm:$0xff] %vm1860_vm6, %v2120_v27  ;;  %v2015_v60 = vmul.f32 -1.442695, %v1381_v54  ;;  %1693 = vperm.xlu0 %2061, %v2120_v27  }
 0x42a   : > { %v1555_v0 = vadd.f32 1.0, %v2122_v62  ;;  %v1160_v59 = vpop.f32.mrf.mxu1 }
 0x42b   : > { %v1390_v7 = vpop.f32.mrf.mxu0  ;;  %2135 = vpow2.f32 %v2015_v60  ;;  %v1386_v1 = vadd.f32 %v1385_v12, %v1160_v59 }
 0x42c   : > { %v2124_v52 = vpop.eup %2123  ;;  %2137 = vrcp.f32 %v1555_v0  ;;  %v1162_v11 = vpop.f32.mrf.mxu1 }
 0x42d   : > { %v1392_v50 = vpop.f32.mrf.mxu0  ;;  %v2126_v22 = vpop.eup %2125  ;;  %v1556_v41 = vadd.f32 1.0, %v2124_v52  ;;  %v2016_v26 = vmul.f32 -1.442695, %v1386_v1 }
 0x42e   : > { %1873 = vst.msk [vmem:[%s3206_s26 + $0x60] sm:$0xff] %vm1860_vm6, %v2126_v22  ;;  %1698 = vperm.xlu1 %2062, %v2126_v22   ;;  %v1165_v40 = vpop.f32.mrf.mxu1 }
 0x42f   : > { %v1395_v30 = vpop.f32.mrf.mxu0  ;;  %2139 = vrcp.f32 %v1556_v41  ;;  %v1391_v34 = vadd.f32 %v1390_v7, %v1165_v40 }
 0x430   : > { %v2128_v32 = vpop.eup %2127  ;;  %2141 = vpow2.f32 %v2016_v26  ;;  %v1167_v33 = vpop.f32.mrf.mxu1 }
 0x431   : > { %v1397_v38 = vpop.f32.mrf.mxu0  ;;  %v2130_v23 = vpop.eup %2129  ;;  %v1557_v61 = vadd.f32 1.0, %v2128_v32  ;;  %v2017_v15 = vmul.f32 -1.442695, %v1391_v34 }
 0x432   : > { %1874 = vst.msk [vmem:[%s3206_s26 + $0x68] sm:$0xff] %vm1860_vm6, %v2130_v23  ;;  %1703 = vperm.xlu0 %2061, %v2130_v23   ;;  %v1170_v56 = vpop.f32.mrf.mxu1 }
 0x433   : > { %v1400_v14 = vpop.f32.mrf.mxu0  ;;  %2143 = vrcp.f32 %v1557_v61  ;;  %v1396_v17 = vadd.f32 %v1395_v30, %v1170_v56 }
 0x434   : > { %v2132_v49 = vpop.eup %2131  ;;  %2145 = vpow2.f32 %v2017_v15  ;;  %v1172_v9 = vpop.f32.mrf.mxu1 }
 0x435   : > { %v1402_v36 = vpop.f32.mrf.mxu0  ;;  %v2134_v12 = vpop.eup %2133  ;;  %v1558_v54 = vadd.f32 1.0, %v2132_v49  ;;  %v2018_v27 = vmul.f32 -1.442695, %v1396_v17 }
 0x436   : > { %1875 = vst.msk [vmem:[%s3206_s26 + $0x70] sm:$0xff] %vm1860_vm6, %v2134_v12  ;;  %1708 = vperm.xlu1 %2062, %v2134_v12   ;;  %v1175_v57 = vpop.f32.mrf.mxu1 }
 0x437   : > { %v1405_v20 = vpop.f32.mrf.mxu0  ;;  %2147 = vrcp.f32 %v1558_v54  ;;  %v1401_v62 = vadd.f32 %v1400_v14, %v1175_v57 }
 0x438   : > { %v2136_v60 = vpop.eup %2135  ;;  %2149 = vpow2.f32 %v2018_v27  ;;  %v1177_v0 = vpop.f32.mrf.mxu1 }
 0x439   : > { %v1407_v59 = vpop.f32.mrf.mxu0  ;;  %v2138_v7 = vpop.eup %2137  ;;  %v1559_v1 = vadd.f32 1.0, %v2136_v60  ;;  %v2019_v52 = vmul.f32 -1.442695, %v1401_v62 }
 0x43a   : > { %1876 = vst.msk [vmem:[%s3206_s26 + $0x78] sm:$0xff] %vm1860_vm6, %v2138_v7  ;;  %1713 = vperm.xlu0 %2061, %v2138_v7   ;;  %v1180_v11 = vpop.f32.mrf.mxu1 }
 0x43b   : > { %v1410_v50 = vpop.f32.mrf.mxu0  ;;  %2151 = vrcp.f32 %v1559_v1  ;;  %v1406_v22 = vadd.f32 %v1405_v20, %v1180_v11 }
 0x43c   : > { %v2140_v41 = vpop.eup %2139  ;;  %2153 = vpow2.f32 %v2019_v52  ;;  %v1182_v26 = vpop.f32.mrf.mxu1 }
 0x43d   : > { %v1412_v40 = vpop.f32.mrf.mxu0  ;;  %v2142_v30 = vpop.eup %2141  ;;  %1877 = vst.msk [vmem:[%s3206_s26 + $0x80] sm:$0xff] %vm1860_vm6, %v2140_v41  ;;  %v2020_v34 = vmul.f32 -1.442695, %v1406_v22  ;;  %1718 = vperm.xlu1 %2062, %v2140_v41  }
 0x43e   : > { %v1560_v32 = vadd.f32 1.0, %v2142_v30  ;;  %v1185_v33 = vpop.f32.mrf.mxu1 }
 0x43f   : > { %v1415_v38 = vpop.f32.mrf.mxu0  ;;  %2155 = vpow2.f32 %v2020_v34  ;;  %v1411_v23 = vadd.f32 %v1410_v50, %v1185_v33 }
 0x440   : > { %v2144_v61 = vpop.eup %2143  ;;  %2157 = vrcp.f32 %v1560_v32  ;;  %v1187_v15 = vpop.f32.mrf.mxu1 }
 0x441   : > { %v1417_v56 = vpop.f32.mrf.mxu0  ;;  %v2146_v14 = vpop.eup %2145  ;;  %1878 = vst.msk [vmem:[%s3206_s26 + $0x88] sm:$0xff] %vm1860_vm6, %v2144_v61  ;;  %v2021_v17 = vmul.f32 -1.442695, %v1411_v23  ;;  %1723 = vperm.xlu0 %2061, %v2144_v61  }
 0x442   : > { %v1561_v49 = vadd.f32 1.0, %v2146_v14  ;;  %v1190_v9 = vpop.f32.mrf.mxu1 }
 0x443   : > { %v1420_v36 = vpop.f32.mrf.mxu0  ;;  %2159 = vpow2.f32 %v2021_v17  ;;  %v1416_v12 = vadd.f32 %v1415_v38, %v1190_v9 }
 0x444   : > { %v2148_v54 = vpop.eup %2147  ;;  %2161 = vrcp.f32 %v1561_v49  ;;  %v1192_v27 = vpop.f32.mrf.mxu1 }
 0x445   : > { %v1422_v57 = vpop.f32.mrf.mxu0  ;;  %v2150_v20 = vpop.eup %2149  ;;  %1879 = vst.msk [vmem:[%s3206_s26 + $0x90] sm:$0xff] %vm1860_vm6, %v2148_v54  ;;  %v2022_v62 = vmul.f32 -1.442695, %v1416_v12  ;;  %1728 = vperm.xlu1 %2062, %v2148_v54  }
 0x446   : > { %v1562_v60 = vadd.f32 1.0, %v2150_v20  ;;  %v1195_v0 = vpop.f32.mrf.mxu1 }
 0x447   : > { %v1425_v59 = vpop.f32.mrf.mxu0  ;;  %2163 = vpow2.f32 %v2022_v62  ;;  %v1421_v7 = vadd.f32 %v1420_v36, %v1195_v0 }
 0x448   : > { %v2152_v1 = vpop.eup %2151  ;;  %2165 = vrcp.f32 %v1562_v60  ;;  %v1197_v52 = vpop.f32.mrf.mxu1 }
 0x449   : > { %v1427_v11 = vpop.f32.mrf.mxu0  ;;  %v2154_v50 = vpop.eup %2153  ;;  %1880 = vst.msk [vmem:[%s3206_s26 + $0x98] sm:$0xff] %vm1860_vm6, %v2152_v1  ;;  %v2023_v22 = vmul.f32 -1.442695, %v1421_v7  ;;  %1733 = vperm.xlu0 %2061, %v2152_v1  }
 0x44a   : > { %v1563_v41 = vadd.f32 1.0, %v2154_v50  ;;  %v1200_v26 = vpop.f32.mrf.mxu1 }
 0x44b   : > { %v1430_v40 = vpop.f32.mrf.mxu0  ;;  %2167 = vpow2.f32 %v2023_v22  ;;  %v1426_v30 = vadd.f32 %v1425_v59, %v1200_v26 }
 0x44c   : > { %v2156_v34 = vpop.eup %2155  ;;  %2169 = vrcp.f32 %v1563_v41  ;;  %v1202_v32 = vpop.f32.mrf.mxu1 }
 0x44d   : > { %v1432_v33 = vpop.f32.mrf.mxu0  ;;  %v2158_v38 = vpop.eup %2157  ;;  %v1564_v23 = vadd.f32 1.0, %v2156_v34  ;;  %v2024_v61 = vmul.f32 -1.442695, %v1426_v30 }
 0x44e   : > { %1881 = vst.msk [vmem:[%s3206_s26 + $0xa0] sm:$0xff] %vm1860_vm6, %v2158_v38  ;;  %1738 = vperm.xlu1 %2062, %v2158_v38   ;;  %v1205_v15 = vpop.f32.mrf.mxu1 }
 0x44f   : > { %v1435_v56 = vpop.f32.mrf.mxu0  ;;  %2171 = vrcp.f32 %v1564_v23  ;;  %v1431_v14 = vadd.f32 %v1430_v40, %v1205_v15 }
 0x450   : > { %v2160_v17 = vpop.eup %2159  ;;  %2173 = vpow2.f32 %v2024_v61  ;;  %v1207_v49 = vpop.f32.mrf.mxu1 }
 0x451   : > { %v1437_v9 = vpop.f32.mrf.mxu0  ;;  %v2162_v36 = vpop.eup %2161  ;;  %v1565_v12 = vadd.f32 1.0, %v2160_v17  ;;  %v2025_v54 = vmul.f32 -1.442695, %v1431_v14 }
 0x452   : > { %1882 = vst.msk [vmem:[%s3206_s26 + $0xa8] sm:$0xff] %vm1860_vm6, %v2162_v36  ;;  %1743 = vperm.xlu0 %2061, %v2162_v36   ;;  %v1210_v27 = vpop.f32.mrf.mxu1 }
 0x453   : > { %v1440_v57 = vpop.f32.mrf.mxu0  ;;  %2175 = vrcp.f32 %v1565_v12  ;;  %v1436_v20 = vadd.f32 %v1435_v56, %v1210_v27 }
 0x454   : > { %v2164_v62 = vpop.eup %2163  ;;  %2177 = vpow2.f32 %v2025_v54  ;;  %v1212_v60 = vpop.f32.mrf.mxu1 }
 0x455   : > { %v1442_v0 = vpop.f32.mrf.mxu0  ;;  %v2166_v59 = vpop.eup %2165  ;;  %v1566_v7 = vadd.f32 1.0, %v2164_v62  ;;  %v2026_v1 = vmul.f32 -1.442695, %v1436_v20 }
 0x456   : > { %1883 = vst.msk [vmem:[%s3206_s26 + $0xb0] sm:$0xff] %vm1860_vm6, %v2166_v59  ;;  %1748 = vperm.xlu1 %2062, %v2166_v59   ;;  %v1215_v52 = vpop.f32.mrf.mxu1 }
 0x457   : > { %2179 = vrcp.f32 %v1566_v7  ;;  %v1441_v11 = vadd.f32 %v1440_v57, %v1215_v52 }
 0x458   : > { %v2168_v50 = vpop.eup %2167  ;;  %2181 = vpow2.f32 %v2026_v1  ;;  %v1217_v22 = vpop.f32.mrf.mxu1 }
 0x459   : > { %v2170_v41 = vpop.eup %2169  ;;  %v1567_v26 = vadd.f32 1.0, %v2168_v50  ;;  %v2027_v40 = vmul.f32 -1.442695, %v1441_v11 }
 0x45a   : > { %1884 = vst.msk [vmem:[%s3206_s26 + $0xb8] sm:$0xff] %vm1860_vm6, %v2170_v41  ;;  %1753 = vperm.xlu0 %2061, %v2170_v41  }
 0x45b   : > { %2183 = vrcp.f32 %v1567_v26 }
 0x45c   : > { %v2172_v30 = vpop.eup %2171  ;;  %2185 = vpow2.f32 %v2027_v40 }
 0x45d   : > { %v2174_v34 = vpop.eup %2173  ;;  %1885 = vst.msk [vmem:[%s3206_s26 + $0xc0] sm:$0xff] %vm1860_vm6, %v2172_v30  ;;  %1758 = vperm.xlu1 %2062, %v2172_v30  }
 0x45e   : > { %v1568_v32 = vadd.f32 1.0, %v2174_v34 }
 0x460   : > { %v2176_v33 = vpop.eup %2175  ;;  %2187 = vrcp.f32 %v1568_v32 }
 0x461   : > { %v2178_v38 = vpop.eup %2177  ;;  %1886 = vst.msk [vmem:[%s3206_s26 + $0xc8] sm:$0xff] %vm1860_vm6, %v2176_v33  ;;  %1763 = vperm.xlu0 %2061, %v2176_v33  }
 0x462   : > { %v1569_v23 = vadd.f32 1.0, %v2178_v38 }
 0x464   : > { %v2180_v61 = vpop.eup %2179  ;;  %2189 = vrcp.f32 %v1569_v23 }
 0x465   : > { %v2182_v15 = vpop.eup %2181  ;;  %1887 = vst.msk [vmem:[%s3206_s26 + $0xd0] sm:$0xff] %vm1860_vm6, %v2180_v61  ;;  %1768 = vperm.xlu1 %2062, %v2180_v61  }
 0x466   : > { %v1570_v56 = vadd.f32 1.0, %v2182_v15 }
 0x468   : > { %v2184_v14 = vpop.eup %2183  ;;  %2191 = vrcp.f32 %v1570_v56 }
 0x469   : > { %v2186_v17 = vpop.eup %2185  ;;  %1888 = vst.msk [vmem:[%s3206_s26 + $0xd8] sm:$0xff] %vm1860_vm6, %v2184_v14  ;;  %1773 = vperm.xlu0 %2061, %v2184_v14  }
 0x46a   : > { %v1571_v49 = vadd.f32 1.0, %v2186_v17 }
 0x46c   : > { %2193 = vrcp.f32 %v1571_v49 }
 0x46d   : > { %v2188_v9 = vpop.eup %2187 }
 0x46e   : > { %1889 = vst.msk [vmem:[%s3206_s26 + $0xe0] sm:$0xff] %vm1860_vm6, %v2188_v9  ;;  %1778 = vperm.xlu1 %2062, %v2188_v9  }
 0x471   : > { %v2190_v36 = vpop.eup %2189 }
 0x472   : > { %1890 = vst.msk [vmem:[%s3206_s26 + $0xe8] sm:$0xff] %vm1860_vm6, %v2190_v36  ;;  %1783 = vperm.xlu0 %2061, %v2190_v36  }
 0x475   : > { %v2192_v12 = vpop.eup %2191 }
 0x476   : > { %1891 = vst.msk [vmem:[%s3206_s26 + $0xf0] sm:$0xff] %vm1860_vm6, %v2192_v12  ;;  %1788 = vperm.xlu1 %2062, %v2192_v12  }
 0x478   : > { %v1639_v54 = vpop.permute.xlu0 %1638 }
 0x479   : > { %v2194_v27 = vpop.eup %2193  ;;  %v1796_v57 = vmul.f32 %v1639_v54, %v2618_v35 }
 0x47a   : > { %1892 = vst.msk [vmem:[%s3206_s26 + $0xf8] sm:$0xff] %vm1860_vm6, %v2194_v27  ;;  %1793 = vperm.xlu0 %2061, %v2194_v27  }
 0x47b   : > { %1828 = vst.msk [vmem:[%s3274_s30] sm:$0xff] %vm297_vm1, %v1796_v57 }
 0x47c   : > { %v1644_v20 = vpop.permute.xlu1 %1643 }
 0x47d   : > { %v1797_v62 = vmul.f32 %v1644_v20, %v2610_v31 }
 0x47f   : > { %1829 = vst.msk [vmem:[%s3274_s30 + $0x8] sm:$0xff] %vm297_vm1, %v1797_v62 }
 0x480   : > { %v1649_v60 = vpop.permute.xlu1 %1648 }
 0x481   : > { %v1798_v0 = vmul.f32 %v1649_v60, %v2602_v28 }
 0x483   : > { %1830 = vst.msk [vmem:[%s3274_s30 + $0x10] sm:$0xff] %vm297_vm1, %v1798_v0 }
 0x484   : > { %v1654_v59 = vpop.permute.xlu1 %1653 }
 0x485   : > { %v1799_v35 = vmul.f32 %v1654_v59, %v2594_v24 }
 0x487   : > { %1831 = vst.msk [vmem:[%s3274_s30 + $0x18] sm:$0xff] %vm297_vm1, %v1799_v35 }
 0x489   : > { %v1659_v7 = vpop.permute.xlu1 %1658 }
 0x48a   : > { %v1800_v1 = vmul.f32 %v1659_v7, %v2586_v18 }
 0x48c   : > { %1832 = vst.msk [vmem:[%s3274_s30 + $0x20] sm:$0xff] %vm297_vm1, %v1800_v1 }
 0x48d   : > { %v1664_v31 = vpop.permute.xlu1 %1663 }
 0x48e   : > { %v1801_v52 = vmul.f32 %v1664_v31, %v2578_v8 }
 0x490   : > { %1833 = vst.msk [vmem:[%s3274_s30 + $0x28] sm:$0xff] %vm297_vm1, %v1801_v52 }
 0x491   : > { %v1669_v28 = vpop.permute.xlu1 %1668 }
 0x492   : > { %v1802_v11 = vmul.f32 %v1669_v28, %v2570_v2 }
 0x494   : > { %1834 = vst.msk [vmem:[%s3274_s30 + $0x30] sm:$0xff] %vm297_vm1, %v1802_v11 }
 0x495   : > { %v1674_v24 = vpop.permute.xlu1 %1673 }
 0x496   : > { %v1803_v50 = vmul.f32 %v1674_v24, %v2562_v63 }
 0x498   : > { %1835 = vst.msk [vmem:[%s3274_s30 + $0x38] sm:$0xff] %vm297_vm1, %v1803_v50 }
 0x499   : > { %v1679_v18 = vpop.permute.xlu1 %1678 }
 0x49a   : > { %v1804_v22 = vmul.f32 %v1679_v18, %v2554_v58 }
 0x49c   : > { %1836 = vst.msk [vmem:[%s3274_s30 + $0x40] sm:$0xff] %vm297_vm1, %v1804_v22  ;;  %v1684_v8 = vpop.permute.xlu0 %1683 }
 0x49d   : > { %v1805_v41 = vmul.f32 %v1684_v8, %v2546_v55 }
 0x49f   : > { %1837 = vst.msk [vmem:[%s3274_s30 + $0x48] sm:$0xff] %vm297_vm1, %v1805_v41 }
 0x4a0   : > { %v1689_v2 = vpop.permute.xlu1 %1688 }
 0x4a1   : > { %v1806_v26 = vmul.f32 %v1689_v2, %v2538_v51 }
 0x4a3   : > { %1838 = vst.msk [vmem:[%s3274_s30 + $0x50] sm:$0xff] %vm297_vm1, %v1806_v26 }
 0x4a4   : > { %v1694_v63 = vpop.permute.xlu0 %1693 }
 0x4a5   : > { %v1807_v40 = vmul.f32 %v1694_v63, %v2530_v48 }
 0x4a7   : > { %1839 = vst.msk [vmem:[%s3274_s30 + $0x58] sm:$0xff] %vm297_vm1, %v1807_v40 }
 0x4a9   : > { %v1699_v58 = vpop.permute.xlu1 %1698 }
 0x4aa   : > { %v1808_v30 = vmul.f32 %v1699_v58, %v2522_v47 }
 0x4ac   : > { %1840 = vst.msk [vmem:[%s3274_s30 + $0x60] sm:$0xff] %vm297_vm1, %v1808_v30 }
 0x4ad   : > { %v1704_v55 = vpop.permute.xlu0 %1703 }
 0x4ae   : > { %v1809_v34 = vmul.f32 %v1704_v55, %v2514_v45 }
 0x4b0   : > { %1841 = vst.msk [vmem:[%s3274_s30 + $0x68] sm:$0xff] %vm297_vm1, %v1809_v34 }
 0x4b1   : > { %v1709_v51 = vpop.permute.xlu1 %1708 }
 0x4b2   : > { %v1810_v32 = vmul.f32 %v1709_v51, %v2510_v44 }
 0x4b4   : > { %1842 = vst.msk [vmem:[%s3274_s30 + $0x70] sm:$0xff] %vm297_vm1, %v1810_v32 }
 0x4b5   : > { %v1714_v48 = vpop.permute.xlu0 %1713 }
 0x4b6   : > { %v1811_v33 = vmul.f32 %v1714_v48, %v2502_v37 }
 0x4b8   : > { %1843 = vst.msk [vmem:[%s3274_s30 + $0x78] sm:$0xff] %vm297_vm1, %v1811_v33  ;;  %v1719_v47 = vpop.permute.xlu1 %1718 }
 0x4b9   : > { %v1812_v38 = vmul.f32 %v1719_v47, %v2746_v3 }
 0x4bb   : > { %1844 = vst.msk [vmem:[%s3274_s30 + $0x80] sm:$0xff] %vm297_vm1, %v1812_v38 }
 0x4bc   : > { %v1724_v45 = vpop.permute.xlu0 %1723 }
 0x4bd   : > { %v1813_v23 = vmul.f32 %v1724_v45, %v2738_v4 }
 0x4bf   : > { %1845 = vst.msk [vmem:[%s3274_s30 + $0x88] sm:$0xff] %vm297_vm1, %v1813_v23 }
 0x4c0   : > { %v1729_v44 = vpop.permute.xlu1 %1728 }
 0x4c1   : > { %v1814_v61 = vmul.f32 %v1729_v44, %v2730_v5 }
 0x4c3   : > { %1846 = vst.msk [vmem:[%s3274_s30 + $0x90] sm:$0xff] %vm297_vm1, %v1814_v61 }
 0x4c4   : > { %v1734_v37 = vpop.permute.xlu0 %1733 }
 0x4c5   : > { %v1815_v15 = vmul.f32 %v1734_v37, %v2722_v6 }
 0x4c7   : > { %1847 = vst.msk [vmem:[%s3274_s30 + $0x98] sm:$0xff] %vm297_vm1, %v1815_v15 }
 0x4c9   : > { %v1739_v3 = vpop.permute.xlu1 %1738 }
 0x4ca   : > { %v1816_v56 = vmul.f32 %v1739_v3, %v2714_v10 }
 0x4cc   : > { %1848 = vst.msk [vmem:[%s3274_s30 + $0xa0] sm:$0xff] %vm297_vm1, %v1816_v56 }
 0x4cd   : > { %v1744_v4 = vpop.permute.xlu0 %1743 }
 0x4ce   : > { %v1817_v14 = vmul.f32 %v1744_v4, %v2706_v13 }
 0x4d0   : > { %1849 = vst.msk [vmem:[%s3274_s30 + $0xa8] sm:$0xff] %vm297_vm1, %v1817_v14 }
 0x4d1   : > { %v1749_v5 = vpop.permute.xlu1 %1748 }
 0x4d2   : > { %v1818_v17 = vmul.f32 %v1749_v5, %v2698_v16 }
 0x4d4   : > { %1850 = vst.msk [vmem:[%s3274_s30 + $0xb0] sm:$0xff] %vm297_vm1, %v1818_v17 }
 0x4d5   : > { %v1754_v6 = vpop.permute.xlu0 %1753 }
 0x4d6   : > { %v1819_v49 = vmul.f32 %v1754_v6, %v2690_v19 }
 0x4d8   : > { %1851 = vst.msk [vmem:[%s3274_s30 + $0xb8] sm:$0xff] %vm297_vm1, %v1819_v49  ;;  %v1759_v10 = vpop.permute.xlu1 %1758 }
 0x4d9   : > { %v1820_v9 = vmul.f32 %v1759_v10, %v2682_v21 }
 0x4db   : > { %1852 = vst.msk [vmem:[%s3274_s30 + $0xc0] sm:$0xff] %vm297_vm1, %v1820_v9 }
 0x4dc   : > { %v1764_v13 = vpop.permute.xlu0 %1763 }
 0x4dd   : > { %v1821_v36 = vmul.f32 %v1764_v13, %v2674_v25 }
 0x4df   : > { %1853 = vst.msk [vmem:[%s3274_s30 + $0xc8] sm:$0xff] %vm297_vm1, %v1821_v36 }
 0x4e0   : > { %v1769_v16 = vpop.permute.xlu1 %1768 }
 0x4e1   : > { %v1822_v12 = vmul.f32 %v1769_v16, %v2666_v29 }
 0x4e3   : > { %1854 = vst.msk [vmem:[%s3274_s30 + $0xd0] sm:$0xff] %vm297_vm1, %v1822_v12 }
 0x4e4   : > { %v1774_v19 = vpop.permute.xlu0 %1773 }
 0x4e5   : > { %v1823_v54 = vmul.f32 %v1774_v19, %v2658_v39 }
 0x4e7   : > { %1855 = vst.msk [vmem:[%s3274_s30 + $0xd8] sm:$0xff] %vm297_vm1, %v1823_v54 }
 0x4e9   : > { %v1779_v21 = vpop.permute.xlu1 %1778 }
 0x4ea   : > { %v1824_v27 = vmul.f32 %v1779_v21, %v2650_v43 }
 0x4ec   : > { %1856 = vst.msk [vmem:[%s3274_s30 + $0xe0] sm:$0xff] %vm297_vm1, %v1824_v27 }
 0x4ed   : > { %v1784_v25 = vpop.permute.xlu0 %1783 }
 0x4ee   : > { %v1825_v57 = vmul.f32 %v1784_v25, %v2642_v53 }
 0x4f0   : > { %1857 = vst.msk [vmem:[%s3274_s30 + $0xe8] sm:$0xff] %vm297_vm1, %v1825_v57 }
 0x4f1   : > { %v1789_v20 = vpop.permute.xlu1 %1788 }
 0x4f2   : > { %v1826_v29 = vmul.f32 %v1789_v20, %v2634_v46 }
 0x4f4   : > { %1858 = vst.msk [vmem:[%s3274_s30 + $0xf0] sm:$0xff] %vm297_vm1, %v1826_v29 }
 0x4f5   : > { %v1794_v62 = vpop.permute.xlu0 %1793 }
 0x4f6   : > { %v1827_v39 = vmul.f32 %v1794_v62, %v2626_v42 }
 0x4f8   : > { %1859 = vst.msk [vmem:[%s3274_s30 + $0xf8] sm:$0xff] %vm297_vm1, %v1827_v39 }
 0x4f9 PF: > { %s17_s21 = sadd.s32 1, %s2201_s21  }
 0x4fa   : > { %p14_p4 = scmp.ge.s32.totalorder %s17_s21, 4  }
 0x4fc   :  { %16 = sbr.rel (!%p14_p4) target bundleno = 1 (0x1), region = 82 }

// kernel: forward.18
= control target key start
LH: loop header
LB: loop body
LE: loop exit
PB: predicated region body
PF: predicated region fallthrough
CT: control target
= control target key end

     0   :  { %v427_v0 = vmov 0   ;;  %vm182_vm0 = vcmask 130048   ;;  %vm320_vm1 = vcmask 261120   ;;  %s616_s1 = inlined_call_operand.vmem [shape: bf16[144,32], index: 1, kind: input, shape index: {}]   ;;  %s617_s0 = inlined_call_operand.vmem [shape: bf16[128,144], index: 0, kind: input, shape index: {}]   ;;  %s618_s2 = inlined_call_operand.vmem [shape: f32[1,32], index: 2, kind: input, shape index: {}]   ;;  %s619_s3 = inlined_call_operand.vmem [shape: f32[128,32], index: 3, kind: output, shape index: {}]  }
   0x1   :  { %207 = vmatprep.subr.bf16.mxu0 %v427_v0  ;;  %375 = vmatprep.subr.bf16.mxu1 %v427_v0  ;;  %v394_v1 = vld [vmem:[%s616_s1 + $0x38] sm:$0xff]   ;;  %v395_v2 = vld [vmem:[%s616_s1 + $0x30] sm:$0xff]   ;;  %v396_v3 = vld [vmem:[%s616_s1 + $0x28] sm:$0xff]  }
   0x2   :  { %208 = vmatpush1.bf16.msra.mxu0 %v394_v1  ;;  %384 = vmatpush1.bf16.msra.mxu1 %v394_v1  ;;  %v397_v4 = vld [vmem:[%s616_s1 + $0x20] sm:$0xff]   ;;  %v398_v7 = vld [vmem:[%s616_s1 + $0x18] sm:$0xff]   ;;  %v399_v8 = vld [vmem:[%s616_s1 + $0x10] sm:$0xff]  }
   0x3   :  { %209 = vmatprep.subr.bf16.mxu0 %v427_v0  ;;  %376 = vmatprep.subr.bf16.mxu1 %v427_v0  ;;  %v405_v5 = vld [vmem:[%s617_s0 + $0x4] ss:$8 sps:$4 sm:$0xff]   ;;  %v403_v12 = vld [vmem:[%s617_s0] ss:$8 sps:$4 sm:$0xff]   ;;  %v409_v14 = vld [vmem:[%s617_s0 + $0x14] ss:$8 sps:$4 sm:$0xff]  }
   0x4   :  { %v408_v6 = vld [vmem:[%s617_s0 + $0x44] ss:$8 sps:$4 sm:$0xff]   ;;  %367 = vmatprep.mubr.msk.bf16.mxu0 %vm182_vm0, %v405_v5  ;;  %v406_v13 = vld [vmem:[%s617_s0 + $0x40] ss:$8 sps:$4 sm:$0xff]   ;;  %v411_v15 = vld [vmem:[%s617_s0 + $0x54] ss:$8 sps:$4 sm:$0xff]  }
   0x5   :  { %371 = vmatprep.mubr.msk.bf16.mxu1 %vm182_vm0, %v408_v6  ;;  %v400_v9 = vld [vmem:[%s616_s1 + $0x8] sm:$0xff]   ;;  %v401_v10 = vld [vmem:[%s616_s1] sm:$0xff]   ;;  %v413_v16 = vld [vmem:[%s617_s0 + $0x10] ss:$8 sps:$4 sm:$0xff]  }
   0x6   :  { %210 = vmatpush1.bf16.msra.mxu0 %v395_v2  ;;  %385 = vmatpush1.bf16.msra.mxu1 %v395_v2  ;;  %v402_v11 = vld [vmem:[%s616_s1 + $0x40] sm:$0xff]   ;;  %v414_v17 = vld [vmem:[%s617_s0 + $0x50] ss:$8 sps:$4 sm:$0xff]   ;;  %v421_v22 = vld [vmem:[%s617_s0 + $0x34] ss:$8 sps:$4 sm:$0xff]  }
   0x7   :  { %211 = vmatprep.subr.bf16.mxu0 %v427_v0  ;;  %377 = vmatprep.subr.bf16.mxu1 %v427_v0  ;;  %v415_v18 = vld [vmem:[%s617_s0 + $0x24] ss:$8 sps:$4 sm:$0xff]   ;;  %v419_v20 = vld [vmem:[%s617_s0 + $0x20] ss:$8 sps:$4 sm:$0xff]   ;;  %v423_v23 = vld [vmem:[%s617_s0 + $0x74] ss:$8 sps:$4 sm:$0xff]  }
   0x8   :  { %v417_v19 = vld [vmem:[%s617_s0 + $0x64] ss:$8 sps:$4 sm:$0xff]   ;;  %v420_v21 = vld [vmem:[%s617_s0 + $0x60] ss:$8 sps:$4 sm:$0xff]   ;;  %v425_v24 = vld [vmem:[%s617_s0 + $0x30] ss:$8 sps:$4 sm:$0xff]  }
   0x9   :  { %v426_v25 = vld [vmem:[%s617_s0 + $0x70] ss:$8 sps:$4 sm:$0xff]   ;;  %v534_v26 = vld [vmem:[%s618_s2] ss:$0 sm:$0xff] }
   0xa   :  { %212 = vmatpush1.bf16.msra.mxu0 %v396_v3  ;;  %386 = vmatpush1.bf16.msra.mxu1 %v396_v3 }
   0xb   :  { %213 = vmatprep.subr.bf16.mxu0 %v427_v0  ;;  %378 = vmatprep.subr.bf16.mxu1 %v427_v0 }
   0xe   :  { %214 = vmatpush1.bf16.msra.mxu0 %v397_v4  ;;  %387 = vmatpush1.bf16.msra.mxu1 %v397_v4 }
   0xf   :  { %215 = vmatprep.subr.bf16.mxu0 %v427_v0  ;;  %379 = vmatprep.subr.bf16.mxu1 %v427_v0 }
  0x12   :  { %216 = vmatpush1.bf16.msra.mxu0 %v398_v7  ;;  %388 = vmatpush1.bf16.msra.mxu1 %v398_v7 }
  0x13   :  { %217 = vmatprep.subr.bf16.mxu0 %v427_v0  ;;  %380 = vmatprep.subr.bf16.mxu1 %v427_v0 }
  0x16   :  { %218 = vmatpush1.bf16.msra.mxu0 %v399_v8  ;;  %389 = vmatpush1.bf16.msra.mxu1 %v399_v8 }
  0x17   :  { %219 = vmatprep.subr.bf16.mxu0 %v427_v0  ;;  %381 = vmatprep.subr.bf16.mxu1 %v427_v0 }
  0x1a   :  { %220 = vmatpush1.bf16.msra.mxu0 %v400_v9  ;;  %390 = vmatpush1.bf16.msra.mxu1 %v400_v9 }
  0x1b   :  { %221 = vmatprep.subr.bf16.mxu0 %v427_v0  ;;  %382 = vmatprep.subr.bf16.mxu1 %v427_v0 }
  0x1e   :  { %222 = vmatpush1.bf16.msra.mxu0 %v401_v10  ;;  %391 = vmatpush1.bf16.msra.mxu1 %v401_v10 }
  0x1f   :  { %237 = vmatprep.subr.bf16.mxu0 %v427_v0  ;;  %383 = vmatprep.subr.bf16.mxu1 %v427_v0 }
  0x22   :  { %238 = vmatpush2.bf16.msra.mxu0 %v402_v11  ;;  %392 = vmatpush2.bf16.msra.mxu1 %v402_v11 }
  0x25   :  { %240 = vmatmul.mubr.bf16.vlgmr.msra.gmra.mxu0 %v403_v12  ;;  %272 = vmatmul.mubr.bf16.vlgmr.msra.gmra.mxu1 %v406_v13 }
  0x26   :  { %368 = vmatprep.mubr.msk.bf16.mxu0 %vm182_vm0, %v409_v14  ;;  %372 = vmatprep.mubr.msk.bf16.mxu1 %vm182_vm0, %v411_v15 }
  0x2d   :  { %248 = vmatmul.mubr.bf16.gmra.mxu0 %v413_v16  ;;  %280 = vmatmul.mubr.bf16.gmra.mxu1 %v414_v17 }
  0x2e   :  { %369 = vmatprep.mubr.msk.bf16.mxu0 %vm182_vm0, %v415_v18  ;;  %373 = vmatprep.mubr.msk.bf16.mxu1 %vm182_vm0, %v417_v19 }
  0x35   :  { %256 = vmatmul.mubr.bf16.gmra.mxu0 %v419_v20  ;;  %288 = vmatmul.mubr.bf16.gmra.mxu1 %v420_v21 }
  0x36   :  { %370 = vmatprep.mubr.msk.bf16.mxu0 %vm182_vm0, %v421_v22  ;;  %374 = vmatprep.mubr.msk.bf16.mxu1 %vm182_vm0, %v423_v23 }
  0x3d   :  { %264 = vmatmul.mubr.bf16.gmra.mxu0 %v425_v24  ;;  %296 = vmatmul.mubr.bf16.gmra.mxu1 %v426_v25 }
  0xe5   :  { %v241_v27 = vpop.f32.mrf.mxu0  ;;  %v273_v28 = vpop.f32.mrf.mxu1 }
  0xe6   :  { %v242_v29 = vadd.f32 %v534_v26, %v241_v27  ;;  %v274_v30 = vadd.f32 %v534_v26, %v273_v28 }
  0xe7   :  { %v243_v31 = vpop.f32.mrf.mxu0  ;;  %v275_v32 = vpop.f32.mrf.mxu1 }
  0xe8   :  { %v304_v33 = vmax.f32 %v242_v29, 0.0  ;;  %v312_v34 = vmax.f32 %v274_v30, 0.0 }
  0xe9   :  { %v244_v35 = vpop.f32.mrf.mxu0  ;;  %v276_v36 = vpop.f32.mrf.mxu1 }
  0xea   :  { %321 = vst.msk [vmem:[%s619_s3] sm:$0xff] %vm320_vm1, %v304_v33  ;;  %329 = vst.msk [vmem:[%s619_s3 + $0x40] sm:$0xff] %vm320_vm1, %v312_v34  ;;  %v245_v37 = vadd.f32 %v534_v26, %v244_v35  ;;  %v277_v38 = vadd.f32 %v534_v26, %v276_v36 }
  0xeb   :  { %v246_v39 = vpop.f32.mrf.mxu0  ;;  %v278_v40 = vpop.f32.mrf.mxu1 }
  0xec   :  { %v305_v41 = vmax.f32 %v245_v37, 0.0  ;;  %v313_v42 = vmax.f32 %v277_v38, 0.0 }
  0xed   :  { %v249_v43 = vpop.f32.mrf.mxu0  ;;  %v281_v44 = vpop.f32.mrf.mxu1 }
  0xee   :  { %322 = vst.msk [vmem:[%s619_s3 + $0x8] sm:$0xff] %vm320_vm1, %v305_v41  ;;  %330 = vst.msk [vmem:[%s619_s3 + $0x48] sm:$0xff] %vm320_vm1, %v313_v42  ;;  %v250_v45 = vadd.f32 %v534_v26, %v249_v43  ;;  %v282_v46 = vadd.f32 %v534_v26, %v281_v44 }
  0xef   :  { %v251_v47 = vpop.f32.mrf.mxu0  ;;  %v283_v48 = vpop.f32.mrf.mxu1 }
  0xf0   :  { %v306_v49 = vmax.f32 %v250_v45, 0.0  ;;  %v314_v50 = vmax.f32 %v282_v46, 0.0 }
  0xf1   :  { %v252_v51 = vpop.f32.mrf.mxu0  ;;  %v284_v52 = vpop.f32.mrf.mxu1 }
  0xf2   :  { %323 = vst.msk [vmem:[%s619_s3 + $0x10] sm:$0xff] %vm320_vm1, %v306_v49  ;;  %331 = vst.msk [vmem:[%s619_s3 + $0x50] sm:$0xff] %vm320_vm1, %v314_v50  ;;  %v253_v53 = vadd.f32 %v534_v26, %v252_v51  ;;  %v285_v54 = vadd.f32 %v534_v26, %v284_v52 }
  0xf3   :  { %v254_v55 = vpop.f32.mrf.mxu0  ;;  %v286_v56 = vpop.f32.mrf.mxu1 }
  0xf4   :  { %v307_v57 = vmax.f32 %v253_v53, 0.0  ;;  %v315_v58 = vmax.f32 %v285_v54, 0.0 }
  0xf5   :  { %v257_v59 = vpop.f32.mrf.mxu0  ;;  %v289_v60 = vpop.f32.mrf.mxu1 }
  0xf6   :  { %324 = vst.msk [vmem:[%s619_s3 + $0x18] sm:$0xff] %vm320_vm1, %v307_v57  ;;  %332 = vst.msk [vmem:[%s619_s3 + $0x58] sm:$0xff] %vm320_vm1, %v315_v58  ;;  %v258_v61 = vadd.f32 %v534_v26, %v257_v59  ;;  %v290_v62 = vadd.f32 %v534_v26, %v289_v60 }
  0xf7   :  { %v259_v63 = vpop.f32.mrf.mxu0  ;;  %v291_v0 = vpop.f32.mrf.mxu1 }
  0xf8   :  { %v308_v1 = vmax.f32 %v258_v61, 0.0  ;;  %v316_v2 = vmax.f32 %v290_v62, 0.0 }
  0xf9   :  { %v260_v3 = vpop.f32.mrf.mxu0  ;;  %v292_v4 = vpop.f32.mrf.mxu1 }
  0xfa   :  { %325 = vst.msk [vmem:[%s619_s3 + $0x20] sm:$0xff] %vm320_vm1, %v308_v1  ;;  %333 = vst.msk [vmem:[%s619_s3 + $0x60] sm:$0xff] %vm320_vm1, %v316_v2  ;;  %v261_v5 = vadd.f32 %v534_v26, %v260_v3  ;;  %v293_v6 = vadd.f32 %v534_v26, %v292_v4 }
  0xfb   :  { %v262_v7 = vpop.f32.mrf.mxu0  ;;  %v294_v8 = vpop.f32.mrf.mxu1 }
  0xfc   :  { %v309_v9 = vmax.f32 %v261_v5, 0.0  ;;  %v317_v10 = vmax.f32 %v293_v6, 0.0 }
  0xfd   :  { %v265_v11 = vpop.f32.mrf.mxu0  ;;  %v297_v12 = vpop.f32.mrf.mxu1 }
  0xfe   :  { %326 = vst.msk [vmem:[%s619_s3 + $0x28] sm:$0xff] %vm320_vm1, %v309_v9  ;;  %334 = vst.msk [vmem:[%s619_s3 + $0x68] sm:$0xff] %vm320_vm1, %v317_v10  ;;  %v266_v13 = vadd.f32 %v534_v26, %v265_v11  ;;  %v298_v14 = vadd.f32 %v534_v26, %v297_v12 }
  0xff   :  { %v267_v15 = vpop.f32.mrf.mxu0  ;;  %v299_v16 = vpop.f32.mrf.mxu1 }
 0x100   :  { %v310_v17 = vmax.f32 %v266_v13, 0.0  ;;  %v318_v18 = vmax.f32 %v298_v14, 0.0 }
 0x101   :  { %v268_v19 = vpop.f32.mrf.mxu0  ;;  %v300_v20 = vpop.f32.mrf.mxu1 }
 0x102   :  { %327 = vst.msk [vmem:[%s619_s3 + $0x30] sm:$0xff] %vm320_vm1, %v310_v17  ;;  %335 = vst.msk [vmem:[%s619_s3 + $0x70] sm:$0xff] %vm320_vm1, %v318_v18  ;;  %v269_v21 = vadd.f32 %v534_v26, %v268_v19  ;;  %v301_v22 = vadd.f32 %v534_v26, %v300_v20 }
 0x103   :  { %v270_v23 = vpop.f32.mrf.mxu0  ;;  %v302_v24 = vpop.f32.mrf.mxu1 }
 0x104   :  { %v311_v25 = vmax.f32 %v269_v21, 0.0  ;;  %v319_v27 = vmax.f32 %v301_v22, 0.0 }
 0x106   :  { %328 = vst.msk [vmem:[%s619_s3 + $0x38] sm:$0xff] %vm320_vm1, %v311_v25  ;;  %336 = vst.msk [vmem:[%s619_s3 + $0x78] sm:$0xff] %vm320_vm1, %v319_v27 }

// kernel: forward.19
= control target key start
LH: loop header
LB: loop body
LE: loop exit
PB: predicated region body
PF: predicated region fallthrough
CT: control target
= control target key end

     0   :  { %s1277_s21 = smov 0   ;;  %s1510_s0 = inlined_call_operand.vmem [shape: f32[2,64,32], index: 0, kind: input, shape index: {}]   ;;  %s1511_s1 = inlined_call_operand.vmem [shape: f32[32,8], index: 1, kind: input, shape index: {}]   ;;  %s1512_s2 = inlined_call_operand.vmem [shape: f32[8,32], index: 2, kind: input, shape index: {}]   ;;  %s1513_s3 = inlined_call_operand.vmem [shape: f32[64,64], index: 3, kind: input, shape index: {}]   ;;  %s1514_s4 = inlined_call_operand.vmem [shape: f32[64,64], index: 4, kind: input, shape index: {}]   ;;  %s1515_s5 = inlined_call_operand.vmem [shape: f32[2,64,32], index: 5, kind: output, shape index: {0}]   ;;  %s1516_s6 = inlined_call_operand.vmem [shape: f32[2,64,1], index: 6, kind: output, shape index: {1}]  }
   0x1 LB: > { %s1028_s22 = sadd.s32 4294967295, %s1237_s21   ;;  %p1032_p0 = scmp.ge.s32.totalorder %s1237_s21, 1  ;;  %s1237_s21 = sphi %s1277_s21, %s17_s21  }
   0x2   : > { %p215_p1 = scmp.lt.s32.totalorder %s1237_s21, 3 }
   0x4   : > { %p216_p2 = pnand %p1032_p0, %p215_p1 }
   0x5   : > { %p250_p3 = scmp.lt.s32.totalorder (!%p216_p2), %s1028_s22, 1 }
   0x6   : > { %219 = sbr.rel (%p216_p2) target bundleno = 1029 (0x405), region = 40 }
   0xb   : > { %v323_v0 = vld [vmem:[%s1511_s1 + $0x18] sm:$0xff]  ;;  %v1239_v1 = vmov 0.0   ;;  %v322_v2 = vld [vmem:[%s1511_s1 + $0x10] sm:$0xff]  ;;  %vm1240_vm0 = vmmov 0   ;;  %s1518_s22 = smov (!%p250_p3, %s1028_s22), 1  ;;  %v321_v3 = vld [vmem:[%s1511_s1 + $0x8] sm:$0xff] }
   0xc   : > { %1110 = vmatprep.subr.mxu0 %v1239_v1  ;;  %1118 = vmatprep.mubr.msk.f32.mxu0 %vm1240_vm0, %v1239_v1  ;;  %s1294_s29 = sshll.u32 %s1518_s22, 6  ;;  %vm273_vm1 = vcmask 261120   ;;  %v320_v4 = vld [vmem:[%s1511_s1] sm:$0xff]  ;;  %vm318_vm2 = vcmask 1040384   ;;  %vm399_vm3 = vcmask 64512   ;;  %vm473_vm4 = vcmask 254976  }
   0xd   : > { %1111 = vmatpush3.msra.mxu0 %v323_v0  ;;  %1121 = vmatprep.subr.mxu1 %v1239_v1  ;;  %s254_s10 = scalar_lea.vmem %s1510_s0, %s1294_s29  ;;  %v398_v57 = vld [vmem:[%s1512_s2] sm:$0xff]  ;;  %vm568_vm5 = vcmask 523264   ;;  %s264_s26 = scalar_lea.vmem %s1516_s6, %s1294_s29  ;;  %vm931_vm6 = vcmask 7168  }
   0xe   : > { %1112 = vmatprep.subr.mxu0 %v1239_v1  ;;  %1123 = vmatprep.mubr.msk.f32.mxu1 %vm1240_vm0, %v1239_v1  ;;  %v1303_v5 = vld [vmem:[%s254_s10] sm:$0xff]  ;;  %v1305_v6 = vld [vmem:[%s254_s10 + $0x8] sm:$0xff]  ;;  %v1307_v7 = vld [vmem:[%s254_s10 + $0x10] sm:$0xff]  ;;  %s259_s30 = scalar_lea.vmem %s1515_s5, %s1294_s29 }
   0xf   : > { %1113 = vmatpush3.msra.mxu0 %v322_v2  ;;  %v1309_v8 = vld [vmem:[%s254_s10 + $0x18] sm:$0xff]  ;;  %v1311_v9 = vld [vmem:[%s254_s10 + $0x20] sm:$0xff]  ;;  %v274_v10 = vsel %vm273_vm1, %v1303_v5, 0.0  ;;  %v275_v11 = vsel %vm273_vm1, %v1305_v6, 0.0  ;;  %v277_v12 = vsel %vm273_vm1, %v1307_v7, 0.0  ;;  %v1319_v13 = vld [vmem:[%s254_s10 + $0x30] sm:$0xff]  ;;  %1122 = vmatpush3.msra.mxu1 %v398_v57 }
  0x10   : > { %1114 = vmatprep.subr.mxu0 %v1239_v1  ;;  %v1321_v14 = vld [vmem:[%s254_s10 + $0x38] sm:$0xff]  ;;  %v276_v15 = vadd.f32 %v275_v11, %v274_v10  ;;  %v279_v16 = vsel %vm273_vm1, %v1309_v8, 0.0  ;;  %v281_v17 = vsel %vm273_vm1, %v1311_v9, 0.0  ;;  %v297_v18 = vsel %vm273_vm1, %v1303_v5, -inf  ;;  %v1331_v20 = vld [vmem:[%s254_s10 + $0x28] sm:$0xff] }
  0x11   : > { %1115 = vmatpush3.msra.mxu0 %v321_v3  ;;  %v298_v19 = vsel %vm273_vm1, %v1305_v6, -inf  ;;  %v299_v22 = vsel %vm273_vm1, %v1307_v7, -inf  ;;  %v300_v23 = vsel %vm273_vm1, %v1309_v8, -inf  ;;  %v301_v24 = vsel %vm273_vm1, %v1311_v9, -inf }
  0x12   : > { %1116 = vmatprep.subr.mxu0 %v1239_v1  ;;  %v278_v21 = vadd.f32 %v277_v12, %v276_v15  ;;  %v302_v25 = vmax.f32 %v297_v18, %v301_v24  ;;  %v303_v26 = vsel %vm273_vm1, %v1331_v20, -inf  ;;  %v305_v27 = vsel %vm273_vm1, %v1319_v13, -inf }
  0x13   : > { %1117 = vmatpush3.msra.mxu0 %v320_v4  ;;  %v307_v28 = vsel %vm273_vm1, %v1321_v14, -inf  ;;  %v304_v30 = vmax.f32 %v298_v19, %v303_v26  ;;  %v306_v31 = vmax.f32 %v299_v22, %v305_v27  ;;  %v283_v33 = vsel %vm273_vm1, %v1331_v20, 0.0 }
  0x14   : > { %v280_v29 = vadd.f32 %v279_v16, %v278_v21  ;;  %v308_v32 = vmax.f32 %v300_v23, %v307_v28  ;;  %v285_v37 = vsel %vm273_vm1, %v1319_v13, 0.0  ;;  %v287_v40 = vsel %vm273_vm1, %v1321_v14, 0.0 }
  0x15   : > { %v309_v35 = vmax.f32 %v302_v25, %v304_v30 }
  0x16   : > { %v282_v34 = vadd.f32 %v281_v17, %v280_v29  ;;  %v310_v36 = vmax.f32 %v306_v31, %v308_v32 }
  0x18   : > { %v284_v38 = vadd.f32 %v283_v33, %v282_v34  ;;  %v311_v39 = vmax.f32 %v309_v35, %v310_v36  ;;  %v560_v35 = vld [vmem:[%s1514_s4] sm:$0xff] }
  0x1a   : > { %v286_v41 = vadd.f32 %v285_v37, %v284_v38  ;;  %v312_v42 = vrot.slane %v311_v39, 4 }
  0x1c   : > { %v288_v43 = vadd.f32 %v287_v40, %v286_v41  ;;  %v313_v44 = vmax.f32 %v311_v39, %v312_v42 }
  0x1e   : > { %v289_v45 = vrot.slane %v288_v43, 4  ;;  %v314_v46 = vrot.slane %v313_v44, 2 }
  0x20   : > { %v290_v47 = vadd.f32 %v289_v45, %v288_v43  ;;  %v315_v48 = vmax.f32 %v313_v44, %v314_v46 }
  0x22   : > { %v291_v49 = vrot.slane %v290_v47, 2  ;;  %v316_v51 = vrot.slane %v315_v48, 1 }
  0x24   : > { %v292_v50 = vadd.f32 %v291_v49, %v290_v47  ;;  %v317_v54 = vmax.f32 %v315_v48, %v316_v51 }
  0x26   : > { %v293_v52 = vrot.slane %v292_v50, 1 }
  0x28   : > { %v294_v53 = vadd.f32 %v293_v52, %v292_v50 }
  0x2a   : > { %v296_v55 = vmul.f32 0.015625, %v294_v53 }
  0x2c   : > { %v319_v56 = vsel %vm318_vm2, %v296_v55, %v317_v54 }
  0x2d   : > { %1119 = vmatmul.mubr.msk.f32.vlgmr.msra.gmra.mxu0 %vm273_vm1, %v319_v56 }
  0xed   : > { %v393_v58 = vpop.f32.mrf.mxu0 }
  0xee   : > { %v397_v59 = vmax.f32 %v393_v58, 0.0  ;;  %v553_v58 = vld [vmem:[%s1513_s3 + $0x8] sm:$0xff] }
  0xef   : > { %v1120_v60 = vpop.f32.mrf.mxu0 }
  0xf0   : > { %1124 = vmatmul.mubr.msk.f32.vlgmr.msra.gmra.mxu1 %vm399_vm3, %v397_v59  ;;  %v554_v59 = vld [vmem:[%s1513_s3 + $0x10] sm:$0xff] }
  0xf1   : > { %1142 = vmatprep.mubr.msk.f32.mxu1 %vm568_vm5, %v560_v35 }
 0x1b0   : > { %v469_v61 = vpop.f32.mrf.mxu1 }
 0x1b1   : > { %v474_v62 = vsel %vm473_vm4, %v469_v61, 0.0 }
 0x1b2   : > { %v475_v63 = vrot.slane %v474_v62, 4  ;;  %v1125_v0 = vpop.f32.mrf.mxu1 }
 0x1b3   : > { %v562_v0 = vld [vmem:[%s1514_s4 + $0x10] sm:$0xff] }
 0x1b4   : > { %v476_v1 = vadd.f32 %v475_v63, %v474_v62  ;;  %v561_v62 = vld [vmem:[%s1514_s4 + $0x8] sm:$0xff]  ;;  %v555_v63 = vld [vmem:[%s1513_s3 + $0x18] sm:$0xff] }
 0x1b6   : > { %v477_v2 = vrot.slane %v476_v1, 2 }
 0x1b8   : > { %v478_v3 = vadd.f32 %v477_v2, %v476_v1  ;;  %v556_v1 = vld [vmem:[%s1513_s3 + $0x20] sm:$0xff]  ;;  %v563_v2 = vld [vmem:[%s1514_s4 + $0x18] sm:$0xff] }
 0x1ba   : > { %v479_v4 = vrot.slane %v478_v3, 1 }
 0x1bc   : > { %v480_v10 = vadd.f32 %v479_v4, %v478_v3  ;;  %v557_v3 = vld [vmem:[%s1513_s3 + $0x28] sm:$0xff]  ;;  %v564_v4 = vld [vmem:[%s1514_s4 + $0x20] sm:$0xff] }
 0x1be   : > { %v1041_v11 = vmul.f32 -1.442695, %v480_v10  ;;  %v558_v10 = vld [vmem:[%s1513_s3 + $0x30] sm:$0xff] }
 0x1c0   : > { %1195 = vpow2.f32 %v1041_v11  ;;  %v565_v11 = vld [vmem:[%s1514_s4 + $0x28] sm:$0xff] }
 0x1cd   : > { %v1196_v12 = vpop.eup %1195 }
 0x1ce   : > { %v484_v15 = vadd.f32 1.0, %v1196_v12  ;;  %v559_v12 = vld [vmem:[%s1513_s3 + $0x38] sm:$0xff] }
 0x1d0   : > { %1197 = vrcp.f32 %v484_v15  ;;  %v566_v15 = vld [vmem:[%s1514_s4 + $0x30] sm:$0xff] }
 0x1dd   : > { %v1198_v16 = vpop.eup %1197 }
 0x1de   : > { %v1356_v17 = vmul.f32 %v1198_v16, %v1321_v14  ;;  %v1363_v21 = vmul.f32 %v1198_v16, %v1319_v13  ;;  %v1366_v22 = vmul.f32 %v1198_v16, %v1331_v20  ;;  %v1373_v24 = vmul.f32 %v1198_v16, %v1311_v9 }
 0x1df   : > { %v1380_v25 = vmul.f32 %v1198_v16, %v1309_v8  ;;  %v1387_v27 = vmul.f32 %v1198_v16, %v1307_v7  ;;  %v1394_v29 = vmul.f32 %v1198_v16, %v1305_v6  ;;  %v1401_v31 = vmul.f32 %v1198_v16, %v1303_v5  ;;  %v552_v5 = vld [vmem:[%s1513_s3] sm:$0xff]  ;;  %v567_v16 = vld [vmem:[%s1514_s4 + $0x38] sm:$0xff] }
 0x1e0   : > { %v549_v18 = vsel %vm273_vm1, %v1356_v17, -inf  ;;  %v516_v19 = vsel %vm273_vm1, %v1356_v17, 0.0  ;;  %v513_v23 = vsel %vm273_vm1, %v1363_v21, 0.0  ;;  %v510_v14 = vsel %vm273_vm1, %v1366_v22, 0.0  ;;  %1170 = vmatprep.mubr.msk.f32.mxu0 %vm568_vm5, %v552_v5 }
 0x1e1   : > { %550 = vmax.xlane.f32.xlu1 %v549_v18  ;;  %517 = vadd.xlane.f32.xlu0 %v516_v19  ;;  %v546_v13 = vsel %vm273_vm1, %v1363_v21, -inf  ;;  %v507_v20 = vsel %vm273_vm1, %v1373_v24, 0.0  ;;  %v543_v26 = vsel %vm273_vm1, %v1366_v22, -inf  ;;  %v504_v9 = vsel %vm273_vm1, %v1380_v25, 0.0 }
 0x1e2   : > { %v540_v28 = vsel %vm273_vm1, %v1373_v24, -inf  ;;  %v501_v8 = vsel %vm273_vm1, %v1387_v27, 0.0  ;;  %v537_v30 = vsel %vm273_vm1, %v1380_v25, -inf  ;;  %v498_v7 = vsel %vm273_vm1, %v1394_v29, 0.0 }
 0x1e3   : > { %v534_v32 = vsel %vm273_vm1, %v1387_v27, -inf  ;;  %v495_v6 = vsel %vm273_vm1, %v1401_v31, 0.0  ;;  %v531_v33 = vsel %vm273_vm1, %v1394_v29, -inf  ;;  %v528_v34 = vsel %vm273_vm1, %v1401_v31, -inf }
 0x1e4   : > { %v1241_v18 = vmov 0  }
 0x1e5   : > { %514 = vadd.xlane.f32.xlu0 %v513_v23  ;;  %511 = vadd.xlane.f32.xlu1 %v510_v14 }
 0x1e6   : > { %1194 = vset.pattern.permute.xlu1 %v1241_v18  ;;  %1193 = vset.pattern.permute.xlu0 %v1241_v18 }
 0x1e9   : > { %547 = vmax.xlane.f32.xlu0 %v546_v13  ;;  %508 = vadd.xlane.f32.xlu1 %v507_v20 }
 0x1ed   : > { %544 = vmax.xlane.f32.xlu0 %v543_v26  ;;  %505 = vadd.xlane.f32.xlu1 %v504_v9 }
 0x1f1   : > { %541 = vmax.xlane.f32.xlu0 %v540_v28  ;;  %502 = vadd.xlane.f32.xlu1 %v501_v8 }
 0x1f5   : > { %538 = vmax.xlane.f32.xlu0 %v537_v30  ;;  %499 = vadd.xlane.f32.xlu1 %v498_v7 }
 0x1f9   : > { %535 = vmax.xlane.f32.xlu0 %v534_v32  ;;  %496 = vadd.xlane.f32.xlu1 %v495_v6 }
 0x1fd   : > { %532 = vmax.xlane.f32.xlu0 %v531_v33  ;;  %529 = vmax.xlane.f32.xlu1 %v528_v34 }
 0x26a   : > { %v551_v36 = vpop.xlane.xlu1 %550  ;;  %v518_v37 = vpop.xlane.xlu0 %517 }
 0x26b   : > { %v527_v38 = vmul.f32 0.03125, %v518_v37  ;;  %1126 = vmatprep.subr.mxu1 %v551_v36 }
 0x26c   : > { %1127 = vmatpush3.msra.mxu1 %v551_v36 }
 0x26d   : > { %1154 = vmatprep.subr.mxu0 %v527_v38 }
 0x26e   : > { %1155 = vmatpush3.msra.mxu0 %v527_v38  ;;  %v515_v39 = vpop.xlane.xlu0 %514  ;;  %v512_v40 = vpop.xlane.xlu1 %511 }
 0x26f   : > { %v526_v41 = vmul.f32 0.03125, %v515_v39  ;;  %v525_v42 = vmul.f32 0.03125, %v512_v40 }
 0x271   : > { %1156 = vmatprep.subr.mxu0 %v526_v41 }
 0x272   : > { %1157 = vmatpush3.msra.mxu0 %v526_v41  ;;  %v548_v43 = vpop.xlane.xlu0 %547  ;;  %v509_v44 = vpop.xlane.xlu1 %508 }
 0x273   : > { %v524_v45 = vmul.f32 0.03125, %v509_v44  ;;  %1128 = vmatprep.subr.mxu1 %v548_v43  ;;  %1158 = vmatprep.subr.mxu0 %v525_v42 }
 0x274   : > { %1129 = vmatpush3.msra.mxu1 %v548_v43  ;;  %1159 = vmatpush3.msra.mxu0 %v525_v42 }
 0x275   : > { %1160 = vmatprep.subr.mxu0 %v524_v45 }
 0x276   : > { %v545_v46 = vpop.xlane.xlu0 %544  ;;  %1161 = vmatpush3.msra.mxu0 %v524_v45  ;;  %v506_v47 = vpop.xlane.xlu1 %505 }
 0x277   : > { %v523_v48 = vmul.f32 0.03125, %v506_v47  ;;  %1130 = vmatprep.subr.mxu1 %v545_v46 }
 0x278   : > { %1131 = vmatpush3.msra.mxu1 %v545_v46 }
 0x279   : > { %1162 = vmatprep.subr.mxu0 %v523_v48 }
 0x27a   : > { %v542_v49 = vpop.xlane.xlu0 %541  ;;  %1163 = vmatpush3.msra.mxu0 %v523_v48  ;;  %v503_v50 = vpop.xlane.xlu1 %502 }
 0x27b   : > { %v522_v51 = vmul.f32 0.03125, %v503_v50  ;;  %1132 = vmatprep.subr.mxu1 %v542_v49 }
 0x27c   : > { %1133 = vmatpush3.msra.mxu1 %v542_v49 }
 0x27d   : > { %1164 = vmatprep.subr.mxu0 %v522_v51 }
 0x27e   : > { %v539_v52 = vpop.xlane.xlu0 %538  ;;  %1165 = vmatpush3.msra.mxu0 %v522_v51  ;;  %v500_v53 = vpop.xlane.xlu1 %499 }
 0x27f   : > { %v521_v54 = vmul.f32 0.03125, %v500_v53  ;;  %1134 = vmatprep.subr.mxu1 %v539_v52 }
 0x280   : > { %1135 = vmatpush3.msra.mxu1 %v539_v52 }
 0x281   : > { %1166 = vmatprep.subr.mxu0 %v521_v54 }
 0x282   : > { %v536_v55 = vpop.xlane.xlu0 %535  ;;  %1167 = vmatpush3.msra.mxu0 %v521_v54  ;;  %v497_v56 = vpop.xlane.xlu1 %496 }
 0x283   : > { %v520_v57 = vmul.f32 0.03125, %v497_v56  ;;  %1136 = vmatprep.subr.mxu1 %v536_v55 }
 0x284   : > { %1137 = vmatpush3.msra.mxu1 %v536_v55 }
 0x285   : > { %1168 = vmatprep.subr.mxu0 %v520_v57 }
 0x286   : > { %v533_v60 = vpop.xlane.xlu0 %532  ;;  %1169 = vmatpush3.msra.mxu0 %v520_v57  ;;  %v530_v61 = vpop.xlane.xlu1 %529 }
 0x287   : > { %1138 = vmatprep.subr.mxu1 %v533_v60  ;;  %1171 = vmatmul.mubr.msk.f32.vlgmr.msra.gmra.mxu0 %vm568_vm5, %v553_v58 }
 0x288   : > { %1139 = vmatpush3.msra.mxu1 %v533_v60  ;;  %1173 = vmatprep.mubr.msk.f32.mxu0 %vm568_vm5, %v554_v59 }
 0x289   : > { %1140 = vmatprep.subr.mxu1 %v530_v61 }
 0x28a   : > { %1141 = vmatpush3.msra.mxu1 %v530_v61 }
 0x28b   : > { %1143 = vmatmul.mubr.msk.f32.vlgmr.msra.gmra.mxu1 %vm568_vm5, %v561_v62  ;;  %1174 = vmatmul.mubr.msk.f32.gmra.mxu0 %vm568_vm5, %v555_v63 }
 0x28c   : > { %1145 = vmatprep.mubr.msk.f32.mxu1 %vm568_vm5, %v562_v0  ;;  %1176 = vmatprep.mubr.msk.f32.mxu0 %vm568_vm5, %v556_v1 }
 0x28f   : > { %1146 = vmatmul.mubr.msk.f32.gmra.mxu1 %vm568_vm5, %v563_v2  ;;  %1177 = vmatmul.mubr.msk.f32.gmra.mxu0 %vm568_vm5, %v557_v3 }
 0x290   : > { %1148 = vmatprep.mubr.msk.f32.mxu1 %vm568_vm5, %v564_v4  ;;  %1179 = vmatprep.mubr.msk.f32.mxu0 %vm568_vm5, %v558_v10 }
 0x293   : > { %1149 = vmatmul.mubr.msk.f32.gmra.mxu1 %vm568_vm5, %v565_v11  ;;  %1180 = vmatmul.mubr.msk.f32.gmra.mxu0 %vm568_vm5, %v559_v12 }
 0x294   : > { %1151 = vmatprep.mubr.msk.f32.mxu1 %vm568_vm5, %v566_v15 }
 0x297   : > { %1152 = vmatmul.mubr.msk.f32.gmra.mxu1 %vm568_vm5, %v567_v16 }
 0x347   : > { %v1172_v19 = vpop.f32.mrf.mxu0 }
 0x349   : > { %v788_v23 = vpop.f32.mrf.mxu0 }
 0x34b   : > { %v1144_v14 = vpop.f32.mrf.mxu1  ;;  %v1175_v13 = vpop.f32.mrf.mxu0 }
 0x34c   : > { %v794_v20 = vadd.f32 %v1172_v19, %v1144_v14 }
 0x34d   : > { %v659_v26 = vpop.f32.mrf.mxu1  ;;  %v798_v9 = vpop.f32.mrf.mxu0 }
 0x34e   : > { %v1059_v28 = vmul.f32 -1.442695, %v794_v20  ;;  %v789_v8 = vadd.f32 %v788_v23, %v659_v26 }
 0x34f   : > { %v1147_v30 = vpop.f32.mrf.mxu1  ;;  %v1178_v7 = vpop.f32.mrf.mxu0 }
 0x350   : > { %1199 = vpow2.f32 %v1059_v28  ;;  %v1058_v32 = vmul.f32 -1.442695, %v789_v8  ;;  %v804_v6 = vadd.f32 %v1175_v13, %v1147_v30 }
 0x351   : > { %v669_v33 = vpop.f32.mrf.mxu1  ;;  %v808_v34 = vpop.f32.mrf.mxu0 }
 0x352   : > { %1201 = vpow2.f32 %v1058_v32  ;;  %v1061_v5 = vmul.f32 -1.442695, %v804_v6  ;;  %v799_v35 = vadd.f32 %v798_v9, %v669_v33 }
 0x353   : > { %v1150_v36 = vpop.f32.mrf.mxu1  ;;  %v1181_v37 = vpop.f32.mrf.mxu0 }
 0x354   : > { %1203 = vpow2.f32 %v1061_v5  ;;  %v1060_v38 = vmul.f32 -1.442695, %v799_v35  ;;  %v814_v39 = vadd.f32 %v1178_v7, %v1150_v36 }
 0x355   : > { %v679_v40 = vpop.f32.mrf.mxu1  ;;  %v818_v44 = vpop.f32.mrf.mxu0 }
 0x356   : > { %1205 = vpow2.f32 %v1060_v38  ;;  %v1063_v41 = vmul.f32 -1.442695, %v814_v39  ;;  %v809_v42 = vadd.f32 %v808_v34, %v679_v40 }
 0x357   : > { %v1153_v43 = vpop.f32.mrf.mxu1 }
 0x358   : > { %1207 = vpow2.f32 %v1063_v41  ;;  %v1062_v45 = vmul.f32 -1.442695, %v809_v42  ;;  %v824_v46 = vadd.f32 %v1181_v37, %v1153_v43 }
 0x359   : > { %v689_v47 = vpop.f32.mrf.mxu1 }
 0x35a   : > { %1209 = vpow2.f32 %v1062_v45  ;;  %v1065_v48 = vmul.f32 -1.442695, %v824_v46  ;;  %v819_v49 = vadd.f32 %v818_v44, %v689_v47 }
 0x35c   : > { %1211 = vpow2.f32 %v1065_v48  ;;  %v1064_v50 = vmul.f32 -1.442695, %v819_v49 }
 0x35d   : > { %v1200_v51 = vpop.eup %1199 }
 0x35e   : > { %v852_v52 = vadd.f32 1.0, %v1200_v51  ;;  %1213 = vpow2.f32 %v1064_v50 }
 0x35f   : > { %v1202_v53 = vpop.eup %1201 }
 0x360   : > { %1215 = vrcp.f32 %v852_v52  ;;  %v851_v54 = vadd.f32 1.0, %v1202_v53 }
 0x361   : > { %v1204_v55 = vpop.eup %1203 }
 0x362   : > { %1217 = vrcp.f32 %v851_v54  ;;  %v854_v56 = vadd.f32 1.0, %v1204_v55 }
 0x363   : > { %v1206_v57 = vpop.eup %1205 }
 0x364   : > { %1219 = vrcp.f32 %v854_v56  ;;  %v853_v58 = vadd.f32 1.0, %v1206_v57 }
 0x365   : > { %v1208_v59 = vpop.eup %1207 }
 0x366   : > { %1221 = vrcp.f32 %v853_v58  ;;  %v856_v60 = vadd.f32 1.0, %v1208_v59 }
 0x367   : > { %v1210_v61 = vpop.eup %1209 }
 0x368   : > { %1223 = vrcp.f32 %v856_v60  ;;  %v855_v62 = vadd.f32 1.0, %v1210_v61 }
 0x369   : > { %v1212_v63 = vpop.eup %1211 }
 0x36a   : > { %1225 = vrcp.f32 %v855_v62  ;;  %v858_v0 = vadd.f32 1.0, %v1212_v63 }
 0x36b   : > { %v1214_v1 = vpop.eup %1213 }
 0x36c   : > { %1227 = vrcp.f32 %v858_v0  ;;  %v857_v2 = vadd.f32 1.0, %v1214_v1 }
 0x36d   : > { %v1216_v3 = vpop.eup %1215 }
 0x36e   : > { %933 = vst.msk [vmem:[%s264_s26 + $0x8] sm:$0xff] %vm931_vm6, %v1216_v3  ;;  %1229 = vrcp.f32 %v857_v2  ;;  %882 = vperm.xlu1 %1194, %v1216_v3  }
 0x36f   : > { %v1218_v4 = vpop.eup %1217 }
 0x370   : > { %932 = vst.msk [vmem:[%s264_s26] sm:$0xff] %vm931_vm6, %v1218_v4  ;;  %877 = vperm.xlu0 %1193, %v1218_v4  }
 0x371   : > { %v1220_v10 = vpop.eup %1219 }
 0x372   : > { %935 = vst.msk [vmem:[%s264_s26 + $0x18] sm:$0xff] %vm931_vm6, %v1220_v10  ;;  %892 = vperm.xlu1 %1194, %v1220_v10  }
 0x373   : > { %v1222_v11 = vpop.eup %1221 }
 0x374   : > { %934 = vst.msk [vmem:[%s264_s26 + $0x10] sm:$0xff] %vm931_vm6, %v1222_v11 }
 0x375   : > { %v1224_v12 = vpop.eup %1223 }
 0x376   : > { %937 = vst.msk [vmem:[%s264_s26 + $0x28] sm:$0xff] %vm931_vm6, %v1224_v12  ;;  %887 = vperm.xlu1 %1194, %v1222_v11  }
 0x377   : > { %v1226_v15 = vpop.eup %1225 }
 0x378   : > { %936 = vst.msk [vmem:[%s264_s26 + $0x20] sm:$0xff] %vm931_vm6, %v1226_v15 }
 0x379   : > { %v1228_v16 = vpop.eup %1227 }
 0x37a   : > { %939 = vst.msk [vmem:[%s264_s26 + $0x38] sm:$0xff] %vm931_vm6, %v1228_v16  ;;  %902 = vperm.xlu1 %1194, %v1224_v12  }
 0x37b   : > { %v1230_v18 = vpop.eup %1229 }
 0x37c   : > { %938 = vst.msk [vmem:[%s264_s26 + $0x30] sm:$0xff] %vm931_vm6, %v1230_v18 }
 0x37e   : > { %897 = vperm.xlu1 %1194, %v1226_v15  }
 0x382   : > { %907 = vperm.xlu1 %1194, %v1230_v18  }
 0x386   : > { %912 = vperm.xlu1 %1194, %v1228_v16  }
 0x3e9   : > { %v883_v19 = vpop.permute.xlu1 %882 }
 0x3ea   : > { %v916_v23 = vmul.f32 %v883_v19, %v1394_v29 }
 0x3eb   : > { %v878_v14 = vpop.permute.xlu0 %877 }
 0x3ec   : > { %924 = vst.msk [vmem:[%s259_s30 + $0x8] sm:$0xff] %vm273_vm1, %v916_v23  ;;  %v915_v13 = vmul.f32 %v878_v14, %v1401_v31 }
 0x3ed   : > { %v893_v20 = vpop.permute.xlu1 %892 }
 0x3ee   : > { %923 = vst.msk [vmem:[%s259_s30] sm:$0xff] %vm273_vm1, %v915_v13  ;;  %v918_v26 = vmul.f32 %v893_v20, %v1380_v25 }
 0x3f0   : > { %926 = vst.msk [vmem:[%s259_s30 + $0x18] sm:$0xff] %vm273_vm1, %v918_v26 }
 0x3f1   : > { %v888_v9 = vpop.permute.xlu1 %887 }
 0x3f2   : > { %v917_v28 = vmul.f32 %v888_v9, %v1387_v27 }
 0x3f4   : > { %925 = vst.msk [vmem:[%s259_s30 + $0x10] sm:$0xff] %vm273_vm1, %v917_v28 }
 0x3f5   : > { %v903_v8 = vpop.permute.xlu1 %902 }
 0x3f6   : > { %v920_v29 = vmul.f32 %v903_v8, %v1366_v22 }
 0x3f8   : > { %928 = vst.msk [vmem:[%s259_s30 + $0x28] sm:$0xff] %vm273_vm1, %v920_v29 }
 0x3f9   : > { %v898_v30 = vpop.permute.xlu1 %897 }
 0x3fa   : > { %v919_v31 = vmul.f32 %v898_v30, %v1373_v24 }
 0x3fc   : > { %927 = vst.msk [vmem:[%s259_s30 + $0x20] sm:$0xff] %vm273_vm1, %v919_v31 }
 0x3fd   : > { %v908_v7 = vpop.permute.xlu1 %907 }
 0x3fe   : > { %v921_v25 = vmul.f32 %v908_v7, %v1363_v21 }
 0x400   : > { %929 = vst.msk [vmem:[%s259_s30 + $0x30] sm:$0xff] %vm273_vm1, %v921_v25 }
 0x401   : > { %v913_v32 = vpop.permute.xlu1 %912 }
 0x402   : > { %v922_v27 = vmul.f32 %v913_v32, %v1356_v17 }
 0x404   : > { %930 = vst.msk [vmem:[%s259_s30 + $0x38] sm:$0xff] %vm273_vm1, %v922_v27 }
 0x405 PF: > { %s17_s21 = sadd.s32 1, %s1237_s21  }
 0x406   : > { %p14_p4 = scmp.ge.s32.totalorder %s17_s21, 4  }
 0x408   :  { %16 = sbr.rel (!%p14_p4) target bundleno = 1 (0x1), region = 82 }

// kernel: forward.20
= control target key start
LH: loop header
LB: loop body
LE: loop exit
PB: predicated region body
PF: predicated region fallthrough
CT: control target
= control target key end

     0   :  { %vm318_vm0 = vcmask 261120   ;;  %vm553_vm1 = vcmask 523264   ;;  %s1048_s1 = inlined_call_operand.vmem [shape: bf16[288,64], index: 1, kind: input, shape index: {}]   ;;  %s1049_s0 = inlined_call_operand.vmem [shape: bf16[128,288], index: 0, kind: input, shape index: {}]   ;;  %s1050_s2 = inlined_call_operand.vmem [shape: f32[1,64], index: 2, kind: input, shape index: {}]   ;;  %s1051_s3 = inlined_call_operand.vmem [shape: f32[128,64], index: 3, kind: output, shape index: {}]  }
   0x1   :  { %v735_v0 = vld [vmem:[%s1048_s1 + $0x78] sm:$0xff]   ;;  %v737_v2 = vld [vmem:[%s1048_s1 + $0x70] sm:$0xff]   ;;  %v739_v4 = vld [vmem:[%s1048_s1 + $0x68] sm:$0xff]  }
   0x2   :  { %v736_v1 = vld [vmem:[%s1048_s1 + $0x38] sm:$0xff]   ;;  %625 = vmatprep.subr.bf16.mxu0 %v735_v0  ;;  %719 = vmatprep.subr.bf16.mxu1 %v735_v0  ;;  %v738_v3 = vld [vmem:[%s1048_s1 + $0x30] sm:$0xff]   ;;  %v740_v5 = vld [vmem:[%s1048_s1 + $0x28] sm:$0xff]  }
   0x3   :  { %626 = vmatpush3.bf16.msra.mxu0 %v736_v1  ;;  %727 = vmatpush3.bf16.msra.mxu1 %v736_v1  ;;  %v741_v6 = vld [vmem:[%s1048_s1 + $0x60] sm:$0xff]   ;;  %v743_v8 = vld [vmem:[%s1048_s1 + $0x58] sm:$0xff]   ;;  %v745_v10 = vld [vmem:[%s1048_s1 + $0x50] sm:$0xff]  }
   0x4   :  { %627 = vmatprep.subr.bf16.mxu0 %v737_v2  ;;  %720 = vmatprep.subr.bf16.mxu1 %v737_v2  ;;  %v742_v7 = vld [vmem:[%s1048_s1 + $0x20] sm:$0xff]   ;;  %v744_v9 = vld [vmem:[%s1048_s1 + $0x18] sm:$0xff]   ;;  %v746_v13 = vld [vmem:[%s1048_s1 + $0x10] sm:$0xff]  }
   0x5   :  { %v753_v11 = vld [vmem:[%s1049_s0 + $0x4] ss:$12 sps:$4 sm:$0xff]   ;;  %v756_v12 = vld [vmem:[%s1049_s0 + $0x94] ss:$12 sps:$4 sm:$0xff]   ;;  %v747_v14 = vld [vmem:[%s1048_s1 + $0x48] sm:$0xff]  }
   0x6   :  { %375 = vmatprep.mubr.bf16.mxu0 %v753_v11  ;;  %423 = vmatprep.mubr.bf16.mxu1 %v756_v12  ;;  %v748_v15 = vld [vmem:[%s1048_s1 + $0x8] sm:$0xff]   ;;  %v749_v16 = vld [vmem:[%s1048_s1 + $0x40] sm:$0xff]   ;;  %v754_v20 = vld [vmem:[%s1049_s0 + $0x90] ss:$12 sps:$4 sm:$0xff]  }
   0x7   :  { %628 = vmatpush3.bf16.msra.mxu0 %v738_v3  ;;  %728 = vmatpush3.bf16.msra.mxu1 %v738_v3  ;;  %v750_v17 = vld [vmem:[%s1048_s1] sm:$0xff]   ;;  %v757_v19 = vld [vmem:[%s1048_s1 + $0x88] sm:$0xff]   ;;  %v768_v28 = vld [vmem:[%s1049_s0 + $0x30] ss:$12 sps:$4 sm:$0xff]  }
   0x8   :  { %629 = vmatprep.subr.bf16.mxu0 %v739_v4  ;;  %721 = vmatprep.subr.bf16.mxu1 %v739_v4  ;;  %v751_v18 = vld [vmem:[%s1049_s0] ss:$12 sps:$4 sm:$0xff]   ;;  %v758_v21 = vld [vmem:[%s1049_s0 + $0x1c] ss:$12 sps:$4 sm:$0xff]   ;;  %v762_v24 = vld [vmem:[%s1049_s0 + $0x18] ss:$12 sps:$4 sm:$0xff]  }
   0x9   :  { %v760_v22 = vld [vmem:[%s1049_s0 + $0xac] ss:$12 sps:$4 sm:$0xff]   ;;  %v764_v23 = vld [vmem:[%s1048_s1 + $0x80] sm:$0xff]   ;;  %v763_v25 = vld [vmem:[%s1049_s0 + $0xa8] ss:$12 sps:$4 sm:$0xff]  }
   0xa   :  { %v765_v26 = vld [vmem:[%s1049_s0 + $0x34] ss:$12 sps:$4 sm:$0xff]   ;;  %v770_v30 = vld [vmem:[%s1049_s0 + $0x4c] ss:$12 sps:$4 sm:$0xff]   ;;  %v774_v33 = vld [vmem:[%s1049_s0 + $0x50] ss:$12 sps:$4 sm:$0xff]  }
   0xb   :  { %630 = vmatpush3.bf16.msra.mxu0 %v740_v5  ;;  %729 = vmatpush3.bf16.msra.mxu1 %v740_v5  ;;  %v767_v27 = vld [vmem:[%s1049_s0 + $0x8] ss:$12 sps:$4 sm:$0xff]   ;;  %v769_v29 = vld [vmem:[%s1049_s0 + $0x20] ss:$12 sps:$4 sm:$0xff]   ;;  %v772_v31 = vld [vmem:[%s1049_s0 + $0x38] ss:$12 sps:$4 sm:$0xff]  }
   0xc   :  { %631 = vmatprep.subr.bf16.mxu0 %v741_v6  ;;  %722 = vmatprep.subr.bf16.mxu1 %v741_v6  ;;  %v773_v32 = vld [vmem:[%s1049_s0 + $0x48] ss:$12 sps:$4 sm:$0xff]   ;;  %v775_v34 = vld [vmem:[%s1049_s0 + $0x64] ss:$12 sps:$4 sm:$0xff]   ;;  %v778_v36 = vld [vmem:[%s1049_s0 + $0x60] ss:$12 sps:$4 sm:$0xff]  }
   0xd   :  { %v777_v35 = vld [vmem:[%s1049_s0 + $0x68] ss:$12 sps:$4 sm:$0xff]   ;;  %v779_v37 = vld [vmem:[%s1049_s0 + $0x80] ss:$12 sps:$4 sm:$0xff]   ;;  %v782_v39 = vld [vmem:[%s1049_s0 + $0x98] ss:$12 sps:$4 sm:$0xff]  }
   0xe   :  { %v780_v38 = vld [vmem:[%s1049_s0 + $0x7c] ss:$12 sps:$4 sm:$0xff]   ;;  %v783_v40 = vld [vmem:[%s1049_s0 + $0x78] ss:$12 sps:$4 sm:$0xff]   ;;  %v958_v60 = vld [vmem:[%s1050_s2] ss:$0 sm:$0xff] }
   0xf   :  { %632 = vmatpush3.bf16.msra.mxu0 %v742_v7  ;;  %730 = vmatpush3.bf16.msra.mxu1 %v742_v7  ;;  %v784_v41 = vld [vmem:[%s1049_s0 + $0xb0] ss:$12 sps:$4 sm:$0xff]  }
  0x10   :  { %633 = vmatprep.subr.bf16.mxu0 %v743_v8  ;;  %723 = vmatprep.subr.bf16.mxu1 %v743_v8 }
  0x13   :  { %634 = vmatpush3.bf16.msra.mxu0 %v744_v9  ;;  %731 = vmatpush3.bf16.msra.mxu1 %v744_v9 }
  0x14   :  { %635 = vmatprep.subr.bf16.mxu0 %v745_v10  ;;  %724 = vmatprep.subr.bf16.mxu1 %v745_v10 }
  0x17   :  { %636 = vmatpush3.bf16.msra.mxu0 %v746_v13  ;;  %732 = vmatpush3.bf16.msra.mxu1 %v746_v13 }
  0x18   :  { %637 = vmatprep.subr.bf16.mxu0 %v747_v14  ;;  %725 = vmatprep.subr.bf16.mxu1 %v747_v14 }
  0x1b   :  { %638 = vmatpush3.bf16.msra.mxu0 %v748_v15  ;;  %733 = vmatpush3.bf16.msra.mxu1 %v748_v15 }
  0x1c   :  { %639 = vmatprep.subr.bf16.mxu0 %v749_v16  ;;  %726 = vmatprep.subr.bf16.mxu1 %v749_v16 }
  0x1f   :  { %640 = vmatpush3.bf16.msra.mxu0 %v750_v17  ;;  %734 = vmatpush3.bf16.msra.mxu1 %v750_v17 }
  0x20   :  { %699 = vmatprep.subr.bf16.mxu1 %v757_v19 }
  0x22   :  { %376 = vmatmul.mubr.bf16.vlgmr.msra.gmra.mxu0 %v751_v18  ;;  %424 = vmatmul.mubr.bf16.vlgmr.msra.gmra.mxu1 %v754_v20 }
  0x23   :  { %700 = vmatpush3.bf16.msra.mxu1 %v757_v19  ;;  %383 = vmatprep.mubr.bf16.mxu0 %v758_v21 }
  0x24   :  { %431 = vmatprep.mubr.bf16.mxu1 %v760_v22  ;;  %701 = vmatprep.subr.bf16.mxu1 %v764_v23 }
  0x27   :  { %702 = vmatpush3.bf16.msra.mxu1 %v764_v23 }
  0x2a   :  { %384 = vmatmul.mubr.bf16.gmra.mxu0 %v762_v24  ;;  %432 = vmatmul.mubr.bf16.gmra.mxu1 %v763_v25 }
  0x2b   :  { %391 = vmatprep.mubr.bf16.mxu0 %v765_v26  ;;  %703 = vmatprep.mubr.msk.bf16.mxu1 %vm318_vm0, %v767_v27 }
  0x32   :  { %392 = vmatmul.mubr.bf16.gmra.mxu0 %v768_v28  ;;  %704 = vmatmul.mubr.msk.bf16.vlgmr.msra.gmra.mxu1 %vm318_vm0, %v769_v29 }
  0x33   :  { %399 = vmatprep.mubr.bf16.mxu0 %v770_v30  ;;  %707 = vmatprep.mubr.msk.bf16.mxu1 %vm318_vm0, %v772_v31 }
  0x3a   :  { %400 = vmatmul.mubr.bf16.gmra.mxu0 %v773_v32  ;;  %708 = vmatmul.mubr.msk.bf16.gmra.mxu1 %vm318_vm0, %v774_v33 }
  0x3b   :  { %407 = vmatprep.mubr.bf16.mxu0 %v775_v34  ;;  %711 = vmatprep.mubr.msk.bf16.mxu1 %vm318_vm0, %v777_v35 }
  0x42   :  { %408 = vmatmul.mubr.bf16.gmra.mxu0 %v778_v36  ;;  %712 = vmatmul.mubr.msk.bf16.gmra.mxu1 %vm318_vm0, %v779_v37 }
  0x43   :  { %415 = vmatprep.mubr.bf16.mxu0 %v780_v38  ;;  %715 = vmatprep.mubr.msk.bf16.mxu1 %vm318_vm0, %v782_v39 }
  0x4a   :  { %416 = vmatmul.mubr.bf16.gmra.mxu0 %v783_v40  ;;  %716 = vmatmul.mubr.msk.bf16.gmra.mxu1 %vm318_vm0, %v784_v41 }
  0xe2   :  { %v641_v42 = vpop.f32.mrf.mxu0  ;;  %v939_v43 = vpop.f32.mrf.mxu1 }
  0xe4   :  { %v642_v44 = vpop.f32.mrf.mxu0  ;;  %v941_v45 = vpop.f32.mrf.mxu1 }
  0xe5   :  { %v643_v57 = vadd.f32 %v642_v44, %v641_v42 }
  0xe6   :  { %v644_v46 = vpop.f32.mrf.mxu0  ;;  %v943_v47 = vpop.f32.mrf.mxu1 }
  0xe7   :  { %v378_v3 = vadd.f32 %v643_v57, %v958_v60  ;;  %v679_v57 = vadd.f32 %v941_v45, %v939_v43 }
  0xe8   :  { %v645_v48 = vpop.f32.mrf.mxu0  ;;  %v945_v49 = vpop.f32.mrf.mxu1 }
  0xe9   :  { %v646_v1 = vadd.f32 %v645_v48, %v644_v46  ;;  %v682_v43 = vadd.f32 %v945_v49, %v943_v47 }
  0xea   :  { %v647_v50 = vpop.f32.mrf.mxu0  ;;  %v947_v51 = vpop.f32.mrf.mxu1 }
  0xeb   :  { %v381_v14 = vadd.f32 %v646_v1, %v958_v60 }
  0xec   :  { %v648_v52 = vpop.f32.mrf.mxu0  ;;  %v949_v53 = vpop.f32.mrf.mxu1 }
  0xed   :  { %v649_v54 = vadd.f32 %v648_v52, %v647_v50  ;;  %v685_v48 = vadd.f32 %v949_v53, %v947_v51 }
  0xee   :  { %v650_v55 = vpop.f32.mrf.mxu0  ;;  %v951_v56 = vpop.f32.mrf.mxu1 }
  0xef   :  { %v386_v62 = vadd.f32 %v649_v54, %v958_v60  ;;  %v434_v1 = vadd.f32 %v685_v48, %v958_v60 }
  0xf0   :  { %v651_v58 = vpop.f32.mrf.mxu0  ;;  %v953_v59 = vpop.f32.mrf.mxu1 }
  0xf1   :  { %v652_v61 = vadd.f32 %v651_v58, %v650_v55  ;;  %v688_v53 = vadd.f32 %v953_v59, %v951_v56  ;;  %v426_v59 = vadd.f32 %v679_v57, %v958_v60 }
  0xf2   :  { %v653_v63 = vpop.f32.mrf.mxu0  ;;  %v705_v0 = vpop.f32.mrf.mxu1 }
  0xf3   :  { %v483_v2 = vadd.f32 %v705_v0, %v386_v62  ;;  %v389_v8 = vadd.f32 %v652_v61, %v958_v60 }
  0xf4   :  { %v654_v4 = vpop.f32.mrf.mxu0  ;;  %v474_v5 = vpop.f32.mrf.mxu1 }
  0xf5   :  { %v539_v6 = vmax.f32 %v483_v2, 0.0  ;;  %v475_v7 = vadd.f32 %v474_v5, %v378_v3  ;;  %v655_v11 = vadd.f32 %v654_v4, %v653_v63 }
  0xf6   :  { %v656_v9 = vpop.f32.mrf.mxu0  ;;  %v706_v10 = vpop.f32.mrf.mxu1 }
  0xf7   :  { %556 = vst.msk [vmem:[%s1051_s3 + $0x10] sm:$0xff] %vm553_vm1, %v539_v6  ;;  %v537_v12 = vmax.f32 %v475_v7, 0.0  ;;  %v486_v13 = vadd.f32 %v706_v10, %v389_v8  ;;  %v394_v23 = vadd.f32 %v655_v11, %v958_v60  ;;  %v437_v7 = vadd.f32 %v688_v53, %v958_v60 }
  0xf8   :  { %v657_v15 = vpop.f32.mrf.mxu0  ;;  %v477_v16 = vpop.f32.mrf.mxu1 }
  0xf9   :  { %554 = vst.msk [vmem:[%s1051_s3] sm:$0xff] %vm553_vm1, %v537_v12  ;;  %v540_v17 = vmax.f32 %v486_v13, 0.0  ;;  %v478_v18 = vadd.f32 %v477_v16, %v381_v14  ;;  %v658_v21 = vadd.f32 %v657_v15, %v656_v9  ;;  %v429_v12 = vadd.f32 %v682_v43, %v958_v60 }
  0xfa   :  { %v659_v19 = vpop.f32.mrf.mxu0  ;;  %v709_v20 = vpop.f32.mrf.mxu1 }
  0xfb   :  { %557 = vst.msk [vmem:[%s1051_s3 + $0x18] sm:$0xff] %vm553_vm1, %v540_v17  ;;  %v538_v22 = vmax.f32 %v478_v18, 0.0  ;;  %v397_v32 = vadd.f32 %v658_v21, %v958_v60 }
  0xfc   :  { %v660_v24 = vpop.f32.mrf.mxu0  ;;  %v490_v25 = vpop.f32.mrf.mxu1 }
  0xfd   :  { %555 = vst.msk [vmem:[%s1051_s3 + $0x8] sm:$0xff] %vm553_vm1, %v538_v22  ;;  %v661_v26 = vadd.f32 %v660_v24, %v659_v19  ;;  %v491_v27 = vadd.f32 %v490_v25, %v394_v23 }
  0xfe   :  { %v662_v28 = vpop.f32.mrf.mxu0  ;;  %v710_v29 = vpop.f32.mrf.mxu1 }
  0xff   :  { %v402_v30 = vadd.f32 %v661_v26, %v958_v60  ;;  %v541_v31 = vmax.f32 %v491_v27, 0.0 }
 0x100   :  { %v663_v33 = vpop.f32.mrf.mxu0  ;;  %v493_v34 = vpop.f32.mrf.mxu1 }
 0x101   :  { %v499_v35 = vadd.f32 %v709_v20, %v402_v30  ;;  %558 = vst.msk [vmem:[%s1051_s3 + $0x20] sm:$0xff] %vm553_vm1, %v541_v31  ;;  %v664_v36 = vadd.f32 %v663_v33, %v662_v28  ;;  %v494_v37 = vadd.f32 %v493_v34, %v397_v32 }
 0x102   :  { %v665_v38 = vpop.f32.mrf.mxu0  ;;  %v713_v39 = vpop.f32.mrf.mxu1 }
 0x103   :  { %v543_v40 = vmax.f32 %v499_v35, 0.0  ;;  %v405_v41 = vadd.f32 %v664_v36, %v958_v60  ;;  %v542_v42 = vmax.f32 %v494_v37, 0.0 }
 0x104   :  { %v666_v44 = vpop.f32.mrf.mxu0  ;;  %v506_v46 = vpop.f32.mrf.mxu1 }
 0x105   :  { %560 = vst.msk [vmem:[%s1051_s3 + $0x30] sm:$0xff] %vm553_vm1, %v543_v40  ;;  %v502_v50 = vadd.f32 %v710_v29, %v405_v41  ;;  %559 = vst.msk [vmem:[%s1051_s3 + $0x28] sm:$0xff] %vm553_vm1, %v542_v42  ;;  %v667_v52 = vadd.f32 %v666_v44, %v665_v38 }
 0x106   :  { %v668_v54 = vpop.f32.mrf.mxu0  ;;  %v714_v55 = vpop.f32.mrf.mxu1 }
 0x107   :  { %v544_v58 = vmax.f32 %v502_v50, 0.0  ;;  %v410_v51 = vadd.f32 %v667_v52, %v958_v60 }
 0x108   :  { %v669_v61 = vpop.f32.mrf.mxu0  ;;  %v509_v62 = vpop.f32.mrf.mxu1 }
 0x109   :  { %561 = vst.msk [vmem:[%s1051_s3 + $0x38] sm:$0xff] %vm553_vm1, %v544_v58  ;;  %v507_v63 = vadd.f32 %v506_v46, %v410_v51  ;;  %v670_v0 = vadd.f32 %v669_v61, %v668_v54 }
 0x10a   :  { %v671_v45 = vpop.f32.mrf.mxu0  ;;  %v717_v2 = vpop.f32.mrf.mxu1 }
 0x10b   :  { %v545_v3 = vmax.f32 %v507_v63, 0.0  ;;  %v413_v4 = vadd.f32 %v670_v0, %v958_v60  ;;  %v531_v56 = vadd.f32 %v717_v2, %v434_v1 }
 0x10c   :  { %v672_v5 = vpop.f32.mrf.mxu0  ;;  %v522_v6 = vpop.f32.mrf.mxu1 }
 0x10d   :  { %562 = vst.msk [vmem:[%s1051_s3 + $0x40] sm:$0xff] %vm553_vm1, %v545_v3  ;;  %v510_v8 = vadd.f32 %v509_v62, %v413_v4  ;;  %v551_v9 = vmax.f32 %v531_v56, 0.0  ;;  %v673_v47 = vadd.f32 %v672_v5, %v671_v45  ;;  %v523_v49 = vadd.f32 %v522_v6, %v426_v59 }
 0x10e   :  { %v674_v10 = vpop.f32.mrf.mxu0  ;;  %v718_v11 = vpop.f32.mrf.mxu1 }
 0x10f   :  { %v546_v13 = vmax.f32 %v510_v8, 0.0  ;;  %568 = vst.msk [vmem:[%s1051_s3 + $0x70] sm:$0xff] %vm553_vm1, %v551_v9  ;;  %v418_v14 = vadd.f32 %v673_v47, %v958_v60  ;;  %v549_v15 = vmax.f32 %v523_v49, 0.0  ;;  %v534_v16 = vadd.f32 %v718_v11, %v437_v7 }
 0x110   :  { %v675_v17 = vpop.f32.mrf.mxu0  ;;  %v525_v18 = vpop.f32.mrf.mxu1 }
 0x111   :  { %563 = vst.msk [vmem:[%s1051_s3 + $0x48] sm:$0xff] %vm553_vm1, %v546_v13  ;;  %v515_v19 = vadd.f32 %v713_v39, %v418_v14  ;;  %566 = vst.msk [vmem:[%s1051_s3 + $0x60] sm:$0xff] %vm553_vm1, %v549_v15  ;;  %v552_v20 = vmax.f32 %v534_v16, 0.0  ;;  %v676_v21 = vadd.f32 %v675_v17, %v674_v10  ;;  %v526_v22 = vadd.f32 %v525_v18, %v429_v12 }
 0x113   :  { %v547_v23 = vmax.f32 %v515_v19, 0.0  ;;  %569 = vst.msk [vmem:[%s1051_s3 + $0x78] sm:$0xff] %vm553_vm1, %v552_v20  ;;  %v421_v24 = vadd.f32 %v676_v21, %v958_v60  ;;  %v550_v25 = vmax.f32 %v526_v22, 0.0 }
 0x115   :  { %564 = vst.msk [vmem:[%s1051_s3 + $0x50] sm:$0xff] %vm553_vm1, %v547_v23  ;;  %v518_v26 = vadd.f32 %v714_v55, %v421_v24  ;;  %567 = vst.msk [vmem:[%s1051_s3 + $0x68] sm:$0xff] %vm553_vm1, %v550_v25 }
 0x117   :  { %v548_v27 = vmax.f32 %v518_v26, 0.0 }
 0x119   :  { %565 = vst.msk [vmem:[%s1051_s3 + $0x58] sm:$0xff] %vm553_vm1, %v548_v27 }

// kernel: forward.14
= control target key start
LH: loop header
LB: loop body
LE: loop exit
PB: predicated region body
PF: predicated region fallthrough
CT: control target
= control target key end

     0   :  { %vm28_vm0 = vcmask 1040384   ;;  %v94_v0 = vmov 0.0   ;;  %v95_v2 = vmov 0   ;;  %vm96_vm1 = vmmov 0   ;;  %s129_s1 = inlined_call_operand.vmem [shape: bf16[1,32], index: 1, kind: input, shape index: {}]   ;;  %s130_s0 = inlined_call_operand.vmem [shape: bf16[2,1], index: 0, kind: input, shape index: {}]   ;;  %s131_s2 = inlined_call_operand.vmem [shape: f32[1,32], index: 2, kind: input, shape index: {}]   ;;  %s132_s3 = inlined_call_operand.vmem [shape: f32[2,32], index: 3, kind: output, shape index: {}]  }
   0x1   :  { %85 = vmatprep.subr.bf16.mxu0 %v94_v0  ;;  %v16_v1 = vld [vmem:[%s129_s1] sm:$0x1]  ;;  %v30_v3 = vsel %vm28_vm0, 65535, %v95_v2  ;;  %87 = vmatprep.mubr.msk.bf16.mxu0 %vm96_vm1, %v94_v0  ;;  %vm24_vm2 = vcmask 7168   ;;  %vm75_vm3 = vcmask 254976  }
   0x2   :  { %v32_v4 = vand.u32 %v30_v3, %v16_v1  ;;  %v15_v5 = vld [vmem:[%s130_s0] sm:$0x1] }
   0x3   :  { %v81_v6 = vld [vmem:[%s131_s2] ss:$0 sm:$0xff] }
   0x4   :  { %86 = vmatpush3.bf16.msra.mxu0 %v32_v4 }
   0x7   :  { %88 = vmatmul.mubr.msk.bf16.vlgmr.msra.gmra.mxu0 %vm24_vm2, %v15_v5 }
  0xc7   :  { %v68_v7 = vpop.f32.mrf.mxu0 }
  0xc8   :  { %v69_v8 = vadd.f32 %v81_v6, %v68_v7 }
  0xc9   :  { %v89_v9 = vpop.f32.mrf.mxu0 }
  0xca   :  { %v74_v10 = vmax.f32 %v69_v8, 0.0 }
  0xcb   :  { %v71_v11 = vpop.f32.mrf.mxu0 }
  0xcc   :  { %76 = vst.msk [vmem:[%s132_s3] sm:$0x3] %vm75_vm3, %v74_v10 }
  0xcd   :  { %v90_v12 = vpop.f32.mrf.mxu0 }

// kernel: forward.21
= control target key start
LH: loop header
LB: loop body
LE: loop exit
PB: predicated region body
PF: predicated region fallthrough
CT: control target
= control target key end

     0   :  { %s2001_s25 = smov 0   ;;  %s2694_s0 = inlined_call_operand.vmem [shape: f32[2,64,64], index: 0, kind: input, shape index: {}]   ;;  %s2695_s1 = inlined_call_operand.vmem [shape: f32[2,1,32], index: 1, kind: input, shape index: {}]   ;;  %s2696_s2 = inlined_call_operand.vmem [shape: f32[64,32], index: 2, kind: input, shape index: {}]   ;;  %s2697_s3 = inlined_call_operand.vmem [shape: f32[32,32], index: 3, kind: input, shape index: {}]   ;;  %s2698_s4 = inlined_call_operand.vmem [shape: f32[64,32], index: 4, kind: input, shape index: {}]   ;;  %s2699_s5 = inlined_call_operand.vmem [shape: f32[32,32], index: 5, kind: input, shape index: {}]   ;;  %s2700_s6 = inlined_call_operand.vmem [shape: f32[64,32], index: 6, kind: input, shape index: {}]   ;;  %s2701_s7 = inlined_call_operand.vmem [shape: f32[32,32], index: 7, kind: input, shape index: {}]   ;;  %s2702_s8 = inlined_call_operand.vmem [shape: f32[1,32], index: 8, kind: input, shape index: {}]   ;;  %s2703_s9 = inlined_call_operand.vmem [shape: f32[1,32], index: 9, kind: input, shape index: {}]   ;;  %s2704_s10 = inlined_call_operand.vmem [shape: f32[32,64], index: 10, kind: input, shape index: {}]   ;;  %s2705_s11 = inlined_call_operand.vmem [shape: f32[2,64,64], index: 11, kind: output, shape index: {0}]   ;;  %s2706_s12 = inlined_call_operand.vmem [shape: f32[2,1,64], index: 12, kind: output, shape index: {1}]   ;;  %s2707_s13 = inlined_call_operand.vmem [shape: f32[2,64,1], index: 13, kind: output, shape index: {2}]  }
   0x1 LB: > { %s1666_s26 = sadd.s32 4294967295, %s1927_s25   ;;  %p1670_p0 = scmp.ge.s32.totalorder %s1927_s25, 1  ;;  %s1927_s25 = sphi %s2001_s25, %s24_s25  }
   0x2   : > { %p400_p1 = scmp.lt.s32.totalorder %s1927_s25, 3 }
   0x4   : > { %p401_p2 = pnand %p1670_p0, %p400_p1 }
   0x5   : > { %p455_p3 = scmp.lt.s32.totalorder (!%p401_p2), %s1666_s26, 1 }
   0x6   : > { %404 = sbr.rel (%p401_p2) target bundleno = 1096 (0x448), region = 64 }
   0xb   : > { %v532_v0 = vld [vmem:[%s2697_s3 + $0x10] sm:$0xff]  ;;  %v533_v1 = vld [vmem:[%s2697_s3 + $0x18] sm:$0xff]  ;;  %v530_v2 = vld [vmem:[%s2697_s3] sm:$0xff]  ;;  %v1929_v3 = vmov 0.0   ;;  %vm1930_vm0 = vmmov 0   ;;  %s2709_s26 = smov (!%p455_p3, %s1666_s26), 1 }
   0xc   : > { %1742 = vmatprep.subr.bf16.mxu0 %v1929_v3  ;;  %v535_v4 = vpack.c.bf16 %v533_v1, %v532_v0  ;;  %v531_v5 = vld [vmem:[%s2697_s3 + $0x8] sm:$0xff]  ;;  %1746 = vmatprep.mubr.msk.bf16.mxu0 %vm1930_vm0, %v1929_v3  ;;  %v524_v7 = vld [vmem:[%s2696_s2 + $0x30] sm:$0xff]  ;;  %v525_v8 = vld [vmem:[%s2696_s2 + $0x38] sm:$0xff]  ;;  %s2037_s22 = sshll.u32 %s2709_s26, 6  ;;  %s462_s27 = scalar_lea.vmem %s2695_s1, %s2709_s26  ;;  %vm488_vm1 = vcmask 523264   ;;  %vm536_vm2 = vcmask 261120  }
   0xd   : > { %1750 = vmatprep.subr.bf16.mxu1 %v1929_v3  ;;  %1758 = vmatprep.mubr.msk.bf16.mxu1 %vm1930_vm0, %v1929_v3  ;;  %v534_v6 = vpack.c.bf16 %v531_v5, %v530_v2  ;;  %v655_v9 = vld [vmem:[%s2699_s5 + $0x10] sm:$0xff]  ;;  %v656_v10 = vld [vmem:[%s2699_s5 + $0x18] sm:$0xff]  ;;  %v529_v11 = vpack.c.bf16 %v525_v8, %v524_v7  ;;  %v522_v12 = vld [vmem:[%s2696_s2 + $0x20] sm:$0xff]  ;;  %s2056_s19 = scalar_lea.vmem %s2694_s0, %s2037_s22  ;;  %vm624_vm3 = vcmask 253952   ;;  %s2562_s24 = scalar_lea.vmem %s2707_s13, %s2037_s22  ;;  %vm1535_vm4 = vcmask 7168  }
   0xe   : > { %1743 = vmatpush3.bf16.msra.mxu0 %v535_v4  ;;  %v485_v13 = vld [vmem:[%s462_s27] sm:$0x1]  ;;  %v523_v14 = vld [vmem:[%s2696_s2 + $0x28] sm:$0xff]  ;;  %v658_v17 = vpack.c.bf16 %v656_v10, %v655_v9  ;;  %v520_v19 = vld [vmem:[%s2696_s2 + $0x10] sm:$0xff]  ;;  %s2576_s29 = scalar_lea.vmem %s2705_s11, %s2037_s22  ;;  %s470_s30 = scalar_lea.vmem %s2706_s12, %s2709_s26  ;;  %vm1533_vm5 = vcmask 516096  }
   0xf   : > { %1744 = vmatprep.subr.bf16.mxu0 %v1929_v3  ;;  %v2061_v15 = vpack.c.bf16 %v485_v13, %v485_v13  ;;  %1751 = vmatpush3.bf16.msra.mxu1 %v529_v11  ;;  %v528_v16 = vpack.c.bf16 %v523_v14, %v522_v12  ;;  %v653_v18 = vld [vmem:[%s2699_s5] sm:$0xff]  ;;  %v521_v20 = vld [vmem:[%s2696_s2 + $0x18] sm:$0xff]  ;;  %v654_v21 = vld [vmem:[%s2699_s5 + $0x8] sm:$0xff] }
  0x10   : > { %1752 = vmatprep.subr.bf16.mxu1 %v1929_v3  ;;  %v2078_v22 = vld [vmem:[%s2056_s19] sm:$0xff]  ;;  %v2081_v23 = vld [vmem:[%s2056_s19 + $0x8] sm:$0xff]  ;;  %v2084_v24 = vld [vmem:[%s2056_s19 + $0x10] sm:$0xff]  ;;  %v527_v28 = vpack.c.bf16 %v521_v20, %v520_v19  ;;  %v657_v32 = vpack.c.bf16 %v654_v21, %v653_v18 }
  0x11   : > { %v2087_v25 = vld [vmem:[%s2056_s19 + $0x18] sm:$0xff]  ;;  %v489_v26 = vsel %vm488_vm1, %v2078_v22, 0.0  ;;  %v490_v27 = vsel %vm488_vm1, %v2081_v23, 0.0  ;;  %v2096_v29 = vld [vmem:[%s2056_s19 + $0x20] sm:$0xff]  ;;  %v492_v31 = vsel %vm488_vm1, %v2084_v24, 0.0  ;;  %v519_v34 = vld [vmem:[%s2696_s2 + $0x8] sm:$0xff]  ;;  %v512_v8 = vpack.c.bf16 %v2081_v23, %v2078_v22 }
  0x12   : > { %1745 = vmatpush3.bf16.msra.mxu0 %v534_v6  ;;  %v491_v30 = vadd.f32 %v490_v27, %v489_v26  ;;  %v518_v33 = vld [vmem:[%s2696_s2] sm:$0xff]  ;;  %v494_v35 = vsel %vm488_vm1, %v2087_v25, 0.0  ;;  %v647_v36 = vld [vmem:[%s2698_s4 + $0x30] sm:$0xff]  ;;  %v648_v37 = vld [vmem:[%s2698_s4 + $0x38] sm:$0xff]  ;;  %v496_v40 = vsel %vm488_vm1, %v2096_v29, 0.0  ;;  %v513_v23 = vpack.c.bf16 %v2087_v25, %v2084_v24 }
  0x13   : > { %1762 = vmatprep.subr.bf16.mxu0 %v1929_v3  ;;  %1753 = vmatpush3.bf16.msra.mxu1 %v528_v16  ;;  %v2119_v38 = vld [vmem:[%s2056_s19 + $0x28] sm:$0xff]  ;;  %v526_v41 = vpack.c.bf16 %v519_v34, %v518_v33  ;;  %v2124_v42 = vld [vmem:[%s2056_s19 + $0x30] sm:$0xff]  ;;  %v652_v44 = vpack.c.bf16 %v648_v37, %v647_v36  ;;  %v645_v46 = vld [vmem:[%s2698_s4 + $0x20] sm:$0xff] }
  0x14   : > { %1754 = vmatprep.subr.bf16.mxu1 %v1929_v3  ;;  %v493_v39 = vadd.f32 %v492_v31, %v491_v30  ;;  %v498_v45 = vsel %vm488_vm1, %v2119_v38, 0.0  ;;  %v646_v47 = vld [vmem:[%s2698_s4 + $0x28] sm:$0xff]  ;;  %v2137_v48 = vld [vmem:[%s2056_s19 + $0x38] sm:$0xff]  ;;  %v500_v50 = vsel %vm488_vm1, %v2124_v42, 0.0  ;;  %v643_v54 = vld [vmem:[%s2698_s4 + $0x10] sm:$0xff] }
  0x15   : > { %1747 = vmatmul.mubr.msk.bf16.vlgmr.msra.gmra.mxu0 %vm536_vm2, %v2061_v15  ;;  %v651_v52 = vpack.c.bf16 %v646_v47, %v645_v46  ;;  %v502_v53 = vsel %vm488_vm1, %v2137_v48, 0.0  ;;  %v644_v55 = vld [vmem:[%s2698_s4 + $0x18] sm:$0xff]  ;;  %v641_v59 = vld [vmem:[%s2698_s4] sm:$0xff]  ;;  %v642_v60 = vld [vmem:[%s2698_s4 + $0x8] sm:$0xff]  ;;  %v515_v25 = vpack.c.bf16 %v2137_v48, %v2124_v42  ;;  %v869_v42 = vlaneseq }
  0x16   : > { %1763 = vmatpush3.bf16.msra.mxu0 %v658_v17  ;;  %1766 = vmatprep.mubr.msk.bf16.mxu0 %vm1930_vm0, %v1929_v3  ;;  %v495_v43 = vadd.f32 %v494_v35, %v493_v39  ;;  %v650_v58 = vpack.c.bf16 %v644_v55, %v643_v54  ;;  %v649_v63 = vpack.c.bf16 %v642_v60, %v641_v59  ;;  %v769_v5 = vld [vmem:[%s2701_s7 + $0x10] sm:$0xff]  ;;  %v770_v6 = vld [vmem:[%s2701_s7 + $0x18] sm:$0xff]  ;;  %v767_v11 = vld [vmem:[%s2701_s7] sm:$0xff] }
  0x17   : > { %1764 = vmatprep.subr.bf16.mxu0 %v1929_v3  ;;  %1755 = vmatpush3.bf16.msra.mxu1 %v527_v28  ;;  %v772_v10 = vpack.c.bf16 %v770_v6, %v769_v5  ;;  %v768_v12 = vld [vmem:[%s2701_s7 + $0x8] sm:$0xff]  ;;  %v761_v14 = vld [vmem:[%s2700_s6 + $0x30] sm:$0xff]  ;;  %v762_v16 = vld [vmem:[%s2700_s6 + $0x38] sm:$0xff] }
  0x18   : > { %1756 = vmatprep.subr.bf16.mxu1 %v1929_v3  ;;  %v497_v49 = vadd.f32 %v496_v40, %v495_v43  ;;  %v771_v13 = vpack.c.bf16 %v768_v12, %v767_v11  ;;  %v766_v17 = vpack.c.bf16 %v762_v16, %v761_v14  ;;  %v759_v18 = vld [vmem:[%s2700_s6 + $0x20] sm:$0xff]  ;;  %v760_v19 = vld [vmem:[%s2700_s6 + $0x28] sm:$0xff]  ;;  %v757_v21 = vld [vmem:[%s2700_s6 + $0x10] sm:$0xff] }
  0x19   : > { %v765_v20 = vpack.c.bf16 %v760_v19, %v759_v18  ;;  %v758_v22 = vld [vmem:[%s2700_s6 + $0x18] sm:$0xff]  ;;  %v755_v27 = vld [vmem:[%s2700_s6] sm:$0xff]  ;;  %v756_v28 = vld [vmem:[%s2700_s6 + $0x8] sm:$0xff] }
  0x1a   : > { %1765 = vmatpush3.bf16.msra.mxu0 %v657_v32  ;;  %v499_v51 = vadd.f32 %v498_v45, %v497_v49  ;;  %v764_v26 = vpack.c.bf16 %v758_v22, %v757_v21  ;;  %v763_v24 = vpack.c.bf16 %v756_v28, %v755_v27  ;;  %v870_v49 = vshrl.u32 %v869_v42, 7 }
  0x1b   : > { %1770 = vmatprep.subr.bf16.mxu0 %v1929_v3  ;;  %1757 = vmatpush3.bf16.msra.mxu1 %v526_v41 }
  0x1c   : > { %v501_v56 = vadd.f32 %v500_v50, %v499_v51  ;;  %1782 = vmatprep.subr.bf16.mxu1 %v1929_v3  ;;  %v2238_v50 = vsub.s32 0, %v870_v49 }
  0x1d   : > { %1767 = vmatmul.mubr.msk.bf16.vlgmr.msra.gmra.mxu0 %vm536_vm2, %v2061_v15 }
  0x1e   : > { %1771 = vmatpush3.bf16.msra.mxu0 %v652_v44  ;;  %1778 = vmatprep.mubr.msk.bf16.mxu0 %vm1930_vm0, %v1929_v3  ;;  %v503_v57 = vadd.f32 %v502_v53, %v501_v56 }
  0x1f   : > { %1772 = vmatprep.subr.bf16.mxu0 %v1929_v3 }
  0x20   : > { %v504_v61 = vrot.slane %v503_v57, 4 }
  0x22   : > { %1773 = vmatpush3.bf16.msra.mxu0 %v651_v52  ;;  %v505_v62 = vadd.f32 %v504_v61, %v503_v57 }
  0x23   : > { %1774 = vmatprep.subr.bf16.mxu0 %v1929_v3 }
  0x24   : > { %v506_v0 = vrot.slane %v505_v62, 2 }
  0x26   : > { %1775 = vmatpush3.bf16.msra.mxu0 %v650_v58  ;;  %v507_v1 = vadd.f32 %v506_v0, %v505_v62 }
  0x27   : > { %1776 = vmatprep.subr.bf16.mxu0 %v1929_v3 }
  0x28   : > { %v508_v2 = vrot.slane %v507_v1, 1 }
  0x2a   : > { %1777 = vmatpush3.bf16.msra.mxu0 %v649_v63  ;;  %v509_v4 = vadd.f32 %v508_v2, %v507_v1 }
  0x2b   : > { %1802 = vmatprep.subr.bf16.mxu0 %v652_v44 }
  0x2c   : > { %v511_v7 = vmul.f32 0.015625, %v509_v4 }
  0x2e   : > { %v516_v9 = vpack.c.bf16 %v511_v7, %v511_v7 }
  0x30   : > { %1759 = vmatmul.mubr.msk.bf16.vlgmr.msra.gmra.mxu1 %vm488_vm1, %v516_v9  ;;  %1779 = vmatmul.mubr.msk.bf16.vlgmr.msra.gmra.mxu0 %vm488_vm1, %v516_v9 }
  0x31   : > { %1803 = vmatpush3.bf16.msra.mxu0 %v652_v44  ;;  %1810 = vmatprep.mubr.msk.bf16.mxu0 %vm488_vm1, %v512_v8 }
  0x32   : > { %1804 = vmatprep.subr.bf16.mxu0 %v651_v52  ;;  %1783 = vmatpush3.bf16.msra.mxu1 %v772_v10 }
  0x33   : > { %1784 = vmatprep.subr.bf16.mxu1 %v1929_v3  ;;  %1786 = vmatprep.mubr.msk.bf16.mxu1 %vm1930_vm0, %v1929_v3 }
  0x35   : > { %1805 = vmatpush3.bf16.msra.mxu0 %v651_v52 }
  0x36   : > { %1806 = vmatprep.subr.bf16.mxu0 %v650_v58  ;;  %1785 = vmatpush3.bf16.msra.mxu1 %v771_v13 }
  0x37   : > { %1790 = vmatprep.subr.bf16.mxu1 %v1929_v3 }
  0x39   : > { %1807 = vmatpush3.bf16.msra.mxu0 %v650_v58  ;;  %1787 = vmatmul.mubr.msk.bf16.vlgmr.msra.gmra.mxu1 %vm536_vm2, %v2061_v15  ;;  %v514_v15 = vpack.c.bf16 %v2119_v38, %v2096_v29 }
  0x3a   : > { %1808 = vmatprep.subr.bf16.mxu0 %v649_v63  ;;  %1791 = vmatpush3.bf16.msra.mxu1 %v766_v17 }
  0x3b   : > { %1792 = vmatprep.subr.bf16.mxu1 %v1929_v3  ;;  %1798 = vmatprep.mubr.msk.bf16.mxu1 %vm1930_vm0, %v1929_v3 }
  0x3d   : > { %1809 = vmatpush3.bf16.msra.mxu0 %v649_v63 }
  0x3e   : > { %1793 = vmatpush3.bf16.msra.mxu1 %v765_v20  ;;  %1834 = vmatprep.subr.mxu0 %v1929_v3 }
  0x3f   : > { %1794 = vmatprep.subr.bf16.mxu1 %v1929_v3 }
  0x40   : > { %1811 = vmatmul.mubr.msk.bf16.vlgmr.msra.gmra.mxu0 %vm488_vm1, %v513_v23 }
  0x41   : > { %1814 = vmatprep.mubr.msk.bf16.mxu0 %vm488_vm1, %v514_v15 }
  0x42   : > { %1795 = vmatpush3.bf16.msra.mxu1 %v764_v26 }
  0x43   : > { %1796 = vmatprep.subr.bf16.mxu1 %v1929_v3 }
  0x46   : > { %1797 = vmatpush3.bf16.msra.mxu1 %v763_v24 }
  0x47   : > { %1818 = vmatprep.subr.bf16.mxu1 %v766_v17 }
  0x48   : > { %1815 = vmatmul.mubr.msk.bf16.gmra.mxu0 %vm488_vm1, %v515_v25 }
  0x49   : > { %1799 = vmatmul.mubr.msk.bf16.vlgmr.msra.gmra.mxu1 %vm488_vm1, %v516_v9  ;;  %1842 = vmatprep.mubr.msk.f32.mxu0 %vm1930_vm0, %v1929_v3 }
  0x4a   : > { %1819 = vmatpush3.bf16.msra.mxu1 %v766_v17  ;;  %1826 = vmatprep.mubr.msk.bf16.mxu1 %vm488_vm1, %v512_v8 }
  0x4b   : > { %1820 = vmatprep.subr.bf16.mxu1 %v765_v20 }
  0x4e   : > { %1821 = vmatpush3.bf16.msra.mxu1 %v765_v20 }
  0x4f   : > { %1822 = vmatprep.subr.bf16.mxu1 %v764_v26 }
  0x52   : > { %1823 = vmatpush3.bf16.msra.mxu1 %v764_v26 }
  0x53   : > { %1824 = vmatprep.subr.bf16.mxu1 %v763_v24 }
  0x56   : > { %1825 = vmatpush3.bf16.msra.mxu1 %v763_v24 }
  0x59   : > { %1827 = vmatmul.mubr.msk.bf16.vlgmr.msra.gmra.mxu1 %vm488_vm1, %v513_v23 }
  0x5a   : > { %1830 = vmatprep.mubr.msk.bf16.mxu1 %vm488_vm1, %v514_v15 }
  0x61   : > { %1831 = vmatmul.mubr.msk.bf16.gmra.mxu1 %vm488_vm1, %v515_v25 }
  0xd5   : > { %v574_v29 = vpop.f32.mrf.mxu0 }
  0xd7   : > { %v1748_v30 = vpop.f32.mrf.mxu0 }
  0xd9   : > { %v577_v31 = vpop.f32.mrf.mxu0 }
  0xdb   : > { %v1749_v32 = vpop.f32.mrf.mxu0 }
  0xdd   : > { %v693_v33 = vpop.f32.mrf.mxu0 }
  0xde   : > { %v872_v51 = vrot.slane %v693_v33, %v2238_v50 }
  0xdf   : > { %v1768_v34 = vpop.f32.mrf.mxu0 }
  0xe1   : > { %v696_v35 = vpop.f32.mrf.mxu0 }
  0xe3   : > { %v1769_v36 = vpop.f32.mrf.mxu0 }
  0xf0   : > { %v617_v37 = vpop.f32.mrf.mxu1  ;;  %v733_v38 = vpop.f32.mrf.mxu0 }
  0xf1   : > { %v2232_v39 = vadd.f32 %v617_v37, %v574_v29  ;;  %v2264_v11 = vadd.f32 %v733_v38, %v693_v33 }
  0xf2   : > { %v1780_v40 = vpop.f32.mrf.mxu0  ;;  %v1760_v41 = vpop.f32.mrf.mxu1 }
  0xf3   : > { %v623_v43 = vmax.f32 %v2232_v39, 0.0  ;;  %v739_v20 = vmax.f32 %v2264_v11, 0.0 }
  0xf4   : > { %v736_v44 = vpop.f32.mrf.mxu0  ;;  %v620_v45 = vpop.f32.mrf.mxu1 }
  0xf5   : > { %v625_v46 = vsel %vm624_vm3, %v623_v43, 0.0  ;;  %v740_v27 = vsel %vm624_vm3, %v739_v20, 0.0 }
  0xf6   : > { %v1781_v47 = vpop.f32.mrf.mxu0  ;;  %626 = vadd.xlane.f32.xlu0 %v625_v46  ;;  %v1761_v48 = vpop.f32.mrf.mxu1 }
  0xf9   : > { %v807_v19 = vpop.f32.mrf.mxu1 }
  0xfb   : > { %v1788_v15 = vpop.f32.mrf.mxu1 }
  0xfd   : > { %v810_v26 = vpop.f32.mrf.mxu1 }
  0xff   : > { %v1789_v24 = vpop.f32.mrf.mxu1 }
 0x100   : > { %v1812_v52 = vpop.f32.mrf.mxu0 }
 0x101   : > { %v2241_v53 = vadd.f32 %v1812_v52, %v872_v51 }
 0x102   : > { %v919_v54 = vpop.f32.mrf.mxu0 }
 0x103   : > { %v952_v55 = vmax.f32 %v2241_v53, 0.0  ;;  %v2244_v56 = vadd.f32 %v919_v54, %v872_v51 }
 0x104   : > { %v1813_v57 = vpop.f32.mrf.mxu0 }
 0x105   : > { %v950_v58 = vmax.f32 %v2244_v56, 0.0  ;;  %v2247_v59 = vadd.f32 %v1813_v57, %v872_v51  ;;  %v964_v60 = vsel %vm536_vm2, %v952_v55, 0.0 }
 0x106   : > { %965 = vadd.xlane.f32.xlu1 %v964_v60  ;;  %v922_v61 = vpop.f32.mrf.mxu0 }
 0x107   : > { %v953_v62 = vmax.f32 %v2247_v59, 0.0  ;;  %v2251_v63 = vadd.f32 %v922_v61, %v872_v51  ;;  %v958_v0 = vsel %vm536_vm2, %v950_v58, 0.0  ;;  %v1093_v59 = vrot.slane %v807_v19, %v2238_v50 }
 0x108   : > { %v1816_v1 = vpop.f32.mrf.mxu0  ;;  %959 = vadd.xlane.f32.xlu0 %v958_v0 }
 0x109   : > { %v951_v2 = vmax.f32 %v2251_v63, 0.0  ;;  %v2255_v5 = vadd.f32 %v1816_v1, %v872_v51  ;;  %v967_v8 = vsel %vm536_vm2, %v953_v62, 0.0  ;;  %v847_v25 = vpop.f32.mrf.mxu1 }
 0x10a   : > { %v935_v4 = vpop.f32.mrf.mxu0  ;;  %v2287_v30 = vadd.f32 %v847_v25, %v807_v19 }
 0x10b   : > { %v2257_v6 = vadd.f32 %v935_v4, %v872_v51  ;;  %v961_v7 = vsel %vm536_vm2, %v951_v2, 0.0  ;;  %v956_v13 = vmax.f32 %v2255_v5, 0.0  ;;  %v1800_v29 = vpop.f32.mrf.mxu1 }
 0x10c   : > { %v1817_v9 = vpop.f32.mrf.mxu0  ;;  %962 = vadd.xlane.f32.xlu1 %v961_v7  ;;  %968 = vadd.xlane.f32.xlu0 %v967_v8 }
 0x10d   : > { %v954_v10 = vmax.f32 %v2257_v6, 0.0  ;;  %v2267_v14 = vadd.f32 %v1817_v9, %v872_v51  ;;  %v976_v22 = vsel %vm536_vm2, %v956_v13, 0.0  ;;  %v850_v31 = vpop.f32.mrf.mxu1 }
 0x10e   : > { %v938_v12 = vpop.f32.mrf.mxu0 }
 0x10f   : > { %v2269_v16 = vadd.f32 %v938_v12, %v872_v51  ;;  %v970_v17 = vsel %vm536_vm2, %v954_v10, 0.0  ;;  %v957_v21 = vmax.f32 %v2267_v14, 0.0  ;;  %v1801_v32 = vpop.f32.mrf.mxu1 }
 0x110   : > { %971 = vadd.xlane.f32.xlu1 %v970_v17 }
 0x111   : > { %v955_v18 = vmax.f32 %v2269_v16, 0.0  ;;  %v979_v28 = vsel %vm536_vm2, %v957_v21, 0.0 }
 0x113   : > { %v973_v23 = vsel %vm536_vm2, %v955_v18, 0.0 }
 0x114   : > { %977 = vadd.xlane.f32.xlu1 %v976_v22  ;;  %974 = vadd.xlane.f32.xlu0 %v973_v23 }
 0x118   : > { %741 = vadd.xlane.f32.xlu1 %v740_v27  ;;  %980 = vadd.xlane.f32.xlu0 %v979_v28 }
 0x119   : > { %v1828_v38 = vpop.f32.mrf.mxu1 }
 0x11a   : > { %v2350_v32 = vadd.f32 %v1828_v38, %v1093_v59 }
 0x11b   : > { %v1128_v41 = vpop.f32.mrf.mxu1 }
 0x11c   : > { %v2332_v26 = vadd.f32 %v1128_v41, %v1093_v59  ;;  %v1161_v38 = vmax.f32 %v2350_v32, 0.0 }
 0x11d   : > { %v1829_v47 = vpop.f32.mrf.mxu1 }
 0x11f   : > { %v1131_v56 = vpop.f32.mrf.mxu1 }
 0x120   : > { %v2334_v27 = vadd.f32 %v1131_v56, %v1093_v59 }
 0x121   : > { %v1832_v0 = vpop.f32.mrf.mxu1 }
 0x122   : > { %v1160_v11 = vmax.f32 %v2334_v27, 0.0 }
 0x123   : > { %v1144_v12 = vpop.f32.mrf.mxu1 }
 0x124   : > { %v2364_v41 = vadd.f32 %v1144_v12, %v1093_v59 }
 0x17f   : > { %v627_v33 = vpop.xlane.xlu0 %626 }
 0x180   : > { %v629_v34 = vmul.f32 0.03125, %v627_v33  ;;  %v2352_v33 = vadd.f32 %v1829_v47, %v1093_v59  ;;  %v2374_v47 = vadd.f32 %v1832_v0, %v1093_v59 }
 0x182   : > { %v2291_v35 = vsub.f32 %v623_v43, %v629_v34  ;;  %v1159_v34 = vmax.f32 %v2332_v26, 0.0 }
 0x184   : > { %v631_v36 = vmul.f32 %v2291_v35, %v2291_v35 }
 0x186   : > { %v632_v37 = vsel %vm624_vm3, %v631_v36, 0.0 }
 0x187   : > { %633 = vadd.xlane.f32.xlu0 %v632_v37 }
 0x18f   : > { %v966_v40 = vpop.xlane.xlu1 %965 }
 0x190   : > { %v984_v42 = vmul.f32 0.03125, %v966_v40  ;;  %v1162_v40 = vmax.f32 %v2352_v33, 0.0 }
 0x191   : > { %v960_v44 = vpop.xlane.xlu0 %959 }
 0x192   : > { %v2296_v45 = vsub.f32 %v952_v55, %v984_v42  ;;  %v982_v46 = vmul.f32 0.03125, %v960_v44  ;;  %v1170_v42 = vsel %vm536_vm2, %v1160_v11, 0.0  ;;  %v1167_v44 = vsel %vm536_vm2, %v1159_v34, 0.0 }
 0x194   : > { %v2298_v48 = vsub.f32 %v950_v58, %v982_v46  ;;  %v1000_v39 = vmul.f32 %v2296_v45, %v2296_v45 }
 0x195   : > { %v963_v43 = vpop.xlane.xlu1 %962  ;;  %v969_v49 = vpop.xlane.xlu0 %968 }
 0x196   : > { %v983_v51 = vmul.f32 0.03125, %v963_v43  ;;  %v985_v52 = vmul.f32 0.03125, %v969_v49  ;;  %v1012_v53 = vsel %vm536_vm2, %v1000_v39, 0.0  ;;  %v998_v54 = vmul.f32 %v2298_v48, %v2298_v48 }
 0x197   : > { %1013 = vadd.xlane.f32.xlu1 %v1012_v53  ;;  %v1176_v39 = vsel %vm536_vm2, %v1162_v40, 0.0  ;;  %v1163_v43 = vmax.f32 %v2364_v41, 0.0  ;;  %v1165_v53 = vmax.f32 %v2374_v47, 0.0 }
 0x198   : > { %v2305_v55 = vsub.f32 %v951_v2, %v983_v51  ;;  %v2309_v57 = vsub.f32 %v953_v62, %v985_v52  ;;  %v1006_v61 = vsel %vm536_vm2, %v998_v54, 0.0  ;;  %v1173_v52 = vsel %vm536_vm2, %v1161_v38, 0.0 }
 0x199   : > { %v972_v58 = vpop.xlane.xlu1 %971 }
 0x19a   : > { %v986_v60 = vmul.f32 0.03125, %v972_v58  ;;  %v1001_v63 = vmul.f32 %v2309_v57, %v2309_v57  ;;  %v999_v2 = vmul.f32 %v2305_v55, %v2305_v55  ;;  %v1179_v58 = vsel %vm536_vm2, %v1163_v43, 0.0 }
 0x19b   : > { %1007 = vadd.xlane.f32.xlu1 %v1006_v61  ;;  %v1185_v61 = vsel %vm536_vm2, %v1165_v53, 0.0 }
 0x19c   : > { %v2314_v1 = vsub.f32 %v954_v10, %v986_v60  ;;  %v1015_v4 = vsel %vm536_vm2, %v1001_v63, 0.0  ;;  %v1009_v19 = vsel %vm536_vm2, %v999_v2, 0.0 }
 0x19d   : > { %v978_v62 = vpop.xlane.xlu1 %977  ;;  %1016 = vadd.xlane.f32.xlu0 %v1015_v4  ;;  %v975_v6 = vpop.xlane.xlu0 %974 }
 0x19e   : > { %v988_v7 = vmul.f32 0.03125, %v978_v62  ;;  %v987_v8 = vmul.f32 0.03125, %v975_v6  ;;  %v1002_v9 = vmul.f32 %v2314_v1, %v2314_v1 }
 0x1a0   : > { %v2324_v10 = vsub.f32 %v956_v13, %v988_v7  ;;  %v2328_v17 = vsub.f32 %v955_v18, %v987_v8  ;;  %v1018_v22 = vsel %vm536_vm2, %v1002_v9, 0.0  ;;  %v1833_v18 = vpop.f32.mrf.mxu1 }
 0x1a1   : > { %v742_v23 = vpop.xlane.xlu1 %741  ;;  %1019 = vadd.xlane.f32.xlu1 %v1018_v22  ;;  %1010 = vadd.xlane.f32.xlu0 %v1009_v19  ;;  %v981_v15 = vpop.xlane.xlu0 %980  ;;  %v2380_v49 = vadd.f32 %v1833_v18, %v1093_v59 }
 0x1a2   : > { %v743_v28 = vmul.f32 0.03125, %v742_v23  ;;  %v989_v5 = vmul.f32 0.03125, %v981_v15  ;;  %v1004_v13 = vmul.f32 %v2324_v10, %v2324_v10  ;;  %v1003_v16 = vmul.f32 %v2328_v17, %v2328_v17 }
 0x1a3   : > { %v1166_v54 = vmax.f32 %v2380_v49, 0.0 }
 0x1a4   : > { %v2342_v24 = vsub.f32 %v739_v20, %v743_v28  ;;  %v2346_v25 = vsub.f32 %v957_v21, %v989_v5  ;;  %v1024_v29 = vsel %vm536_vm2, %v1004_v13, 0.0  ;;  %v1021_v31 = vsel %vm536_vm2, %v1003_v16, 0.0  ;;  %v1147_v21 = vpop.f32.mrf.mxu1  ;;  %v2404_v5 = vld [vmem:[%s2702_s8] sm:$0x1] }
 0x1a5   : > { %1025 = vadd.xlane.f32.xlu1 %v1024_v29  ;;  %1022 = vadd.xlane.f32.xlu0 %v1021_v31  ;;  %v2372_v46 = vadd.f32 %v1147_v21, %v1093_v59  ;;  %v1188_v60 = vsel %vm536_vm2, %v1166_v54, 0.0 }
 0x1a6   : > { %v745_v20 = vmul.f32 %v2342_v24, %v2342_v24  ;;  %v1005_v14 = vmul.f32 %v2346_v25, %v2346_v25 }
 0x1a7   : > { %v1164_v51 = vmax.f32 %v2372_v46, 0.0 }
 0x1a8   : > { %v746_v36 = vsel %vm624_vm3, %v745_v20, 0.0  ;;  %v1027_v37 = vsel %vm536_vm2, %v1005_v14, 0.0 }
 0x1a9   : > { %747 = vadd.xlane.f32.xlu1 %v746_v36  ;;  %1028 = vadd.xlane.f32.xlu0 %v1027_v37  ;;  %v1182_v56 = vsel %vm536_vm2, %v1164_v51, 0.0  ;;  %v2414_v37 = vrot.slane %v2404_v5, %v2238_v50 }
 0x1ad   : > { %1171 = vadd.xlane.f32.xlu1 %v1170_v42  ;;  %1168 = vadd.xlane.f32.xlu0 %v1167_v44 }
 0x1b1   : > { %1177 = vadd.xlane.f32.xlu1 %v1176_v39  ;;  %1174 = vadd.xlane.f32.xlu0 %v1173_v52 }
 0x1b5   : > { %1183 = vadd.xlane.f32.xlu1 %v1182_v56  ;;  %1180 = vadd.xlane.f32.xlu0 %v1179_v58 }
 0x1b9   : > { %1189 = vadd.xlane.f32.xlu1 %v1188_v60  ;;  %1186 = vadd.xlane.f32.xlu0 %v1185_v61 }
 0x210   : > { %v634_v63 = vpop.xlane.xlu0 %633 }
 0x211   : > { %v635_v0 = vmul.f32 0.03125, %v634_v63 }
 0x213   : > { %v636_v4 = vadd.f32 1e-05, %v635_v0 }
 0x215   : > { %1855 = vrsqrt.f32 %v636_v4 }
 0x220   : > { %v1014_v2 = vpop.xlane.xlu1 %1013 }
 0x221   : > { %v1032_v59 = vmul.f32 0.03125, %v1014_v2 }
 0x222   : > { %v1856_v9 = vpop.eup %1855 }
 0x223   : > { %v1040_v62 = vadd.f32 1e-05, %v1032_v59  ;;  %v638_v23 = vmul.f32 %v1856_v9, %v2291_v35  ;;  %v2410_v35 = vld [vmem:[%s2703_s9] sm:$0x1] }
 0x224   : > { %v1008_v6 = vpop.xlane.xlu1 %1007  ;;  %v2418_v52 = vrot.slane %v2410_v35, %v2238_v50 }
 0x225   : > { %1857 = vrsqrt.f32 %v1040_v62  ;;  %v1030_v7 = vmul.f32 0.03125, %v1008_v6  ;;  %v639_v31 = vmul.f32 %v638_v23, %v2404_v5 }
 0x226   : > { %v1017_v8 = vpop.xlane.xlu0 %1016 }
 0x227   : > { %v1038_v12 = vadd.f32 1e-05, %v1030_v7  ;;  %v1033_v22 = vmul.f32 0.03125, %v1017_v8  ;;  %v2421_v56 = vadd.f32 %v639_v31, %v2410_v35 }
 0x229   : > { %1859 = vrsqrt.f32 %v1038_v12  ;;  %v1041_v19 = vadd.f32 1e-05, %v1033_v22  ;;  %v2427_v6 = vrot.slane %v2421_v56, %v2238_v50 }
 0x22a   : > { %v1020_v15 = vpop.xlane.xlu1 %1019  ;;  %v1011_v28 = vpop.xlane.xlu0 %1010 }
 0x22b   : > { %1861 = vrsqrt.f32 %v1041_v19  ;;  %v1034_v13 = vmul.f32 0.03125, %v1020_v15  ;;  %v1031_v16 = vmul.f32 0.03125, %v1011_v28 }
 0x22d   : > { %v1042_v18 = vadd.f32 1e-05, %v1034_v13  ;;  %v1039_v29 = vadd.f32 1e-05, %v1031_v16 }
 0x22e   : > { %v1026_v20 = vpop.xlane.xlu1 %1025  ;;  %v1023_v14 = vpop.xlane.xlu0 %1022 }
 0x22f   : > { %1863 = vrsqrt.f32 %v1042_v18  ;;  %v1036_v21 = vmul.f32 0.03125, %v1026_v20  ;;  %v1035_v36 = vmul.f32 0.03125, %v1023_v14 }
 0x230   : > { %1865 = vrsqrt.f32 %v1039_v29 }
 0x231   : > { %v1044_v42 = vadd.f32 1e-05, %v1036_v21  ;;  %v1043_v44 = vadd.f32 1e-05, %v1035_v36 }
 0x232   : > { %v1858_v39 = vpop.eup %1857  ;;  %v748_v58 = vpop.xlane.xlu1 %747 }
 0x233   : > { %v1029_v60 = vpop.xlane.xlu0 %1028  ;;  %1867 = vrsqrt.f32 %v1044_v42  ;;  %v749_v61 = vmul.f32 0.03125, %v748_v58  ;;  %v1056_v0 = vmul.f32 %v1858_v39, %v2296_v45 }
 0x234   : > { %v1037_v63 = vmul.f32 0.03125, %v1029_v60  ;;  %1869 = vrsqrt.f32 %v1043_v44 }
 0x235   : > { %v750_v4 = vadd.f32 1e-05, %v749_v61  ;;  %v1070_v59 = vmul.f32 %v2414_v37, %v1056_v0 }
 0x236   : > { %v1045_v2 = vadd.f32 1e-05, %v1037_v63  ;;  %v1860_v62 = vpop.eup %1859  ;;  %v1172_v44 = vpop.xlane.xlu1 %1171 }
 0x237   : > { %1871 = vrsqrt.f32 %v750_v4  ;;  %v1084_v7 = vadd.f32 %v2418_v52, %v1070_v59  ;;  %v1054_v9 = vmul.f32 %v1860_v62, %v2298_v48  ;;  %v1169_v16 = vpop.xlane.xlu0 %1168 }
 0x238   : > { %v1862_v8 = vpop.eup %1861  ;;  %1873 = vrsqrt.f32 %v1045_v2 }
 0x239   : > { %v1293_v12 = vmul.f32 %v2427_v6, %v1084_v7  ;;  %v1057_v45 = vmul.f32 %v1862_v8, %v2309_v57  ;;  %v1068_v22 = vmul.f32 %v2414_v37, %v1054_v9  ;;  %v1191_v7 = vmul.f32 0.03125, %v1169_v16 }
 0x23b   : > { %v1305_v19 = vsel %vm536_vm2, %v1293_v12, 0.0  ;;  %v1071_v23 = vmul.f32 %v2414_v37, %v1057_v45  ;;  %v1082_v28 = vadd.f32 %v2418_v52, %v1068_v22  ;;  %v1175_v61 = vpop.xlane.xlu0 %1174  ;;  %v1178_v22 = vpop.xlane.xlu1 %1177  ;;  %v2467_v16 = vsub.f32 %v1159_v34, %v1191_v7 }
 0x23c   : > { %v1864_v15 = vpop.eup %1863  ;;  %1306 = vadd.xlane.f32.xlu0 %v1305_v19  ;;  %v1194_v26 = vmul.f32 0.03125, %v1178_v22 }
 0x23d   : > { %v1866_v13 = vpop.eup %1865  ;;  %v1085_v18 = vadd.f32 %v2418_v52, %v1071_v23  ;;  %v1058_v48 = vmul.f32 %v1864_v15, %v2314_v1  ;;  %v1291_v29 = vmul.f32 %v2427_v6, %v1082_v28 }
 0x23e   : > { %v1055_v57 = vmul.f32 %v1866_v13, %v2305_v55  ;;  %v1192_v13 = vmul.f32 0.03125, %v1172_v44 }
 0x23f   : > { %v1294_v31 = vmul.f32 %v2427_v6, %v1085_v18  ;;  %v1072_v20 = vmul.f32 %v2414_v37, %v1058_v48  ;;  %v1299_v21 = vsel %vm536_vm2, %v1291_v29, 0.0  ;;  %v1193_v18 = vmul.f32 0.03125, %v1175_v61  ;;  %v1181_v48 = vpop.xlane.xlu0 %1180  ;;  %v1184_v34 = vpop.xlane.xlu1 %1183 }
 0x240   : > { %v1868_v14 = vpop.eup %1867  ;;  %v1069_v36 = vmul.f32 %v2414_v37, %v1055_v57  ;;  %1300 = vadd.xlane.f32.xlu0 %v1299_v21  ;;  %v1195_v44 = vmul.f32 0.03125, %v1181_v48 }
 0x241   : > { %v1870_v42 = vpop.eup %1869  ;;  %v1308_v39 = vsel %vm536_vm2, %v1294_v31, 0.0  ;;  %v1086_v1 = vadd.f32 %v2418_v52, %v1072_v20  ;;  %v1060_v60 = vmul.f32 %v1868_v14, %v2324_v10  ;;  %v2476_v14 = vsub.f32 %v1160_v11, %v1192_v13 }
 0x242   : > { %1309 = vadd.xlane.f32.xlu1 %v1308_v39  ;;  %v1083_v58 = vadd.f32 %v2418_v52, %v1069_v36  ;;  %v1059_v55 = vmul.f32 %v1870_v42, %v2328_v17  ;;  %v1207_v36 = vmul.f32 %v2467_v16, %v2467_v16  ;;  %v2485_v42 = vsub.f32 %v1161_v38, %v1193_v18 }
 0x243   : > { %v1295_v63 = vmul.f32 %v2427_v6, %v1086_v1  ;;  %v1074_v59 = vmul.f32 %v2414_v37, %v1060_v60  ;;  %v1187_v11 = vpop.xlane.xlu0 %1186  ;;  %v2491_v39 = vsub.f32 %v1162_v40, %v1194_v26  ;;  %v1196_v1 = vmul.f32 0.03125, %v1184_v34  ;;  %v1190_v61 = vpop.xlane.xlu1 %1189 }
 0x244   : > { %v1872_v0 = vpop.eup %1871  ;;  %v1292_v4 = vmul.f32 %v2427_v6, %v1083_v58  ;;  %v1073_v2 = vmul.f32 %v2414_v37, %v1059_v55  ;;  %v1215_v58 = vsel %vm536_vm2, %v1207_v36, 0.0  ;;  %v1208_v32 = vmul.f32 %v2476_v14, %v2476_v14 }
 0x245   : > { %v1874_v62 = vpop.eup %1873  ;;  %v1311_v8 = vsel %vm536_vm2, %v1295_v63, 0.0  ;;  %v752_v9 = vmul.f32 %v1872_v0, %v2342_v24  ;;  %v1088_v12 = vadd.f32 %v2418_v52, %v1074_v59  ;;  %v853_v24 = vmax.f32 %v2287_v30, 0.0 }
 0x246   : > { %v1302_v17 = vsel %vm536_vm2, %v1292_v4, 0.0  ;;  %1312 = vadd.xlane.f32.xlu0 %v1311_v8  ;;  %v1087_v10 = vadd.f32 %v2418_v52, %v1073_v2  ;;  %v1061_v45 = vmul.f32 %v1874_v62, %v2346_v25  ;;  %v2498_v38 = vsub.f32 %v1163_v43, %v1195_v44 }
 0x247   : > { %1303 = vadd.xlane.f32.xlu1 %v1302_v17  ;;  %v753_v19 = vmul.f32 %v752_v9, %v2404_v5  ;;  %v1297_v15 = vmul.f32 %v2427_v6, %v1088_v12  ;;  %v854_v21 = vsel %vm624_vm3, %v853_v24, 0.0  ;;  %v1197_v55 = vmul.f32 0.03125, %v1187_v11 }
 0x248   : > { %v1296_v23 = vmul.f32 %v2427_v6, %v1087_v10  ;;  %v1075_v28 = vmul.f32 %v2414_v37, %v1061_v45  ;;  %v1209_v60 = vmul.f32 %v2485_v42, %v2485_v42  ;;  %v2505_v33 = vsub.f32 %v1164_v51, %v1196_v1 }
 0x249   : > { %v1317_v29 = vsel %vm536_vm2, %v1297_v15, 0.0  ;;  %v754_v31 = vadd.f32 %v753_v19, %v2410_v35  ;;  %v1218_v40 = vsel %vm536_vm2, %v1208_v32, 0.0  ;;  %v1210_v41 = vmul.f32 %v2491_v39, %v2491_v39 }
 0x24a   : > { %v1314_v25 = vsel %vm536_vm2, %v1296_v23, 0.0  ;;  %v1089_v57 = vadd.f32 %v2418_v52, %v1075_v28  ;;  %1318 = vadd.xlane.f32.xlu0 %v1317_v29  ;;  %v1198_v43 = vmul.f32 0.03125, %v1190_v61  ;;  %v2512_v63 = vsub.f32 %v1165_v53, %v1197_v55 }
 0x24b   : > { %1315 = vadd.xlane.f32.xlu1 %v1314_v25  ;;  %v1331_v27 = vmul.f32 %v754_v31, %v2421_v56  ;;  %v1221_v0 = vsel %vm536_vm2, %v1209_v60, 0.0  ;;  %v1211_v4 = vmul.f32 %v2498_v38, %v2498_v38  ;;  %v1224_v46 = vsel %vm536_vm2, %v1210_v41, 0.0 }
 0x24c   : > { %v1298_v20 = vmul.f32 %v2427_v6, %v1089_v57  ;;  %v2520_v51 = vsub.f32 %v1166_v54, %v1198_v43  ;;  %v1212_v47 = vmul.f32 %v2505_v33, %v2505_v33  ;;  %v1213_v53 = vmul.f32 %v2512_v63, %v2512_v63 }
 0x24d   : > { %v1332_v56 = vsel %vm624_vm3, %v1331_v27, 0.0  ;;  %v1227_v2 = vsel %vm536_vm2, %v1211_v4, 0.0 }
 0x24e   : > { %v1320_v6 = vsel %vm536_vm2, %v1298_v20, 0.0  ;;  %855 = vadd.xlane.f32.xlu0 %v854_v21  ;;  %v1230_v59 = vsel %vm536_vm2, %v1212_v47, 0.0  ;;  %v1233_v62 = vsel %vm536_vm2, %v1213_v53, 0.0  ;;  %v1214_v7 = vmul.f32 %v2520_v51, %v2520_v51 }
 0x24f   : > { %1321 = vadd.xlane.f32.xlu1 %v1320_v6 }
 0x250   : > { %v1236_v49 = vsel %vm536_vm2, %v1214_v7, 0.0 }
 0x252   : > { %1216 = vadd.xlane.f32.xlu0 %v1215_v58 }
 0x253   : > { %1333 = vadd.xlane.f32.xlu1 %v1332_v56 }
 0x256   : > { %1222 = vadd.xlane.f32.xlu0 %v1221_v0 }
 0x257   : > { %1219 = vadd.xlane.f32.xlu1 %v1218_v40 }
 0x25a   : > { %1228 = vadd.xlane.f32.xlu0 %v1227_v2 }
 0x25b   : > { %1225 = vadd.xlane.f32.xlu1 %v1224_v46 }
 0x25e   : > { %1234 = vadd.xlane.f32.xlu0 %v1233_v62 }
 0x25f   : > { %1231 = vadd.xlane.f32.xlu1 %v1230_v59 }
 0x263   : > { %1237 = vadd.xlane.f32.xlu1 %v1236_v49 }
 0x2c5   : > { %v1307_v54 = vpop.xlane.xlu0 %1306 }
 0x2c6   : > { %v1325_v28 = vmul.f32 0.17677669, %v1307_v54 }
 0x2c9   : > { %v1301_v8 = vpop.xlane.xlu0 %1300 }
 0x2ca   : > { %v1323_v13 = vmul.f32 0.17677669, %v1301_v8 }
 0x2cb   : > { %v1310_v9 = vpop.xlane.xlu1 %1309 }
 0x2cc   : > { %v1326_v25 = vmul.f32 0.17677669, %v1310_v9 }
 0x2cf   : > { %v1313_v17 = vpop.xlane.xlu0 %1312 }
 0x2d0   : > { %v1304_v10 = vpop.xlane.xlu1 %1303  ;;  %v1327_v23 = vmul.f32 0.17677669, %v1313_v17 }
 0x2d1   : > { %v1324_v19 = vmul.f32 0.17677669, %v1304_v10  ;;  %v1443_v10 = vld [vmem:[%s2704_s10 + $0x18] sm:$0xff] }
 0x2d2   : > { %v1336_v20 = vmax.f32 %v1323_v13, %v1327_v23  ;;  %1835 = vmatpush3.msra.mxu0 %v1443_v10  ;;  %v1914_v10 = vld [vmem:[%s2056_s19 + $0x8] sm:$0xff] }
 0x2d3   : > { %v1319_v45 = vpop.xlane.xlu0 %1318  ;;  %1836 = vmatprep.subr.mxu0 %v1929_v3 }
 0x2d4   : > { %v1316_v12 = vpop.xlane.xlu1 %1315  ;;  %v1329_v15 = vmul.f32 0.17677669, %v1319_v45 }
 0x2d5   : > { %v1328_v22 = vmul.f32 0.17677669, %v1316_v12  ;;  %v1442_v12 = vld [vmem:[%s2704_s10 + $0x10] sm:$0xff] }
 0x2d6   : > { %v1338_v26 = vmax.f32 %v1325_v28, %v1329_v15  ;;  %1837 = vmatpush3.msra.mxu0 %v1442_v12 }
 0x2d7   : > { %v856_v48 = vpop.xlane.xlu0 %855  ;;  %v1337_v29 = vmax.f32 %v1324_v19, %v1328_v22  ;;  %1838 = vmatprep.subr.mxu0 %v1929_v3 }
 0x2d8   : > { %v1322_v18 = vpop.xlane.xlu1 %1321  ;;  %v857_v31 = vmul.f32 0.03125, %v856_v48 }
 0x2d9   : > { %v1330_v57 = vmul.f32 0.17677669, %v1322_v18  ;;  %v1340_v36 = vmax.f32 %v1336_v20, %v1337_v29 }
 0x2da   : > { %v2534_v21 = vsub.f32 %v853_v24, %v857_v31 }
 0x2db   : > { %v1339_v34 = vmax.f32 %v1326_v25, %v1330_v57 }
 0x2dc   : > { %v859_v6 = vmul.f32 %v2534_v21, %v2534_v21  ;;  %v1334_v56 = vpop.xlane.xlu1 %1333 }
 0x2dd   : > { %v1341_v44 = vmax.f32 %v1338_v26, %v1339_v34  ;;  %v1335_v61 = vmul.f32 0.17677669, %v1334_v56 }
 0x2de   : > { %v860_v11 = vsel %vm624_vm3, %v859_v6, 0.0 }
 0x2df   : > { %v1342_v27 = vmax.f32 %v1340_v36, %v1341_v44  ;;  %861 = vadd.xlane.f32.xlu0 %v860_v11 }
 0x2e1   : > { %v1343_v1 = vrot.slane %v1342_v27, 4 }
 0x2e3   : > { %v1344_v58 = vmax.f32 %v1342_v27, %v1343_v1 }
 0x2e5   : > { %v1345_v32 = vrot.slane %v1344_v58, 2 }
 0x2e7   : > { %v1346_v55 = vmax.f32 %v1344_v58, %v1345_v32 }
 0x2e9   : > { %v1347_v60 = vrot.slane %v1346_v55, 1 }
 0x2eb   : > { %v1348_v40 = vmax.f32 %v1346_v55, %v1347_v60  ;;  %v1217_v60 = vpop.xlane.xlu0 %1216 }
 0x2ed   : > { %v1349_v30 = vmax.f32 %v1348_v40, %v1335_v61  ;;  %v1239_v40 = vmul.f32 0.03125, %v1217_v60 }
 0x2ef   : > { %v1353_v24 = vrot.slane %v1349_v30, %v2238_v50  ;;  %v1378_v48 = vsub.f32 %v1335_v61, %v1349_v30  ;;  %v1220_v61 = vpop.xlane.xlu1 %1219 }
 0x2f0   : > { %v1240_v30 = vmul.f32 0.03125, %v1220_v61 }
 0x2f1   : > { %v1354_v41 = vsub.f32 %v1323_v13, %v1353_v24  ;;  %v1355_v43 = vsub.f32 %v1324_v19, %v1353_v24  ;;  %v1356_v0 = vsub.f32 %v1325_v28, %v1353_v24  ;;  %v1357_v4 = vsub.f32 %v1326_v25, %v1353_v24 }
 0x2f2   : > { %v1358_v47 = vsub.f32 %v1327_v23, %v1353_v24  ;;  %v1359_v59 = vsub.f32 %v1328_v22, %v1353_v24  ;;  %v1360_v7 = vsub.f32 %v1329_v15, %v1353_v24  ;;  %v1361_v54 = vsub.f32 %v1330_v57, %v1353_v24  ;;  %v1441_v22 = vld [vmem:[%s2704_s10 + $0x8] sm:$0xff]  ;;  %v1440_v15 = vld [vmem:[%s2704_s10] sm:$0xff] }
 0x2f3   : > { %v1362_v46 = vmul.f32 1.442695, %v1354_v41  ;;  %v1364_v2 = vmul.f32 1.442695, %v1355_v43  ;;  %v1366_v53 = vmul.f32 1.442695, %v1356_v0  ;;  %1839 = vmatpush3.msra.mxu0 %v1441_v22  ;;  %v1223_v43 = vpop.xlane.xlu0 %1222 }
 0x2f4   : > { %v1368_v62 = vmul.f32 1.442695, %v1357_v4  ;;  %v1370_v49 = vmul.f32 1.442695, %v1358_v47  ;;  %v1372_v8 = vmul.f32 1.442695, %v1359_v59  ;;  %1840 = vmatprep.subr.mxu0 %v1929_v3  ;;  %v1226_v47 = vpop.xlane.xlu1 %1225 }
 0x2f5   : > { %1875 = vpow2.f32 %v1362_v46  ;;  %v1374_v9 = vmul.f32 1.442695, %v1360_v7  ;;  %v1376_v17 = vmul.f32 1.442695, %v1361_v54  ;;  %1841 = vmatpush3.msra.mxu0 %v1440_v15  ;;  %v1379_v20 = vmul.f32 1.442695, %v1378_v48 }
 0x2f6   : > { %1877 = vpow2.f32 %v1364_v2  ;;  %v1247_v24 = vadd.f32 1e-05, %v1239_v40  ;;  %v1248_v41 = vadd.f32 1e-05, %v1240_v30  ;;  %v1241_v2 = vmul.f32 0.03125, %v1223_v43  ;;  %v1915_v22 = vld [vmem:[%s2056_s19 + $0x10] sm:$0xff] }
 0x2f7   : > { %1879 = vpow2.f32 %v1366_v53  ;;  %v1916_v15 = vld [vmem:[%s2056_s19 + $0x18] sm:$0xff] }
 0x2f8   : > { %1881 = vpow2.f32 %v1368_v62 }
 0x2f9   : > { %1883 = vpow2.f32 %v1370_v49 }
 0x2fa   : > { %1885 = vpow2.f32 %v1372_v8 }
 0x2fb   : > { %1887 = vpow2.f32 %v1374_v9  ;;  %v1913_v9 = vld [vmem:[%s2056_s19] sm:$0xff] }
 0x2fc   : > { %1889 = vpow2.f32 %v1376_v17 }
 0x2fd   : > { %1891 = vpow2.f32 %v1379_v20  ;;  %v1919_v20 = vld [vmem:[%s2056_s19 + $0x30] sm:$0xff] }
 0x302   : > { %v1876_v45 = vpop.eup %1875 }
 0x303   : > { %v1878_v19 = vpop.eup %1877 }
 0x304   : > { %v1381_v23 = vadd.f32 %v1878_v19, %v1876_v45  ;;  %v1880_v28 = vpop.eup %1879 }
 0x305   : > { %v1882_v18 = vpop.eup %1881 }
 0x306   : > { %v1382_v13 = vadd.f32 %v1880_v28, %v1381_v23  ;;  %v1884_v29 = vpop.eup %1883  ;;  %v1249_v23 = vadd.f32 1e-05, %v1241_v2 }
 0x307   : > { %v1886_v31 = vpop.eup %1885 }
 0x308   : > { %v1383_v25 = vadd.f32 %v1882_v18, %v1382_v13  ;;  %v1888_v34 = vpop.eup %1887  ;;  %v1229_v13 = vpop.xlane.xlu0 %1228 }
 0x309   : > { %v1890_v44 = vpop.eup %1889 }
 0x30a   : > { %v1384_v57 = vadd.f32 %v1884_v29, %v1383_v25  ;;  %v1892_v55 = vpop.eup %1891 }
 0x30c   : > { %v1385_v26 = vadd.f32 %v1886_v31, %v1384_v57  ;;  %v1918_v57 = vld [vmem:[%s2056_s19 + $0x28] sm:$0xff] }
 0x30e   : > { %v1386_v36 = vadd.f32 %v1888_v34, %v1385_v26 }
 0x310   : > { %v1387_v6 = vadd.f32 %v1890_v44, %v1386_v36 }
 0x312   : > { %v1388_v27 = vrot.slane %v1387_v6, 4 }
 0x314   : > { %v1389_v11 = vadd.f32 %v1388_v27, %v1387_v6 }
 0x316   : > { %v1390_v1 = vrot.slane %v1389_v11, 2 }
 0x318   : > { %v1391_v58 = vadd.f32 %v1390_v1, %v1389_v11 }
 0x31a   : > { %v1392_v32 = vrot.slane %v1391_v58, 1 }
 0x31c   : > { %v1393_v3 = vadd.f32 %v1392_v32, %v1391_v58  ;;  %v1235_v58 = vpop.xlane.xlu0 %1234 }
 0x31e   : > { %v1394_v56 = vadd.f32 %v1892_v55, %v1393_v3  ;;  %v1245_v3 = vmul.f32 0.03125, %v1235_v58 }
 0x320   : > { %1893 = vrcp.f32 %v1394_v56  ;;  %v1253_v61 = vadd.f32 1e-05, %v1245_v3 }
 0x321   : > { %1895 = vrsqrt.f32 %v1247_v24 }
 0x322   : > { %1897 = vrsqrt.f32 %v1248_v41 }
 0x323   : > { %1899 = vrsqrt.f32 %v1249_v23 }
 0x32d   : > { %v1894_v0 = vpop.eup %1893 }
 0x32e   : > { %v1399_v4 = vrot.slane %v1894_v0, %v2238_v50  ;;  %v2556_v46 = vmul.f32 %v1894_v0, %v1892_v55  ;;  %v1896_v27 = vpop.eup %1895 }
 0x32f   : > { %v1898_v1 = vpop.eup %1897  ;;  %v1263_v56 = vmul.f32 %v1896_v27, %v2467_v16 }
 0x330   : > { %v2564_v53 = vmul.f32 %v1876_v45, %v1399_v4  ;;  %v2566_v50 = vmul.f32 %v1878_v19, %v1399_v4  ;;  %v2568_v59 = vmul.f32 %v1880_v28, %v1399_v4  ;;  %v2570_v62 = vmul.f32 %v1882_v18, %v1399_v4  ;;  %v1917_v18 = vld [vmem:[%s2056_s19 + $0x20] sm:$0xff]  ;;  %v1900_v30 = vpop.eup %1899 }
 0x331   : > { %v2578_v7 = vmul.f32 %v1884_v29, %v1399_v4  ;;  %v2580_v49 = vmul.f32 %v1886_v31, %v1399_v4  ;;  %v2582_v54 = vmul.f32 %v1888_v34, %v1399_v4  ;;  %v2584_v8 = vmul.f32 %v1890_v44, %v1399_v4  ;;  %v1920_v34 = vld [vmem:[%s2056_s19 + $0x38] sm:$0xff]  ;;  %v1232_v44 = vpop.xlane.xlu1 %1231 }
 0x332   : > { %v1517_v17 = vmul.f32 %v1913_v9, %v2564_v53  ;;  %1536 = vst.msk [vmem:[%s2562_s24] sm:$0xff] %vm1535_vm4, %v2564_v53  ;;  %v1518_v12 = vmul.f32 %v1914_v10, %v2566_v50  ;;  %1537 = vst.msk [vmem:[%s2562_s24 + $0x8] sm:$0xff] %vm1535_vm4, %v2566_v50  ;;  %v1242_v45 = vmul.f32 0.03125, %v1226_v47  ;;  %v1519_v19 = vmul.f32 %v1915_v22, %v2568_v59 }
 0x333   : > { %1538 = vst.msk [vmem:[%s2562_s24 + $0x10] sm:$0xff] %vm1535_vm4, %v2568_v59  ;;  %1539 = vst.msk [vmem:[%s2562_s24 + $0x18] sm:$0xff] %vm1535_vm4, %v2570_v62  ;;  %v1520_v28 = vmul.f32 %v1916_v15, %v2570_v62  ;;  %v1521_v48 = vmul.f32 %v1917_v18, %v2578_v7  ;;  %v1243_v29 = vmul.f32 0.03125, %v1229_v13  ;;  %v1522_v31 = vmul.f32 %v1918_v57, %v2580_v49 }
 0x334   : > { %1540 = vst.msk [vmem:[%s2562_s24 + $0x20] sm:$0xff] %vm1535_vm4, %v2578_v7  ;;  %1541 = vst.msk [vmem:[%s2562_s24 + $0x28] sm:$0xff] %vm1535_vm4, %v2580_v49  ;;  %v1250_v25 = vadd.f32 1e-05, %v1242_v45  ;;  %v1523_v26 = vmul.f32 %v1919_v20, %v2582_v54  ;;  %v1524_v36 = vmul.f32 %v1920_v34, %v2584_v8  ;;  %v1244_v11 = vmul.f32 0.03125, %v1232_v44 }
 0x335   : > { %1542 = vst.msk [vmem:[%s2562_s24 + $0x30] sm:$0xff] %vm1535_vm4, %v2582_v54  ;;  %1543 = vst.msk [vmem:[%s2562_s24 + $0x38] sm:$0xff] %vm1535_vm4, %v2584_v8  ;;  %v1251_v6 = vadd.f32 1e-05, %v1243_v29  ;;  %v1238_v55 = vpop.xlane.xlu1 %1237  ;;  %v1264_v60 = vmul.f32 %v1898_v1, %v2476_v14  ;;  %v1271_v24 = vmul.f32 %v1263_v56, %v2414_v37  ;;  %v1265_v0 = vmul.f32 %v1900_v30, %v2485_v42 }
 0x336   : > { %1525 = vst.msk [vmem:[%s2576_s29] sm:$0xff] %vm488_vm1, %v1517_v17  ;;  %1526 = vst.msk [vmem:[%s2576_s29 + $0x8] sm:$0xff] %vm488_vm1, %v1518_v12  ;;  %1901 = vrsqrt.f32 %v1250_v25  ;;  %v1252_v32 = vadd.f32 1e-05, %v1244_v11  ;;  %v1246_v40 = vmul.f32 0.03125, %v1238_v55 }
 0x337   : > { %1527 = vst.msk [vmem:[%s2576_s29 + $0x10] sm:$0xff] %vm488_vm1, %v1519_v19  ;;  %1528 = vst.msk [vmem:[%s2576_s29 + $0x18] sm:$0xff] %vm488_vm1, %v1520_v28  ;;  %1903 = vrsqrt.f32 %v1251_v6  ;;  %v1272_v41 = vmul.f32 %v1264_v60, %v2414_v37  ;;  %v1279_v2 = vadd.f32 %v1271_v24, %v2418_v52  ;;  %v1273_v10 = vmul.f32 %v1265_v0, %v2414_v37 }
 0x338   : > { %1529 = vst.msk [vmem:[%s2576_s29 + $0x20] sm:$0xff] %vm488_vm1, %v1521_v48  ;;  %1530 = vst.msk [vmem:[%s2576_s29 + $0x28] sm:$0xff] %vm488_vm1, %v1522_v31  ;;  %1905 = vrsqrt.f32 %v1252_v32  ;;  %v1254_v4 = vadd.f32 1e-05, %v1246_v40 }
 0x339   : > { %1531 = vst.msk [vmem:[%s2576_s29 + $0x30] sm:$0xff] %vm488_vm1, %v1523_v26  ;;  %1532 = vst.msk [vmem:[%s2576_s29 + $0x38] sm:$0xff] %vm488_vm1, %v1524_v36  ;;  %1907 = vrsqrt.f32 %v1253_v61  ;;  %v1280_v47 = vadd.f32 %v1272_v41, %v2418_v52  ;;  %v1409_v9 = vmul.f32 %v2564_v53, %v1279_v2  ;;  %v1281_v22 = vadd.f32 %v1273_v10, %v2418_v52 }
 0x33a   : > { %1909 = vrsqrt.f32 %v1254_v4 }
 0x33b   : > { %v1410_v17 = vmul.f32 %v2566_v50, %v1280_v47  ;;  %v1417_v42 = vsel %vm536_vm2, %v1409_v9, 0.0 }
 0x33d   : > { %v1418_v45 = vsel %vm536_vm2, %v1410_v17, 0.0 }
 0x33e   : > { %v1419_v15 = vadd.f32 %v1418_v45, %v1417_v42 }
 0x343   : > { %v1902_v43 = vpop.eup %1901 }
 0x344   : > { %v1266_v16 = vmul.f32 %v1902_v43, %v2491_v39  ;;  %v1904_v14 = vpop.eup %1903  ;;  %v1411_v39 = vmul.f32 %v2568_v59, %v1281_v22 }
 0x345   : > { %v1267_v12 = vmul.f32 %v1904_v14, %v2498_v38  ;;  %v1906_v23 = vpop.eup %1905 }
 0x346   : > { %v1274_v19 = vmul.f32 %v1266_v16, %v2414_v37  ;;  %v1268_v28 = vmul.f32 %v1906_v23, %v2505_v33  ;;  %v1908_v13 = vpop.eup %1907  ;;  %v1420_v38 = vsel %vm536_vm2, %v1411_v39, 0.0 }
 0x347   : > { %v1275_v50 = vmul.f32 %v1267_v12, %v2414_v37  ;;  %v1421_v48 = vadd.f32 %v1420_v38, %v1419_v15  ;;  %v1269_v57 = vmul.f32 %v1908_v13, %v2512_v63  ;;  %v1910_v59 = vpop.eup %1909 }
 0x348   : > { %v1282_v53 = vadd.f32 %v1274_v19, %v2418_v52  ;;  %v1276_v29 = vmul.f32 %v1268_v28, %v2414_v37  ;;  %v1270_v36 = vmul.f32 %v1910_v59, %v2520_v51 }
 0x349   : > { %v1283_v25 = vadd.f32 %v1275_v50, %v2418_v52  ;;  %v1277_v34 = vmul.f32 %v1269_v57, %v2414_v37 }
 0x34a   : > { %v1412_v18 = vmul.f32 %v2570_v62, %v1282_v53  ;;  %v1284_v33 = vadd.f32 %v1276_v29, %v2418_v52  ;;  %v1278_v63 = vmul.f32 %v1270_v36, %v2414_v37 }
 0x34b   : > { %v1413_v20 = vmul.f32 %v2578_v7, %v1283_v25  ;;  %v1285_v27 = vadd.f32 %v1277_v34, %v2418_v52 }
 0x34c   : > { %v1422_v31 = vsel %vm536_vm2, %v1412_v18, 0.0  ;;  %v1414_v44 = vmul.f32 %v2580_v49, %v1284_v33  ;;  %v1286_v58 = vadd.f32 %v1278_v63, %v2418_v52 }
 0x34d   : > { %v1423_v26 = vadd.f32 %v1422_v31, %v1421_v48  ;;  %v1424_v62 = vsel %vm536_vm2, %v1413_v20, 0.0  ;;  %v1415_v7 = vmul.f32 %v2582_v54, %v1285_v27 }
 0x34e   : > { %v1426_v11 = vsel %vm536_vm2, %v1414_v44, 0.0  ;;  %v1416_v51 = vmul.f32 %v2584_v8, %v1286_v58 }
 0x34f   : > { %v1425_v6 = vadd.f32 %v1424_v62, %v1423_v26  ;;  %v1428_v32 = vsel %vm536_vm2, %v1415_v7, 0.0 }
 0x350   : > { %v1430_v55 = vsel %vm536_vm2, %v1416_v51, 0.0 }
 0x351   : > { %v1427_v1 = vadd.f32 %v1426_v11, %v1425_v6 }
 0x353   : > { %v1429_v3 = vadd.f32 %v1428_v32, %v1427_v1 }
 0x355   : > { %v1431_v56 = vadd.f32 %v1430_v55, %v1429_v3 }
 0x357   : > { %v1432_v37 = vrot.slane %v1431_v56, 4 }
 0x359   : > { %v1433_v40 = vadd.f32 %v1432_v37, %v1431_v56 }
 0x35b   : > { %v1434_v30 = vrot.slane %v1433_v40, 2 }
 0x35d   : > { %v1435_v54 = vadd.f32 %v1434_v30, %v1433_v40 }
 0x35f   : > { %v1436_v43 = vrot.slane %v1435_v54, 1 }
 0x361   : > { %v1437_v0 = vadd.f32 %v1436_v43, %v1435_v54 }
 0x368   : > { %v862_v49 = vpop.xlane.xlu0 %861 }
 0x369   : > { %v863_v60 = vmul.f32 0.03125, %v862_v49 }
 0x36b   : > { %v864_v61 = vadd.f32 1e-05, %v863_v60 }
 0x36d   : > { %1911 = vrsqrt.f32 %v864_v61 }
 0x37a   : > { %v1912_v24 = vpop.eup %1911 }
 0x37b   : > { %v866_v52 = vmul.f32 %v1912_v24, %v2534_v21 }
 0x37d   : > { %v867_v41 = vmul.f32 %v866_v52, %v2404_v5 }
 0x37f   : > { %v868_v8 = vadd.f32 %v867_v41, %v2410_v35 }
 0x381   : > { %v1438_v4 = vmul.f32 %v2556_v46, %v868_v8 }
 0x383   : > { %v1439_v2 = vadd.f32 %v1438_v4, %v1437_v0 }
 0x385   : > { %1843 = vmatmul.mubr.msk.f32.vlgmr.msra.gmra.mxu0 %vm536_vm2, %v1439_v2 }
 0x445   : > { %v1513_v47 = vpop.f32.mrf.mxu0 }
 0x446   : > { %1534 = vst.msk [vmem:[%s470_s30] sm:$0x1] %vm1533_vm5, %v1513_v47 }
 0x447   : > { %v1844_v16 = vpop.f32.mrf.mxu0 }
 0x448 PF: > { %s24_s25 = sadd.s32 1, %s1927_s25  }
 0x449   : > { %p21_p4 = scmp.ge.s32.totalorder %s24_s25, 4  }
 0x44b   :  { %23 = sbr.rel (!%p21_p4) target bundleno = 1 (0x1), region = 121 }

// kernel: forward.22
= control target key start
LH: loop header
LB: loop body
LE: loop exit
PB: predicated region body
PF: predicated region fallthrough
CT: control target
= control target key end

     0   :  { %vm372_vm0 = vcmask 523264   ;;  %s884_s1 = inlined_call_operand.vmem [shape: bf16[576,128], index: 1, kind: input, shape index: {}]   ;;  %s885_s0 = inlined_call_operand.vmem [shape: bf16[32,576], index: 0, kind: input, shape index: {}]   ;;  %s886_s2 = inlined_call_operand.vmem [shape: f32[1,128], index: 2, kind: input, shape index: {}]   ;;  %s887_s3 = inlined_call_operand.vmem [shape: f32[32,128], index: 3, kind: output, shape index: {}]  }
   0x1   :  { %v661_v0 = vld [vmem:[%s884_s1 + $0x78] sm:$0xff]   ;;  %v665_v4 = vld [vmem:[%s884_s1 + $0x70] sm:$0xff]   ;;  %v669_v8 = vld [vmem:[%s884_s1 + $0x68] sm:$0xff]  }
   0x2   :  { %v662_v1 = vld [vmem:[%s884_s1 + $0xf8] sm:$0xff]   ;;  %587 = vmatprep.subr.bf16.mxu0 %v661_v0  ;;  %v666_v5 = vld [vmem:[%s884_s1 + $0xf0] sm:$0xff]   ;;  %v670_v9 = vld [vmem:[%s884_s1 + $0xe8] sm:$0xff]  }
   0x3   :  { %v663_v2 = vld [vmem:[%s884_s1 + $0x38] sm:$0xff]   ;;  %615 = vmatprep.subr.bf16.mxu1 %v662_v1  ;;  %v667_v6 = vld [vmem:[%s884_s1 + $0x30] sm:$0xff]   ;;  %v671_v10 = vld [vmem:[%s884_s1 + $0x28] sm:$0xff]  }
   0x4   :  { %v664_v3 = vld [vmem:[%s884_s1 + $0xb8] sm:$0xff]   ;;  %588 = vmatpush3.bf16.msra.mxu0 %v663_v2  ;;  %v668_v7 = vld [vmem:[%s884_s1 + $0xb0] sm:$0xff]   ;;  %v672_v11 = vld [vmem:[%s884_s1 + $0xa8] sm:$0xff]  }
   0x5   :  { %616 = vmatpush3.bf16.msra.mxu1 %v664_v3  ;;  %589 = vmatprep.subr.bf16.mxu0 %v665_v4  ;;  %v673_v12 = vld [vmem:[%s884_s1 + $0x60] sm:$0xff]   ;;  %v677_v16 = vld [vmem:[%s884_s1 + $0x58] sm:$0xff]   ;;  %v681_v20 = vld [vmem:[%s884_s1 + $0x50] sm:$0xff]  }
   0x6   :  { %617 = vmatprep.subr.bf16.mxu1 %v666_v5  ;;  %v674_v13 = vld [vmem:[%s884_s1 + $0xe0] sm:$0xff]   ;;  %v678_v17 = vld [vmem:[%s884_s1 + $0xd8] sm:$0xff]   ;;  %v682_v21 = vld [vmem:[%s884_s1 + $0xd0] sm:$0xff]  }
   0x7   :  { %v675_v14 = vld [vmem:[%s884_s1 + $0x20] sm:$0xff]   ;;  %v679_v18 = vld [vmem:[%s884_s1 + $0x18] sm:$0xff]   ;;  %v683_v22 = vld [vmem:[%s884_s1 + $0x10] sm:$0xff]  }
   0x8   :  { %590 = vmatpush3.bf16.msra.mxu0 %v667_v6  ;;  %v676_v15 = vld [vmem:[%s884_s1 + $0xa0] sm:$0xff]   ;;  %v680_v19 = vld [vmem:[%s884_s1 + $0x98] sm:$0xff]   ;;  %v684_v23 = vld [vmem:[%s884_s1 + $0x90] sm:$0xff]  }
   0x9   :  { %618 = vmatpush3.bf16.msra.mxu1 %v668_v7  ;;  %591 = vmatprep.subr.bf16.mxu0 %v669_v8  ;;  %v685_v24 = vld [vmem:[%s884_s1 + $0x48] sm:$0xff]   ;;  %v689_v28 = vld [vmem:[%s884_s1 + $0x40] sm:$0xff]   ;;  %v699_v36 = vld [vmem:[%s884_s1 + $0x118] sm:$0xff]  }
   0xa   :  { %619 = vmatprep.subr.bf16.mxu1 %v670_v9  ;;  %v686_v25 = vld [vmem:[%s884_s1 + $0xc8] sm:$0xff]   ;;  %v690_v29 = vld [vmem:[%s884_s1 + $0xc0] sm:$0xff]   ;;  %v700_v37 = vld [vmem:[%s884_s1 + $0x110] sm:$0xff]  }
   0xb   :  { %v687_v26 = vld [vmem:[%s884_s1 + $0x8] sm:$0xff]   ;;  %v691_v30 = vld [vmem:[%s884_s1] sm:$0xff]  }
   0xc   :  { %592 = vmatpush3.bf16.msra.mxu0 %v671_v10  ;;  %v688_v27 = vld [vmem:[%s884_s1 + $0x88] sm:$0xff]   ;;  %v692_v31 = vld [vmem:[%s884_s1 + $0x80] sm:$0xff]  }
   0xd   :  { %620 = vmatpush3.bf16.msra.mxu1 %v672_v11  ;;  %593 = vmatprep.subr.bf16.mxu0 %v673_v12  ;;  %v693_v32 = vld [vmem:[%s885_s0] ss:$20 sps:$4 sm:$0xff]   ;;  %v695_v33 = vld [vmem:[%s885_s0 + $0x4] ss:$20 sps:$4 sm:$0xff]   ;;  %v696_v34 = vld [vmem:[%s885_s0 + $0x8] ss:$20 sps:$4 sm:$0xff]  }
   0xe   :  { %621 = vmatprep.subr.bf16.mxu1 %v674_v13  ;;  %v698_v35 = vld [vmem:[%s885_s0 + $0xc] ss:$20 sps:$4 sm:$0xff]   ;;  %411 = vmatprep.mubr.bf16.mxu0 %v695_v33  ;;  %v703_v39 = vld [vmem:[%s885_s0 + $0x34] ss:$20 sps:$4 sm:$0xff]   ;;  %v706_v42 = vld [vmem:[%s885_s0 + $0x30] ss:$20 sps:$4 sm:$0xff]  }
   0xf   :  { %460 = vmatprep.mubr.bf16.mxu1 %v698_v35  ;;  %v701_v38 = vld [vmem:[%s885_s0 + $0x2c] ss:$20 sps:$4 sm:$0xff]   ;;  %v705_v40 = vld [vmem:[%s885_s0 + $0x28] ss:$20 sps:$4 sm:$0xff]   ;;  %v709_v43 = vld [vmem:[%s885_s0 + $0x10] ss:$20 sps:$4 sm:$0xff]  }
  0x10   :  { %594 = vmatpush3.bf16.msra.mxu0 %v675_v14  ;;  %v707_v41 = vld [vmem:[%s884_s1 + $0x108] sm:$0xff]   ;;  %v708_v44 = vld [vmem:[%s884_s1 + $0x100] sm:$0xff]  }
  0x11   :  { %622 = vmatpush3.bf16.msra.mxu1 %v676_v15  ;;  %595 = vmatprep.subr.bf16.mxu0 %v677_v16  ;;  %v710_v45 = vld [vmem:[%s885_s0 + $0x38] ss:$20 sps:$4 sm:$0xff]   ;;  %v538_v58 = vld [vmem:[%s886_s2] ss:$0 sm:$0xff] }
  0x12   :  { %623 = vmatprep.subr.bf16.mxu1 %v678_v17 }
  0x14   :  { %596 = vmatpush3.bf16.msra.mxu0 %v679_v18 }
  0x15   :  { %624 = vmatpush3.bf16.msra.mxu1 %v680_v19  ;;  %597 = vmatprep.subr.bf16.mxu0 %v681_v20 }
  0x16   :  { %625 = vmatprep.subr.bf16.mxu1 %v682_v21 }
  0x18   :  { %598 = vmatpush3.bf16.msra.mxu0 %v683_v22 }
  0x19   :  { %626 = vmatpush3.bf16.msra.mxu1 %v684_v23  ;;  %599 = vmatprep.subr.bf16.mxu0 %v685_v24 }
  0x1a   :  { %627 = vmatprep.subr.bf16.mxu1 %v686_v25 }
  0x1c   :  { %600 = vmatpush3.bf16.msra.mxu0 %v687_v26 }
  0x1d   :  { %628 = vmatpush3.bf16.msra.mxu1 %v688_v27  ;;  %601 = vmatprep.subr.bf16.mxu0 %v689_v28 }
  0x1e   :  { %629 = vmatprep.subr.bf16.mxu1 %v690_v29 }
  0x20   :  { %602 = vmatpush3.bf16.msra.mxu0 %v691_v30 }
  0x21   :  { %630 = vmatpush3.bf16.msra.mxu1 %v692_v31  ;;  %649 = vmatprep.subr.bf16.mxu0 %v699_v36 }
  0x23   :  { %412 = vmatmul.mubr.bf16.vlgmr.msra.gmra.mxu0 %v693_v32 }
  0x24   :  { %461 = vmatmul.mubr.bf16.vlgmr.msra.gmra.mxu1 %v696_v34  ;;  %650 = vmatpush3.bf16.msra.mxu0 %v699_v36 }
  0x25   :  { %651 = vmatprep.subr.bf16.mxu0 %v700_v37  ;;  %419 = vmatprep.mubr.bf16.mxu0 %v701_v38 }
  0x26   :  { %468 = vmatprep.mubr.bf16.mxu1 %v703_v39 }
  0x28   :  { %652 = vmatpush3.bf16.msra.mxu0 %v700_v37 }
  0x29   :  { %653 = vmatprep.subr.bf16.mxu0 %v707_v41 }
  0x2b   :  { %420 = vmatmul.mubr.bf16.gmra.mxu0 %v705_v40 }
  0x2c   :  { %469 = vmatmul.mubr.bf16.gmra.mxu1 %v706_v42  ;;  %657 = vmatprep.mubr.msk.bf16.mxu0 %vm372_vm0, %v709_v43 }
  0x2d   :  { %654 = vmatpush3.bf16.msra.mxu0 %v707_v41 }
  0x2e   :  { %655 = vmatprep.subr.bf16.mxu0 %v708_v44 }
  0x31   :  { %656 = vmatpush3.bf16.msra.mxu0 %v708_v44 }
  0x34   :  { %658 = vmatmul.mubr.msk.bf16.vlgmr.msra.gmra.mxu0 %vm372_vm0, %v710_v45 }
  0xe3   :  { %v603_v46 = vpop.f32.mrf.mxu0 }
  0xe4   :  { %v631_v47 = vpop.f32.mrf.mxu1 }
  0xe5   :  { %v604_v48 = vpop.f32.mrf.mxu0 }
  0xe6   :  { %v632_v49 = vpop.f32.mrf.mxu1  ;;  %v605_v56 = vadd.f32 %v604_v48, %v603_v46 }
  0xe7   :  { %v606_v50 = vpop.f32.mrf.mxu0  ;;  %v633_v2 = vadd.f32 %v632_v49, %v631_v47 }
  0xe8   :  { %v634_v51 = vpop.f32.mrf.mxu1  ;;  %v414_v1 = vadd.f32 %v605_v56, %v538_v58 }
  0xe9   :  { %v607_v52 = vpop.f32.mrf.mxu0 }
  0xea   :  { %v635_v53 = vpop.f32.mrf.mxu1  ;;  %v608_v3 = vadd.f32 %v607_v52, %v606_v50  ;;  %v463_v13 = vadd.f32 %v633_v2, %v414_v1 }
  0xeb   :  { %v609_v54 = vpop.f32.mrf.mxu0  ;;  %v636_v16 = vadd.f32 %v635_v53, %v634_v51 }
  0xec   :  { %v637_v55 = vpop.f32.mrf.mxu1  ;;  %v417_v11 = vadd.f32 %v608_v3, %v538_v58 }
  0xed   :  { %v610_v57 = vpop.f32.mrf.mxu0 }
  0xee   :  { %v611_v59 = vadd.f32 %v610_v57, %v609_v54  ;;  %v638_v60 = vpop.f32.mrf.mxu1  ;;  %v466_v22 = vadd.f32 %v636_v16, %v417_v11 }
  0xef   :  { %v639_v61 = vadd.f32 %v638_v60, %v637_v55  ;;  %v612_v62 = vpop.f32.mrf.mxu0 }
  0xf0   :  { %v422_v63 = vadd.f32 %v611_v59, %v538_v58  ;;  %v640_v0 = vpop.f32.mrf.mxu1 }
  0xf1   :  { %v613_v4 = vpop.f32.mrf.mxu0 }
  0xf2   :  { %v614_v5 = vadd.f32 %v613_v4, %v612_v62  ;;  %v641_v6 = vpop.f32.mrf.mxu1  ;;  %v471_v7 = vadd.f32 %v639_v61, %v422_v63 }
  0xf3   :  { %v642_v9 = vadd.f32 %v641_v6, %v640_v0 }
  0xf4   :  { %v425_v8 = vadd.f32 %v614_v5, %v538_v58  ;;  %v659_v10 = vpop.f32.mrf.mxu0 }
  0xf5   :  { %v520_v12 = vadd.f32 %v659_v10, %v471_v7 }
  0xf6   :  { %v511_v14 = vpop.f32.mrf.mxu0  ;;  %v474_v15 = vadd.f32 %v642_v9, %v425_v8 }
  0xf7   :  { %v528_v17 = vmax.f32 %v520_v12, 0.0  ;;  %v512_v18 = vadd.f32 %v511_v14, %v463_v13 }
  0xf8   :  { %v660_v19 = vpop.f32.mrf.mxu0 }
  0xf9   :  { %532 = vst [vmem:[%s887_s3 + $0x10] sm:$0xff] %v528_v17  ;;  %v526_v20 = vmax.f32 %v512_v18, 0.0  ;;  %v523_v21 = vadd.f32 %v660_v19, %v474_v15 }
  0xfa   :  { %v514_v23 = vpop.f32.mrf.mxu0 }
  0xfb   :  { %530 = vst [vmem:[%s887_s3] sm:$0xff] %v526_v20  ;;  %v529_v24 = vmax.f32 %v523_v21, 0.0  ;;  %v515_v25 = vadd.f32 %v514_v23, %v466_v22 }
  0xfd   :  { %533 = vst [vmem:[%s887_s3 + $0x18] sm:$0xff] %v529_v24  ;;  %v527_v26 = vmax.f32 %v515_v25, 0.0 }
  0xff   :  { %531 = vst [vmem:[%s887_s3 + $0x8] sm:$0xff] %v527_v26 }

// kernel: forward.23
= control target key start
LH: loop header
LB: loop body
LE: loop exit
PB: predicated region body
PF: predicated region fallthrough
CT: control target
= control target key end

     0   :  { %s1646_s25 = smov 0   ;;  %s2092_s0 = inlined_call_operand.vmem [shape: f32[2,16,128], index: 0, kind: input, shape index: {}]   ;;  %s2093_s1 = inlined_call_operand.vmem [shape: f32[2,1,32], index: 1, kind: input, shape index: {}]   ;;  %s2094_s2 = inlined_call_operand.vmem [shape: f32[128,32], index: 2, kind: input, shape index: {}]   ;;  %s2095_s3 = inlined_call_operand.vmem [shape: f32[32,32], index: 3, kind: input, shape index: {}]   ;;  %s2096_s4 = inlined_call_operand.vmem [shape: f32[128,32], index: 4, kind: input, shape index: {}]   ;;  %s2097_s5 = inlined_call_operand.vmem [shape: f32[32,32], index: 5, kind: input, shape index: {}]   ;;  %s2098_s6 = inlined_call_operand.vmem [shape: f32[128,32], index: 6, kind: input, shape index: {}]   ;;  %s2099_s7 = inlined_call_operand.vmem [shape: f32[32,32], index: 7, kind: input, shape index: {}]   ;;  %s2100_s8 = inlined_call_operand.vmem [shape: f32[1,32], index: 8, kind: input, shape index: {}]   ;;  %s2101_s9 = inlined_call_operand.vmem [shape: f32[1,32], index: 9, kind: input, shape index: {}]   ;;  %s2102_s10 = inlined_call_operand.vmem [shape: f32[32,128], index: 10, kind: input, shape index: {}]   ;;  %s2103_s11 = inlined_call_operand.vmem [shape: f32[2,16,128], index: 11, kind: output, shape index: {0}]   ;;  %s2104_s12 = inlined_call_operand.vmem [shape: f32[2,1,128], index: 12, kind: output, shape index: {1}]   ;;  %s2105_s13 = inlined_call_operand.vmem [shape: f32[2,16,1], index: 13, kind: output, shape index: {2}]  }
   0x1 LB: > { %s1320_s26 = sadd.s32 4294967295, %s1572_s25   ;;  %p1324_p0 = scmp.ge.s32.totalorder %s1572_s25, 1  ;;  %s1572_s25 = sphi %s1646_s25, %s24_s25  }
   0x2   : > { %p400_p1 = scmp.lt.s32.totalorder %s1572_s25, 3 }
   0x4   : > { %p401_p2 = pnand %p1324_p0, %p400_p1 }
   0x5   : > { %p455_p3 = scmp.lt.s32.totalorder (!%p401_p2), %s1320_s26, 1 }
   0x6   : > { %404 = sbr.rel (%p401_p2) target bundleno = 1039 (0x40f), region = 64 }
   0xb   : > { %v520_v0 = vld [vmem:[%s2095_s3 + $0x10] sm:$0xff]  ;;  %v521_v1 = vld [vmem:[%s2095_s3 + $0x18] sm:$0xff]  ;;  %v1574_v3 = vmov 0.0   ;;  %v518_v6 = vld [vmem:[%s2095_s3] sm:$0xff]  ;;  %vm1575_vm0 = vmmov 0   ;;  %s2107_s26 = smov (!%p455_p3, %s1320_s26), 1 }
   0xc   : > { %v508_v2 = vld [vmem:[%s2094_s2 + $0x70] sm:$0xff]  ;;  %1399 = vmatprep.subr.bf16.mxu0 %v1574_v3  ;;  %1407 = vmatprep.subr.bf16.mxu1 %v1574_v3  ;;  %v523_v4 = vpack.c.bf16 %v521_v1, %v520_v0  ;;  %v509_v5 = vld [vmem:[%s2094_s2 + $0x78] sm:$0xff]  ;;  %v519_v7 = vld [vmem:[%s2095_s3 + $0x8] sm:$0xff]  ;;  %s462_s30 = scalar_lea.vmem %s2093_s1, %s2107_s26  ;;  %s1705_s22 = sshll.u32 %s2107_s26, 4  ;;  %vm524_vm1 = vcmask 261120   ;;  %vm609_vm2 = vcmask 253952  }
   0xd   : > { %v517_v8 = vpack.c.bf16 %v509_v5, %v508_v2  ;;  %v506_v9 = vld [vmem:[%s2094_s2 + $0x60] sm:$0xff]  ;;  %v507_v10 = vld [vmem:[%s2094_s2 + $0x68] sm:$0xff]  ;;  %1403 = vmatprep.mubr.msk.bf16.mxu0 %vm1575_vm0, %v1574_v3  ;;  %1423 = vmatprep.mubr.msk.bf16.mxu1 %vm1575_vm0, %v1574_v3  ;;  %v522_v11 = vpack.c.bf16 %v519_v7, %v518_v6  ;;  %v652_v13 = vld [vmem:[%s2097_s5 + $0x10] sm:$0xff]  ;;  %s459_s14 = scalar_lea.vmem %s2092_s0, %s1705_s22  ;;  %s475_s24 = scalar_lea.vmem %s2105_s13, %s1705_s22  ;;  %vm1195_vm3 = vcmask 7168  }
   0xe   : > { %1400 = vmatpush3.bf16.msra.mxu0 %v523_v4  ;;  %v516_v12 = vpack.c.bf16 %v507_v10, %v506_v9  ;;  %v653_v14 = vld [vmem:[%s2097_s5 + $0x18] sm:$0xff]  ;;  %v479_v15 = vld [vmem:[%s462_s30] sm:$0x1]  ;;  %v504_v16 = vld [vmem:[%s2094_s2 + $0x50] sm:$0xff]  ;;  %s467_s29 = scalar_lea.vmem %s2103_s11, %s1705_s22 }
   0xf   : > { %1408 = vmatpush3.bf16.msra.mxu1 %v517_v8  ;;  %1401 = vmatprep.subr.bf16.mxu0 %v1574_v3  ;;  %v505_v17 = vld [vmem:[%s2094_s2 + $0x58] sm:$0xff]  ;;  %v1707_v18 = vpack.c.bf16 %v479_v15, %v479_v15  ;;  %v655_v19 = vpack.c.bf16 %v653_v14, %v652_v13  ;;  %v650_v21 = vld [vmem:[%s2097_s5] sm:$0xff]  ;;  %v651_v22 = vld [vmem:[%s2097_s5 + $0x8] sm:$0xff] }
  0x10   : > { %1409 = vmatprep.subr.bf16.mxu1 %v1574_v3  ;;  %v515_v20 = vpack.c.bf16 %v505_v17, %v504_v16  ;;  %v502_v23 = vld [vmem:[%s2094_s2 + $0x40] sm:$0xff]  ;;  %v503_v24 = vld [vmem:[%s2094_s2 + $0x48] sm:$0xff]  ;;  %v654_v25 = vpack.c.bf16 %v651_v22, %v650_v21  ;;  %v640_v29 = vld [vmem:[%s2096_s4 + $0x70] sm:$0xff] }
  0x11   : > { %v1731_v26 = vld [vmem:[%s459_s14] sm:$0xff]  ;;  %v1733_v27 = vld [vmem:[%s459_s14 + $0x8] sm:$0xff]  ;;  %v514_v28 = vpack.c.bf16 %v503_v24, %v502_v23  ;;  %v641_v30 = vld [vmem:[%s2096_s4 + $0x78] sm:$0xff]  ;;  %s470_s14 = scalar_lea.vmem %s2104_s12, %s2107_s26 }
  0x12   : > { %1402 = vmatpush3.bf16.msra.mxu0 %v522_v11  ;;  %v482_v31 = vadd.f32 %v1733_v27, %v1731_v26  ;;  %v500_v32 = vld [vmem:[%s2094_s2 + $0x30] sm:$0xff]  ;;  %v501_v33 = vld [vmem:[%s2094_s2 + $0x38] sm:$0xff]  ;;  %v1751_v35 = vpack.c.bf16 %v641_v30, %v640_v29  ;;  %v638_v37 = vld [vmem:[%s2096_s4 + $0x60] sm:$0xff] }
  0x13   : > { %1410 = vmatpush3.bf16.msra.mxu1 %v516_v12  ;;  %1427 = vmatprep.subr.bf16.mxu0 %v1574_v3  ;;  %v513_v36 = vpack.c.bf16 %v501_v33, %v500_v32  ;;  %v639_v38 = vld [vmem:[%s2096_s4 + $0x68] sm:$0xff]  ;;  %v498_v40 = vld [vmem:[%s2094_s2 + $0x20] sm:$0xff]  ;;  %v636_v45 = vld [vmem:[%s2096_s4 + $0x50] sm:$0xff] }
  0x14   : > { %1411 = vmatprep.subr.bf16.mxu1 %v1574_v3  ;;  %v483_v34 = vrot.slane %v482_v31, 4  ;;  %v499_v41 = vld [vmem:[%s2094_s2 + $0x28] sm:$0xff]  ;;  %v1770_v43 = vpack.c.bf16 %v639_v38, %v638_v37  ;;  %v637_v46 = vld [vmem:[%s2096_s4 + $0x58] sm:$0xff]  ;;  %v496_v48 = vld [vmem:[%s2094_s2 + $0x10] sm:$0xff] }
  0x15   : > { %1404 = vmatmul.mubr.msk.bf16.vlgmr.msra.gmra.mxu0 %vm524_vm1, %v1707_v18  ;;  %v512_v44 = vpack.c.bf16 %v499_v41, %v498_v40  ;;  %v497_v49 = vld [vmem:[%s2094_s2 + $0x18] sm:$0xff]  ;;  %v1789_v51 = vpack.c.bf16 %v637_v46, %v636_v45  ;;  %v634_v53 = vld [vmem:[%s2096_s4 + $0x40] sm:$0xff]  ;;  %v635_v54 = vld [vmem:[%s2096_s4 + $0x48] sm:$0xff] }
  0x16   : > { %1428 = vmatpush3.bf16.msra.mxu0 %v655_v19  ;;  %1431 = vmatprep.mubr.msk.bf16.mxu0 %vm1575_vm0, %v1574_v3  ;;  %v484_v39 = vadd.f32 %v483_v34, %v482_v31  ;;  %v511_v52 = vpack.c.bf16 %v497_v49, %v496_v48  ;;  %v494_v56 = vld [vmem:[%s2094_s2] sm:$0xff]  ;;  %v495_v57 = vld [vmem:[%s2094_s2 + $0x8] sm:$0xff]  ;;  %v1806_v58 = vpack.c.bf16 %v635_v54, %v634_v53  ;;  %v632_v61 = vld [vmem:[%s2096_s4 + $0x30] sm:$0xff] }
  0x17   : > { %1412 = vmatpush3.bf16.msra.mxu1 %v515_v20  ;;  %1429 = vmatprep.subr.bf16.mxu0 %v1574_v3  ;;  %v510_v60 = vpack.c.bf16 %v495_v57, %v494_v56  ;;  %v633_v62 = vld [vmem:[%s2096_s4 + $0x38] sm:$0xff]  ;;  %v766_v63 = vld [vmem:[%s2098_s6 + $0x70] sm:$0xff]  ;;  %v630_v5 = vld [vmem:[%s2096_s4 + $0x20] sm:$0xff] }
  0x18   : > { %1413 = vmatprep.subr.bf16.mxu1 %v1574_v3  ;;  %v485_v42 = vrot.slane %v484_v39, 2  ;;  %v767_v0 = vld [vmem:[%s2098_s6 + $0x78] sm:$0xff]  ;;  %v1825_v2 = vpack.c.bf16 %v633_v62, %v632_v61  ;;  %v631_v6 = vld [vmem:[%s2096_s4 + $0x28] sm:$0xff]  ;;  %v764_v7 = vld [vmem:[%s2098_s6 + $0x60] sm:$0xff] }
  0x19   : > { %v1828_v4 = vpack.c.bf16 %v767_v0, %v766_v63  ;;  %v765_v8 = vld [vmem:[%s2098_s6 + $0x68] sm:$0xff]  ;;  %v1845_v9 = vpack.c.bf16 %v631_v6, %v630_v5  ;;  %v628_v11 = vld [vmem:[%s2096_s4 + $0x10] sm:$0xff]  ;;  %v629_v12 = vld [vmem:[%s2096_s4 + $0x18] sm:$0xff] }
  0x1a   : > { %1430 = vmatpush3.bf16.msra.mxu0 %v654_v25  ;;  %v486_v47 = vadd.f32 %v485_v42, %v484_v39  ;;  %v1849_v10 = vpack.c.bf16 %v765_v8, %v764_v7  ;;  %v762_v13 = vld [vmem:[%s2098_s6 + $0x50] sm:$0xff]  ;;  %v763_v14 = vld [vmem:[%s2098_s6 + $0x58] sm:$0xff]  ;;  %v1867_v15 = vpack.c.bf16 %v629_v12, %v628_v11  ;;  %v626_v17 = vld [vmem:[%s2096_s4] sm:$0xff] }
  0x1b   : > { %1414 = vmatpush3.bf16.msra.mxu1 %v514_v28  ;;  %1435 = vmatprep.subr.bf16.mxu0 %v1574_v3  ;;  %v1871_v16 = vpack.c.bf16 %v763_v14, %v762_v13  ;;  %v627_v19 = vld [vmem:[%s2096_s4 + $0x8] sm:$0xff]  ;;  %v760_v20 = vld [vmem:[%s2098_s6 + $0x40] sm:$0xff]  ;;  %v778_v24 = vld [vmem:[%s2099_s7 + $0x10] sm:$0xff] }
  0x1c   : > { %1415 = vmatprep.subr.bf16.mxu1 %v1574_v3  ;;  %v487_v50 = vrot.slane %v486_v47, 1  ;;  %v761_v21 = vld [vmem:[%s2098_s6 + $0x48] sm:$0xff]  ;;  %v1887_v22 = vpack.c.bf16 %v627_v19, %v626_v17  ;;  %v779_v25 = vld [vmem:[%s2099_s7 + $0x18] sm:$0xff]  ;;  %v758_v28 = vld [vmem:[%s2098_s6 + $0x30] sm:$0xff] }
  0x1d   : > { %1432 = vmatmul.mubr.msk.bf16.vlgmr.msra.gmra.mxu0 %vm524_vm1, %v1707_v18  ;;  %v772_v23 = vpack.c.bf16 %v761_v21, %v760_v20  ;;  %v759_v29 = vld [vmem:[%s2098_s6 + $0x38] sm:$0xff]  ;;  %v781_v30 = vpack.c.bf16 %v779_v25, %v778_v24  ;;  %v776_v32 = vld [vmem:[%s2099_s7] sm:$0xff]  ;;  %v777_v33 = vld [vmem:[%s2099_s7 + $0x8] sm:$0xff] }
  0x1e   : > { %1436 = vmatpush3.bf16.msra.mxu0 %v1751_v35  ;;  %1451 = vmatprep.mubr.msk.bf16.mxu0 %vm1575_vm0, %v1574_v3  ;;  %v488_v55 = vadd.f32 %v487_v50, %v486_v47  ;;  %v771_v31 = vpack.c.bf16 %v759_v29, %v758_v28  ;;  %v756_v34 = vld [vmem:[%s2098_s6 + $0x20] sm:$0xff]  ;;  %v780_v37 = vpack.c.bf16 %v777_v33, %v776_v32  ;;  %v754_v39 = vld [vmem:[%s2098_s6 + $0x10] sm:$0xff]  ;;  %v755_v40 = vld [vmem:[%s2098_s6 + $0x18] sm:$0xff] }
  0x1f   : > { %1416 = vmatpush3.bf16.msra.mxu1 %v513_v36  ;;  %1437 = vmatprep.subr.bf16.mxu0 %v1574_v3  ;;  %v757_v36 = vld [vmem:[%s2098_s6 + $0x28] sm:$0xff]  ;;  %v769_v41 = vpack.c.bf16 %v755_v40, %v754_v39  ;;  %v752_v42 = vld [vmem:[%s2098_s6] sm:$0xff] }
  0x20   : > { %1417 = vmatprep.subr.bf16.mxu1 %v1574_v3  ;;  %v490_v59 = vmul.f32 0.0625, %v488_v55  ;;  %v770_v38 = vpack.c.bf16 %v757_v36, %v756_v34 }
  0x22   : > { %1438 = vmatpush3.bf16.msra.mxu0 %v1770_v43  ;;  %v1823_v1 = vpack.c.bf16 %v490_v59, %v490_v59 }
  0x23   : > { %1418 = vmatpush3.bf16.msra.mxu1 %v512_v44  ;;  %1439 = vmatprep.subr.bf16.mxu0 %v1574_v3  ;;  %v753_v44 = vld [vmem:[%s2098_s6 + $0x8] sm:$0xff] }
  0x24   : > { %1419 = vmatprep.subr.bf16.mxu1 %v1574_v3  ;;  %v768_v45 = vpack.c.bf16 %v753_v44, %v752_v42 }
  0x26   : > { %1440 = vmatpush3.bf16.msra.mxu0 %v1789_v51 }
  0x27   : > { %1420 = vmatpush3.bf16.msra.mxu1 %v511_v52  ;;  %1441 = vmatprep.subr.bf16.mxu0 %v1574_v3 }
  0x28   : > { %1421 = vmatprep.subr.bf16.mxu1 %v1574_v3 }
  0x2a   : > { %1442 = vmatpush3.bf16.msra.mxu0 %v1806_v58 }
  0x2b   : > { %1422 = vmatpush3.bf16.msra.mxu1 %v510_v60  ;;  %1443 = vmatprep.subr.bf16.mxu0 %v1574_v3 }
  0x2c   : > { %1463 = vmatprep.subr.bf16.mxu1 %v1574_v3 }
  0x2e   : > { %1424 = vmatmul.mubr.bf16.vlgmr.msra.gmra.mxu1 %v1823_v1  ;;  %1444 = vmatpush3.bf16.msra.mxu0 %v1825_v2 }
  0x2f   : > { %1464 = vmatpush3.bf16.msra.mxu1 %v1828_v4  ;;  %1445 = vmatprep.subr.bf16.mxu0 %v1574_v3 }
  0x30   : > { %1465 = vmatprep.subr.bf16.mxu1 %v1574_v3  ;;  %1479 = vmatprep.mubr.msk.bf16.mxu1 %vm1575_vm0, %v1574_v3 }
  0x32   : > { %1446 = vmatpush3.bf16.msra.mxu0 %v1845_v9 }
  0x33   : > { %1466 = vmatpush3.bf16.msra.mxu1 %v1849_v10  ;;  %1447 = vmatprep.subr.bf16.mxu0 %v1574_v3 }
  0x34   : > { %1467 = vmatprep.subr.bf16.mxu1 %v1574_v3 }
  0x36   : > { %1448 = vmatpush3.bf16.msra.mxu0 %v1867_v15 }
  0x37   : > { %1468 = vmatpush3.bf16.msra.mxu1 %v1871_v16  ;;  %1449 = vmatprep.subr.bf16.mxu0 %v1574_v3 }
  0x38   : > { %1469 = vmatprep.subr.bf16.mxu1 %v1574_v3 }
  0x3a   : > { %1450 = vmatpush3.bf16.msra.mxu0 %v1887_v22 }
  0x3b   : > { %1470 = vmatpush3.bf16.msra.mxu1 %v772_v23  ;;  %1455 = vmatprep.subr.bf16.mxu0 %v1574_v3 }
  0x3c   : > { %1471 = vmatprep.subr.bf16.mxu1 %v1574_v3 }
  0x3d   : > { %1452 = vmatmul.mubr.bf16.vlgmr.msra.gmra.mxu0 %v1823_v1 }
  0x3e   : > { %1456 = vmatpush3.bf16.msra.mxu0 %v781_v30  ;;  %1459 = vmatprep.mubr.msk.bf16.mxu0 %vm1575_vm0, %v1574_v3 }
  0x3f   : > { %1472 = vmatpush3.bf16.msra.mxu1 %v771_v31  ;;  %1457 = vmatprep.subr.bf16.mxu0 %v1574_v3 }
  0x40   : > { %1473 = vmatprep.subr.bf16.mxu1 %v1574_v3 }
  0x42   : > { %1458 = vmatpush3.bf16.msra.mxu0 %v780_v37 }
  0x43   : > { %1474 = vmatpush3.bf16.msra.mxu1 %v770_v38  ;;  %1483 = vmatprep.subr.bf16.mxu0 %v1574_v3 }
  0x44   : > { %1475 = vmatprep.subr.bf16.mxu1 %v1574_v3 }
  0x45   : > { %1460 = vmatmul.mubr.msk.bf16.vlgmr.msra.gmra.mxu0 %vm524_vm1, %v1707_v18  ;;  %v491_v18 = vpack.c.bf16 %v1733_v27, %v1731_v26 }
  0x46   : > { %1484 = vmatpush3.bf16.msra.mxu0 %v1751_v35  ;;  %1499 = vmatprep.mubr.msk.bf16.mxu0 %vm1575_vm0, %v1574_v3 }
  0x47   : > { %1476 = vmatpush3.bf16.msra.mxu1 %v769_v41  ;;  %1485 = vmatprep.subr.bf16.mxu0 %v1574_v3 }
  0x48   : > { %1477 = vmatprep.subr.bf16.mxu1 %v1574_v3 }
  0x4a   : > { %1486 = vmatpush3.bf16.msra.mxu0 %v1770_v43 }
  0x4b   : > { %1478 = vmatpush3.bf16.msra.mxu1 %v768_v45  ;;  %1487 = vmatprep.subr.bf16.mxu0 %v1574_v3 }
  0x4c   : > { %1503 = vmatprep.subr.bf16.mxu1 %v1574_v3 }
  0x4e   : > { %1480 = vmatmul.mubr.bf16.vlgmr.msra.gmra.mxu1 %v1823_v1  ;;  %1488 = vmatpush3.bf16.msra.mxu0 %v1789_v51 }
  0x4f   : > { %1504 = vmatpush3.bf16.msra.mxu1 %v1828_v4  ;;  %1489 = vmatprep.subr.bf16.mxu0 %v1574_v3 }
  0x50   : > { %1505 = vmatprep.subr.bf16.mxu1 %v1574_v3  ;;  %1519 = vmatprep.mubr.msk.bf16.mxu1 %vm1575_vm0, %v1574_v3 }
  0x52   : > { %1490 = vmatpush3.bf16.msra.mxu0 %v1806_v58 }
  0x53   : > { %1506 = vmatpush3.bf16.msra.mxu1 %v1849_v10  ;;  %1491 = vmatprep.subr.bf16.mxu0 %v1574_v3 }
  0x54   : > { %1507 = vmatprep.subr.bf16.mxu1 %v1574_v3 }
  0x56   : > { %1492 = vmatpush3.bf16.msra.mxu0 %v1825_v2 }
  0x57   : > { %1508 = vmatpush3.bf16.msra.mxu1 %v1871_v16  ;;  %1493 = vmatprep.subr.bf16.mxu0 %v1574_v3 }
  0x58   : > { %1509 = vmatprep.subr.bf16.mxu1 %v1574_v3 }
  0x5a   : > { %1494 = vmatpush3.bf16.msra.mxu0 %v1845_v9  ;;  %v878_v9 = vlaneseq }
  0x5b   : > { %1510 = vmatpush3.bf16.msra.mxu1 %v772_v23  ;;  %1495 = vmatprep.subr.bf16.mxu0 %v1574_v3 }
  0x5c   : > { %1511 = vmatprep.subr.bf16.mxu1 %v1574_v3  ;;  %v879_v10 = vshrl.u32 %v878_v9, 7 }
  0x5e   : > { %1496 = vmatpush3.bf16.msra.mxu0 %v1867_v15  ;;  %v1980_v11 = vsub.s32 0, %v879_v10 }
  0x5f   : > { %1512 = vmatpush3.bf16.msra.mxu1 %v771_v31  ;;  %1497 = vmatprep.subr.bf16.mxu0 %v1574_v3 }
  0x60   : > { %1513 = vmatprep.subr.bf16.mxu1 %v1574_v3 }
  0x62   : > { %1498 = vmatpush3.bf16.msra.mxu0 %v1887_v22 }
  0x63   : > { %1514 = vmatpush3.bf16.msra.mxu1 %v770_v38  ;;  %1523 = vmatprep.subr.mxu0 %v1574_v3 }
  0x64   : > { %1515 = vmatprep.subr.bf16.mxu1 %v1574_v3 }
  0x65   : > { %1500 = vmatmul.mubr.bf16.vlgmr.msra.gmra.mxu0 %v491_v18 }
  0x66   : > { %1531 = vmatprep.mubr.msk.f32.mxu0 %vm1575_vm0, %v1574_v3 }
  0x67   : > { %1516 = vmatpush3.bf16.msra.mxu1 %v769_v41 }
  0x68   : > { %1517 = vmatprep.subr.bf16.mxu1 %v1574_v3 }
  0x6b   : > { %1518 = vmatpush3.bf16.msra.mxu1 %v768_v45 }
  0x6e   : > { %1520 = vmatmul.mubr.bf16.vlgmr.msra.gmra.mxu1 %v491_v18 }
  0xd5   : > { %v562_v35 = vpop.f32.mrf.mxu0 }
  0xd7   : > { %v1405_v43 = vpop.f32.mrf.mxu0 }
  0xd9   : > { %v565_v46 = vpop.f32.mrf.mxu0 }
  0xdb   : > { %v1406_v47 = vpop.f32.mrf.mxu0 }
  0xdd   : > { %v690_v48 = vpop.f32.mrf.mxu0 }
  0xde   : > { %v881_v12 = vrot.slane %v690_v48, %v1980_v11 }
  0xdf   : > { %v1433_v49 = vpop.f32.mrf.mxu0 }
  0xe1   : > { %v693_v50 = vpop.f32.mrf.mxu0 }
  0xe3   : > { %v1434_v51 = vpop.f32.mrf.mxu0 }
  0xee   : > { %v602_v52 = vpop.f32.mrf.mxu1 }
  0xef   : > { %v603_v53 = vadd.f32 %v602_v52, %v562_v35 }
  0xf0   : > { %v1425_v54 = vpop.f32.mrf.mxu1 }
  0xf1   : > { %v608_v55 = vmax.f32 %v603_v53, 0.0 }
  0xf2   : > { %v605_v56 = vpop.f32.mrf.mxu1 }
  0xf3   : > { %v610_v57 = vsel %vm609_vm2, %v608_v55, 0.0 }
  0xf4   : > { %611 = vadd.xlane.f32.xlu0 %v610_v57  ;;  %v1426_v58 = vpop.f32.mrf.mxu1 }
  0xfd   : > { %v730_v59 = vpop.f32.mrf.mxu0 }
  0xfe   : > { %v731_v19 = vadd.f32 %v730_v59, %v690_v48 }
  0xff   : > { %v1453_v60 = vpop.f32.mrf.mxu0 }
 0x100   : > { %v736_v25 = vmax.f32 %v731_v19, 0.0 }
 0x101   : > { %v733_v61 = vpop.f32.mrf.mxu0 }
 0x102   : > { %v737_v33 = vsel %vm609_vm2, %v736_v25, 0.0 }
 0x103   : > { %v1454_v62 = vpop.f32.mrf.mxu0 }
 0x105   : > { %v816_v63 = vpop.f32.mrf.mxu0 }
 0x106   : > { %v970_v24 = vrot.slane %v816_v63, %v1980_v11 }
 0x107   : > { %v1461_v0 = vpop.f32.mrf.mxu0 }
 0x109   : > { %v819_v1 = vpop.f32.mrf.mxu0 }
 0x10b   : > { %v1462_v2 = vpop.f32.mrf.mxu0 }
 0x10e   : > { %v856_v4 = vpop.f32.mrf.mxu1 }
 0x10f   : > { %v1978_v5 = vadd.f32 %v856_v4, %v816_v63 }
 0x110   : > { %v1481_v6 = vpop.f32.mrf.mxu1 }
 0x112   : > { %v859_v7 = vpop.f32.mrf.mxu1 }
 0x114   : > { %v1482_v8 = vpop.f32.mrf.mxu1 }
 0x125   : > { %v916_v13 = vpop.f32.mrf.mxu0 }
 0x126   : > { %v917_v14 = vadd.f32 %v916_v13, %v881_v12  ;;  %v2004_v13 = vld [vmem:[%s2100_s8] sm:$0x1] }
 0x127   : > { %v1501_v15 = vpop.f32.mrf.mxu0 }
 0x128   : > { %v923_v16 = vmax.f32 %v917_v14, 0.0  ;;  %v2010_v15 = vld [vmem:[%s2101_s9] sm:$0x1] }
 0x129   : > { %v919_v17 = vpop.f32.mrf.mxu0 }
 0x12a   : > { %v920_v20 = vadd.f32 %v919_v17, %v881_v12  ;;  %v925_v21 = vsel %vm524_vm1, %v923_v16, 0.0  ;;  %v2014_v17 = vrot.slane %v2004_v13, %v1980_v11 }
 0x12b   : > { %v1502_v22 = vpop.f32.mrf.mxu0  ;;  %926 = vadd.xlane.f32.xlu0 %v925_v21 }
 0x12c   : > { %v924_v23 = vmax.f32 %v920_v20, 0.0  ;;  %v2019_v22 = vrot.slane %v2010_v15, %v1980_v11 }
 0x12e   : > { %v1005_v28 = vpop.f32.mrf.mxu1  ;;  %v928_v29 = vsel %vm524_vm1, %v924_v23, 0.0 }
 0x12f   : > { %v1986_v30 = vadd.f32 %v1005_v28, %v970_v24  ;;  %929 = vadd.xlane.f32.xlu1 %v928_v29 }
 0x130   : > { %v1521_v31 = vpop.f32.mrf.mxu1 }
 0x131   : > { %v1012_v51 = vmax.f32 %v1986_v30, 0.0 }
 0x132   : > { %v1008_v32 = vpop.f32.mrf.mxu1 }
 0x133   : > { %v1989_v34 = vadd.f32 %v1008_v32, %v970_v24  ;;  %738 = vadd.xlane.f32.xlu1 %v737_v33  ;;  %v1014_v58 = vsel %vm524_vm1, %v1012_v51, 0.0 }
 0x134   : > { %v1522_v36 = vpop.f32.mrf.mxu1 }
 0x135   : > { %v1013_v56 = vmax.f32 %v1989_v34, 0.0 }
 0x137   : > { %v1017_v60 = vsel %vm524_vm1, %v1013_v56, 0.0 }
 0x17d   : > { %v612_v37 = vpop.xlane.xlu0 %611 }
 0x17e   : > { %v614_v38 = vmul.f32 0.03125, %v612_v37 }
 0x180   : > { %v615_v39 = vsub.f32 %v608_v55, %v614_v38  ;;  %v862_v55 = vmax.f32 %v1978_v5, 0.0 }
 0x182   : > { %v616_v40 = vmul.f32 %v615_v39, %v615_v39  ;;  %v863_v59 = vsel %vm609_vm2, %v862_v55, 0.0 }
 0x184   : > { %v617_v41 = vsel %vm609_vm2, %v616_v40, 0.0 }
 0x185   : > { %618 = vadd.xlane.f32.xlu0 %v617_v41 }
 0x1b4   : > { %v927_v42 = vpop.xlane.xlu0 %926 }
 0x1b5   : > { %v931_v44 = vmul.f32 0.03125, %v927_v42 }
 0x1b7   : > { %v933_v45 = vsub.f32 %v923_v16, %v931_v44 }
 0x1b8   : > { %v930_v18 = vpop.xlane.xlu1 %929 }
 0x1b9   : > { %v932_v35 = vmul.f32 0.03125, %v930_v18  ;;  %v935_v43 = vmul.f32 %v933_v45, %v933_v45 }
 0x1bb   : > { %v934_v46 = vsub.f32 %v924_v23, %v932_v35  ;;  %v937_v47 = vsel %vm524_vm1, %v935_v43, 0.0 }
 0x1bc   : > { %v739_v48 = vpop.xlane.xlu1 %738  ;;  %938 = vadd.xlane.f32.xlu1 %v937_v47 }
 0x1bd   : > { %v740_v49 = vmul.f32 0.03125, %v739_v48  ;;  %v936_v50 = vmul.f32 %v934_v46, %v934_v46 }
 0x1bf   : > { %v741_v52 = vsub.f32 %v736_v25, %v740_v49  ;;  %v940_v53 = vsel %vm524_vm1, %v936_v50, 0.0 }
 0x1c0   : > { %941 = vadd.xlane.f32.xlu0 %v940_v53 }
 0x1c1   : > { %v742_v54 = vmul.f32 %v741_v52, %v741_v52 }
 0x1c3   : > { %v743_v57 = vsel %vm609_vm2, %v742_v54, 0.0 }
 0x1c4   : > { %744 = vadd.xlane.f32.xlu1 %v743_v57  ;;  %1015 = vadd.xlane.f32.xlu0 %v1014_v58  ;;  %v1114_v57 = vld [vmem:[%s2102_s10 + $0x8] sm:$0xff]  ;;  %v1113_v58 = vld [vmem:[%s2102_s10] sm:$0xff] }
 0x1c8   : > { %864 = vadd.xlane.f32.xlu0 %v863_v59  ;;  %1018 = vadd.xlane.f32.xlu1 %v1017_v60 }
 0x20e   : > { %v619_v61 = vpop.xlane.xlu0 %618 }
 0x20f   : > { %v620_v62 = vmul.f32 0.03125, %v619_v61 }
 0x211   : > { %v621_v63 = vadd.f32 1e-05, %v620_v62 }
 0x213   : > { %1544 = vrsqrt.f32 %v621_v63 }
 0x220   : > { %v1545_v7 = vpop.eup %1544 }
 0x221   : > { %v623_v12 = vmul.f32 %v1545_v7, %v615_v39 }
 0x223   : > { %v624_v14 = vmul.f32 %v623_v12, %v2004_v13 }
 0x225   : > { %v625_v20 = vadd.f32 %v624_v14, %v2010_v15 }
 0x227   : > { %v1047_v30 = vrot.slane %v625_v20, %v1980_v11 }
 0x245   : > { %v939_v0 = vpop.xlane.xlu1 %938 }
 0x246   : > { %v943_v1 = vmul.f32 0.03125, %v939_v0 }
 0x248   : > { %v945_v2 = vadd.f32 1e-05, %v943_v1 }
 0x249   : > { %v942_v4 = vpop.xlane.xlu0 %941 }
 0x24a   : > { %1546 = vrsqrt.f32 %v945_v2  ;;  %v944_v5 = vmul.f32 0.03125, %v942_v4 }
 0x24c   : > { %v946_v6 = vadd.f32 1e-05, %v944_v5 }
 0x24d   : > { %v745_v8 = vpop.xlane.xlu1 %744  ;;  %v1016_v16 = vpop.xlane.xlu0 %1015 }
 0x24e   : > { %1548 = vrsqrt.f32 %v946_v6  ;;  %v746_v9 = vmul.f32 0.03125, %v745_v8  ;;  %v1020_v25 = vmul.f32 0.03125, %v1016_v16 }
 0x250   : > { %v747_v10 = vadd.f32 1e-05, %v746_v9  ;;  %v2025_v37 = vsub.f32 %v1012_v51, %v1020_v25 }
 0x251   : > { %v865_v28 = vpop.xlane.xlu0 %864  ;;  %v1019_v32 = vpop.xlane.xlu1 %1018 }
 0x252   : > { %1550 = vrsqrt.f32 %v747_v10  ;;  %v866_v38 = vmul.f32 0.03125, %v865_v28  ;;  %v1021_v39 = vmul.f32 0.03125, %v1019_v32  ;;  %v1024_v18 = vmul.f32 %v2025_v37, %v2025_v37 }
 0x254   : > { %v2032_v35 = vsub.f32 %v862_v55, %v866_v38  ;;  %v2034_v43 = vsub.f32 %v1013_v56, %v1021_v39  ;;  %v1026_v49 = vsel %vm524_vm1, %v1024_v18, 0.0  ;;  %v1116_v55 = vld [vmem:[%s2102_s10 + $0x18] sm:$0xff]  ;;  %v1115_v56 = vld [vmem:[%s2102_s10 + $0x10] sm:$0xff] }
 0x255   : > { %1524 = vmatpush3.msra.mxu0 %v1116_v55 }
 0x256   : > { %v868_v51 = vmul.f32 %v2032_v35, %v2032_v35  ;;  %1525 = vmatprep.subr.mxu0 %v1574_v3 }
 0x257   : > { %v1547_v19 = vpop.eup %1546  ;;  %1526 = vmatpush3.msra.mxu0 %v1115_v56 }
 0x258   : > { %v949_v21 = vmul.f32 %v1547_v19, %v933_v45  ;;  %v869_v53 = vsel %vm609_vm2, %v868_v51, 0.0  ;;  %1527 = vmatprep.subr.mxu0 %v1574_v3 }
 0x259   : > { %1528 = vmatpush3.msra.mxu0 %v1114_v57 }
 0x25a   : > { %v957_v23 = vmul.f32 %v2014_v17, %v949_v21  ;;  %1529 = vmatprep.subr.mxu0 %v1574_v3 }
 0x25b   : > { %v1549_v24 = vpop.eup %1548  ;;  %1530 = vmatpush3.msra.mxu0 %v1113_v58 }
 0x25c   : > { %v965_v29 = vadd.f32 %v2019_v22, %v957_v23  ;;  %v950_v31 = vmul.f32 %v1549_v24, %v934_v46 }
 0x25e   : > { %v1048_v33 = vmul.f32 %v1047_v30, %v965_v29  ;;  %v958_v34 = vmul.f32 %v2014_v17, %v950_v31 }
 0x25f   : > { %v1551_v36 = vpop.eup %1550 }
 0x260   : > { %v1050_v40 = vsel %vm524_vm1, %v1048_v33, 0.0  ;;  %v966_v41 = vadd.f32 %v2019_v22, %v958_v34  ;;  %v749_v42 = vmul.f32 %v1551_v36, %v741_v52  ;;  %v1025_v52 = vmul.f32 %v2034_v43, %v2034_v43 }
 0x261   : > { %1051 = vadd.xlane.f32.xlu1 %v1050_v40 }
 0x262   : > { %v1049_v44 = vmul.f32 %v1047_v30, %v966_v41  ;;  %v750_v45 = vmul.f32 %v749_v42, %v2004_v13  ;;  %v1029_v54 = vsel %vm524_vm1, %v1025_v52, 0.0 }
 0x264   : > { %v1053_v46 = vsel %vm524_vm1, %v1049_v44, 0.0  ;;  %v751_v47 = vadd.f32 %v750_v45, %v2010_v15 }
 0x265   : > { %1054 = vadd.xlane.f32.xlu0 %v1053_v46 }
 0x266   : > { %v1058_v48 = vmul.f32 %v751_v47, %v625_v20 }
 0x268   : > { %v1059_v50 = vsel %vm609_vm2, %v1058_v48, 0.0 }
 0x269   : > { %1027 = vadd.xlane.f32.xlu0 %v1026_v49  ;;  %1060 = vadd.xlane.f32.xlu1 %v1059_v50 }
 0x26d   : > { %870 = vadd.xlane.f32.xlu0 %v869_v53  ;;  %1030 = vadd.xlane.f32.xlu1 %v1029_v54 }
 0x2ea   : > { %v1052_v59 = vpop.xlane.xlu1 %1051 }
 0x2eb   : > { %v1056_v61 = vmul.f32 0.17677669, %v1052_v59 }
 0x2ee   : > { %v1055_v60 = vpop.xlane.xlu0 %1054 }
 0x2ef   : > { %v1057_v62 = vmul.f32 0.17677669, %v1055_v60 }
 0x2f1   : > { %v1063_v63 = vmax.f32 %v1056_v61, %v1057_v62 }
 0x2f2   : > { %v1061_v5 = vpop.xlane.xlu1 %1060  ;;  %v1028_v20 = vpop.xlane.xlu0 %1027 }
 0x2f3   : > { %v1064_v0 = vrot.slane %v1063_v63, 4  ;;  %v1062_v8 = vmul.f32 0.17677669, %v1061_v5  ;;  %v1032_v28 = vmul.f32 0.03125, %v1028_v20 }
 0x2f5   : > { %v1065_v1 = vmax.f32 %v1063_v63, %v1064_v0  ;;  %v1034_v32 = vadd.f32 1e-05, %v1032_v28 }
 0x2f6   : > { %v1031_v23 = vpop.xlane.xlu1 %1030  ;;  %v871_v41 = vpop.xlane.xlu0 %870 }
 0x2f7   : > { %v1066_v2 = vrot.slane %v1065_v1, 2  ;;  %v1033_v30 = vmul.f32 0.03125, %v1031_v23  ;;  %v872_v45 = vmul.f32 0.03125, %v871_v41 }
 0x2f9   : > { %v1067_v4 = vmax.f32 %v1065_v1, %v1066_v2  ;;  %v1035_v34 = vadd.f32 1e-05, %v1033_v30  ;;  %v873_v18 = vadd.f32 1e-05, %v872_v45 }
 0x2fb   : > { %v1068_v6 = vrot.slane %v1067_v4, 1 }
 0x2fd   : > { %v1069_v7 = vmax.f32 %v1067_v4, %v1068_v6 }
 0x2ff   : > { %v1070_v9 = vmax.f32 %v1069_v7, %v1062_v8 }
 0x301   : > { %v1074_v10 = vrot.slane %v1070_v9, %v1980_v11  ;;  %v1081_v19 = vsub.f32 %v1062_v8, %v1070_v9 }
 0x303   : > { %v1075_v12 = vsub.f32 %v1056_v61, %v1074_v10  ;;  %v1076_v14 = vsub.f32 %v1057_v62, %v1074_v10  ;;  %v1082_v21 = vmul.f32 1.442695, %v1081_v19 }
 0x305   : > { %v1077_v3 = vmul.f32 1.442695, %v1075_v12  ;;  %v1079_v16 = vmul.f32 1.442695, %v1076_v14 }
 0x307   : > { %1552 = vpow2.f32 %v1077_v3 }
 0x308   : > { %1554 = vpow2.f32 %v1079_v16 }
 0x309   : > { %1556 = vpow2.f32 %v1082_v21 }
 0x30a   : > { %1558 = vrsqrt.f32 %v1034_v32 }
 0x30b   : > { %1560 = vrsqrt.f32 %v1035_v34 }
 0x314   : > { %v1553_v24 = vpop.eup %1552 }
 0x315   : > { %v1555_v25 = vpop.eup %1554 }
 0x316   : > { %v1084_v29 = vadd.f32 %v1555_v25, %v1553_v24  ;;  %v1557_v42 = vpop.eup %1556 }
 0x317   : > { %v1559_v46 = vpop.eup %1558 }
 0x318   : > { %v1085_v31 = vrot.slane %v1084_v29, 4  ;;  %v1561_v47 = vpop.eup %1560  ;;  %v1038_v48 = vmul.f32 %v1559_v46, %v2025_v37 }
 0x319   : > { %v1039_v49 = vmul.f32 %v1561_v47, %v2034_v43 }
 0x31a   : > { %v1086_v33 = vadd.f32 %v1085_v31, %v1084_v29  ;;  %v1040_v50 = vmul.f32 %v1038_v48, %v2014_v17 }
 0x31b   : > { %v1041_v51 = vmul.f32 %v1039_v49, %v2014_v17 }
 0x31c   : > { %v1087_v36 = vrot.slane %v1086_v33, 2  ;;  %v1042_v54 = vadd.f32 %v1040_v50, %v2019_v22 }
 0x31d   : > { %v1043_v37 = vadd.f32 %v1041_v51, %v2019_v22 }
 0x31e   : > { %v1088_v38 = vadd.f32 %v1087_v36, %v1086_v33 }
 0x320   : > { %v1089_v39 = vrot.slane %v1088_v38, 1 }
 0x322   : > { %v1090_v40 = vadd.f32 %v1089_v39, %v1088_v38 }
 0x324   : > { %v1091_v44 = vadd.f32 %v1557_v42, %v1090_v40 }
 0x326   : > { %1562 = vrcp.f32 %v1091_v44 }
 0x327   : > { %1564 = vrsqrt.f32 %v873_v18 }
 0x333   : > { %v1563_v52 = vpop.eup %1562 }
 0x334   : > { %v1096_v53 = vrot.slane %v1563_v52, %v1980_v11  ;;  %v1565_v58 = vpop.eup %1564  ;;  %v1099_v0 = vmul.f32 %v1563_v52, %v1557_v42 }
 0x335   : > { %v875_v61 = vmul.f32 %v1565_v58, %v2032_v35 }
 0x336   : > { %v1097_v55 = vmul.f32 %v1553_v24, %v1096_v53  ;;  %v1098_v56 = vmul.f32 %v1555_v25, %v1096_v53 }
 0x338   : > { %v1190_v17 = vmul.f32 %v1097_v55, %v1731_v26  ;;  %v1191_v43 = vmul.f32 %v1098_v56, %v1733_v27  ;;  %1196 = vst.msk [vmem:[%s475_s24] sm:$0xff] %vm1195_vm3, %v1097_v55  ;;  %1197 = vst.msk [vmem:[%s475_s24 + $0x8] sm:$0xff] %vm1195_vm3, %v1098_v56  ;;  %v1101_v11 = vmul.f32 %v1098_v56, %v1043_v37 }
 0x339   : > { %v1100_v57 = vmul.f32 %v1097_v55, %v1042_v54  ;;  %v876_v26 = vmul.f32 %v875_v61, %v2004_v13 }
 0x33a   : > { %1192 = vst [vmem:[%s467_s29] sm:$0xff] %v1190_v17  ;;  %1193 = vst [vmem:[%s467_s29 + $0x8] sm:$0xff] %v1191_v43  ;;  %v1103_v22 = vsel %vm524_vm1, %v1101_v11, 0.0 }
 0x33b   : > { %v1102_v59 = vsel %vm524_vm1, %v1100_v57, 0.0  ;;  %v877_v2 = vadd.f32 %v876_v26, %v2010_v15 }
 0x33c   : > { %v1104_v60 = vadd.f32 %v1103_v22, %v1102_v59 }
 0x33d   : > { %v1111_v6 = vmul.f32 %v1099_v0, %v877_v2 }
 0x33e   : > { %v1105_v62 = vrot.slane %v1104_v60, 4 }
 0x340   : > { %v1106_v63 = vadd.f32 %v1105_v62, %v1104_v60 }
 0x342   : > { %v1107_v27 = vrot.slane %v1106_v63, 2 }
 0x344   : > { %v1108_v1 = vadd.f32 %v1107_v27, %v1106_v63 }
 0x346   : > { %v1109_v4 = vrot.slane %v1108_v1, 1 }
 0x348   : > { %v1110_v5 = vadd.f32 %v1109_v4, %v1108_v1 }
 0x34a   : > { %v1112_v7 = vadd.f32 %v1111_v6, %v1110_v5 }
 0x34c   : > { %1532 = vmatmul.mubr.msk.f32.vlgmr.msra.gmra.mxu0 %vm524_vm1, %v1112_v7 }
 0x40c   : > { %v1186_v35 = vpop.f32.mrf.mxu0 }
 0x40d   : > { %1194 = vst [vmem:[%s470_s14] sm:$0x1] %v1186_v35 }
 0x40e   : > { %v1533_v8 = vpop.f32.mrf.mxu0 }
 0x40f PF: > { %s24_s25 = sadd.s32 1, %s1572_s25  }
 0x410   : > { %p21_p4 = scmp.ge.s32.totalorder %s24_s25, 4  }
 0x412   :  { %23 = sbr.rel (!%p21_p4) target bundleno = 1 (0x1), region = 121 }

// kernel: forward.24
= control target key start
LH: loop header
LB: loop body
LE: loop exit
PB: predicated region body
PF: predicated region fallthrough
CT: control target
= control target key end

     0   :  { %s982_s15 = smov 0   ;;  %s1163_s0 = inlined_call_operand.vmem [shape: f32[2,16,128], index: 0, kind: input, shape index: {}]   ;;  %s1164_s1 = inlined_call_operand.vmem [shape: f32[128,32], index: 1, kind: input, shape index: {}]   ;;  %s1165_s2 = inlined_call_operand.vmem [shape: f32[128,32], index: 2, kind: input, shape index: {}]   ;;  %s1166_s3 = inlined_call_operand.vmem [shape: f32[128,128], index: 3, kind: input, shape index: {}]   ;;  %s1167_s4 = inlined_call_operand.vmem [shape: f32[2,1,128], index: 4, kind: output, shape index: {}]  }
   0x1 LB: > { %s736_s16 = sadd.s32 4294967295, %s955_s15   ;;  %p740_p0 = scmp.ge.s32.totalorder %s955_s15, 1  ;;  %s955_s15 = sphi %s982_s15, %s14_s15  }
   0x2   : > { %p162_p1 = scmp.lt.s32.totalorder %s955_s15, 3 }
   0x4   : > { %p163_p2 = pnand %p740_p0, %p162_p1 }
   0x5   : > { %p186_p3 = scmp.lt.s32.totalorder (!%p163_p2), %s736_s16, 1 }
   0x6   : > { %166 = sbr.rel (%p163_p2) target bundleno = 1171 (0x493), region = 36 }
   0xb   : > { %v302_v0 = vld [vmem:[%s1165_s2 + $0x78] sm:$0xff]  ;;  %v301_v2 = vld [vmem:[%s1165_s2 + $0x70] sm:$0xff]  ;;  %v300_v4 = vld [vmem:[%s1165_s2 + $0x68] sm:$0xff]  ;;  %s1169_s16 = smov (!%p186_p3, %s736_s16), 1  ;;  %vm390_vm1 = vcmask 261120   ;;  %vm478_vm5 = vcmask 130048  }
   0xc   : > { %v211_v1 = vld [vmem:[%s1164_s1 + $0x78] sm:$0xff]  ;;  %849 = vmatprep.subr.mxu1 %v302_v0  ;;  %v210_v3 = vld [vmem:[%s1164_s1 + $0x70] sm:$0xff]  ;;  %v209_v5 = vld [vmem:[%s1164_s1 + $0x68] sm:$0xff]  ;;  %s751_s21 = sshll.u32 %s1169_s16, 4  ;;  %s193_s23 = scalar_lea.vmem %s1167_s4, %s1169_s16 }
   0xd   : > { %814 = vmatprep.subr.mxu0 %v211_v1  ;;  %850 = vmatpush3.msra.mxu1 %v302_v0  ;;  %v299_v6 = vld [vmem:[%s1165_s2 + $0x60] sm:$0xff]  ;;  %v298_v8 = vld [vmem:[%s1165_s2 + $0x58] sm:$0xff]  ;;  %v297_v10 = vld [vmem:[%s1165_s2 + $0x50] sm:$0xff]  ;;  %s190_s6 = scalar_lea.vmem %s1163_s0, %s751_s21 }
   0xe   : > { %815 = vmatpush3.msra.mxu0 %v211_v1  ;;  %851 = vmatprep.subr.mxu1 %v301_v2  ;;  %v208_v7 = vld [vmem:[%s1164_s1 + $0x60] sm:$0xff]  ;;  %v207_v9 = vld [vmem:[%s1164_s1 + $0x58] sm:$0xff]  ;;  %v206_v11 = vld [vmem:[%s1164_s1 + $0x50] sm:$0xff] }
   0xf   : > { %816 = vmatprep.subr.mxu0 %v210_v3  ;;  %852 = vmatpush3.msra.mxu1 %v301_v2  ;;  %v296_v12 = vld [vmem:[%s1165_s2 + $0x48] sm:$0xff]  ;;  %v295_v14 = vld [vmem:[%s1165_s2 + $0x40] sm:$0xff]  ;;  %v294_v16 = vld [vmem:[%s1165_s2 + $0x38] sm:$0xff] }
  0x10   : > { %817 = vmatpush3.msra.mxu0 %v210_v3  ;;  %853 = vmatprep.subr.mxu1 %v300_v4  ;;  %v205_v13 = vld [vmem:[%s1164_s1 + $0x48] sm:$0xff]  ;;  %v204_v15 = vld [vmem:[%s1164_s1 + $0x40] sm:$0xff]  ;;  %v203_v17 = vld [vmem:[%s1164_s1 + $0x38] sm:$0xff] }
  0x11   : > { %818 = vmatprep.subr.mxu0 %v209_v5  ;;  %854 = vmatpush3.msra.mxu1 %v300_v4  ;;  %v293_v18 = vld [vmem:[%s1165_s2 + $0x30] sm:$0xff]  ;;  %v292_v20 = vld [vmem:[%s1165_s2 + $0x28] sm:$0xff]  ;;  %v291_v22 = vld [vmem:[%s1165_s2 + $0x20] sm:$0xff] }
  0x12   : > { %819 = vmatpush3.msra.mxu0 %v209_v5  ;;  %855 = vmatprep.subr.mxu1 %v299_v6  ;;  %v202_v19 = vld [vmem:[%s1164_s1 + $0x30] sm:$0xff]  ;;  %v201_v21 = vld [vmem:[%s1164_s1 + $0x28] sm:$0xff]  ;;  %v200_v23 = vld [vmem:[%s1164_s1 + $0x20] sm:$0xff] }
  0x13   : > { %820 = vmatprep.subr.mxu0 %v208_v7  ;;  %856 = vmatpush3.msra.mxu1 %v299_v6  ;;  %v290_v24 = vld [vmem:[%s1165_s2 + $0x18] sm:$0xff]  ;;  %v289_v26 = vld [vmem:[%s1165_s2 + $0x10] sm:$0xff]  ;;  %v288_v28 = vld [vmem:[%s1165_s2 + $0x8] sm:$0xff] }
  0x14   : > { %821 = vmatpush3.msra.mxu0 %v208_v7  ;;  %857 = vmatprep.subr.mxu1 %v298_v8  ;;  %v199_v25 = vld [vmem:[%s1164_s1 + $0x18] sm:$0xff]  ;;  %v198_v27 = vld [vmem:[%s1164_s1 + $0x10] sm:$0xff]  ;;  %v197_v29 = vld [vmem:[%s1164_s1 + $0x8] sm:$0xff] }
  0x15   : > { %822 = vmatprep.subr.mxu0 %v207_v9  ;;  %858 = vmatpush3.msra.mxu1 %v298_v8  ;;  %v287_v30 = vld [vmem:[%s1165_s2] sm:$0xff]  ;;  %v195_v33 = vld [vmem:[%s190_s6 + $0x8] sm:$0xff]  ;;  %v597_v60 = vld [vmem:[%s1166_s3 + $0x78] sm:$0xff] }
  0x16   : > { %823 = vmatpush3.msra.mxu0 %v207_v9  ;;  %859 = vmatprep.subr.mxu1 %v297_v10  ;;  %v196_v31 = vld [vmem:[%s1164_s1] sm:$0xff]  ;;  %v596_v61 = vld [vmem:[%s1166_s3 + $0x70] sm:$0xff]  ;;  %v595_v62 = vld [vmem:[%s1166_s3 + $0x68] sm:$0xff] }
  0x17   : > { %824 = vmatprep.subr.mxu0 %v206_v11  ;;  %860 = vmatpush3.msra.mxu1 %v297_v10  ;;  %v194_v32 = vld [vmem:[%s190_s6] sm:$0xff]  ;;  %v593_v0 = vld [vmem:[%s1166_s3 + $0x58] sm:$0xff]  ;;  %v592_v1 = vld [vmem:[%s1166_s3 + $0x50] sm:$0xff] }
  0x18   : > { %825 = vmatpush3.msra.mxu0 %v206_v11  ;;  %861 = vmatprep.subr.mxu1 %v296_v12  ;;  %v594_v63 = vld [vmem:[%s1166_s3 + $0x60] sm:$0xff]  ;;  %v591_v2 = vld [vmem:[%s1166_s3 + $0x48] sm:$0xff]  ;;  %v589_v4 = vld [vmem:[%s1166_s3 + $0x38] sm:$0xff] }
  0x19   : > { %826 = vmatprep.subr.mxu0 %v205_v13  ;;  %862 = vmatpush3.msra.mxu1 %v296_v12  ;;  %v590_v3 = vld [vmem:[%s1166_s3 + $0x40] sm:$0xff]  ;;  %v588_v5 = vld [vmem:[%s1166_s3 + $0x30] sm:$0xff]  ;;  %v587_v6 = vld [vmem:[%s1166_s3 + $0x28] sm:$0xff] }
  0x1a   : > { %827 = vmatpush3.msra.mxu0 %v205_v13  ;;  %863 = vmatprep.subr.mxu1 %v295_v14  ;;  %v586_v7 = vld [vmem:[%s1166_s3 + $0x20] sm:$0xff]  ;;  %v585_v8 = vld [vmem:[%s1166_s3 + $0x18] sm:$0xff]  ;;  %v584_v9 = vld [vmem:[%s1166_s3 + $0x10] sm:$0xff] }
  0x1b   : > { %828 = vmatprep.subr.mxu0 %v204_v15  ;;  %864 = vmatpush3.msra.mxu1 %v295_v14 }
  0x1c   : > { %829 = vmatpush3.msra.mxu0 %v204_v15  ;;  %865 = vmatprep.subr.mxu1 %v294_v16 }
  0x1d   : > { %830 = vmatprep.subr.mxu0 %v203_v17  ;;  %866 = vmatpush3.msra.mxu1 %v294_v16  ;;  %v583_v16 = vld [vmem:[%s1166_s3 + $0x8] sm:$0xff] }
  0x1e   : > { %831 = vmatpush3.msra.mxu0 %v203_v17  ;;  %867 = vmatprep.subr.mxu1 %v293_v18  ;;  %v582_v17 = vld [vmem:[%s1166_s3] sm:$0xff] }
  0x1f   : > { %832 = vmatprep.subr.mxu0 %v202_v19  ;;  %868 = vmatpush3.msra.mxu1 %v293_v18 }
  0x20   : > { %833 = vmatpush3.msra.mxu0 %v202_v19  ;;  %869 = vmatprep.subr.mxu1 %v292_v20 }
  0x21   : > { %834 = vmatprep.subr.mxu0 %v201_v21  ;;  %870 = vmatpush3.msra.mxu1 %v292_v20 }
  0x22   : > { %835 = vmatpush3.msra.mxu0 %v201_v21  ;;  %871 = vmatprep.subr.mxu1 %v291_v22 }
  0x23   : > { %836 = vmatprep.subr.mxu0 %v200_v23  ;;  %872 = vmatpush3.msra.mxu1 %v291_v22 }
  0x24   : > { %837 = vmatpush3.msra.mxu0 %v200_v23  ;;  %873 = vmatprep.subr.mxu1 %v290_v24 }
  0x25   : > { %838 = vmatprep.subr.mxu0 %v199_v25  ;;  %874 = vmatpush3.msra.mxu1 %v290_v24 }
  0x26   : > { %839 = vmatpush3.msra.mxu0 %v199_v25  ;;  %875 = vmatprep.subr.mxu1 %v289_v26 }
  0x27   : > { %840 = vmatprep.subr.mxu0 %v198_v27  ;;  %876 = vmatpush3.msra.mxu1 %v289_v26 }
  0x28   : > { %841 = vmatpush3.msra.mxu0 %v198_v27  ;;  %877 = vmatprep.subr.mxu1 %v288_v28 }
  0x29   : > { %842 = vmatprep.subr.mxu0 %v197_v29  ;;  %878 = vmatpush3.msra.mxu1 %v288_v28 }
  0x2a   : > { %843 = vmatpush3.msra.mxu0 %v197_v29  ;;  %879 = vmatprep.subr.mxu1 %v287_v30 }
  0x2b   : > { %844 = vmatprep.subr.mxu0 %v196_v31  ;;  %880 = vmatpush3.msra.mxu1 %v287_v30 }
  0x2c   : > { %881 = vmatprep.mubr.f32.mxu1 %v194_v32  ;;  %845 = vmatpush3.msra.mxu0 %v196_v31 }
  0x2d   : > { %846 = vmatprep.mubr.f32.mxu0 %v194_v32  ;;  %882 = vmatmul.mubr.f32.vlgmr.msra.gmra.mxu1 %v195_v33 }
  0x2e   : > { %847 = vmatmul.mubr.f32.vlgmr.msra.gmra.mxu0 %v195_v33  ;;  %898 = vmatprep.subr.mxu1 %v597_v60 }
  0x2f   : > { %899 = vmatpush3.msra.mxu1 %v597_v60 }
  0x30   : > { %900 = vmatprep.subr.mxu1 %v596_v61 }
  0x31   : > { %901 = vmatpush3.msra.mxu1 %v596_v61 }
  0x32   : > { %902 = vmatprep.subr.mxu1 %v595_v62 }
  0x33   : > { %903 = vmatpush3.msra.mxu1 %v595_v62 }
  0x34   : > { %904 = vmatprep.subr.mxu1 %v594_v63 }
  0x35   : > { %905 = vmatpush3.msra.mxu1 %v594_v63 }
  0x36   : > { %906 = vmatprep.subr.mxu1 %v593_v0 }
  0x37   : > { %907 = vmatpush3.msra.mxu1 %v593_v0 }
  0x38   : > { %908 = vmatprep.subr.mxu1 %v592_v1 }
  0x39   : > { %909 = vmatpush3.msra.mxu1 %v592_v1 }
  0x3a   : > { %910 = vmatprep.subr.mxu1 %v591_v2 }
  0x3b   : > { %911 = vmatpush3.msra.mxu1 %v591_v2 }
  0x3c   : > { %912 = vmatprep.subr.mxu1 %v590_v3 }
  0x3d   : > { %913 = vmatpush3.msra.mxu1 %v590_v3 }
  0x3e   : > { %914 = vmatprep.subr.mxu1 %v589_v4 }
  0x3f   : > { %915 = vmatpush3.msra.mxu1 %v589_v4 }
  0x40   : > { %916 = vmatprep.subr.mxu1 %v588_v5 }
  0x41   : > { %917 = vmatpush3.msra.mxu1 %v588_v5 }
  0x42   : > { %918 = vmatprep.subr.mxu1 %v587_v6 }
  0x43   : > { %919 = vmatpush3.msra.mxu1 %v587_v6 }
  0x44   : > { %920 = vmatprep.subr.mxu1 %v586_v7 }
  0x45   : > { %921 = vmatpush3.msra.mxu1 %v586_v7 }
  0x46   : > { %922 = vmatprep.subr.mxu1 %v585_v8 }
  0x47   : > { %923 = vmatpush3.msra.mxu1 %v585_v8 }
  0x48   : > { %924 = vmatprep.subr.mxu1 %v584_v9 }
  0x49   : > { %925 = vmatpush3.msra.mxu1 %v584_v9 }
  0x4a   : > { %926 = vmatprep.subr.mxu1 %v583_v16 }
  0x4b   : > { %927 = vmatpush3.msra.mxu1 %v583_v16 }
  0x4c   : > { %928 = vmatprep.subr.mxu1 %v582_v17 }
  0x4d   : > { %929 = vmatpush3.msra.mxu1 %v582_v17 }
  0xed   : > { %v883_v34 = vpop.f32.mrf.mxu1 }
  0xee   : > { %v848_v35 = vpop.f32.mrf.mxu0  ;;  %vm385_vm0 = vcmp.gt.f32.partialorder %v883_v34, 0.0  ;;  %v387_v36 = vmul.f32 0.01, %v883_v34 }
  0xef   : > { %v369_v37 = vpop.f32.mrf.mxu1  ;;  %v381_v44 = vmul.f32 0.01, %v848_v35  ;;  %vm379_vm4 = vcmp.gt.f32.partialorder %v848_v35, 0.0 }
  0xf0   : > { %v278_v38 = vpop.f32.mrf.mxu0  ;;  %vm384_vm2 = vcmp.gt.f32.partialorder %v369_v37, 0.0  ;;  %v386_v39 = vmul.f32 0.01, %v369_v37  ;;  %v389_v41 = vsel %vm385_vm0, %v883_v34, %v387_v36 }
  0xf1   : > { %vm378_vm3 = vcmp.gt.f32.partialorder %v278_v38, 0.0  ;;  %v380_v40 = vmul.f32 0.01, %v278_v38  ;;  %884 = vmatprep.subr.msk.mxu0 %vm390_vm1, %v389_v41  ;;  %v383_v45 = vsel %vm379_vm4, %v848_v35, %v381_v44 }
  0xf2   : > { %v388_v42 = vsel %vm384_vm2, %v369_v37, %v386_v39  ;;  %885 = vmatpush3.xpose.msk.msra.mxu0 %vm390_vm1, %v389_v41 }
  0xf3   : > { %v382_v43 = vsel %vm378_vm3, %v278_v38, %v380_v40  ;;  %886 = vmatprep.subr.msk.mxu0 %vm390_vm1, %v388_v42 }
  0xf4   : > { %888 = vmatprep.mubr.msk.f32.mxu0 %vm390_vm1, %v382_v43 }
  0xf6   : > { %887 = vmatpush3.xpose.msk.msra.mxu0 %vm390_vm1, %v388_v42 }
  0xf7   : > { %891 = vmatprep.subr.mxu0 %v195_v33 }
  0xf9   : > { %889 = vmatmul.mubr.msk.f32.vlgmr.msra.gmra.mxu0 %vm390_vm1, %v383_v45 }
  0xfa   : > { %892 = vmatpush3.msra.mxu0 %v195_v33 }
  0xfb   : > { %893 = vmatprep.subr.mxu0 %v194_v32 }
  0xfc   : > { %894 = vmatpush3.msra.mxu0 %v194_v32 }
 0x1b9   : > { %v890_v46 = vpop.f32.mrf.mxu0 }
 0x1ba   : > { %v482_v49 = vsel %vm478_vm5, %v890_v46, -inf }
 0x1bb   : > { %v469_v47 = vpop.f32.mrf.mxu0 }
 0x1bc   : > { %v479_v48 = vsel %vm478_vm5, %v469_v47, -inf }
 0x1bd   : > { %480 = vmax.xlane.f32.xlu0 %v479_v48 }
 0x1c1   : > { %483 = vmax.xlane.f32.xlu0 %v482_v49 }
 0x246   : > { %v481_v50 = vpop.xlane.xlu0 %480 }
 0x247   : > { %v485_v51 = vsub.f32 %v469_v47, %v481_v50 }
 0x249   : > { %v487_v52 = vmul.f32 1.442695, %v485_v51 }
 0x24a   : > { %v484_v53 = vpop.xlane.xlu0 %483 }
 0x24b   : > { %941 = vpow2.f32 %v487_v52  ;;  %v486_v54 = vsub.f32 %v890_v46, %v484_v53 }
 0x24d   : > { %v489_v55 = vmul.f32 1.442695, %v486_v54 }
 0x24f   : > { %943 = vpow2.f32 %v489_v55 }
 0x258   : > { %v942_v56 = vpop.eup %941 }
 0x259   : > { %v491_v57 = vsel %vm478_vm5, %v942_v56, 0.0 }
 0x25a   : > { %492 = vadd.xlane.f32.xlu1 %v491_v57 }
 0x25c   : > { %v944_v58 = vpop.eup %943 }
 0x25d   : > { %v494_v59 = vsel %vm478_vm5, %v944_v58, 0.0 }
 0x25e   : > { %495 = vadd.xlane.f32.xlu1 %v494_v59 }
 0x2e3   : > { %v493_v10 = vpop.xlane.xlu1 %492 }
 0x2e4   : > { %945 = vrcp.f32 %v493_v10 }
 0x2e7   : > { %v496_v11 = vpop.xlane.xlu1 %495 }
 0x2e8   : > { %947 = vrcp.f32 %v496_v11 }
 0x2f1   : > { %v946_v12 = vpop.eup %945 }
 0x2f2   : > { %v499_v13 = vmul.f32 %v946_v12, %v942_v56 }
 0x2f4   : > { %895 = vmatprep.mubr.msk.f32.mxu0 %vm478_vm5, %v499_v13 }
 0x2f5   : > { %v948_v14 = vpop.eup %947 }
 0x2f6   : > { %v500_v15 = vmul.f32 %v948_v14, %v944_v58 }
 0x2f8   : > { %896 = vmatmul.mubr.msk.f32.vlgmr.msra.gmra.mxu0 %vm478_vm5, %v500_v15 }
 0x3b8   : > { %v897_v18 = vpop.f32.mrf.mxu0 }
 0x3ba   : > { %v573_v19 = vpop.f32.mrf.mxu0 }
 0x3bb   : > { %930 = vmatprep.mubr.f32.mxu1 %v573_v19 }
 0x3bc   : > { %931 = vmatmul.mubr.f32.vlgmr.msra.gmra.mxu1 %v897_v18 }
 0x47c   : > { %v932_v20 = vpop.f32.mrf.mxu1 }
 0x47d   : > { %v676_v21 = vmul.f32 0.01, %v932_v20  ;;  %vm674_vm6 = vcmp.gt.f32.partialorder %v932_v20, 0.0 }
 0x47e   : > { %v664_v22 = vpop.f32.mrf.mxu1 }
 0x47f   : > { %vm673_vm7 = vcmp.gt.f32.partialorder %v664_v22, 0.0  ;;  %v675_v23 = vmul.f32 0.01, %v664_v22  ;;  %v678_v24 = vsel %vm674_vm6, %v932_v20, %v676_v21 }
 0x481   : > { %v677_v25 = vsel %vm673_vm7, %v664_v22, %v675_v23 }
 0x482   : > { %v679_v26 = vadd.f32 %v678_v24, %v677_v25 }
 0x484   : > { %v680_v27 = vrot.slane %v679_v26, 4 }
 0x486   : > { %v681_v28 = vadd.f32 %v680_v27, %v679_v26 }
 0x488   : > { %v682_v29 = vrot.slane %v681_v28, 2 }
 0x48a   : > { %v683_v30 = vadd.f32 %v682_v29, %v681_v28 }
 0x48c   : > { %v684_v31 = vrot.slane %v683_v30, 1 }
 0x48e   : > { %v685_v32 = vadd.f32 %v684_v31, %v683_v30 }
 0x490   : > { %v687_v33 = vmul.f32 0.0625, %v685_v32 }
 0x492   : > { %688 = vst [vmem:[%s193_s23] sm:$0x1] %v687_v33 }
 0x493 PF: > { %s14_s15 = sadd.s32 1, %s955_s15  }
 0x494   : > { %p11_p4 = scmp.ge.s32.totalorder %s14_s15, 4  }
 0x496   :  { %13 = sbr.rel (!%p11_p4) target bundleno = 1 (0x1), region = 66 }

// kernel: forward.27
= control target key start
LH: loop header
LB: loop body
LE: loop exit
PB: predicated region body
PF: predicated region fallthrough
CT: control target
= control target key end

     0   :  { %v293_v0 = vmov 0.0   ;;  %vm66_vm0 = vcmask 261120   ;;  %vm294_vm1 = vmmov 0   ;;  %vm155_vm2 = vcmask 523264   ;;  %s471_s1 = inlined_call_operand.vmem [shape: f32[160,64], index: 1, kind: input, shape index: {}]   ;;  %s472_s0 = inlined_call_operand.vmem [shape: f32[2,160], index: 0, kind: input, shape index: {}]   ;;  %s473_s3 = inlined_call_operand.vmem [shape: f32[64,32], index: 3, kind: input, shape index: {}]   ;;  %s474_s2 = inlined_call_operand.vmem [shape: f32[1,64], index: 2, kind: input, shape index: {}]   ;;  %s475_s6 = inlined_call_operand.<no memory space> [shape: f32[1,1], index: 6, kind: input, shape index: {}]   ;;  %s476_s4 = inlined_call_operand.vmem [shape: f32[1,32], index: 4, kind: input, shape index: {}]   ;;  %s477_s5 = inlined_call_operand.vmem [shape: f32[1,32], index: 5, kind: input, shape index: {}]   ;;  %s478_s7 = inlined_call_operand.vmem [shape: f32[2,1], index: 7, kind: output, shape index: {}]  }
   0x1   :  { %69 = vmatprep.subr.mxu0 %v293_v0  ;;  %v44_v1 = vld [vmem:[%s471_s1 + $0x78] sm:$0xff]  ;;  %v43_v2 = vld [vmem:[%s471_s1 + $0x70] sm:$0xff]  ;;  %272 = vmatprep.subr.mxu1 %v293_v0  ;;  %v42_v3 = vld [vmem:[%s471_s1 + $0x68] sm:$0xff]  ;;  %v12_v36 = vstv %s475_s6  ;;  %vm238_vm3 = vcmask 254976   ;;  %vm250_vm4 = vcmask 1024  }
   0x2   :  { %70 = vmatpush1.msra.mxu0 %v44_v1  ;;  %v41_v4 = vld [vmem:[%s471_s1 + $0x60] sm:$0xff]  ;;  %v40_v5 = vld [vmem:[%s471_s1 + $0x58] sm:$0xff]  ;;  %v39_v9 = vld [vmem:[%s471_s1 + $0x50] sm:$0xff]  ;;  %288 = vmatprep.mubr.msk.f32.mxu1 %vm294_vm1, %v293_v0  ;;  %13 = vst [vmem:[#allocation2] sm:$0x1] %v12_v36 }
   0x3   :  { %71 = vmatprep.subr.mxu0 %v293_v0  ;;  %v358_v6 = vld.sshfl [vmem:[%s472_s0] sm:$0x33 pattern:$0x76325410]  ;;  %v147_v8 = vld [vmem:[%s473_s3 + $0x38] sm:$0xff]  ;;  %v146_v10 = vld [vmem:[%s473_s3 + $0x30] sm:$0xff] }
   0x4   :  { %72 = vmatpush1.msra.mxu0 %v43_v2  ;;  %v64_v7 = vcombine.high %v358_v6, %v358_v6  ;;  %273 = vmatpush3.msra.mxu1 %v147_v8  ;;  %v38_v11 = vld [vmem:[%s471_s1 + $0x48] sm:$0xff]  ;;  %v37_v13 = vld [vmem:[%s471_s1 + $0x40] sm:$0xff]  ;;  %v36_v15 = vld [vmem:[%s471_s1 + $0x38] sm:$0xff] }
   0x5   :  { %73 = vmatprep.subr.mxu0 %v293_v0  ;;  %274 = vmatprep.subr.mxu1 %v293_v0  ;;  %v145_v12 = vld [vmem:[%s473_s3 + $0x28] sm:$0xff]  ;;  %v144_v14 = vld [vmem:[%s473_s3 + $0x20] sm:$0xff]  ;;  %v143_v16 = vld [vmem:[%s473_s3 + $0x18] sm:$0xff] }
   0x6   :  { %74 = vmatpush1.msra.mxu0 %v42_v3  ;;  %258 = vmatprep.mubr.msk.f32.mxu0 %vm66_vm0, %v64_v7  ;;  %v35_v17 = vld [vmem:[%s471_s1 + $0x30] sm:$0xff]  ;;  %v34_v18 = vld [vmem:[%s471_s1 + $0x28] sm:$0xff]  ;;  %v33_v19 = vld [vmem:[%s471_s1 + $0x20] sm:$0xff] }
   0x7   :  { %75 = vmatprep.subr.mxu0 %v293_v0  ;;  %275 = vmatpush3.msra.mxu1 %v146_v10  ;;  %v32_v20 = vld [vmem:[%s471_s1 + $0x18] sm:$0xff]  ;;  %v31_v21 = vld [vmem:[%s471_s1 + $0x10] sm:$0xff]  ;;  %v30_v22 = vld [vmem:[%s471_s1 + $0x8] sm:$0xff] }
   0x8   :  { %76 = vmatpush1.msra.mxu0 %v41_v4  ;;  %276 = vmatprep.subr.mxu1 %v293_v0  ;;  %v29_v23 = vld [vmem:[%s471_s1] sm:$0xff]  ;;  %v48_v24 = vld [vmem:[%s471_s1 + $0x98] sm:$0xff]  ;;  %v47_v25 = vld [vmem:[%s471_s1 + $0x90] sm:$0xff] }
   0x9   :  { %77 = vmatprep.subr.mxu0 %v293_v0  ;;  %277 = vmatpush3.msra.mxu1 %v145_v12  ;;  %v46_v26 = vld [vmem:[%s471_s1 + $0x88] sm:$0xff]  ;;  %v45_v27 = vld [vmem:[%s471_s1 + $0x80] sm:$0xff]  ;;  %v142_v28 = vld [vmem:[%s473_s3 + $0x10] sm:$0xff] }
   0xa   :  { %78 = vmatpush1.msra.mxu0 %v40_v5  ;;  %278 = vmatprep.subr.mxu1 %v293_v0  ;;  %v141_v29 = vld [vmem:[%s473_s3 + $0x8] sm:$0xff]  ;;  %v140_v30 = vld [vmem:[%s473_s3] sm:$0xff] }
   0xb   :  { %79 = vmatprep.subr.mxu0 %v293_v0  ;;  %279 = vmatpush3.msra.mxu1 %v144_v14  ;;  %v256_v31 = vld [vmem:[%s474_s2] ss:$0 sm:$0xff] }
   0xc   :  { %80 = vmatpush1.msra.mxu0 %v39_v9  ;;  %280 = vmatprep.subr.mxu1 %v293_v0  ;;  %v259_v37 = vld [vmem:[%s476_s4] ss:$0 sm:$0xff] }
   0xd   :  { %81 = vmatprep.subr.mxu0 %v293_v0  ;;  %281 = vmatpush3.msra.mxu1 %v143_v16  ;;  %v261_v41 = vld [vmem:[%s477_s5] ss:$0 sm:$0xff] }
   0xe   :  { %82 = vmatpush1.msra.mxu0 %v38_v11  ;;  %282 = vmatprep.subr.mxu1 %v293_v0  ;;  %v262_v45 = vld [vmem:[#allocation2] ss:$0 sm:$0xff] }
   0xf   :  { %83 = vmatprep.subr.mxu0 %v293_v0  ;;  %283 = vmatpush3.msra.mxu1 %v142_v28 }
  0x10   :  { %84 = vmatpush1.msra.mxu0 %v37_v13  ;;  %284 = vmatprep.subr.mxu1 %v293_v0 }
  0x11   :  { %85 = vmatprep.subr.mxu0 %v293_v0  ;;  %285 = vmatpush3.msra.mxu1 %v141_v29 }
  0x12   :  { %86 = vmatpush1.msra.mxu0 %v36_v15  ;;  %286 = vmatprep.subr.mxu1 %v293_v0 }
  0x13   :  { %87 = vmatprep.subr.mxu0 %v293_v0  ;;  %287 = vmatpush3.msra.mxu1 %v140_v30 }
  0x14   :  { %88 = vmatpush1.msra.mxu0 %v35_v17 }
  0x15   :  { %89 = vmatprep.subr.mxu0 %v293_v0 }
  0x16   :  { %90 = vmatpush1.msra.mxu0 %v34_v18 }
  0x17   :  { %91 = vmatprep.subr.mxu0 %v293_v0 }
  0x18   :  { %92 = vmatpush1.msra.mxu0 %v33_v19 }
  0x19   :  { %93 = vmatprep.subr.mxu0 %v293_v0 }
  0x1a   :  { %94 = vmatpush1.msra.mxu0 %v32_v20 }
  0x1b   :  { %95 = vmatprep.subr.mxu0 %v293_v0 }
  0x1c   :  { %96 = vmatpush1.msra.mxu0 %v31_v21 }
  0x1d   :  { %97 = vmatprep.subr.mxu0 %v293_v0 }
  0x1e   :  { %98 = vmatpush1.msra.mxu0 %v30_v22 }
  0x1f   :  { %99 = vmatprep.subr.mxu0 %v293_v0 }
  0x20   :  { %100 = vmatpush1.msra.mxu0 %v29_v23 }
  0x21   :  { %125 = vmatprep.subr.mxu0 %v293_v0 }
  0x22   :  { %126 = vmatpush2.msra.mxu0 %v48_v24 }
  0x23   :  { %127 = vmatprep.subr.mxu0 %v293_v0 }
  0x24   :  { %128 = vmatpush2.msra.mxu0 %v47_v25 }
  0x25   :  { %129 = vmatprep.subr.mxu0 %v293_v0 }
  0x26   :  { %130 = vmatpush2.msra.mxu0 %v46_v26 }
  0x27   :  { %131 = vmatprep.subr.mxu0 %v293_v0 }
  0x28   :  { %132 = vmatpush2.msra.mxu0 %v45_v27 }
  0x29   :  { %134 = vmatmul.mubr.f32.vlgmr.msra.gmra.mxu0 %v358_v6 }
  0xe9   :  { %v135_v32 = vpop.f32.mrf.mxu0 }
  0xea   :  { %v136_v33 = vadd.f32 %v256_v31, %v135_v32 }
  0xeb   :  { %v137_v34 = vpop.f32.mrf.mxu0 }
  0xec   :  { %v139_v35 = vmax.f32 %v136_v33, 0.0 }
  0xee   :  { %289 = vmatmul.mubr.msk.f32.vlgmr.msra.gmra.mxu1 %vm155_vm2, %v139_v35 }
 0x1ae   :  { %v225_v38 = vpop.f32.mrf.mxu1 }
 0x1af   :  { %v226_v39 = vadd.f32 %v259_v37, %v225_v38 }
 0x1b0   :  { %v290_v40 = vpop.f32.mrf.mxu1 }
 0x1b1   :  { %v229_v42 = vmax.f32 %v226_v39, 0.0 }
 0x1b3   :  { %v237_v43 = vmul.f32 %v261_v41, %v229_v42 }
 0x1b5   :  { %v239_v44 = vsel %vm238_vm3, %v237_v43, 0.0 }
 0x1b6   :  { %240 = vadd.xlane.f32.xlu0 %v239_v44 }
 0x23f   :  { %v241_v46 = vpop.xlane.xlu0 %240 }
 0x240   :  { %v249_v47 = vadd.f32 %v262_v45, %v241_v46 }
 0x242   :  { %251 = vst.msk [vmem:[%s478_s7] sm:$0x3] %vm250_vm4, %v249_v47 }

// kernel: forward.26
= control target key start
LH: loop header
LB: loop body
LE: loop exit
PB: predicated region body
PF: predicated region fallthrough
CT: control target
= control target key end

     0   :  { %v331_v1 = vmov 0.0   ;;  %vm332_vm0 = vmmov 0   ;;  %s438_s0 = inlined_call_operand.vmem [shape: f32[2,128], index: 0, kind: input, shape index: {}]   ;;  %s439_s1 = inlined_call_operand.vmem [shape: f32[128,32], index: 1, kind: input, shape index: {}]   ;;  %s440_s2 = inlined_call_operand.vmem [shape: f32[1,32], index: 2, kind: input, shape index: {}]   ;;  %s441_s3 = inlined_call_operand.vmem [shape: f32[32,48], index: 3, kind: input, shape index: {}]   ;;  %s442_s4 = inlined_call_operand.vmem [shape: f32[1,48], index: 4, kind: input, shape index: {}]   ;;  %s443_s5 = inlined_call_operand.hbm [shape: f32[2,48], index: 5, kind: output, shape index: {}]  }
   0x1   :  { %v37_v0 = vld [vmem:[%s439_s1 + $0x78] sm:$0xff]  ;;  %256 = vmatprep.subr.mxu0 %v331_v1  ;;  %v36_v2 = vld [vmem:[%s439_s1 + $0x70] sm:$0xff]  ;;  %288 = vmatprep.mubr.msk.f32.mxu0 %vm332_vm0, %v331_v1  ;;  %v35_v3 = vld [vmem:[%s439_s1 + $0x68] sm:$0xff] }
   0x2   :  { %257 = vmatpush3.msra.mxu0 %v37_v0  ;;  %291 = vmatprep.subr.mxu1 %v331_v1  ;;  %v34_v4 = vld [vmem:[%s439_s1 + $0x60] sm:$0xff]  ;;  %v119_v5 = vld [vmem:[%s441_s3 + $0x18] sm:$0xff] }
   0x3   :  { %258 = vmatprep.subr.mxu0 %v331_v1  ;;  %299 = vmatprep.mubr.msk.f32.mxu1 %vm332_vm0, %v331_v1 }
   0x4   :  { %259 = vmatpush3.msra.mxu0 %v36_v2  ;;  %292 = vmatpush3.msra.mxu1 %v119_v5 }
   0x5   :  { %260 = vmatprep.subr.mxu0 %v331_v1 }
   0x6   :  { %261 = vmatpush3.msra.mxu0 %v35_v3 }
   0x7   :  { %10 = vsyncpa [#allocation3], 0  ;;  %262 = vmatprep.subr.mxu0 %v331_v1  ;;  %v33_v6 = vld [vmem:[%s439_s1 + $0x58] sm:$0xff]  ;;  %293 = vmatprep.subr.mxu1 %v331_v1  ;;  %v32_v7 = vld [vmem:[%s439_s1 + $0x50] sm:$0xff]  ;;  %vm127_vm1 = vcmask 261120   ;;  %vm202_vm2 = vcmask 386048  }
   0x8   :  { %263 = vmatpush3.msra.mxu0 %v34_v4  ;;  %v31_v8 = vld [vmem:[%s439_s1 + $0x48] sm:$0xff]  ;;  %v30_v9 = vld [vmem:[%s439_s1 + $0x40] sm:$0xff]  ;;  %v29_v10 = vld [vmem:[%s439_s1 + $0x38] sm:$0xff] }
   0x9   :  { %264 = vmatprep.subr.mxu0 %v331_v1  ;;  %v28_v11 = vld [vmem:[%s439_s1 + $0x30] sm:$0xff]  ;;  %v27_v12 = vld [vmem:[%s439_s1 + $0x28] sm:$0xff]  ;;  %v26_v13 = vld [vmem:[%s439_s1 + $0x20] sm:$0xff] }
   0xa   :  { %265 = vmatpush3.msra.mxu0 %v33_v6  ;;  %v25_v14 = vld [vmem:[%s439_s1 + $0x18] sm:$0xff]  ;;  %v24_v15 = vld [vmem:[%s439_s1 + $0x10] sm:$0xff]  ;;  %v23_v16 = vld [vmem:[%s439_s1 + $0x8] sm:$0xff] }
   0xb   :  { %266 = vmatprep.subr.mxu0 %v331_v1  ;;  %v22_v17 = vld [vmem:[%s439_s1] sm:$0xff]  ;;  %v118_v19 = vld [vmem:[%s441_s3 + $0x10] sm:$0xff]  ;;  %v117_v20 = vld [vmem:[%s441_s3 + $0x8] sm:$0xff] }
   0xc   :  { %267 = vmatpush3.msra.mxu0 %v32_v7  ;;  %v21_v18 = vld [vmem:[%s438_s0] sm:$0x3]  ;;  %294 = vmatpush3.msra.mxu1 %v118_v19 }
   0xd   :  { %268 = vmatprep.subr.mxu0 %v331_v1  ;;  %295 = vmatprep.subr.mxu1 %v331_v1  ;;  %v116_v21 = vld [vmem:[%s441_s3] sm:$0xff] }
   0xe   :  { %269 = vmatpush3.msra.mxu0 %v31_v8  ;;  %296 = vmatpush3.msra.mxu1 %v117_v20  ;;  %v231_v22 = vld [vmem:[%s440_s2] ss:$0 sm:$0xff]  ;;  %s333_s2 = smov [#allocation2]  }
   0xf   :  { %270 = vmatprep.subr.mxu0 %v331_v1  ;;  %297 = vmatprep.subr.mxu1 %v331_v1  ;;  %v232_v27 = vld [vmem:[%s442_s4] ss:$0 sm:$0xff]  ;;  %s223_s3 = sshll.u32 %s333_s2, 4  ;;  %s224_s3 = int_to_ptr.vmem [resolvable:$true] %s223_s3 }
  0x10   :  { %271 = vmatpush3.msra.mxu0 %v30_v9  ;;  %298 = vmatpush3.msra.mxu1 %v116_v21  ;;  %s309_s4 = scalar_lea.vmem %s224_s3, 32  ;;  %p314_p1 = scmp.lt.s32.totalorder %s224_s3, %s224_s3 }
  0x11   :  { %272 = vmatprep.subr.mxu0 %v331_v1  ;;  %p310_p0 = scmp.ne.s32.totalorder %s224_s3, %s309_s4  ;;  %p315_p2 = scmp.lt.s32.totalorder %s309_s4, %s309_s4 }
  0x12   :  { %273 = vmatpush3.msra.mxu0 %v29_v10 }
  0x13   :  { %274 = vmatprep.subr.mxu0 %v331_v1  ;;  %p316_p3 = por %p315_p2, %p314_p1 }
  0x14   :  { %275 = vmatpush3.msra.mxu0 %v28_v11 }
  0x15   :  { %276 = vmatprep.subr.mxu0 %v331_v1  ;;  %p317_p4 = pnand %p316_p3, %p310_p0 }
  0x16   :  { %277 = vmatpush3.msra.mxu0 %v27_v12 }
  0x17   :  { %278 = vmatprep.subr.mxu0 %v331_v1 }
  0x18   :  { %279 = vmatpush3.msra.mxu0 %v26_v13 }
  0x19   :  { %280 = vmatprep.subr.mxu0 %v331_v1 }
  0x1a   :  { %281 = vmatpush3.msra.mxu0 %v25_v14 }
  0x1b   :  { %282 = vmatprep.subr.mxu0 %v331_v1 }
  0x1c   :  { %283 = vmatpush3.msra.mxu0 %v24_v15 }
  0x1d   :  { %284 = vmatprep.subr.mxu0 %v331_v1 }
  0x1e   :  { %285 = vmatpush3.msra.mxu0 %v23_v16 }
  0x1f   :  { %286 = vmatprep.subr.mxu0 %v331_v1 }
  0x20   :  { %287 = vmatpush3.msra.mxu0 %v22_v17 }
  0x21   :  { %289 = vmatmul.mubr.f32.vlgmr.msra.gmra.mxu0 %v21_v18 }
  0xe1   :  { %v111_v23 = vpop.f32.mrf.mxu0 }
  0xe2   :  { %v112_v24 = vadd.f32 %v231_v22, %v111_v23 }
  0xe3   :  { %v290_v25 = vpop.f32.mrf.mxu0 }
  0xe4   :  { %v115_v26 = vmax.f32 %v112_v24, 0.0 }
  0xe6   :  { %300 = vmatmul.mubr.msk.f32.vlgmr.msra.gmra.mxu1 %vm127_vm1, %v115_v26 }
 0x1a6   :  { %v197_v28 = vpop.f32.mrf.mxu1 }
 0x1a7   :  { %v198_v29 = vadd.f32 %v232_v27, %v197_v28 }
 0x1a8   :  { %v301_v30 = vpop.f32.mrf.mxu1 }
 0x1a9   :  { %v201_v31 = vmul.f32 %v198_v29, %v198_v29 }
 0x1ab   :  { %v203_v32 = vsel %vm202_vm2, %v201_v31, 0.0 }
 0x1ac   :  { %204 = vadd.xlane.f32.xlu0 %v203_v32 }
 0x235   :  { %v205_v33 = vpop.xlane.xlu0 %204 }
 0x236   :  { %305 = vrsqrt.f32 %v205_v33  ;;  %vm208_vm3 = vcmp.eq.f32.partialorder %v205_v33, inf  ;;  %v211_v36 = vand.u32 2147483648, %v205_v33  ;;  %vm210_vm4 = vcmp.eq.f32.partialorder %v205_v33, 0.0 }
 0x243   :  { %v306_v34 = vpop.eup %305 }
 0x244   :  { %v207_v35 = vmul.f32 %v306_v34, %v205_v33 }
 0x246   :  { %v209_v37 = vsel %vm208_vm3, %v205_v33, %v207_v35 }
 0x247   :  { %v212_v38 = vsel %vm210_vm4, %v211_v36, %v209_v37 }
 0x248   :  { %v213_v39 = vmax.f32 %v212_v38, 1e-12 }
 0x24a   :  { %307 = vrcp.f32 %v213_v39 }
 0x257   :  { %v308_v40 = vpop.eup %307 }
 0x258   :  { %v215_v41 = vmul.f32 %v308_v40, %v198_v29 }
 0x25a   :  { %216 = vst.msk [vmem:[#allocation2] sm:$0x3] %vm202_vm2, %v215_v41 }
 0x25b   :  { %320 = shalt.err (!%p317_p4)
}
 0x25c   :  { %226 = dma.vmem_to_hbm [thread:$0]  %s224_s3, 32, %s443_s5, [#allocation3]  }
 0x25d   :  { %329 = dma.done.wait [#allocation3], 32  }
 0x25e   :  { %330 = vsyncadd [#allocation3], 4294967264 }
 0x25f   :  { %230 = vsyncpa [#allocation3], 1 }

// kernel: forward.25
= control target key start
LH: loop header
LB: loop body
LE: loop exit
PB: predicated region body
PF: predicated region fallthrough
CT: control target
= control target key end

     0   :  { %v304_v1 = vmov 0.0   ;;  %vm305_vm0 = vmmov 0   ;;  %s387_s0 = inlined_call_operand.vmem [shape: f32[2,64], index: 0, kind: input, shape index: {}]   ;;  %s388_s1 = inlined_call_operand.vmem [shape: f32[64,32], index: 1, kind: input, shape index: {}]   ;;  %s389_s2 = inlined_call_operand.vmem [shape: f32[1,32], index: 2, kind: input, shape index: {}]   ;;  %s390_s3 = inlined_call_operand.vmem [shape: f32[32,48], index: 3, kind: input, shape index: {}]   ;;  %s391_s4 = inlined_call_operand.vmem [shape: f32[1,48], index: 4, kind: input, shape index: {}]   ;;  %s392_s5 = inlined_call_operand.hbm [shape: f32[2,48], index: 5, kind: output, shape index: {}]  }
   0x1   :  { %v29_v0 = vld [vmem:[%s388_s1 + $0x38] sm:$0xff]  ;;  %245 = vmatprep.subr.mxu0 %v304_v1  ;;  %v28_v2 = vld [vmem:[%s388_s1 + $0x30] sm:$0xff]  ;;  %261 = vmatprep.mubr.msk.f32.mxu0 %vm305_vm0, %v304_v1  ;;  %v27_v3 = vld [vmem:[%s388_s1 + $0x28] sm:$0xff] }
   0x2   :  { %246 = vmatpush3.msra.mxu0 %v29_v0  ;;  %264 = vmatprep.subr.mxu1 %v304_v1  ;;  %v115_v4 = vld [vmem:[%s390_s3 + $0x18] sm:$0xff] }
   0x3   :  { %247 = vmatprep.subr.mxu0 %v304_v1  ;;  %272 = vmatprep.mubr.msk.f32.mxu1 %vm305_vm0, %v304_v1 }
   0x4   :  { %10 = vsyncpa [#allocation3], 0  ;;  %248 = vmatpush3.msra.mxu0 %v28_v2  ;;  %265 = vmatpush3.msra.mxu1 %v115_v4  ;;  %v26_v5 = vld [vmem:[%s388_s1 + $0x20] sm:$0xff]  ;;  %v25_v6 = vld [vmem:[%s388_s1 + $0x18] sm:$0xff]  ;;  %vm37_vm1 = vcmask 523264   ;;  %vm123_vm2 = vcmask 261120  }
   0x5   :  { %249 = vmatprep.subr.mxu0 %v304_v1  ;;  %266 = vmatprep.subr.mxu1 %v304_v1  ;;  %v24_v7 = vld [vmem:[%s388_s1 + $0x10] sm:$0xff]  ;;  %v23_v8 = vld [vmem:[%s388_s1 + $0x8] sm:$0xff]  ;;  %v22_v9 = vld [vmem:[%s388_s1] sm:$0xff]  ;;  %vm198_vm3 = vcmask 386048  }
   0x6   :  { %250 = vmatpush3.msra.mxu0 %v27_v3  ;;  %v21_v10 = vld [vmem:[%s387_s0] sm:$0x3]  ;;  %v114_v11 = vld [vmem:[%s390_s3 + $0x10] sm:$0xff]  ;;  %v113_v12 = vld [vmem:[%s390_s3 + $0x8] sm:$0xff] }
   0x7   :  { %251 = vmatprep.subr.mxu0 %v304_v1  ;;  %267 = vmatpush3.msra.mxu1 %v114_v11  ;;  %v112_v13 = vld [vmem:[%s390_s3] sm:$0xff] }
   0x8   :  { %252 = vmatpush3.msra.mxu0 %v26_v5  ;;  %268 = vmatprep.subr.mxu1 %v304_v1  ;;  %v227_v14 = vld [vmem:[%s389_s2] ss:$0 sm:$0xff]  ;;  %s306_s2 = smov [#allocation2]  }
   0x9   :  { %253 = vmatprep.subr.mxu0 %v304_v1  ;;  %269 = vmatpush3.msra.mxu1 %v113_v12  ;;  %v229_v19 = vld [vmem:[%s391_s4] ss:$0 sm:$0xff]  ;;  %s219_s3 = sshll.u32 %s306_s2, 4  ;;  %s220_s3 = int_to_ptr.vmem [resolvable:$true] %s219_s3 }
   0xa   :  { %254 = vmatpush3.msra.mxu0 %v25_v6  ;;  %270 = vmatprep.subr.mxu1 %v304_v1  ;;  %s282_s4 = scalar_lea.vmem %s220_s3, 32  ;;  %p287_p1 = scmp.lt.s32.totalorder %s220_s3, %s220_s3 }
   0xb   :  { %255 = vmatprep.subr.mxu0 %v304_v1  ;;  %271 = vmatpush3.msra.mxu1 %v112_v13  ;;  %p283_p0 = scmp.ne.s32.totalorder %s220_s3, %s282_s4  ;;  %p288_p2 = scmp.lt.s32.totalorder %s282_s4, %s282_s4 }
   0xc   :  { %256 = vmatpush3.msra.mxu0 %v24_v7 }
   0xd   :  { %257 = vmatprep.subr.mxu0 %v304_v1  ;;  %p289_p3 = por %p288_p2, %p287_p1 }
   0xe   :  { %258 = vmatpush3.msra.mxu0 %v23_v8 }
   0xf   :  { %259 = vmatprep.subr.mxu0 %v304_v1  ;;  %p290_p4 = pnand %p289_p3, %p283_p0 }
  0x10   :  { %260 = vmatpush3.msra.mxu0 %v22_v9 }
  0x11   :  { %262 = vmatmul.mubr.msk.f32.vlgmr.msra.gmra.mxu0 %vm37_vm1, %v21_v10 }
  0xd1   :  { %v107_v15 = vpop.f32.mrf.mxu0 }
  0xd2   :  { %v108_v16 = vadd.f32 %v227_v14, %v107_v15 }
  0xd3   :  { %v263_v17 = vpop.f32.mrf.mxu0 }
  0xd4   :  { %v111_v18 = vmax.f32 %v108_v16, 0.0 }
  0xd6   :  { %273 = vmatmul.mubr.msk.f32.vlgmr.msra.gmra.mxu1 %vm123_vm2, %v111_v18 }
 0x196   :  { %v193_v20 = vpop.f32.mrf.mxu1 }
 0x197   :  { %v194_v21 = vadd.f32 %v229_v19, %v193_v20 }
 0x198   :  { %v274_v22 = vpop.f32.mrf.mxu1 }
 0x199   :  { %v197_v23 = vmul.f32 %v194_v21, %v194_v21 }
 0x19b   :  { %v199_v24 = vsel %vm198_vm3, %v197_v23, 0.0 }
 0x19c   :  { %200 = vadd.xlane.f32.xlu0 %v199_v24 }
 0x225   :  { %v201_v25 = vpop.xlane.xlu0 %200 }
 0x226   :  { %278 = vrsqrt.f32 %v201_v25  ;;  %vm204_vm4 = vcmp.eq.f32.partialorder %v201_v25, inf  ;;  %v207_v28 = vand.u32 2147483648, %v201_v25  ;;  %vm206_vm5 = vcmp.eq.f32.partialorder %v201_v25, 0.0 }
 0x233   :  { %v279_v26 = vpop.eup %278 }
 0x234   :  { %v203_v27 = vmul.f32 %v279_v26, %v201_v25 }
 0x236   :  { %v205_v29 = vsel %vm204_vm4, %v201_v25, %v203_v27 }
 0x237   :  { %v208_v30 = vsel %vm206_vm5, %v207_v28, %v205_v29 }
 0x238   :  { %v209_v31 = vmax.f32 %v208_v30, 1e-12 }
 0x23a   :  { %280 = vrcp.f32 %v209_v31 }
 0x247   :  { %v281_v32 = vpop.eup %280 }
 0x248   :  { %v211_v33 = vmul.f32 %v281_v32, %v194_v21 }
 0x24a   :  { %212 = vst.msk [vmem:[#allocation2] sm:$0x3] %vm198_vm3, %v211_v33 }
 0x24b   :  { %293 = shalt.err (!%p290_p4)
}
 0x24c   :  { %222 = dma.vmem_to_hbm [thread:$0]  %s220_s3, 32, %s392_s5, [#allocation3]  }
 0x24d   :  { %302 = dma.done.wait [#allocation3], 32  }
 0x24e   :  { %303 = vsyncadd [#allocation3], 4294967264 }
 0x24f   :  { %226 = vsyncpa [#allocation3], 1 }

</bundles_post_ra>
